<compile_context>
chip_gen: v7x
topology: tpu7x:2x2x1
jax: 0.10.0
libtpu: 0.0.40
codegen_flags: <defaults>
</compile_context>

<pallas_src>
import functools
import math

import jax
import jax.numpy as jnp
from jax.experimental import pallas as pl
from jax.experimental.pallas import tpu as pltpu


# Layers whose (padded) weight has fewer elements than this skip the Pallas
# kernel and use a plain jnp.dot: a pallas_call launch + pipeline prologue
# costs far more than a few-KB matmul.
DEFAULT_MIN_PALLAS_WEIGHT_ELEMS = 256 * 1024
# Budget for a single weight tile (one buffer of the double-buffer), bytes.
MAX_WEIGHT_TILE_BYTES = 8 * 1024 * 1024
# Budget for the resident full-K activation block, bytes.
MAX_ACT_TILE_BYTES = 4 * 1024 * 1024
# Explicit scoped-VMEM limit: worst case here is ~18 MB (2x8 MB weight bufs +
# resident activation + output/acc), safe on v5e/v6e (128 MB) and v7x (64 MB).
VMEM_LIMIT_BYTES = 32 * 1024 * 1024


def _round_up(x, m):
    return ((x + m - 1) // m) * m


def _pad_feature_dim(d):
    # Big dims pad to a multiple of 512, small dims to 256.  Rule is per-dim,
    # so consecutive layers agree on the shared (padded) dimension.
    return _round_up(d, 512) if d >= 4096 else _round_up(d, 256)


def _divs_of_128(n):
    """Divisors of n that are multiples of 128, descending."""
    return [d for d in range(128, n + 1, 128) if n % d == 0][::-1]


def _pick_batch_tile(mp, kp):
    # Largest batch tile whose resident full-K activation block fits budget.
    for c in (256, 128, 64, 32, 16, 8):
        if mp % c == 0 and c * kp * 4 <= MAX_ACT_TILE_BYTES:
            return c
    return 8


def _pick_tiles(kp, np_, w_bytes):
    """Choose (tk, tn) dividing the padded dims, under the weight-tile budget."""
    tn_all = _divs_of_128(np_)
    # Prefer >= 2 blocks along N so the 'parallel' j axis can shard across
    # TensorCores (v7x megacore); fall back to one block for small N.
    cands = [d for d in tn_all if np_ // d >= 2] or tn_all
    # Keep enough budget that K can get at least a 256-deep tile.
    tn_ok = [d for d in cands if d * 256 * w_bytes <= MAX_WEIGHT_TILE_BYTES]
    tn = tn_ok[0] if tn_ok else cands[-1]
    # K tile: biggest divisor that keeps one weight tile under the budget.
    tk_all = _divs_of_128(kp)
    tk = tk_all[-1]
    for d in tk_all:
        if d * tn * w_bytes <= MAX_WEIGHT_TILE_BYTES:
            tk = d
            break
    return tk, tn


# ----------------------------------------------------------------------------
# Pallas kernel: tiled Linear (+ optional fused ReLU), f32 accumulation
# ----------------------------------------------------------------------------
def _linear_kernel(x_ref, w_ref, b_ref, o_ref, acc_ref, *, tk, apply_relu):
    k = pl.program_id(2)

    @pl.when(k == 0)
    def _():
        acc_ref[...] = jnp.zeros_like(acc_ref)

    # x is resident with its full K extent; slice out the current K tile.
    x_blk = x_ref[:, pl.ds(pl.multiple_of(k * tk, tk), tk)]
    acc_ref[...] += jnp.dot(
        x_blk.astype(w_ref.dtype),        # bf16 x bf16 -> f32 on the MXU
        w_ref[...],
        preferred_element_type=jnp.float32,
    )

    @pl.when(k == pl.num_programs(2) - 1)
    def _():
        y = acc_ref[...] + b_ref[...]     # b_ref is (1, tn), broadcasts rows
        if apply_relu:
            y = jnp.maximum(y, 0.0)
        o_ref[...] = y.astype(o_ref.dtype)


def pallas_linear_padded(x, w, b, *, apply_relu):
    """y = x @ w + b (optionally ReLU).  All arrays are pre-padded:
    x: (Mp, Kp) f32, w: (Kp, Np) bf16 (or f32), b: (1, Np) f32."""
    mp, kp = x.shape
    kw, np_ = w.shape
    assert kp == kw and b.shape == (1, np_)

    tm = _pick_batch_tile(mp, kp)
    tk, tn = _pick_tiles(kp, np_, jnp.dtype(w.dtype).itemsize)
    grid = (mp // tm, np_ // tn, kp // tk)

    return pl.pallas_call(
        functools.partial(_linear_kernel, tk=tk, apply_relu=apply_relu),
        out_shape=jax.ShapeDtypeStruct((mp, np_), jnp.float32),
        grid_spec=pltpu.PrefetchScalarGridSpec(
            num_scalar_prefetch=0,
            grid=grid,
            in_specs=[
                # full-K activation block: stays resident across j/k steps
                pl.BlockSpec((tm, kp), lambda i, j, k: (i, 0)),
                pl.BlockSpec((tk, tn), lambda i, j, k: (k, j)),   # weight tile
                pl.BlockSpec((1, tn), lambda i, j, k: (0, j)),    # bias tile
            ],
            out_specs=pl.BlockSpec((tm, tn), lambda i, j, k: (i, j)),
            scratch_shapes=[pltpu.VMEM((tm, tn), jnp.float32)],
        ),
        compiler_params=pltpu.CompilerParams(
            dimension_semantics=("parallel", "parallel", "arbitrary"),
            vmem_limit_bytes=VMEM_LIMIT_BYTES,
        ),
    )(x, w, b)


# ----------------------------------------------------------------------------
# AutoEncoderMLP: parameter init (pre-padded) + forward
# ----------------------------------------------------------------------------
def init_mlp_params(key, layers, weight_dtype=jnp.bfloat16):
    """PyTorch nn.Linear default init, stored pre-padded to the tile grid.

    Weights are stored as (in, out) so the kernel computes x @ W
    (== x @ W_pt.T), zero-padded to (Kp, Np); biases as (1, Np) f32.
    """
    params = []
    for i in range(len(layers) - 1):
        fan_in, fan_out = layers[i], layers[i + 1]
        kp, np_ = _pad_feature_dim(fan_in), _pad_feature_dim(fan_out)
        key, k_w, k_b = jax.random.split(key, 3)
        bound = 1.0 / math.sqrt(fan_in)
        w = jax.random.uniform(k_w, (fan_in, fan_out), jnp.float32, -bound, bound)
        b = jax.random.uniform(k_b, (fan_out,), jnp.float32, -bound, bound)
        wp = jnp.zeros((kp, np_), weight_dtype).at[:fan_in, :fan_out].set(
            w.astype(weight_dtype))
        bp = jnp.zeros((1, np_), jnp.float32).at[0, :fan_out].set(b)
        params.append({"w": wp, "b": bp, "out_dim": fan_out})
    return key, params


def mlp_forward(params, x, *,
                min_pallas_weight_elems=DEFAULT_MIN_PALLAS_WEIGHT_ELEMS):
    n = len(params)
    for i, p in enumerate(params):
        apply_relu = i < n - 1   # ReLU between layers, identity after the last
        w, b = p["w"], p["b"]
        if w.size < min_pallas_weight_elems:
            # Tiny layer: pallas_call launch overhead > the matmul itself.
            y = jnp.dot(x.astype(w.dtype), w,
                        preferred_element_type=jnp.float32) + b
            x = jnp.maximum(y, 0.0) if apply_relu else y
        else:
            x = pallas_linear_padded(x, w, b, apply_relu=apply_relu)
    return x


def autoencoder_forward(enc_params, dec_params, x, *,
                        min_pallas_weight_elems=DEFAULT_MIN_PALLAS_WEIGHT_ELEMS):
    m, f = x.shape
    mp = _round_up(m, 8)
    kp0 = enc_params[0]["w"].shape[0]
    # Only the (tiny) activation is padded per call; weights are pre-padded.
    xp = jnp.zeros((mp, kp0), jnp.float32).at[:m, :f].set(x)
    h = mlp_forward(enc_params, xp,
                    min_pallas_weight_elems=min_pallas_weight_elems)
    y = mlp_forward(dec_params, h,
                    min_pallas_weight_elems=min_pallas_weight_elems)
    return y[:m, :dec_params[-1]["out_dim"]]


# Pure-JAX/XLA reference (same bf16 weight/activation quantization).
def _ref_forward(enc_params, dec_params, x):
    m, f = x.shape
    mp = _round_up(m, 8)
    kp0 = enc_params[0]["w"].shape[0]
    h = jnp.zeros((mp, kp0), jnp.float32).at[:m, :f].set(x)

    def run_mlp(params, h):
        n = len(params)
        for i, p in enumerate(params):
            h = jnp.dot(h.astype(p["w"].dtype), p["w"],
                        preferred_element_type=jnp.float32) + p["b"]
            if i < n - 1:
                h = jnp.maximum(h, 0.0)
        return h

    y = run_mlp(dec_params, run_mlp(enc_params, h))
    return y[:m, :dec_params[-1]["out_dim"]]


if __name__ == "__main__":
    # Small, structure-preserving stand-in for the original
    # [112*192, 4800, 1280, 128, 10] encoder and its mirrored decoder.
    encoder_layers = [3072, 512, 128, 16]
    decoder_layers = [16, 128, 512, 3072]
    batch = 4

    key = jax.random.PRNGKey(0)
    key, enc_params = init_mlp_params(key, encoder_layers)
    key, dec_params = init_mlp_params(key, decoder_layers)

    key, kx = jax.random.split(key)
    x = jax.random.normal(kx, (batch, encoder_layers[0]), jnp.float32)

    # Threshold chosen so the big layers use the Pallas kernel and the
    # bottleneck layers exercise the jnp.dot fallback path.
    fwd = jax.jit(functools.partial(
        autoencoder_forward, enc_params, dec_params,
        min_pallas_weight_elems=100_000))

    y = jax.block_until_ready(fwd(x))

    y_ref = _ref_forward(enc_params, dec_params, x)
    assert y.shape == (batch, decoder_layers[-1])
    rel_err = float(jnp.max(jnp.abs(y - y_ref)) /
                    (jnp.max(jnp.abs(y_ref)) + 1e-6))
    assert rel_err < 2e-2, f"mismatch vs reference: rel_err={rel_err}"

    print("KERNEL_OK")
</pallas_src>

<mosaic_0001>
module attributes {stable_mosaic.version = 11 : i64} {
  func.func @_linear_kernel(%arg0: i32, %arg1: i32, %arg2: i32, %arg3: memref<8x3072xf32, #tpu.memory_space<vmem>>, %arg4: memref<3072x256xbf16, #tpu.memory_space<vmem>>, %arg5: memref<1x256xf32, #tpu.memory_space<vmem>>, %arg6: memref<8x256xf32, #tpu.memory_space<vmem>>, %arg7: memref<8x256xf32, #tpu.memory_space<vmem>>) attributes {dimension_semantics = [#tpu.dimension_semantics<parallel>, #tpu.dimension_semantics<parallel>, #tpu.dimension_semantics<arbitrary>], iteration_bounds = array<i64: 1, 2, 1>, scalar_prefetch = 0 : i64, scratch_operands = 1 : i64, tpu.core_type = #tpu.core_type<tc>, window_params = [{transform_indices = @transform_0, window_bounds = array<i64: 8, 3072>}, {transform_indices = @transform_1, window_bounds = array<i64: 3072, 256>}, {transform_indices = @transform_2, window_bounds = array<i64: 1, 256>}, {transform_indices = @transform_3, window_bounds = array<i64: 8, 256>}]} {
    %c0_i32 = arith.constant 0 : i32
    %0 = arith.cmpi eq, %arg2, %c0_i32 : i32
    %1 = arith.extui %0 : i1 to i32
    %c0_i32_0 = arith.constant 0 : i32
    %2 = arith.cmpi ne, %1, %c0_i32_0 : i32
    scf.if %2 {
      %cst_9 = arith.constant 0.000000e+00 : f32
      %16 = vector.broadcast %cst_9 : f32 to vector<8x256xf32>
      %c0_10 = arith.constant 0 : index
      %c0_11 = arith.constant 0 : index
      %17 = vector.load %arg7[%c0_10, %c0_11] : memref<8x256xf32, #tpu.memory_space<vmem>>, vector<8x256xf32>
      tpu.vector_store %arg7[%c0_10, %c0_11], %16 {strides = array<i32>} : memref<8x256xf32, #tpu.memory_space<vmem>>, vector<8x256xf32>,
    } else {
    }
    %c3072_i32 = arith.constant 3072 : i32
    %3 = arith.muli %arg2, %c3072_i32 : i32
    %4 = tpu.assume_multiple %3, 3072 : i32
    %c0 = arith.constant 0 : index
    %5 = arith.index_cast %4 : i32 to index
    %6 = vector.load %arg3[%c0, %5] : memref<8x3072xf32, #tpu.memory_space<vmem>>, vector<8x3072xf32>
    %c0_1 = arith.constant 0 : index
    %c0_2 = arith.constant 0 : index
    %7 = vector.load %arg7[%c0_1, %c0_2] : memref<8x256xf32, #tpu.memory_space<vmem>>, vector<8x256xf32>
    %8 = arith.truncf %6 : vector<8x3072xf32> to vector<8x3072xbf16>
    %c0_3 = arith.constant 0 : index
    %c0_4 = arith.constant 0 : index
    %9 = vector.load %arg4[%c0_3, %c0_4] : memref<3072x256xbf16, #tpu.memory_space<vmem>>, vector<3072x256xbf16>
    %cst = arith.constant dense<0.000000e+00> : vector<8x256xf32>
    %10 = tpu.matmul %8, %9, %cst {dimension_numbers = #tpu.dot_dimension_numbers<[1], [0], [0], [1], [0, 0, 1, 1], [], []>} : vector<8x3072xbf16>, vector<3072x256xbf16>, vector<8x256xf32> -> vector<8x256xf32>
    %11 = arith.addf %7, %10 : vector<8x256xf32>
    %c0_5 = arith.constant 0 : index
    %c0_6 = arith.constant 0 : index
    %12 = vector.load %arg7[%c0_5, %c0_6] : memref<8x256xf32, #tpu.memory_space<vmem>>, vector<8x256xf32>
    tpu.vector_store %arg7[%c0_5, %c0_6], %11 {strides = array<i32>} : memref<8x256xf32, #tpu.memory_space<vmem>>, vector<8x256xf32>,
    %c0_i32_7 = arith.constant 0 : i32
    %13 = arith.cmpi eq, %arg2, %c0_i32_7 : i32
    %14 = arith.extui %13 : i1 to i32
    %c0_i32_8 = arith.constant 0 : i32
    %15 = arith.cmpi ne, %14, %c0_i32_8 : i32
    scf.if %15 {
      %c0_9 = arith.constant 0 : index
      %c0_10 = arith.constant 0 : index
      %16 = vector.load %arg7[%c0_9, %c0_10] : memref<8x256xf32, #tpu.memory_space<vmem>>, vector<8x256xf32>
      %c0_11 = arith.constant 0 : index
      %c0_12 = arith.constant 0 : index
      %17 = vector.load %arg5[%c0_11, %c0_12] : memref<1x256xf32, #tpu.memory_space<vmem>>, vector<1x256xf32>
      %18 = vector.broadcast %17 : vector<1x256xf32> to vector<8x256xf32>
      %19 = arith.addf %16, %18 : vector<8x256xf32>
      %cst_13 = arith.constant 0.000000e+00 : f32
      %20 = vector.broadcast %cst_13 : f32 to vector<8x256xf32>
      %21 = arith.maximumf %19, %20 : vector<8x256xf32>
      %c0_14 = arith.constant 0 : index
      %c0_15 = arith.constant 0 : index
      %22 = vector.load %arg6[%c0_14, %c0_15] : memref<8x256xf32, #tpu.memory_space<vmem>>, vector<8x256xf32>
      tpu.vector_store %arg6[%c0_14, %c0_15], %21 {strides = array<i32>} : memref<8x256xf32, #tpu.memory_space<vmem>>, vector<8x256xf32>,
    } else {
    }
    return
  }
  func.func @transform_0(%arg0: i32, %arg1: i32, %arg2: i32) -> (i32, i32) {
    %c0_i32 = arith.constant 0 : i32
    %c0_i32_0 = arith.constant 0 : i32
    return %arg0, %c0_i32 : i32, i32
  }
  func.func @transform_1(%arg0: i32, %arg1: i32, %arg2: i32) -> (i32, i32) {
    %c0_i32 = arith.constant 0 : i32
    return %arg2, %arg1 : i32, i32
  }
  func.func @transform_2(%arg0: i32, %arg1: i32, %arg2: i32) -> (i32, i32) {
    %c0_i32 = arith.constant 0 : i32
    %c0_i32_0 = arith.constant 0 : i32
    return %c0_i32, %arg1 : i32, i32
  }
  func.func @transform_3(%arg0: i32, %arg1: i32, %arg2: i32) -> (i32, i32) {
    %c0_i32 = arith.constant 0 : i32
    return %arg0, %arg1 : i32, i32
  }
}

module attributes {stable_mosaic.version = 11 : i64} {
  func.func @_linear_kernel(%arg0: i32, %arg1: i32, %arg2: i32, %arg3: memref<8x512xf32, #tpu.memory_space<vmem>>, %arg4: memref<512x128xbf16, #tpu.memory_space<vmem>>, %arg5: memref<1x128xf32, #tpu.memory_space<vmem>>, %arg6: memref<8x128xf32, #tpu.memory_space<vmem>>, %arg7: memref<8x128xf32, #tpu.memory_space<vmem>>) attributes {dimension_semantics = [#tpu.dimension_semantics<parallel>, #tpu.dimension_semantics<parallel>, #tpu.dimension_semantics<arbitrary>], iteration_bounds = array<i64: 1, 2, 1>, scalar_prefetch = 0 : i64, scratch_operands = 1 : i64, tpu.core_type = #tpu.core_type<tc>, window_params = [{transform_indices = @transform_0, window_bounds = array<i64: 8, 512>}, {transform_indices = @transform_1, window_bounds = array<i64: 512, 128>}, {transform_indices = @transform_2, window_bounds = array<i64: 1, 128>}, {transform_indices = @transform_3, window_bounds = array<i64: 8, 128>}]} {
    %c0_i32 = arith.constant 0 : i32
    %0 = arith.cmpi eq, %arg2, %c0_i32 : i32
    %1 = arith.extui %0 : i1 to i32
    %c0_i32_0 = arith.constant 0 : i32
    %2 = arith.cmpi ne, %1, %c0_i32_0 : i32
    scf.if %2 {
      %cst_9 = arith.constant 0.000000e+00 : f32
      %16 = vector.broadcast %cst_9 : f32 to vector<8x128xf32>
      %c0_10 = arith.constant 0 : index
      %c0_11 = arith.constant 0 : index
      %17 = vector.load %arg7[%c0_10, %c0_11] : memref<8x128xf32, #tpu.memory_space<vmem>>, vector<8x128xf32>
      tpu.vector_store %arg7[%c0_10, %c0_11], %16 {strides = array<i32>} : memref<8x128xf32, #tpu.memory_space<vmem>>, vector<8x128xf32>,
    } else {
    }
    %c512_i32 = arith.constant 512 : i32
    %3 = arith.muli %arg2, %c512_i32 : i32
    %4 = tpu.assume_multiple %3, 512 : i32
    %c0 = arith.constant 0 : index
    %5 = arith.index_cast %4 : i32 to index
    %6 = vector.load %arg3[%c0, %5] : memref<8x512xf32, #tpu.memory_space<vmem>>, vector<8x512xf32>
    %c0_1 = arith.constant 0 : index
    %c0_2 = arith.constant 0 : index
    %7 = vector.load %arg7[%c0_1, %c0_2] : memref<8x128xf32, #tpu.memory_space<vmem>>, vector<8x128xf32>
    %8 = arith.truncf %6 : vector<8x512xf32> to vector<8x512xbf16>
    %c0_3 = arith.constant 0 : index
    %c0_4 = arith.constant 0 : index
    %9 = vector.load %arg4[%c0_3, %c0_4] : memref<512x128xbf16, #tpu.memory_space<vmem>>, vector<512x128xbf16>
    %cst = arith.constant dense<0.000000e+00> : vector<8x128xf32>
    %10 = tpu.matmul %8, %9, %cst {dimension_numbers = #tpu.dot_dimension_numbers<[1], [0], [0], [1], [0, 0, 1, 1], [], []>} : vector<8x512xbf16>, vector<512x128xbf16>, vector<8x128xf32> -> vector<8x128xf32>
    %11 = arith.addf %7, %10 : vector<8x128xf32>
    %c0_5 = arith.constant 0 : index
    %c0_6 = arith.constant 0 : index
    %12 = vector.load %arg7[%c0_5, %c0_6] : memref<8x128xf32, #tpu.memory_space<vmem>>, vector<8x128xf32>
    tpu.vector_store %arg7[%c0_5, %c0_6], %11 {strides = array<i32>} : memref<8x128xf32, #tpu.memory_space<vmem>>, vector<8x128xf32>,
    %c0_i32_7 = arith.constant 0 : i32
    %13 = arith.cmpi eq, %arg2, %c0_i32_7 : i32
    %14 = arith.extui %13 : i1 to i32
    %c0_i32_8 = arith.constant 0 : i32
    %15 = arith.cmpi ne, %14, %c0_i32_8 : i32
    scf.if %15 {
      %c0_9 = arith.constant 0 : index
      %c0_10 = arith.constant 0 : index
      %16 = vector.load %arg7[%c0_9, %c0_10] : memref<8x128xf32, #tpu.memory_space<vmem>>, vector<8x128xf32>
      %c0_11 = arith.constant 0 : index
      %c0_12 = arith.constant 0 : index
      %17 = vector.load %arg5[%c0_11, %c0_12] : memref<1x128xf32, #tpu.memory_space<vmem>>, vector<1x128xf32>
      %18 = vector.broadcast %17 : vector<1x128xf32> to vector<8x128xf32>
      %19 = arith.addf %16, %18 : vector<8x128xf32>
      %cst_13 = arith.constant 0.000000e+00 : f32
      %20 = vector.broadcast %cst_13 : f32 to vector<8x128xf32>
      %21 = arith.maximumf %19, %20 : vector<8x128xf32>
      %c0_14 = arith.constant 0 : index
      %c0_15 = arith.constant 0 : index
      %22 = vector.load %arg6[%c0_14, %c0_15] : memref<8x128xf32, #tpu.memory_space<vmem>>, vector<8x128xf32>
      tpu.vector_store %arg6[%c0_14, %c0_15], %21 {strides = array<i32>} : memref<8x128xf32, #tpu.memory_space<vmem>>, vector<8x128xf32>,
    } else {
    }
    return
  }
  func.func @transform_0(%arg0: i32, %arg1: i32, %arg2: i32) -> (i32, i32) {
    %c0_i32 = arith.constant 0 : i32
    %c0_i32_0 = arith.constant 0 : i32
    return %arg0, %c0_i32 : i32, i32
  }
  func.func @transform_1(%arg0: i32, %arg1: i32, %arg2: i32) -> (i32, i32) {
    %c0_i32 = arith.constant 0 : i32
    return %arg2, %arg1 : i32, i32
  }
  func.func @transform_2(%arg0: i32, %arg1: i32, %arg2: i32) -> (i32, i32) {
    %c0_i32 = arith.constant 0 : i32
    %c0_i32_0 = arith.constant 0 : i32
    return %c0_i32, %arg1 : i32, i32
  }
  func.func @transform_3(%arg0: i32, %arg1: i32, %arg2: i32) -> (i32, i32) {
    %c0_i32 = arith.constant 0 : i32
    return %arg0, %arg1 : i32, i32
  }
}

module attributes {stable_mosaic.version = 11 : i64} {
  func.func @_linear_kernel(%arg0: i32, %arg1: i32, %arg2: i32, %arg3: memref<8x256xf32, #tpu.memory_space<vmem>>, %arg4: memref<256x256xbf16, #tpu.memory_space<vmem>>, %arg5: memref<1x256xf32, #tpu.memory_space<vmem>>, %arg6: memref<8x256xf32, #tpu.memory_space<vmem>>, %arg7: memref<8x256xf32, #tpu.memory_space<vmem>>) attributes {dimension_semantics = [#tpu.dimension_semantics<parallel>, #tpu.dimension_semantics<parallel>, #tpu.dimension_semantics<arbitrary>], iteration_bounds = array<i64: 1, 2, 1>, scalar_prefetch = 0 : i64, scratch_operands = 1 : i64, tpu.core_type = #tpu.core_type<tc>, window_params = [{transform_indices = @transform_0, window_bounds = array<i64: 8, 256>}, {transform_indices = @transform_1, window_bounds = array<i64: 256, 256>}, {transform_indices = @transform_2, window_bounds = array<i64: 1, 256>}, {transform_indices = @transform_3, window_bounds = array<i64: 8, 256>}]} {
    %c0_i32 = arith.constant 0 : i32
    %0 = arith.cmpi eq, %arg2, %c0_i32 : i32
    %1 = arith.extui %0 : i1 to i32
    %c0_i32_0 = arith.constant 0 : i32
    %2 = arith.cmpi ne, %1, %c0_i32_0 : i32
    scf.if %2 {
      %cst_9 = arith.constant 0.000000e+00 : f32
      %16 = vector.broadcast %cst_9 : f32 to vector<8x256xf32>
      %c0_10 = arith.constant 0 : index
      %c0_11 = arith.constant 0 : index
      %17 = vector.load %arg7[%c0_10, %c0_11] : memref<8x256xf32, #tpu.memory_space<vmem>>, vector<8x256xf32>
      tpu.vector_store %arg7[%c0_10, %c0_11], %16 {strides = array<i32>} : memref<8x256xf32, #tpu.memory_space<vmem>>, vector<8x256xf32>,
    } else {
    }
    %c256_i32 = arith.constant 256 : i32
    %3 = arith.muli %arg2, %c256_i32 : i32
    %4 = tpu.assume_multiple %3, 256 : i32
    %c0 = arith.constant 0 : index
    %5 = arith.index_cast %4 : i32 to index
    %6 = vector.load %arg3[%c0, %5] : memref<8x256xf32, #tpu.memory_space<vmem>>, vector<8x256xf32>
    %c0_1 = arith.constant 0 : index
    %c0_2 = arith.constant 0 : index
    %7 = vector.load %arg7[%c0_1, %c0_2] : memref<8x256xf32, #tpu.memory_space<vmem>>, vector<8x256xf32>
    %8 = arith.truncf %6 : vector<8x256xf32> to vector<8x256xbf16>
    %c0_3 = arith.constant 0 : index
    %c0_4 = arith.constant 0 : index
    %9 = vector.load %arg4[%c0_3, %c0_4] : memref<256x256xbf16, #tpu.memory_space<vmem>>, vector<256x256xbf16>
    %cst = arith.constant dense<0.000000e+00> : vector<8x256xf32>
    %10 = tpu.matmul %8, %9, %cst {dimension_numbers = #tpu.dot_dimension_numbers<[1], [0], [0], [1], [0, 0, 1, 1], [], []>} : vector<8x256xbf16>, vector<256x256xbf16>, vector<8x256xf32> -> vector<8x256xf32>
    %11 = arith.addf %7, %10 : vector<8x256xf32>
    %c0_5 = arith.constant 0 : index
    %c0_6 = arith.constant 0 : index
    %12 = vector.load %arg7[%c0_5, %c0_6] : memref<8x256xf32, #tpu.memory_space<vmem>>, vector<8x256xf32>
    tpu.vector_store %arg7[%c0_5, %c0_6], %11 {strides = array<i32>} : memref<8x256xf32, #tpu.memory_space<vmem>>, vector<8x256xf32>,
    %c0_i32_7 = arith.constant 0 : i32
    %13 = arith.cmpi eq, %arg2, %c0_i32_7 : i32
    %14 = arith.extui %13 : i1 to i32
    %c0_i32_8 = arith.constant 0 : i32
    %15 = arith.cmpi ne, %14, %c0_i32_8 : i32
    scf.if %15 {
      %c0_9 = arith.constant 0 : index
      %c0_10 = arith.constant 0 : index
      %16 = vector.load %arg7[%c0_9, %c0_10] : memref<8x256xf32, #tpu.memory_space<vmem>>, vector<8x256xf32>
      %c0_11 = arith.constant 0 : index
      %c0_12 = arith.constant 0 : index
      %17 = vector.load %arg5[%c0_11, %c0_12] : memref<1x256xf32, #tpu.memory_space<vmem>>, vector<1x256xf32>
      %18 = vector.broadcast %17 : vector<1x256xf32> to vector<8x256xf32>
      %19 = arith.addf %16, %18 : vector<8x256xf32>
      %cst_13 = arith.constant 0.000000e+00 : f32
      %20 = vector.broadcast %cst_13 : f32 to vector<8x256xf32>
      %21 = arith.maximumf %19, %20 : vector<8x256xf32>
      %c0_14 = arith.constant 0 : index
      %c0_15 = arith.constant 0 : index
      %22 = vector.load %arg6[%c0_14, %c0_15] : memref<8x256xf32, #tpu.memory_space<vmem>>, vector<8x256xf32>
      tpu.vector_store %arg6[%c0_14, %c0_15], %21 {strides = array<i32>} : memref<8x256xf32, #tpu.memory_space<vmem>>, vector<8x256xf32>,
    } else {
    }
    return
  }
  func.func @transform_0(%arg0: i32, %arg1: i32, %arg2: i32) -> (i32, i32) {
    %c0_i32 = arith.constant 0 : i32
    %c0_i32_0 = arith.constant 0 : i32
    return %arg0, %c0_i32 : i32, i32
  }
  func.func @transform_1(%arg0: i32, %arg1: i32, %arg2: i32) -> (i32, i32) {
    %c0_i32 = arith.constant 0 : i32
    return %arg2, %arg1 : i32, i32
  }
  func.func @transform_2(%arg0: i32, %arg1: i32, %arg2: i32) -> (i32, i32) {
    %c0_i32 = arith.constant 0 : i32
    %c0_i32_0 = arith.constant 0 : i32
    return %c0_i32, %arg1 : i32, i32
  }
  func.func @transform_3(%arg0: i32, %arg1: i32, %arg2: i32) -> (i32, i32) {
    %c0_i32 = arith.constant 0 : i32
    return %arg0, %arg1 : i32, i32
  }
}

module attributes {stable_mosaic.version = 11 : i64} {
  func.func @_linear_kernel(%arg0: i32, %arg1: i32, %arg2: i32, %arg3: memref<8x512xf32, #tpu.memory_space<vmem>>, %arg4: memref<512x1536xbf16, #tpu.memory_space<vmem>>, %arg5: memref<1x1536xf32, #tpu.memory_space<vmem>>, %arg6: memref<8x1536xf32, #tpu.memory_space<vmem>>, %arg7: memref<8x1536xf32, #tpu.memory_space<vmem>>) attributes {dimension_semantics = [#tpu.dimension_semantics<parallel>, #tpu.dimension_semantics<parallel>, #tpu.dimension_semantics<arbitrary>], iteration_bounds = array<i64: 1, 2, 1>, scalar_prefetch = 0 : i64, scratch_operands = 1 : i64, tpu.core_type = #tpu.core_type<tc>, window_params = [{transform_indices = @transform_0, window_bounds = array<i64: 8, 512>}, {transform_indices = @transform_1, window_bounds = array<i64: 512, 1536>}, {transform_indices = @transform_2, window_bounds = array<i64: 1, 1536>}, {transform_indices = @transform_3, window_bounds = array<i64: 8, 1536>}]} {
    %c0_i32 = arith.constant 0 : i32
    %0 = arith.cmpi eq, %arg2, %c0_i32 : i32
    %1 = arith.extui %0 : i1 to i32
    %c0_i32_0 = arith.constant 0 : i32
    %2 = arith.cmpi ne, %1, %c0_i32_0 : i32
    scf.if %2 {
      %cst_9 = arith.constant 0.000000e+00 : f32
      %16 = vector.broadcast %cst_9 : f32 to vector<8x1536xf32>
      %c0_10 = arith.constant 0 : index
      %c0_11 = arith.constant 0 : index
      %17 = vector.load %arg7[%c0_10, %c0_11] : memref<8x1536xf32, #tpu.memory_space<vmem>>, vector<8x1536xf32>
      tpu.vector_store %arg7[%c0_10, %c0_11], %16 {strides = array<i32>} : memref<8x1536xf32, #tpu.memory_space<vmem>>, vector<8x1536xf32>,
    } else {
    }
    %c512_i32 = arith.constant 512 : i32
    %3 = arith.muli %arg2, %c512_i32 : i32
    %4 = tpu.assume_multiple %3, 512 : i32
    %c0 = arith.constant 0 : index
    %5 = arith.index_cast %4 : i32 to index
    %6 = vector.load %arg3[%c0, %5] : memref<8x512xf32, #tpu.memory_space<vmem>>, vector<8x512xf32>
    %c0_1 = arith.constant 0 : index
    %c0_2 = arith.constant 0 : index
    %7 = vector.load %arg7[%c0_1, %c0_2] : memref<8x1536xf32, #tpu.memory_space<vmem>>, vector<8x1536xf32>
    %8 = arith.truncf %6 : vector<8x512xf32> to vector<8x512xbf16>
    %c0_3 = arith.constant 0 : index
    %c0_4 = arith.constant 0 : index
    %9 = vector.load %arg4[%c0_3, %c0_4] : memref<512x1536xbf16, #tpu.memory_space<vmem>>, vector<512x1536xbf16>
    %cst = arith.constant dense<0.000000e+00> : vector<8x1536xf32>
    %10 = tpu.matmul %8, %9, %cst {dimension_numbers = #tpu.dot_dimension_numbers<[1], [0], [0], [1], [0, 0, 1, 1], [], []>} : vector<8x512xbf16>, vector<512x1536xbf16>, vector<8x1536xf32> -> vector<8x1536xf32>
    %11 = arith.addf %7, %10 : vector<8x1536xf32>
    %c0_5 = arith.constant 0 : index
    %c0_6 = arith.constant 0 : index
    %12 = vector.load %arg7[%c0_5, %c0_6] : memref<8x1536xf32, #tpu.memory_space<vmem>>, vector<8x1536xf32>
    tpu.vector_store %arg7[%c0_5, %c0_6], %11 {strides = array<i32>} : memref<8x1536xf32, #tpu.memory_space<vmem>>, vector<8x1536xf32>,
    %c0_i32_7 = arith.constant 0 : i32
    %13 = arith.cmpi eq, %arg2, %c0_i32_7 : i32
    %14 = arith.extui %13 : i1 to i32
    %c0_i32_8 = arith.constant 0 : i32
    %15 = arith.cmpi ne, %14, %c0_i32_8 : i32
    scf.if %15 {
      %c0_9 = arith.constant 0 : index
      %c0_10 = arith.constant 0 : index
      %16 = vector.load %arg7[%c0_9, %c0_10] : memref<8x1536xf32, #tpu.memory_space<vmem>>, vector<8x1536xf32>
      %c0_11 = arith.constant 0 : index
      %c0_12 = arith.constant 0 : index
      %17 = vector.load %arg5[%c0_11, %c0_12] : memref<1x1536xf32, #tpu.memory_space<vmem>>, vector<1x1536xf32>
      %18 = vector.broadcast %17 : vector<1x1536xf32> to vector<8x1536xf32>
      %19 = arith.addf %16, %18 : vector<8x1536xf32>
      %c0_13 = arith.constant 0 : index
      %c0_14 = arith.constant 0 : index
      %20 = vector.load %arg6[%c0_13, %c0_14] : memref<8x1536xf32, #tpu.memory_space<vmem>>, vector<8x1536xf32>
      tpu.vector_store %arg6[%c0_13, %c0_14], %19 {strides = array<i32>} : memref<8x1536xf32, #tpu.memory_space<vmem>>, vector<8x1536xf32>,
    } else {
    }
    return
  }
  func.func @transform_0(%arg0: i32, %arg1: i32, %arg2: i32) -> (i32, i32) {
    %c0_i32 = arith.constant 0 : i32
    %c0_i32_0 = arith.constant 0 : i32
    return %arg0, %c0_i32 : i32, i32
  }
  func.func @transform_1(%arg0: i32, %arg1: i32, %arg2: i32) -> (i32, i32) {
    %c0_i32 = arith.constant 0 : i32
    return %arg2, %arg1 : i32, i32
  }
  func.func @transform_2(%arg0: i32, %arg1: i32, %arg2: i32) -> (i32, i32) {
    %c0_i32 = arith.constant 0 : i32
    %c0_i32_0 = arith.constant 0 : i32
    return %c0_i32, %arg1 : i32, i32
  }
  func.func @transform_3(%arg0: i32, %arg1: i32, %arg2: i32) -> (i32, i32) {
    %c0_i32 = arith.constant 0 : i32
    return %arg0, %arg1 : i32, i32
  }
}

</mosaic_0001>

<bundles_post_ra>
// kernel: autoencoder_forward.6
= control target key start
LH: loop header
LB: loop body
LE: loop exit
PB: predicated region body
PF: predicated region fallthrough
CT: control target
= control target key end

     0   :  { %s998_s12 = smov 0   ;;  %s1000_s13 = smov 0   ;;  %s1174_s0 = inlined_call_operand.vmem [shape: f32[8,256], index: 0, kind: input, shape index: {}]   ;;  %s1175_s1 = inlined_call_operand.vmem [shape: bf16[256,512], index: 1, kind: input, shape index: {}]   ;;  %s1176_s2 = inlined_call_operand.vmem [shape: f32[1,512], index: 2, kind: input, shape index: {}]   ;;  %s1177_s3 = inlined_call_operand.vmem [shape: f32[8,512], index: 3, kind: output, shape index: {}]  }
   0x1   :  { %s1002_s14 = smov 0   ;;  %s1004_s15 = smov 0  }
   0x2   :  { %s1006_s16 = smov 0  }
   0x3 LB: > { %s28_s17 = sadd.s32 1, %s972_s15  ;;  %p74_p1 = scmp.ne.s32.totalorder %s964_s13, %s960_s12  ;;  %s976_s16 = sphi %s1006_s16, %s13_s16   ;;  %s972_s15 = sphi %s1004_s15, %s1181_s15   ;;  %s968_s14 = sphi %s1002_s14, %s1180_s14   ;;  %s964_s13 = sphi %s1000_s13, %s1179_s13   ;;  %s960_s12 = sphi %s998_s12, %s1178_s12  }
   0x4   : > { %p30_p0 = scmp.ge.s32.totalorder %s28_s17, 2  ;;  %p75_p2 = scmp.eq.s32.totalorder %s976_s16, 0 }
   0x5   : > { %s67_s19 = sadd.s32 1, %s964_s13  ;;  %p806_p5 = scmp.ge.s32.totalorder %s976_s16, 2 }
   0x6   : > { %s1183_s17 = smov (%p30_p0, %s28_s17), 0  ;;  %p76_p3 = por %p75_p2, %p74_p1 }
   0x7   : > { %s63_s18 = ssub.s32 %s972_s15, %s1183_s17  ;;  %162 = sbr.rel (%p806_p5) target bundleno = 34 (0x22), region = 20 }
   0x8   : > { %p65_p4 = scmp.eq.s32.totalorder %s63_s18, 0 }
   0xa   : > { %s1033_s20 = scalar_select %p65_p4, %s964_s13, %s67_s19  }
   0xe   : > { %165 = sbr.rel (!%p76_p3) target bundleno = 34 (0x22), region = 24  ;;  %s167_s21 = sand.u32 (%p76_p3), 1, %s964_s13  }
   0xf   : > { %s849_s22 = sshll.u32 (%p76_p3), %s972_s15, 3  ;;  %s807_s23 = sshll.u32 (%p76_p3), %s167_s21, 8 }
  0x10   : > { %s1041_s26 = scalar_lea.vmem (%p76_p3), %s1175_s1, %s849_s22  ;;  %s1046_s27 = scalar_lea.vmem (%p76_p3), [#allocation3], %s807_s23 }
  0x11   : > { %v265_v0 = vld [vmem:[%s1041_s26] sm:$0xff] (%p76_p3)  ;;  %v267_v1 = vld [vmem:[%s1041_s26 + $0x10] sm:$0xff] (%p76_p3) }
  0x12   : > { %v269_v2 = vld [vmem:[%s1041_s26 + $0x20] sm:$0xff] (%p76_p3)  ;;  %266 = vst [vmem:[%s1046_s27] sm:$0xff] (%p76_p3), %v265_v0  ;;  %268 = vst [vmem:[%s1046_s27 + $0x8] sm:$0xff] (%p76_p3), %v267_v1  ;;  %v271_v3 = vld [vmem:[%s1041_s26 + $0x30] sm:$0xff] (%p76_p3) }
  0x13   : > { %270 = vst [vmem:[%s1046_s27 + $0x10] sm:$0xff] (%p76_p3), %v269_v2  ;;  %v273_v4 = vld [vmem:[%s1041_s26 + $0x40] sm:$0xff] (%p76_p3)  ;;  %v275_v5 = vld [vmem:[%s1041_s26 + $0x50] sm:$0xff] (%p76_p3)  ;;  %272 = vst [vmem:[%s1046_s27 + $0x18] sm:$0xff] (%p76_p3), %v271_v3 }
  0x14   : > { %274 = vst [vmem:[%s1046_s27 + $0x20] sm:$0xff] (%p76_p3), %v273_v4  ;;  %276 = vst [vmem:[%s1046_s27 + $0x28] sm:$0xff] (%p76_p3), %v275_v5  ;;  %v277_v6 = vld [vmem:[%s1041_s26 + $0x60] sm:$0xff] (%p76_p3)  ;;  %v279_v7 = vld [vmem:[%s1041_s26 + $0x70] sm:$0xff] (%p76_p3) }
  0x15   : > { %v281_v8 = vld [vmem:[%s1041_s26 + $0x80] sm:$0xff]  ;;  %278 = vst [vmem:[%s1046_s27 + $0x30] sm:$0xff] %v277_v6  ;;  %280 = vst [vmem:[%s1046_s27 + $0x38] sm:$0xff] %v279_v7  ;;  %v283_v9 = vld [vmem:[%s1041_s26 + $0x90] sm:$0xff] }
  0x16   : > { %282 = vst [vmem:[%s1046_s27 + $0x40] sm:$0xff] %v281_v8  ;;  %v285_v10 = vld [vmem:[%s1041_s26 + $0xa0] sm:$0xff]  ;;  %v287_v11 = vld [vmem:[%s1041_s26 + $0xb0] sm:$0xff]  ;;  %284 = vst [vmem:[%s1046_s27 + $0x48] sm:$0xff] %v283_v9 }
  0x17   : > { %286 = vst [vmem:[%s1046_s27 + $0x50] sm:$0xff] %v285_v10  ;;  %288 = vst [vmem:[%s1046_s27 + $0x58] sm:$0xff] %v287_v11  ;;  %v289_v12 = vld [vmem:[%s1041_s26 + $0xc0] sm:$0xff]  ;;  %v291_v13 = vld [vmem:[%s1041_s26 + $0xd0] sm:$0xff] }
  0x18   : > { %v293_v14 = vld [vmem:[%s1041_s26 + $0xe0] sm:$0xff]  ;;  %290 = vst [vmem:[%s1046_s27 + $0x60] sm:$0xff] %v289_v12  ;;  %292 = vst [vmem:[%s1046_s27 + $0x68] sm:$0xff] %v291_v13  ;;  %v295_v15 = vld [vmem:[%s1041_s26 + $0xf0] sm:$0xff] }
  0x19   : > { %294 = vst [vmem:[%s1046_s27 + $0x70] sm:$0xff] %v293_v14  ;;  %v297_v16 = vld [vmem:[%s1041_s26 + $0x100] sm:$0xff]  ;;  %v299_v17 = vld [vmem:[%s1041_s26 + $0x110] sm:$0xff]  ;;  %296 = vst [vmem:[%s1046_s27 + $0x78] sm:$0xff] %v295_v15 }
  0x1a   : > { %298 = vst [vmem:[%s1046_s27 + $0x80] sm:$0xff] %v297_v16  ;;  %300 = vst [vmem:[%s1046_s27 + $0x88] sm:$0xff] %v299_v17  ;;  %v301_v18 = vld [vmem:[%s1041_s26 + $0x120] sm:$0xff]  ;;  %v303_v19 = vld [vmem:[%s1041_s26 + $0x130] sm:$0xff] }
  0x1b   : > { %v305_v20 = vld [vmem:[%s1041_s26 + $0x140] sm:$0xff]  ;;  %302 = vst [vmem:[%s1046_s27 + $0x90] sm:$0xff] %v301_v18  ;;  %304 = vst [vmem:[%s1046_s27 + $0x98] sm:$0xff] %v303_v19  ;;  %v307_v21 = vld [vmem:[%s1041_s26 + $0x150] sm:$0xff] }
  0x1c   : > { %306 = vst [vmem:[%s1046_s27 + $0xa0] sm:$0xff] %v305_v20  ;;  %v309_v22 = vld [vmem:[%s1041_s26 + $0x160] sm:$0xff]  ;;  %v311_v23 = vld [vmem:[%s1041_s26 + $0x170] sm:$0xff]  ;;  %308 = vst [vmem:[%s1046_s27 + $0xa8] sm:$0xff] %v307_v21 }
  0x1d   : > { %310 = vst [vmem:[%s1046_s27 + $0xb0] sm:$0xff] %v309_v22  ;;  %312 = vst [vmem:[%s1046_s27 + $0xb8] sm:$0xff] %v311_v23  ;;  %v313_v24 = vld [vmem:[%s1041_s26 + $0x180] sm:$0xff]  ;;  %v315_v25 = vld [vmem:[%s1041_s26 + $0x190] sm:$0xff] }
  0x1e   : > { %v317_v26 = vld [vmem:[%s1041_s26 + $0x1a0] sm:$0xff]  ;;  %314 = vst [vmem:[%s1046_s27 + $0xc0] sm:$0xff] %v313_v24  ;;  %316 = vst [vmem:[%s1046_s27 + $0xc8] sm:$0xff] %v315_v25  ;;  %v319_v27 = vld [vmem:[%s1041_s26 + $0x1b0] sm:$0xff] }
  0x1f   : > { %318 = vst [vmem:[%s1046_s27 + $0xd0] sm:$0xff] %v317_v26  ;;  %v321_v28 = vld [vmem:[%s1041_s26 + $0x1c0] sm:$0xff]  ;;  %v323_v29 = vld [vmem:[%s1041_s26 + $0x1d0] sm:$0xff]  ;;  %320 = vst [vmem:[%s1046_s27 + $0xd8] sm:$0xff] %v319_v27 }
  0x20   : > { %322 = vst [vmem:[%s1046_s27 + $0xe0] sm:$0xff] %v321_v28  ;;  %324 = vst [vmem:[%s1046_s27 + $0xe8] sm:$0xff] %v323_v29  ;;  %v325_v30 = vld [vmem:[%s1041_s26 + $0x1e0] sm:$0xff]  ;;  %v327_v31 = vld [vmem:[%s1041_s26 + $0x1f0] sm:$0xff] }
  0x21   : > { %326 = vst [vmem:[%s1046_s27 + $0xf0] sm:$0xff] %v325_v30  ;;  %328 = vst [vmem:[%s1046_s27 + $0xf8] sm:$0xff] %v327_v31 }
  0x22 PF: > { %p810_p6 = scmp.ge.s32.totalorder %s976_s16, 1  ;;  %p341_p7 = scmp.lt.s32.totalorder %s976_s16, 3 }
  0x24   : > { %p342_p8 = pnand %p810_p6, %p341_p7 }
  0x25   : > { %s348_s28 = sand.u32 (!%p342_p8), 1, %s960_s12   ;;  %v418_v32 = vld [vmem:[%s1174_s0 + $0x8] sm:$0xff] (!%p342_p8)  ;;  %v417_v2 = vld [vmem:[%s1174_s0] sm:$0xff] (!%p342_p8)  ;;  %s812_s8 = sshll.u32 (!%p342_p8), %s968_s14, 1  ;;  %v667_v4 = vlaneseq (!%p342_p8) }
  0x26   : > { %345 = sbr.rel (%p342_p8) target bundleno = 323 (0x143), region = 66  ;;  %s811_s4 = sshll.u32 (!%p342_p8), %s348_s28, 8  ;;  %v422_v33 = vpack.c.bf16 (!%p342_p8), %v418_v32, %v418_v32  ;;  %v421_v3 = vpack.c.bf16 (!%p342_p8), %v417_v2, %v417_v2 }
  0x27   : > { %s1115_s5 = scalar_lea.vmem (!%p342_p8), [#allocation3], %s811_s4  ;;  %p392_p9 = scmp.lt.s32.totalorder (!%p342_p8), %s812_s8, 3  ;;  %v668_v5 = vshrl.u32 (!%p342_p8), %v667_v4, 7 }
  0x28   : > { %v890_v34 = vld [vmem:[%s1115_s5 + $0x4] ss:$8 sps:$4 sm:$0xff] (!%p342_p8)   ;;  %647 = vmatprep.mubr.bf16.mxu0 (!%p342_p8), %v422_v33  ;;  %v892_v35 = vld [vmem:[%s1115_s5] ss:$8 sps:$4 sm:$0xff] (!%p342_p8)   ;;  %v893_v36 = vld [vmem:[%s1115_s5 + $0x14] ss:$8 sps:$4 sm:$0xff] (!%p342_p8)  }
  0x29   : > { %615 = vmatprep.subr.bf16.mxu0 (!%p342_p8), %v890_v34  ;;  %v895_v37 = vld [vmem:[%s1115_s5 + $0x10] ss:$8 sps:$4 sm:$0xff] (!%p342_p8)   ;;  %v896_v38 = vld [vmem:[%s1115_s5 + $0x24] ss:$8 sps:$4 sm:$0xff] (!%p342_p8)   ;;  %v898_v39 = vld [vmem:[%s1115_s5 + $0x20] ss:$8 sps:$4 sm:$0xff] (!%p342_p8)  }
  0x2a   : > { %616 = vmatpush1.bf16.msra.mxu0 (!%p342_p8), %v892_v35  ;;  %v899_v40 = vld [vmem:[%s1115_s5 + $0x34] ss:$8 sps:$4 sm:$0xff] (!%p342_p8)   ;;  %v901_v41 = vld [vmem:[%s1115_s5 + $0x30] ss:$8 sps:$4 sm:$0xff] (!%p342_p8)   ;;  %v902_v42 = vld [vmem:[%s1115_s5 + $0x44] ss:$8 sps:$4 sm:$0xff] (!%p342_p8)  }
  0x2b   : > { %617 = vmatprep.subr.bf16.mxu0 (!%p342_p8), %v893_v36  ;;  %v904_v43 = vld [vmem:[%s1115_s5 + $0x40] ss:$8 sps:$4 sm:$0xff] (!%p342_p8)   ;;  %v905_v44 = vld [vmem:[%s1115_s5 + $0x54] ss:$8 sps:$4 sm:$0xff] (!%p342_p8)   ;;  %v907_v45 = vld [vmem:[%s1115_s5 + $0x50] ss:$8 sps:$4 sm:$0xff] (!%p342_p8)  }
  0x2c   : > { %v908_v46 = vld [vmem:[%s1115_s5 + $0x64] ss:$8 sps:$4 sm:$0xff] (!%p342_p8)   ;;  %v910_v47 = vld [vmem:[%s1115_s5 + $0x60] ss:$8 sps:$4 sm:$0xff] (!%p342_p8)   ;;  %v911_v48 = vld [vmem:[%s1115_s5 + $0x74] ss:$8 sps:$4 sm:$0xff] (!%p342_p8)  }
  0x2d   : > { %v913_v49 = vld [vmem:[%s1115_s5 + $0x70] ss:$8 sps:$4 sm:$0xff]   ;;  %v914_v50 = vld [vmem:[%s1115_s5 + $0x84] ss:$8 sps:$4 sm:$0xff]   ;;  %v916_v51 = vld [vmem:[%s1115_s5 + $0x80] ss:$8 sps:$4 sm:$0xff]  }
  0x2e   : > { %618 = vmatpush1.bf16.msra.mxu0 %v895_v37  ;;  %v917_v52 = vld [vmem:[%s1115_s5 + $0x94] ss:$8 sps:$4 sm:$0xff]   ;;  %v919_v53 = vld [vmem:[%s1115_s5 + $0x90] ss:$8 sps:$4 sm:$0xff]   ;;  %v920_v54 = vld [vmem:[%s1115_s5 + $0xa4] ss:$8 sps:$4 sm:$0xff]  }
  0x2f   : > { %619 = vmatprep.subr.bf16.mxu0 %v896_v38  ;;  %v922_v55 = vld [vmem:[%s1115_s5 + $0xa0] ss:$8 sps:$4 sm:$0xff]   ;;  %v923_v56 = vld [vmem:[%s1115_s5 + $0xb4] ss:$8 sps:$4 sm:$0xff]   ;;  %v925_v57 = vld [vmem:[%s1115_s5 + $0xb0] ss:$8 sps:$4 sm:$0xff]  }
  0x30   : > { %v926_v58 = vld [vmem:[%s1115_s5 + $0xc4] ss:$8 sps:$4 sm:$0xff]   ;;  %v928_v59 = vld [vmem:[%s1115_s5 + $0xc0] ss:$8 sps:$4 sm:$0xff]   ;;  %v929_v60 = vld [vmem:[%s1115_s5 + $0xd4] ss:$8 sps:$4 sm:$0xff]  }
  0x31   : > { %v931_v61 = vld [vmem:[%s1115_s5 + $0xd0] ss:$8 sps:$4 sm:$0xff]   ;;  %v932_v62 = vld [vmem:[%s1115_s5 + $0xe4] ss:$8 sps:$4 sm:$0xff]   ;;  %v934_v63 = vld [vmem:[%s1115_s5 + $0xe0] ss:$8 sps:$4 sm:$0xff]  }
  0x32   : > { %620 = vmatpush1.bf16.msra.mxu0 %v898_v39  ;;  %v935_v0 = vld [vmem:[%s1115_s5 + $0xf4] ss:$8 sps:$4 sm:$0xff]   ;;  %v937_v1 = vld [vmem:[%s1115_s5 + $0xf0] ss:$8 sps:$4 sm:$0xff]   ;;  %s1185_s8 = smov (!%p392_p9, %s812_s8), 3  ;;  %v669_v6 = vsub.s32 0, %v668_v5 }
  0x33   : > { %621 = vmatprep.subr.bf16.mxu0 %v899_v40  ;;  %s394_s11 = scalar_lea.vmem %s1176_s2, %s1185_s8  ;;  %v673_v8 = vsub.s32 1, %v668_v5  ;;  %s814_s12 = sshll.u32 %s1185_s8, 3 }
  0x34   : > { %v665_v7 = vld [vmem:[%s394_s11] sm:$0x3]  ;;  %s404_s14 = scalar_lea.vmem %s1177_s3, %s814_s12 }
  0x35   : > { %v670_v9 = vrot.slane %v665_v7, %v669_v6  ;;  %v674_v10 = vrot.slane %v665_v7, %v673_v8 }
  0x36   : > { %622 = vmatpush1.bf16.msra.mxu0 %v901_v41 }
  0x37   : > { %623 = vmatprep.subr.bf16.mxu0 %v902_v42 }
  0x3a   : > { %624 = vmatpush1.bf16.msra.mxu0 %v904_v43 }
  0x3b   : > { %625 = vmatprep.subr.bf16.mxu0 %v905_v44 }
  0x3e   : > { %626 = vmatpush1.bf16.msra.mxu0 %v907_v45 }
  0x3f   : > { %627 = vmatprep.subr.bf16.mxu0 %v908_v46 }
  0x42   : > { %628 = vmatpush1.bf16.msra.mxu0 %v910_v47 }
  0x43   : > { %629 = vmatprep.subr.bf16.mxu0 %v911_v48 }
  0x46   : > { %630 = vmatpush1.bf16.msra.mxu0 %v913_v49 }
  0x47   : > { %631 = vmatprep.subr.bf16.mxu0 %v914_v50 }
  0x4a   : > { %632 = vmatpush1.bf16.msra.mxu0 %v916_v51 }
  0x4b   : > { %633 = vmatprep.subr.bf16.mxu0 %v917_v52 }
  0x4e   : > { %634 = vmatpush1.bf16.msra.mxu0 %v919_v53 }
  0x4f   : > { %635 = vmatprep.subr.bf16.mxu0 %v920_v54 }
  0x52   : > { %636 = vmatpush1.bf16.msra.mxu0 %v922_v55 }
  0x53   : > { %637 = vmatprep.subr.bf16.mxu0 %v923_v56 }
  0x56   : > { %638 = vmatpush1.bf16.msra.mxu0 %v925_v57 }
  0x57   : > { %639 = vmatprep.subr.bf16.mxu0 %v926_v58 }
  0x5a   : > { %640 = vmatpush1.bf16.msra.mxu0 %v928_v59 }
  0x5b   : > { %641 = vmatprep.subr.bf16.mxu0 %v929_v60 }
  0x5e   : > { %642 = vmatpush1.bf16.msra.mxu0 %v931_v61 }
  0x5f   : > { %643 = vmatprep.subr.bf16.mxu0 %v932_v62 }
  0x62   : > { %644 = vmatpush1.bf16.msra.mxu0 %v934_v63 }
  0x63   : > { %645 = vmatprep.subr.bf16.mxu0 %v935_v0 }
  0x66   : > { %646 = vmatpush1.bf16.msra.mxu0 %v937_v1 }
  0x69   : > { %648 = vmatmul.mubr.bf16.vlgmr.msra.gmra.mrb[0].mxu0 %v421_v3 }
 0x13c   : > { %v649_v11 = vpop.f32.mrb[0].mxu0 }
 0x13d   : > { %v677_v12 = vadd.f32 %v670_v9, %v649_v11  ;;  %v651_v13 = vpop.f32.mrb[1].mxu0 }
 0x13e   : > { %v678_v14 = vadd.f32 %v674_v10, %v651_v13  ;;  %v653_v15 = vpop.f32.mrb[2].mxu0 }
 0x13f   : > { %v679_v16 = vmax.f32 %v677_v12, 0.0  ;;  %v654_v17 = vpop.f32.mrb[3].mxu0 }
 0x140   : > { %v680_v18 = vmax.f32 %v678_v14, 0.0 }
 0x141   : > { %681 = vst [vmem:[%s404_s14] sm:$0xff] %v679_v16 }
 0x142   : > { %682 = vst [vmem:[%s404_s14 + $0x8] sm:$0xff] %v680_v18 }
 0x143 PF: > { %s13_s16 = sadd.s32 1, %s976_s16   ;;  %s1178_s12 = smov %s964_s13 }
 0x144   : > { %p10_p10 = scmp.ge.s32.totalorder %s13_s16, 4   ;;  %s1179_s13 = smov %s1033_s20 }
 0x145   : > { %s1180_s14 = smov %s972_s15  ;;  %s1181_s15 = smov %s1183_s17 }
 0x146   :  { %12 = sbr.rel (!%p10_p10) target bundleno = 3 (0x3), region = 120 }

// kernel: autoencoder_forward.5
= control target key start
LH: loop header
LB: loop body
LE: loop exit
PB: predicated region body
PF: predicated region fallthrough
CT: control target
= control target key end

     0   :  { %s1239_s12 = smov 0   ;;  %s1241_s13 = smov 0   ;;  %s1486_s0 = inlined_call_operand.vmem [shape: f32[8,512], index: 0, kind: input, shape index: {}]   ;;  %s1487_s1 = inlined_call_operand.vmem [shape: bf16[512,256], index: 1, kind: input, shape index: {}]   ;;  %s1488_s2 = inlined_call_operand.vmem [shape: f32[1,256], index: 2, kind: input, shape index: {}]   ;;  %s1489_s3 = inlined_call_operand.vmem [shape: f32[8,256], index: 3, kind: output, shape index: {}]  }
   0x1   :  { %s1243_s14 = smov 0   ;;  %s1245_s15 = smov 0  }
   0x2   :  { %s1247_s16 = smov 0  }
   0x3 LB: > { %s28_s17 = sadd.s32 1, %s1213_s15  ;;  %p74_p1 = scmp.ne.s32.totalorder %s1205_s13, %s1201_s12  ;;  %s1217_s16 = sphi %s1247_s16, %s13_s16   ;;  %s1213_s15 = sphi %s1245_s15, %s1493_s15   ;;  %s1209_s14 = sphi %s1243_s14, %s1492_s14   ;;  %s1205_s13 = sphi %s1241_s13, %s1491_s13   ;;  %s1201_s12 = sphi %s1239_s12, %s1490_s12  }
   0x4   : > { %p30_p0 = scmp.ge.s32.totalorder %s28_s17, 2  ;;  %p75_p2 = scmp.eq.s32.totalorder %s1217_s16, 0 }
   0x5   : > { %s67_s19 = sadd.s32 1, %s1205_s13  ;;  %p1022_p5 = scmp.ge.s32.totalorder %s1217_s16, 2 }
   0x6   : > { %s1495_s17 = smov (%p30_p0, %s28_s17), 0  ;;  %p76_p3 = por %p75_p2, %p74_p1 }
   0x7   : > { %s63_s18 = ssub.s32 %s1213_s15, %s1495_s17  ;;  %162 = sbr.rel (%p1022_p5) target bundleno = 60 (0x3c), region = 20 }
   0x8   : > { %p65_p4 = scmp.eq.s32.totalorder %s63_s18, 0 }
   0xa   : > { %s1274_s20 = scalar_select %p65_p4, %s1205_s13, %s67_s19  }
   0xe   : > { %165 = sbr.rel (!%p76_p3) target bundleno = 60 (0x3c), region = 24  ;;  %s167_s21 = sand.u32 (%p76_p3), 1, %s1205_s13  }
   0xf   : > { %s1024_s22 = sshll.u32 (%p76_p3), %s1213_s15, 2  ;;  %s1023_s23 = sshll.u32 (%p76_p3), %s167_s21, 8 }
  0x10   : > { %s1282_s26 = scalar_lea.vmem (%p76_p3), %s1487_s1, %s1024_s22  ;;  %s1286_s27 = scalar_lea.vmem (%p76_p3), [#allocation3], %s1023_s23 }
  0x11   : > { %v190_v0 = vld [vmem:[%s1282_s26] sm:$0xf] (%p76_p3)  ;;  %v192_v1 = vld [vmem:[%s1282_s26 + $0x8] sm:$0xf] (%p76_p3)  ;;  %v194_v2 = vld [vmem:[%s1282_s26 + $0x10] sm:$0xf] (%p76_p3) }
  0x12   : > { %191 = vst [vmem:[%s1286_s27] sm:$0xf] (%p76_p3), %v190_v0  ;;  %193 = vst [vmem:[%s1286_s27 + $0x4] sm:$0xf] (%p76_p3), %v192_v1  ;;  %v196_v3 = vld [vmem:[%s1282_s26 + $0x18] sm:$0xf] (%p76_p3) }
  0x13   : > { %v198_v4 = vld [vmem:[%s1282_s26 + $0x20] sm:$0xf] (%p76_p3)  ;;  %195 = vst [vmem:[%s1286_s27 + $0x8] sm:$0xf] (%p76_p3), %v194_v2  ;;  %197 = vst [vmem:[%s1286_s27 + $0xc] sm:$0xf] (%p76_p3), %v196_v3 }
  0x14   : > { %199 = vst [vmem:[%s1286_s27 + $0x10] sm:$0xf] (%p76_p3), %v198_v4  ;;  %v200_v5 = vld [vmem:[%s1282_s26 + $0x28] sm:$0xf] (%p76_p3)  ;;  %v202_v6 = vld [vmem:[%s1282_s26 + $0x30] sm:$0xf] (%p76_p3) }
  0x15   : > { %v204_v7 = vld [vmem:[%s1282_s26 + $0x38] sm:$0xf]  ;;  %201 = vst [vmem:[%s1286_s27 + $0x14] sm:$0xf] %v200_v5  ;;  %203 = vst [vmem:[%s1286_s27 + $0x18] sm:$0xf] %v202_v6 }
  0x16   : > { %205 = vst [vmem:[%s1286_s27 + $0x1c] sm:$0xf] %v204_v7  ;;  %v206_v8 = vld [vmem:[%s1282_s26 + $0x40] sm:$0xf]  ;;  %v208_v9 = vld [vmem:[%s1282_s26 + $0x48] sm:$0xf] }
  0x17   : > { %v210_v10 = vld [vmem:[%s1282_s26 + $0x50] sm:$0xf]  ;;  %207 = vst [vmem:[%s1286_s27 + $0x20] sm:$0xf] %v206_v8  ;;  %209 = vst [vmem:[%s1286_s27 + $0x24] sm:$0xf] %v208_v9 }
  0x18   : > { %211 = vst [vmem:[%s1286_s27 + $0x28] sm:$0xf] %v210_v10  ;;  %v212_v11 = vld [vmem:[%s1282_s26 + $0x58] sm:$0xf]  ;;  %v214_v12 = vld [vmem:[%s1282_s26 + $0x60] sm:$0xf] }
  0x19   : > { %v216_v13 = vld [vmem:[%s1282_s26 + $0x68] sm:$0xf]  ;;  %213 = vst [vmem:[%s1286_s27 + $0x2c] sm:$0xf] %v212_v11  ;;  %215 = vst [vmem:[%s1286_s27 + $0x30] sm:$0xf] %v214_v12 }
  0x1a   : > { %217 = vst [vmem:[%s1286_s27 + $0x34] sm:$0xf] %v216_v13  ;;  %v218_v14 = vld [vmem:[%s1282_s26 + $0x70] sm:$0xf]  ;;  %v220_v15 = vld [vmem:[%s1282_s26 + $0x78] sm:$0xf] }
  0x1b   : > { %v222_v16 = vld [vmem:[%s1282_s26 + $0x80] sm:$0xf]  ;;  %219 = vst [vmem:[%s1286_s27 + $0x38] sm:$0xf] %v218_v14  ;;  %221 = vst [vmem:[%s1286_s27 + $0x3c] sm:$0xf] %v220_v15 }
  0x1c   : > { %223 = vst [vmem:[%s1286_s27 + $0x40] sm:$0xf] %v222_v16  ;;  %v224_v17 = vld [vmem:[%s1282_s26 + $0x88] sm:$0xf]  ;;  %v226_v18 = vld [vmem:[%s1282_s26 + $0x90] sm:$0xf] }
  0x1d   : > { %v228_v19 = vld [vmem:[%s1282_s26 + $0x98] sm:$0xf]  ;;  %225 = vst [vmem:[%s1286_s27 + $0x44] sm:$0xf] %v224_v17  ;;  %227 = vst [vmem:[%s1286_s27 + $0x48] sm:$0xf] %v226_v18 }
  0x1e   : > { %229 = vst [vmem:[%s1286_s27 + $0x4c] sm:$0xf] %v228_v19  ;;  %v230_v20 = vld [vmem:[%s1282_s26 + $0xa0] sm:$0xf]  ;;  %v232_v21 = vld [vmem:[%s1282_s26 + $0xa8] sm:$0xf] }
  0x1f   : > { %v234_v22 = vld [vmem:[%s1282_s26 + $0xb0] sm:$0xf]  ;;  %231 = vst [vmem:[%s1286_s27 + $0x50] sm:$0xf] %v230_v20  ;;  %233 = vst [vmem:[%s1286_s27 + $0x54] sm:$0xf] %v232_v21 }
  0x20   : > { %235 = vst [vmem:[%s1286_s27 + $0x58] sm:$0xf] %v234_v22  ;;  %v236_v23 = vld [vmem:[%s1282_s26 + $0xb8] sm:$0xf]  ;;  %v238_v24 = vld [vmem:[%s1282_s26 + $0xc0] sm:$0xf] }
  0x21   : > { %v240_v25 = vld [vmem:[%s1282_s26 + $0xc8] sm:$0xf]  ;;  %237 = vst [vmem:[%s1286_s27 + $0x5c] sm:$0xf] %v236_v23  ;;  %239 = vst [vmem:[%s1286_s27 + $0x60] sm:$0xf] %v238_v24 }
  0x22   : > { %241 = vst [vmem:[%s1286_s27 + $0x64] sm:$0xf] %v240_v25  ;;  %v242_v26 = vld [vmem:[%s1282_s26 + $0xd0] sm:$0xf]  ;;  %v244_v27 = vld [vmem:[%s1282_s26 + $0xd8] sm:$0xf] }
  0x23   : > { %v246_v28 = vld [vmem:[%s1282_s26 + $0xe0] sm:$0xf]  ;;  %243 = vst [vmem:[%s1286_s27 + $0x68] sm:$0xf] %v242_v26  ;;  %245 = vst [vmem:[%s1286_s27 + $0x6c] sm:$0xf] %v244_v27 }
  0x24   : > { %247 = vst [vmem:[%s1286_s27 + $0x70] sm:$0xf] %v246_v28  ;;  %v248_v29 = vld [vmem:[%s1282_s26 + $0xe8] sm:$0xf]  ;;  %v250_v30 = vld [vmem:[%s1282_s26 + $0xf0] sm:$0xf] }
  0x25   : > { %v252_v31 = vld [vmem:[%s1282_s26 + $0xf8] sm:$0xf]  ;;  %249 = vst [vmem:[%s1286_s27 + $0x74] sm:$0xf] %v248_v29  ;;  %251 = vst [vmem:[%s1286_s27 + $0x78] sm:$0xf] %v250_v30 }
  0x26   : > { %253 = vst [vmem:[%s1286_s27 + $0x7c] sm:$0xf] %v252_v31  ;;  %v254_v32 = vld [vmem:[%s1282_s26 + $0x100] sm:$0xf]  ;;  %v256_v33 = vld [vmem:[%s1282_s26 + $0x108] sm:$0xf] }
  0x27   : > { %v258_v34 = vld [vmem:[%s1282_s26 + $0x110] sm:$0xf]  ;;  %255 = vst [vmem:[%s1286_s27 + $0x80] sm:$0xf] %v254_v32  ;;  %257 = vst [vmem:[%s1286_s27 + $0x84] sm:$0xf] %v256_v33 }
  0x28   : > { %259 = vst [vmem:[%s1286_s27 + $0x88] sm:$0xf] %v258_v34  ;;  %v260_v35 = vld [vmem:[%s1282_s26 + $0x118] sm:$0xf]  ;;  %v262_v36 = vld [vmem:[%s1282_s26 + $0x120] sm:$0xf] }
  0x29   : > { %v264_v37 = vld [vmem:[%s1282_s26 + $0x128] sm:$0xf]  ;;  %261 = vst [vmem:[%s1286_s27 + $0x8c] sm:$0xf] %v260_v35  ;;  %263 = vst [vmem:[%s1286_s27 + $0x90] sm:$0xf] %v262_v36 }
  0x2a   : > { %265 = vst [vmem:[%s1286_s27 + $0x94] sm:$0xf] %v264_v37  ;;  %v266_v38 = vld [vmem:[%s1282_s26 + $0x130] sm:$0xf]  ;;  %v268_v39 = vld [vmem:[%s1282_s26 + $0x138] sm:$0xf] }
  0x2b   : > { %v270_v40 = vld [vmem:[%s1282_s26 + $0x140] sm:$0xf]  ;;  %267 = vst [vmem:[%s1286_s27 + $0x98] sm:$0xf] %v266_v38  ;;  %269 = vst [vmem:[%s1286_s27 + $0x9c] sm:$0xf] %v268_v39 }
  0x2c   : > { %271 = vst [vmem:[%s1286_s27 + $0xa0] sm:$0xf] %v270_v40  ;;  %v272_v41 = vld [vmem:[%s1282_s26 + $0x148] sm:$0xf]  ;;  %v274_v42 = vld [vmem:[%s1282_s26 + $0x150] sm:$0xf] }
  0x2d   : > { %v276_v43 = vld [vmem:[%s1282_s26 + $0x158] sm:$0xf]  ;;  %273 = vst [vmem:[%s1286_s27 + $0xa4] sm:$0xf] %v272_v41  ;;  %275 = vst [vmem:[%s1286_s27 + $0xa8] sm:$0xf] %v274_v42 }
  0x2e   : > { %277 = vst [vmem:[%s1286_s27 + $0xac] sm:$0xf] %v276_v43  ;;  %v278_v44 = vld [vmem:[%s1282_s26 + $0x160] sm:$0xf]  ;;  %v280_v45 = vld [vmem:[%s1282_s26 + $0x168] sm:$0xf] }
  0x2f   : > { %v282_v46 = vld [vmem:[%s1282_s26 + $0x170] sm:$0xf]  ;;  %279 = vst [vmem:[%s1286_s27 + $0xb0] sm:$0xf] %v278_v44  ;;  %281 = vst [vmem:[%s1286_s27 + $0xb4] sm:$0xf] %v280_v45 }
  0x30   : > { %283 = vst [vmem:[%s1286_s27 + $0xb8] sm:$0xf] %v282_v46  ;;  %v284_v47 = vld [vmem:[%s1282_s26 + $0x178] sm:$0xf]  ;;  %v286_v48 = vld [vmem:[%s1282_s26 + $0x180] sm:$0xf] }
  0x31   : > { %v288_v49 = vld [vmem:[%s1282_s26 + $0x188] sm:$0xf]  ;;  %285 = vst [vmem:[%s1286_s27 + $0xbc] sm:$0xf] %v284_v47  ;;  %287 = vst [vmem:[%s1286_s27 + $0xc0] sm:$0xf] %v286_v48 }
  0x32   : > { %289 = vst [vmem:[%s1286_s27 + $0xc4] sm:$0xf] %v288_v49  ;;  %v290_v50 = vld [vmem:[%s1282_s26 + $0x190] sm:$0xf]  ;;  %v292_v51 = vld [vmem:[%s1282_s26 + $0x198] sm:$0xf] }
  0x33   : > { %v294_v52 = vld [vmem:[%s1282_s26 + $0x1a0] sm:$0xf]  ;;  %291 = vst [vmem:[%s1286_s27 + $0xc8] sm:$0xf] %v290_v50  ;;  %293 = vst [vmem:[%s1286_s27 + $0xcc] sm:$0xf] %v292_v51 }
  0x34   : > { %295 = vst [vmem:[%s1286_s27 + $0xd0] sm:$0xf] %v294_v52  ;;  %v296_v53 = vld [vmem:[%s1282_s26 + $0x1a8] sm:$0xf]  ;;  %v298_v54 = vld [vmem:[%s1282_s26 + $0x1b0] sm:$0xf] }
  0x35   : > { %v300_v55 = vld [vmem:[%s1282_s26 + $0x1b8] sm:$0xf]  ;;  %297 = vst [vmem:[%s1286_s27 + $0xd4] sm:$0xf] %v296_v53  ;;  %299 = vst [vmem:[%s1286_s27 + $0xd8] sm:$0xf] %v298_v54 }
  0x36   : > { %301 = vst [vmem:[%s1286_s27 + $0xdc] sm:$0xf] %v300_v55  ;;  %v302_v56 = vld [vmem:[%s1282_s26 + $0x1c0] sm:$0xf]  ;;  %v304_v57 = vld [vmem:[%s1282_s26 + $0x1c8] sm:$0xf] }
  0x37   : > { %v306_v58 = vld [vmem:[%s1282_s26 + $0x1d0] sm:$0xf]  ;;  %303 = vst [vmem:[%s1286_s27 + $0xe0] sm:$0xf] %v302_v56  ;;  %305 = vst [vmem:[%s1286_s27 + $0xe4] sm:$0xf] %v304_v57 }
  0x38   : > { %307 = vst [vmem:[%s1286_s27 + $0xe8] sm:$0xf] %v306_v58  ;;  %v308_v59 = vld [vmem:[%s1282_s26 + $0x1d8] sm:$0xf]  ;;  %v310_v60 = vld [vmem:[%s1282_s26 + $0x1e0] sm:$0xf] }
  0x39   : > { %v312_v61 = vld [vmem:[%s1282_s26 + $0x1e8] sm:$0xf]  ;;  %309 = vst [vmem:[%s1286_s27 + $0xec] sm:$0xf] %v308_v59  ;;  %311 = vst [vmem:[%s1286_s27 + $0xf0] sm:$0xf] %v310_v60 }
  0x3a   : > { %313 = vst [vmem:[%s1286_s27 + $0xf4] sm:$0xf] %v312_v61  ;;  %v314_v62 = vld [vmem:[%s1282_s26 + $0x1f0] sm:$0xf]  ;;  %v316_v63 = vld [vmem:[%s1282_s26 + $0x1f8] sm:$0xf] }
  0x3b   : > { %315 = vst [vmem:[%s1286_s27 + $0xf8] sm:$0xf] %v314_v62  ;;  %317 = vst [vmem:[%s1286_s27 + $0xfc] sm:$0xf] %v316_v63 }
  0x3c PF: > { %p1025_p6 = scmp.ge.s32.totalorder %s1217_s16, 1  ;;  %p473_p7 = scmp.lt.s32.totalorder %s1217_s16, 3 }
  0x3e   : > { %p474_p8 = pnand %p1025_p6, %p473_p7 }
  0x3f   : > { %s480_s28 = sand.u32 (!%p474_p8), 1, %s1201_s12   ;;  %v543_v0 = vld [vmem:[%s1486_s0 + $0x8] sm:$0xff] (!%p474_p8)  ;;  %v545_v1 = vld [vmem:[%s1486_s0 + $0x18] sm:$0xff] (!%p474_p8)  ;;  %v542_v31 = vld [vmem:[%s1486_s0] sm:$0xff] (!%p474_p8)  ;;  %p520_p9 = scmp.lt.s32.totalorder (!%p474_p8), %s1209_s14, 1 }
  0x40   : > { %477 = sbr.rel (%p474_p8) target bundleno = 323 (0x143), region = 69  ;;  %s1026_s6 = sshll.u32 (!%p474_p8), %s480_s28, 8  ;;  %v548_v2 = vpack.c.bf16 (!%p474_p8), %v543_v0, %v543_v0  ;;  %v550_v3 = vpack.c.bf16 (!%p474_p8), %v545_v1, %v545_v1  ;;  %v544_v33 = vld [vmem:[%s1486_s0 + $0x10] sm:$0xff] (!%p474_p8)  ;;  %v547_v38 = vpack.c.bf16 (!%p474_p8), %v542_v31, %v542_v31 }
  0x41   : > { %s1423_s7 = scalar_lea.vmem (!%p474_p8), [#allocation3], %s1026_s6  ;;  %v549_v39 = vpack.c.bf16 (!%p474_p8), %v544_v33, %v544_v33 }
  0x42   : > { %v1147_v4 = vld [vmem:[%s1423_s7 + $0x40] sm:$0xff] (!%p474_p8)   ;;  %839 = vmatprep.mubr.bf16.mxu0 (!%p474_p8), %v548_v2  ;;  %879 = vmatprep.mubr.bf16.mxu1 (!%p474_p8), %v550_v3  ;;  %v1151_v8 = vld [vmem:[%s1423_s7 + $0x48] sm:$0xff] (!%p474_p8)   ;;  %v1155_v12 = vld [vmem:[%s1423_s7 + $0x50] sm:$0xff] (!%p474_p8)  }
  0x43   : > { %v1148_v5 = vld [vmem:[%s1423_s7 + $0xc0] sm:$0xff] (!%p474_p8)   ;;  %1063 = vmatprep.subr.bf16.mxu0 (!%p474_p8), %v1147_v4  ;;  %v1152_v9 = vld [vmem:[%s1423_s7 + $0xc8] sm:$0xff] (!%p474_p8)   ;;  %v1156_v13 = vld [vmem:[%s1423_s7 + $0xd0] sm:$0xff] (!%p474_p8)  }
  0x44   : > { %v1149_v6 = vld [vmem:[%s1423_s7] sm:$0xff] (!%p474_p8)   ;;  %1085 = vmatprep.subr.bf16.mxu1 (!%p474_p8), %v1148_v5  ;;  %v1153_v10 = vld [vmem:[%s1423_s7 + $0x8] sm:$0xff] (!%p474_p8)   ;;  %v1157_v14 = vld [vmem:[%s1423_s7 + $0x10] sm:$0xff] (!%p474_p8)  }
  0x45   : > { %v1150_v7 = vld [vmem:[%s1423_s7 + $0x80] sm:$0xff] (!%p474_p8)   ;;  %1064 = vmatpush3.bf16.msra.mxu0 (!%p474_p8), %v1149_v6  ;;  %v1154_v11 = vld [vmem:[%s1423_s7 + $0x88] sm:$0xff] (!%p474_p8)   ;;  %v1158_v15 = vld [vmem:[%s1423_s7 + $0x90] sm:$0xff] (!%p474_p8)  }
  0x46   : > { %1086 = vmatpush3.bf16.msra.mxu1 (!%p474_p8), %v1150_v7  ;;  %1065 = vmatprep.subr.bf16.mxu0 (!%p474_p8), %v1151_v8  ;;  %v1159_v16 = vld [vmem:[%s1423_s7 + $0x58] sm:$0xff] (!%p474_p8)   ;;  %v1163_v20 = vld [vmem:[%s1423_s7 + $0x60] sm:$0xff] (!%p474_p8)   ;;  %v1167_v24 = vld [vmem:[%s1423_s7 + $0x68] sm:$0xff] (!%p474_p8)  }
  0x47   : > { %1087 = vmatprep.subr.bf16.mxu1 %v1152_v9  ;;  %v1160_v17 = vld [vmem:[%s1423_s7 + $0xd8] sm:$0xff]   ;;  %v1164_v21 = vld [vmem:[%s1423_s7 + $0xe0] sm:$0xff]   ;;  %v1168_v25 = vld [vmem:[%s1423_s7 + $0xe8] sm:$0xff]   ;;  %s1497_s14 = smov (!%p520_p9, %s1209_s14), 1 }
  0x48   : > { %v1161_v18 = vld [vmem:[%s1423_s7 + $0x18] sm:$0xff]   ;;  %v1165_v22 = vld [vmem:[%s1423_s7 + $0x20] sm:$0xff]   ;;  %v1169_v26 = vld [vmem:[%s1423_s7 + $0x28] sm:$0xff]   ;;  %s522_s19 = scalar_lea.vmem %s1488_s2, %s1497_s14  ;;  %s1027_s21 = sshll.u32 %s1497_s14, 3 }
  0x49   : > { %1066 = vmatpush3.bf16.msra.mxu0 %v1153_v10  ;;  %v1162_v19 = vld [vmem:[%s1423_s7 + $0x98] sm:$0xff]   ;;  %v1166_v23 = vld [vmem:[%s1423_s7 + $0xa0] sm:$0xff]   ;;  %v1170_v27 = vld [vmem:[%s1423_s7 + $0xa8] sm:$0xff]   ;;  %s530_s24 = scalar_lea.vmem %s1489_s3, %s1027_s21 }
  0x4a   : > { %1088 = vmatpush3.bf16.msra.mxu1 %v1154_v11  ;;  %1067 = vmatprep.subr.bf16.mxu0 %v1155_v12  ;;  %v1171_v28 = vld [vmem:[%s1423_s7 + $0x70] sm:$0xff]   ;;  %v1175_v34 = vld [vmem:[%s1423_s7 + $0x78] sm:$0xff]   ;;  %v1060_v49 = vld [vmem:[%s522_s19] ss:$0 sm:$0xff] }
  0x4b   : > { %1089 = vmatprep.subr.bf16.mxu1 %v1156_v13  ;;  %v1172_v29 = vld [vmem:[%s1423_s7 + $0xf0] sm:$0xff]   ;;  %v1176_v35 = vld [vmem:[%s1423_s7 + $0xf8] sm:$0xff]  }
  0x4c   : > { %v1173_v30 = vld [vmem:[%s1423_s7 + $0x30] sm:$0xff]   ;;  %v1177_v36 = vld [vmem:[%s1423_s7 + $0x38] sm:$0xff]  }
  0x4d   : > { %1068 = vmatpush3.bf16.msra.mxu0 %v1157_v14  ;;  %v1174_v32 = vld [vmem:[%s1423_s7 + $0xb0] sm:$0xff]   ;;  %v1178_v37 = vld [vmem:[%s1423_s7 + $0xb8] sm:$0xff]  }
  0x4e   : > { %1090 = vmatpush3.bf16.msra.mxu1 %v1158_v15  ;;  %1069 = vmatprep.subr.bf16.mxu0 %v1159_v16 }
  0x4f   : > { %1091 = vmatprep.subr.bf16.mxu1 %v1160_v17 }
  0x51   : > { %1070 = vmatpush3.bf16.msra.mxu0 %v1161_v18 }
  0x52   : > { %1092 = vmatpush3.bf16.msra.mxu1 %v1162_v19  ;;  %1071 = vmatprep.subr.bf16.mxu0 %v1163_v20 }
  0x53   : > { %1093 = vmatprep.subr.bf16.mxu1 %v1164_v21 }
  0x55   : > { %1072 = vmatpush3.bf16.msra.mxu0 %v1165_v22 }
  0x56   : > { %1094 = vmatpush3.bf16.msra.mxu1 %v1166_v23  ;;  %1073 = vmatprep.subr.bf16.mxu0 %v1167_v24 }
  0x57   : > { %1095 = vmatprep.subr.bf16.mxu1 %v1168_v25 }
  0x59   : > { %1074 = vmatpush3.bf16.msra.mxu0 %v1169_v26 }
  0x5a   : > { %1096 = vmatpush3.bf16.msra.mxu1 %v1170_v27  ;;  %1075 = vmatprep.subr.bf16.mxu0 %v1171_v28 }
  0x5b   : > { %1097 = vmatprep.subr.bf16.mxu1 %v1172_v29 }
  0x5d   : > { %1076 = vmatpush3.bf16.msra.mxu0 %v1173_v30 }
  0x5e   : > { %1098 = vmatpush3.bf16.msra.mxu1 %v1174_v32  ;;  %1077 = vmatprep.subr.bf16.mxu0 %v1175_v34 }
  0x5f   : > { %1099 = vmatprep.subr.bf16.mxu1 %v1176_v35 }
  0x61   : > { %1078 = vmatpush3.bf16.msra.mxu0 %v1177_v36 }
  0x62   : > { %1100 = vmatpush3.bf16.msra.mxu1 %v1178_v37 }
  0x64   : > { %840 = vmatmul.mubr.bf16.vlgmr.msra.gmra.mrb[0].mxu0 %v547_v38 }
  0x65   : > { %880 = vmatmul.mubr.bf16.vlgmr.msra.gmra.mrb[0].mxu1 %v549_v39 }
 0x137   : > { %v1079_v40 = vpop.f32.mrb[0].mxu0 }
 0x138   : > { %v1101_v41 = vpop.f32.mrb[0].mxu1  ;;  %v1080_v42 = vpop.f32.mrb[1].mxu0 }
 0x139   : > { %v1081_v43 = vadd.f32 %v1080_v42, %v1079_v40  ;;  %v1102_v44 = vpop.f32.mrb[1].mxu1  ;;  %v1082_v45 = vpop.f32.mrb[2].mxu0 }
 0x13a   : > { %v1103_v46 = vadd.f32 %v1102_v44, %v1101_v41  ;;  %v1104_v47 = vpop.f32.mrb[2].mxu1  ;;  %v1083_v48 = vpop.f32.mrb[3].mxu0 }
 0x13b   : > { %v1105_v50 = vpop.f32.mrb[3].mxu1 }
 0x13c   : > { %v882_v51 = vadd.f32 %v1103_v46, %v1081_v43 }
 0x13e   : > { %v900_v52 = vadd.f32 %v1060_v49, %v882_v51 }
 0x140   : > { %v901_v53 = vmax.f32 %v900_v52, 0.0 }
 0x142   : > { %902 = vst [vmem:[%s530_s24] sm:$0xff] %v901_v53 }
 0x143 PF: > { %s13_s16 = sadd.s32 1, %s1217_s16   ;;  %s1490_s12 = smov %s1205_s13 }
 0x144   : > { %p10_p10 = scmp.ge.s32.totalorder %s13_s16, 4   ;;  %s1491_s13 = smov %s1274_s20 }
 0x145   : > { %s1492_s14 = smov %s1213_s15  ;;  %s1493_s15 = smov %s1495_s17 }
 0x146   :  { %12 = sbr.rel (!%p10_p10) target bundleno = 3 (0x3), region = 123 }

// kernel: autoencoder_forward.4
= control target key start
LH: loop header
LB: loop body
LE: loop exit
PB: predicated region body
PF: predicated region fallthrough
CT: control target
= control target key end

     0   :  { %s5893_s12 = smov 0   ;;  %s5895_s13 = smov 0   ;;  %s7203_s0 = inlined_call_operand.vmem [shape: f32[8,3072], index: 0, kind: input, shape index: {}]   ;;  %s7204_s1 = inlined_call_operand.vmem [shape: bf16[3072,512], index: 1, kind: input, shape index: {}]   ;;  %s7205_s2 = inlined_call_operand.vmem [shape: f32[1,512], index: 2, kind: input, shape index: {}]   ;;  %s7206_s3 = inlined_call_operand.vmem [shape: f32[8,512], index: 3, kind: output, shape index: {}]  }
   0x1   :  { %s5897_s14 = smov 0   ;;  %s5899_s15 = smov 0  }
   0x2   :  { %s5901_s16 = smov 0  }
   0x3 LB: > { %s28_s17 = sadd.s32 1, %s5867_s15  ;;  %p74_p1 = scmp.ne.s32.totalorder %s5859_s13, %s5855_s12  ;;  %s5871_s16 = sphi %s5901_s16, %s13_s16   ;;  %s5867_s15 = sphi %s5899_s15, %s7210_s15   ;;  %s5863_s14 = sphi %s5897_s14, %s7209_s14   ;;  %s5859_s13 = sphi %s5895_s13, %s7208_s13   ;;  %s5855_s12 = sphi %s5893_s12, %s7207_s12  }
   0x4   : > { %p30_p0 = scmp.ge.s32.totalorder %s28_s17, 2  ;;  %p75_p2 = scmp.eq.s32.totalorder %s5871_s16, 0 }
   0x5   : > { %s67_s19 = sadd.s32 1, %s5859_s13  ;;  %p4821_p5 = scmp.ge.s32.totalorder %s5871_s16, 2 }
   0x6   : > { %s7212_s17 = smov (%p30_p0, %s28_s17), 0  ;;  %p76_p3 = por %p75_p2, %p74_p1 }
   0x7   : > { %s63_s18 = ssub.s32 %s5867_s15, %s7212_s17  ;;  %162 = sbr.rel (%p4821_p5) target bundleno = 210 (0xd2), region = 20 }
   0x8   : > { %p65_p4 = scmp.eq.s32.totalorder %s63_s18, 0 }
   0xa   : > { %s5928_s20 = scalar_select %p65_p4, %s5859_s13, %s67_s19  }
   0xe   : > { %165 = sbr.rel (!%p76_p3) target bundleno = 210 (0xd2), region = 24  ;;  %s167_s21 = sand.u32 (%p76_p3), 1, %s5859_s13  }
   0xf   : > { %s5214_s22 = sshll.u32 (%p76_p3), %s5867_s15, 3  ;;  %s5215_s23 = smul.u32 (%p76_p3), 3072, %s167_s21 }
  0x10   : > { %s5936_s26 = scalar_lea.vmem (%p76_p3), %s7204_s1, %s5214_s22 }
  0x11   : > { %v969_v0 = vld [vmem:[%s5936_s26] sm:$0xff] (%p76_p3)  ;;  %v971_v1 = vld [vmem:[%s5936_s26 + $0x10] sm:$0xff] (%p76_p3)  ;;  %s5944_s27 = scalar_lea.vmem (%p76_p3), [#allocation3], %s5215_s23 }
  0x12   : > { %v973_v2 = vld [vmem:[%s5936_s26 + $0x20] sm:$0xff] (%p76_p3)  ;;  %v975_v3 = vld [vmem:[%s5936_s26 + $0x30] sm:$0xff] (%p76_p3)  ;;  %970 = vst [vmem:[%s5944_s27] sm:$0xff] (%p76_p3), %v969_v0  ;;  %972 = vst [vmem:[%s5944_s27 + $0x8] sm:$0xff] (%p76_p3), %v971_v1 }
  0x13   : > { %v977_v4 = vld [vmem:[%s5936_s26 + $0x40] sm:$0xff] (%p76_p3)  ;;  %v979_v5 = vld [vmem:[%s5936_s26 + $0x50] sm:$0xff] (%p76_p3)  ;;  %974 = vst [vmem:[%s5944_s27 + $0x10] sm:$0xff] (%p76_p3), %v973_v2  ;;  %976 = vst [vmem:[%s5944_s27 + $0x18] sm:$0xff] (%p76_p3), %v975_v3 }
  0x14   : > { %978 = vst [vmem:[%s5944_s27 + $0x20] sm:$0xff] (%p76_p3), %v977_v4  ;;  %980 = vst [vmem:[%s5944_s27 + $0x28] sm:$0xff] (%p76_p3), %v979_v5  ;;  %v981_v6 = vld [vmem:[%s5936_s26 + $0x60] sm:$0xff] (%p76_p3)  ;;  %v983_v7 = vld [vmem:[%s5936_s26 + $0x70] sm:$0xff] (%p76_p3) }
  0x15   : > { %v985_v8 = vld [vmem:[%s5936_s26 + $0x80] sm:$0xff]  ;;  %982 = vst [vmem:[%s5944_s27 + $0x30] sm:$0xff] %v981_v6  ;;  %984 = vst [vmem:[%s5944_s27 + $0x38] sm:$0xff] %v983_v7  ;;  %v987_v9 = vld [vmem:[%s5936_s26 + $0x90] sm:$0xff] }
  0x16   : > { %986 = vst [vmem:[%s5944_s27 + $0x40] sm:$0xff] %v985_v8  ;;  %v989_v10 = vld [vmem:[%s5936_s26 + $0xa0] sm:$0xff]  ;;  %v991_v11 = vld [vmem:[%s5936_s26 + $0xb0] sm:$0xff]  ;;  %988 = vst [vmem:[%s5944_s27 + $0x48] sm:$0xff] %v987_v9 }
  0x17   : > { %990 = vst [vmem:[%s5944_s27 + $0x50] sm:$0xff] %v989_v10  ;;  %992 = vst [vmem:[%s5944_s27 + $0x58] sm:$0xff] %v991_v11  ;;  %v993_v12 = vld [vmem:[%s5936_s26 + $0xc0] sm:$0xff]  ;;  %v995_v13 = vld [vmem:[%s5936_s26 + $0xd0] sm:$0xff] }
  0x18   : > { %v997_v14 = vld [vmem:[%s5936_s26 + $0xe0] sm:$0xff]  ;;  %994 = vst [vmem:[%s5944_s27 + $0x60] sm:$0xff] %v993_v12  ;;  %996 = vst [vmem:[%s5944_s27 + $0x68] sm:$0xff] %v995_v13  ;;  %v999_v15 = vld [vmem:[%s5936_s26 + $0xf0] sm:$0xff] }
  0x19   : > { %998 = vst [vmem:[%s5944_s27 + $0x70] sm:$0xff] %v997_v14  ;;  %v1001_v16 = vld [vmem:[%s5936_s26 + $0x100] sm:$0xff]  ;;  %v1003_v17 = vld [vmem:[%s5936_s26 + $0x110] sm:$0xff]  ;;  %1000 = vst [vmem:[%s5944_s27 + $0x78] sm:$0xff] %v999_v15 }
  0x1a   : > { %1002 = vst [vmem:[%s5944_s27 + $0x80] sm:$0xff] %v1001_v16  ;;  %1004 = vst [vmem:[%s5944_s27 + $0x88] sm:$0xff] %v1003_v17  ;;  %v1005_v18 = vld [vmem:[%s5936_s26 + $0x120] sm:$0xff]  ;;  %v1007_v19 = vld [vmem:[%s5936_s26 + $0x130] sm:$0xff] }
  0x1b   : > { %v1009_v20 = vld [vmem:[%s5936_s26 + $0x140] sm:$0xff]  ;;  %1006 = vst [vmem:[%s5944_s27 + $0x90] sm:$0xff] %v1005_v18  ;;  %1008 = vst [vmem:[%s5944_s27 + $0x98] sm:$0xff] %v1007_v19  ;;  %v1011_v21 = vld [vmem:[%s5936_s26 + $0x150] sm:$0xff] }
  0x1c   : > { %1010 = vst [vmem:[%s5944_s27 + $0xa0] sm:$0xff] %v1009_v20  ;;  %v1013_v22 = vld [vmem:[%s5936_s26 + $0x160] sm:$0xff]  ;;  %v1015_v23 = vld [vmem:[%s5936_s26 + $0x170] sm:$0xff]  ;;  %1012 = vst [vmem:[%s5944_s27 + $0xa8] sm:$0xff] %v1011_v21 }
  0x1d   : > { %1014 = vst [vmem:[%s5944_s27 + $0xb0] sm:$0xff] %v1013_v22  ;;  %1016 = vst [vmem:[%s5944_s27 + $0xb8] sm:$0xff] %v1015_v23  ;;  %v1017_v24 = vld [vmem:[%s5936_s26 + $0x180] sm:$0xff]  ;;  %v1019_v25 = vld [vmem:[%s5936_s26 + $0x190] sm:$0xff] }
  0x1e   : > { %v1021_v26 = vld [vmem:[%s5936_s26 + $0x1a0] sm:$0xff]  ;;  %1018 = vst [vmem:[%s5944_s27 + $0xc0] sm:$0xff] %v1017_v24  ;;  %1020 = vst [vmem:[%s5944_s27 + $0xc8] sm:$0xff] %v1019_v25  ;;  %v1023_v27 = vld [vmem:[%s5936_s26 + $0x1b0] sm:$0xff] }
  0x1f   : > { %1022 = vst [vmem:[%s5944_s27 + $0xd0] sm:$0xff] %v1021_v26  ;;  %v1025_v28 = vld [vmem:[%s5936_s26 + $0x1c0] sm:$0xff]  ;;  %v1027_v29 = vld [vmem:[%s5936_s26 + $0x1d0] sm:$0xff]  ;;  %1024 = vst [vmem:[%s5944_s27 + $0xd8] sm:$0xff] %v1023_v27 }
  0x20   : > { %1026 = vst [vmem:[%s5944_s27 + $0xe0] sm:$0xff] %v1025_v28  ;;  %1028 = vst [vmem:[%s5944_s27 + $0xe8] sm:$0xff] %v1027_v29  ;;  %v1029_v30 = vld [vmem:[%s5936_s26 + $0x1e0] sm:$0xff]  ;;  %v1031_v31 = vld [vmem:[%s5936_s26 + $0x1f0] sm:$0xff] }
  0x21   : > { %v1033_v32 = vld [vmem:[%s5936_s26 + $0x200] sm:$0xff]  ;;  %1030 = vst [vmem:[%s5944_s27 + $0xf0] sm:$0xff] %v1029_v30  ;;  %1032 = vst [vmem:[%s5944_s27 + $0xf8] sm:$0xff] %v1031_v31  ;;  %v1035_v33 = vld [vmem:[%s5936_s26 + $0x210] sm:$0xff] }
  0x22   : > { %1034 = vst [vmem:[%s5944_s27 + $0x100] sm:$0xff] %v1033_v32  ;;  %v1037_v34 = vld [vmem:[%s5936_s26 + $0x220] sm:$0xff]  ;;  %v1039_v35 = vld [vmem:[%s5936_s26 + $0x230] sm:$0xff]  ;;  %1036 = vst [vmem:[%s5944_s27 + $0x108] sm:$0xff] %v1035_v33 }
  0x23   : > { %1038 = vst [vmem:[%s5944_s27 + $0x110] sm:$0xff] %v1037_v34  ;;  %1040 = vst [vmem:[%s5944_s27 + $0x118] sm:$0xff] %v1039_v35  ;;  %v1041_v36 = vld [vmem:[%s5936_s26 + $0x240] sm:$0xff]  ;;  %v1043_v37 = vld [vmem:[%s5936_s26 + $0x250] sm:$0xff] }
  0x24   : > { %v1045_v38 = vld [vmem:[%s5936_s26 + $0x260] sm:$0xff]  ;;  %1042 = vst [vmem:[%s5944_s27 + $0x120] sm:$0xff] %v1041_v36  ;;  %1044 = vst [vmem:[%s5944_s27 + $0x128] sm:$0xff] %v1043_v37  ;;  %v1047_v39 = vld [vmem:[%s5936_s26 + $0x270] sm:$0xff] }
  0x25   : > { %1046 = vst [vmem:[%s5944_s27 + $0x130] sm:$0xff] %v1045_v38  ;;  %v1049_v40 = vld [vmem:[%s5936_s26 + $0x280] sm:$0xff]  ;;  %v1051_v41 = vld [vmem:[%s5936_s26 + $0x290] sm:$0xff]  ;;  %1048 = vst [vmem:[%s5944_s27 + $0x138] sm:$0xff] %v1047_v39 }
  0x26   : > { %1050 = vst [vmem:[%s5944_s27 + $0x140] sm:$0xff] %v1049_v40  ;;  %1052 = vst [vmem:[%s5944_s27 + $0x148] sm:$0xff] %v1051_v41  ;;  %v1053_v42 = vld [vmem:[%s5936_s26 + $0x2a0] sm:$0xff]  ;;  %v1055_v43 = vld [vmem:[%s5936_s26 + $0x2b0] sm:$0xff] }
  0x27   : > { %v1057_v44 = vld [vmem:[%s5936_s26 + $0x2c0] sm:$0xff]  ;;  %1054 = vst [vmem:[%s5944_s27 + $0x150] sm:$0xff] %v1053_v42  ;;  %1056 = vst [vmem:[%s5944_s27 + $0x158] sm:$0xff] %v1055_v43  ;;  %v1059_v45 = vld [vmem:[%s5936_s26 + $0x2d0] sm:$0xff] }
  0x28   : > { %1058 = vst [vmem:[%s5944_s27 + $0x160] sm:$0xff] %v1057_v44  ;;  %v1061_v46 = vld [vmem:[%s5936_s26 + $0x2e0] sm:$0xff]  ;;  %v1063_v47 = vld [vmem:[%s5936_s26 + $0x2f0] sm:$0xff]  ;;  %1060 = vst [vmem:[%s5944_s27 + $0x168] sm:$0xff] %v1059_v45 }
  0x29   : > { %1062 = vst [vmem:[%s5944_s27 + $0x170] sm:$0xff] %v1061_v46  ;;  %1064 = vst [vmem:[%s5944_s27 + $0x178] sm:$0xff] %v1063_v47  ;;  %v1065_v48 = vld [vmem:[%s5936_s26 + $0x300] sm:$0xff]  ;;  %v1067_v49 = vld [vmem:[%s5936_s26 + $0x310] sm:$0xff] }
  0x2a   : > { %v1069_v50 = vld [vmem:[%s5936_s26 + $0x320] sm:$0xff]  ;;  %1066 = vst [vmem:[%s5944_s27 + $0x180] sm:$0xff] %v1065_v48  ;;  %1068 = vst [vmem:[%s5944_s27 + $0x188] sm:$0xff] %v1067_v49  ;;  %v1071_v51 = vld [vmem:[%s5936_s26 + $0x330] sm:$0xff] }
  0x2b   : > { %1070 = vst [vmem:[%s5944_s27 + $0x190] sm:$0xff] %v1069_v50  ;;  %v1073_v52 = vld [vmem:[%s5936_s26 + $0x340] sm:$0xff]  ;;  %v1075_v53 = vld [vmem:[%s5936_s26 + $0x350] sm:$0xff]  ;;  %1072 = vst [vmem:[%s5944_s27 + $0x198] sm:$0xff] %v1071_v51 }
  0x2c   : > { %1074 = vst [vmem:[%s5944_s27 + $0x1a0] sm:$0xff] %v1073_v52  ;;  %1076 = vst [vmem:[%s5944_s27 + $0x1a8] sm:$0xff] %v1075_v53  ;;  %v1077_v54 = vld [vmem:[%s5936_s26 + $0x360] sm:$0xff]  ;;  %v1079_v55 = vld [vmem:[%s5936_s26 + $0x370] sm:$0xff] }
  0x2d   : > { %v1081_v56 = vld [vmem:[%s5936_s26 + $0x380] sm:$0xff]  ;;  %1078 = vst [vmem:[%s5944_s27 + $0x1b0] sm:$0xff] %v1077_v54  ;;  %1080 = vst [vmem:[%s5944_s27 + $0x1b8] sm:$0xff] %v1079_v55  ;;  %v1083_v57 = vld [vmem:[%s5936_s26 + $0x390] sm:$0xff] }
  0x2e   : > { %1082 = vst [vmem:[%s5944_s27 + $0x1c0] sm:$0xff] %v1081_v56  ;;  %v1085_v58 = vld [vmem:[%s5936_s26 + $0x3a0] sm:$0xff]  ;;  %v1087_v59 = vld [vmem:[%s5936_s26 + $0x3b0] sm:$0xff]  ;;  %1084 = vst [vmem:[%s5944_s27 + $0x1c8] sm:$0xff] %v1083_v57 }
  0x2f   : > { %1086 = vst [vmem:[%s5944_s27 + $0x1d0] sm:$0xff] %v1085_v58  ;;  %1088 = vst [vmem:[%s5944_s27 + $0x1d8] sm:$0xff] %v1087_v59  ;;  %v1089_v60 = vld [vmem:[%s5936_s26 + $0x3c0] sm:$0xff]  ;;  %v1091_v61 = vld [vmem:[%s5936_s26 + $0x3d0] sm:$0xff] }
  0x30   : > { %v1093_v62 = vld [vmem:[%s5936_s26 + $0x3e0] sm:$0xff]  ;;  %1090 = vst [vmem:[%s5944_s27 + $0x1e0] sm:$0xff] %v1089_v60  ;;  %1092 = vst [vmem:[%s5944_s27 + $0x1e8] sm:$0xff] %v1091_v61  ;;  %v1095_v63 = vld [vmem:[%s5936_s26 + $0x3f0] sm:$0xff] }
  0x31   : > { %1094 = vst [vmem:[%s5944_s27 + $0x1f0] sm:$0xff] %v1093_v62  ;;  %v1097_v0 = vld [vmem:[%s5936_s26 + $0x400] sm:$0xff]  ;;  %v1099_v1 = vld [vmem:[%s5936_s26 + $0x410] sm:$0xff]  ;;  %1096 = vst [vmem:[%s5944_s27 + $0x1f8] sm:$0xff] %v1095_v63 }
  0x32   : > { %1098 = vst [vmem:[%s5944_s27 + $0x200] sm:$0xff] %v1097_v0  ;;  %1100 = vst [vmem:[%s5944_s27 + $0x208] sm:$0xff] %v1099_v1  ;;  %v1101_v2 = vld [vmem:[%s5936_s26 + $0x420] sm:$0xff]  ;;  %v1103_v3 = vld [vmem:[%s5936_s26 + $0x430] sm:$0xff] }
  0x33   : > { %v1105_v4 = vld [vmem:[%s5936_s26 + $0x440] sm:$0xff]  ;;  %1102 = vst [vmem:[%s5944_s27 + $0x210] sm:$0xff] %v1101_v2  ;;  %1104 = vst [vmem:[%s5944_s27 + $0x218] sm:$0xff] %v1103_v3  ;;  %v1107_v5 = vld [vmem:[%s5936_s26 + $0x450] sm:$0xff] }
  0x34   : > { %1106 = vst [vmem:[%s5944_s27 + $0x220] sm:$0xff] %v1105_v4  ;;  %v1109_v6 = vld [vmem:[%s5936_s26 + $0x460] sm:$0xff]  ;;  %v1111_v7 = vld [vmem:[%s5936_s26 + $0x470] sm:$0xff]  ;;  %1108 = vst [vmem:[%s5944_s27 + $0x228] sm:$0xff] %v1107_v5 }
  0x35   : > { %1110 = vst [vmem:[%s5944_s27 + $0x230] sm:$0xff] %v1109_v6  ;;  %1112 = vst [vmem:[%s5944_s27 + $0x238] sm:$0xff] %v1111_v7  ;;  %v1113_v8 = vld [vmem:[%s5936_s26 + $0x480] sm:$0xff]  ;;  %v1115_v9 = vld [vmem:[%s5936_s26 + $0x490] sm:$0xff] }
  0x36   : > { %v1117_v10 = vld [vmem:[%s5936_s26 + $0x4a0] sm:$0xff]  ;;  %1114 = vst [vmem:[%s5944_s27 + $0x240] sm:$0xff] %v1113_v8  ;;  %1116 = vst [vmem:[%s5944_s27 + $0x248] sm:$0xff] %v1115_v9  ;;  %v1119_v11 = vld [vmem:[%s5936_s26 + $0x4b0] sm:$0xff] }
  0x37   : > { %1118 = vst [vmem:[%s5944_s27 + $0x250] sm:$0xff] %v1117_v10  ;;  %v1121_v12 = vld [vmem:[%s5936_s26 + $0x4c0] sm:$0xff]  ;;  %v1123_v13 = vld [vmem:[%s5936_s26 + $0x4d0] sm:$0xff]  ;;  %1120 = vst [vmem:[%s5944_s27 + $0x258] sm:$0xff] %v1119_v11 }
  0x38   : > { %1122 = vst [vmem:[%s5944_s27 + $0x260] sm:$0xff] %v1121_v12  ;;  %1124 = vst [vmem:[%s5944_s27 + $0x268] sm:$0xff] %v1123_v13  ;;  %v1125_v14 = vld [vmem:[%s5936_s26 + $0x4e0] sm:$0xff]  ;;  %v1127_v15 = vld [vmem:[%s5936_s26 + $0x4f0] sm:$0xff] }
  0x39   : > { %v1129_v16 = vld [vmem:[%s5936_s26 + $0x500] sm:$0xff]  ;;  %1126 = vst [vmem:[%s5944_s27 + $0x270] sm:$0xff] %v1125_v14  ;;  %1128 = vst [vmem:[%s5944_s27 + $0x278] sm:$0xff] %v1127_v15  ;;  %v1131_v17 = vld [vmem:[%s5936_s26 + $0x510] sm:$0xff] }
  0x3a   : > { %1130 = vst [vmem:[%s5944_s27 + $0x280] sm:$0xff] %v1129_v16  ;;  %v1133_v18 = vld [vmem:[%s5936_s26 + $0x520] sm:$0xff]  ;;  %v1135_v19 = vld [vmem:[%s5936_s26 + $0x530] sm:$0xff]  ;;  %1132 = vst [vmem:[%s5944_s27 + $0x288] sm:$0xff] %v1131_v17 }
  0x3b   : > { %1134 = vst [vmem:[%s5944_s27 + $0x290] sm:$0xff] %v1133_v18  ;;  %1136 = vst [vmem:[%s5944_s27 + $0x298] sm:$0xff] %v1135_v19  ;;  %v1137_v20 = vld [vmem:[%s5936_s26 + $0x540] sm:$0xff]  ;;  %v1139_v21 = vld [vmem:[%s5936_s26 + $0x550] sm:$0xff] }
  0x3c   : > { %v1141_v22 = vld [vmem:[%s5936_s26 + $0x560] sm:$0xff]  ;;  %1138 = vst [vmem:[%s5944_s27 + $0x2a0] sm:$0xff] %v1137_v20  ;;  %1140 = vst [vmem:[%s5944_s27 + $0x2a8] sm:$0xff] %v1139_v21  ;;  %v1143_v23 = vld [vmem:[%s5936_s26 + $0x570] sm:$0xff] }
  0x3d   : > { %1142 = vst [vmem:[%s5944_s27 + $0x2b0] sm:$0xff] %v1141_v22  ;;  %v1145_v24 = vld [vmem:[%s5936_s26 + $0x580] sm:$0xff]  ;;  %v1147_v25 = vld [vmem:[%s5936_s26 + $0x590] sm:$0xff]  ;;  %1144 = vst [vmem:[%s5944_s27 + $0x2b8] sm:$0xff] %v1143_v23 }
  0x3e   : > { %1146 = vst [vmem:[%s5944_s27 + $0x2c0] sm:$0xff] %v1145_v24  ;;  %1148 = vst [vmem:[%s5944_s27 + $0x2c8] sm:$0xff] %v1147_v25  ;;  %v1149_v26 = vld [vmem:[%s5936_s26 + $0x5a0] sm:$0xff]  ;;  %v1151_v27 = vld [vmem:[%s5936_s26 + $0x5b0] sm:$0xff] }
  0x3f   : > { %v1153_v28 = vld [vmem:[%s5936_s26 + $0x5c0] sm:$0xff]  ;;  %1150 = vst [vmem:[%s5944_s27 + $0x2d0] sm:$0xff] %v1149_v26  ;;  %1152 = vst [vmem:[%s5944_s27 + $0x2d8] sm:$0xff] %v1151_v27  ;;  %v1155_v29 = vld [vmem:[%s5936_s26 + $0x5d0] sm:$0xff] }
  0x40   : > { %1154 = vst [vmem:[%s5944_s27 + $0x2e0] sm:$0xff] %v1153_v28  ;;  %v1157_v30 = vld [vmem:[%s5936_s26 + $0x5e0] sm:$0xff]  ;;  %v1159_v31 = vld [vmem:[%s5936_s26 + $0x5f0] sm:$0xff]  ;;  %1156 = vst [vmem:[%s5944_s27 + $0x2e8] sm:$0xff] %v1155_v29 }
  0x41   : > { %1158 = vst [vmem:[%s5944_s27 + $0x2f0] sm:$0xff] %v1157_v30  ;;  %1160 = vst [vmem:[%s5944_s27 + $0x2f8] sm:$0xff] %v1159_v31  ;;  %v1161_v32 = vld [vmem:[%s5936_s26 + $0x600] sm:$0xff]  ;;  %v1163_v33 = vld [vmem:[%s5936_s26 + $0x610] sm:$0xff] }
  0x42   : > { %v1165_v34 = vld [vmem:[%s5936_s26 + $0x620] sm:$0xff]  ;;  %1162 = vst [vmem:[%s5944_s27 + $0x300] sm:$0xff] %v1161_v32  ;;  %1164 = vst [vmem:[%s5944_s27 + $0x308] sm:$0xff] %v1163_v33  ;;  %v1167_v35 = vld [vmem:[%s5936_s26 + $0x630] sm:$0xff] }
  0x43   : > { %1166 = vst [vmem:[%s5944_s27 + $0x310] sm:$0xff] %v1165_v34  ;;  %v1169_v36 = vld [vmem:[%s5936_s26 + $0x640] sm:$0xff]  ;;  %v1171_v37 = vld [vmem:[%s5936_s26 + $0x650] sm:$0xff]  ;;  %1168 = vst [vmem:[%s5944_s27 + $0x318] sm:$0xff] %v1167_v35 }
  0x44   : > { %1170 = vst [vmem:[%s5944_s27 + $0x320] sm:$0xff] %v1169_v36  ;;  %1172 = vst [vmem:[%s5944_s27 + $0x328] sm:$0xff] %v1171_v37  ;;  %v1173_v38 = vld [vmem:[%s5936_s26 + $0x660] sm:$0xff]  ;;  %v1175_v39 = vld [vmem:[%s5936_s26 + $0x670] sm:$0xff] }
  0x45   : > { %v1177_v40 = vld [vmem:[%s5936_s26 + $0x680] sm:$0xff]  ;;  %1174 = vst [vmem:[%s5944_s27 + $0x330] sm:$0xff] %v1173_v38  ;;  %1176 = vst [vmem:[%s5944_s27 + $0x338] sm:$0xff] %v1175_v39  ;;  %v1179_v41 = vld [vmem:[%s5936_s26 + $0x690] sm:$0xff] }
  0x46   : > { %1178 = vst [vmem:[%s5944_s27 + $0x340] sm:$0xff] %v1177_v40  ;;  %v1181_v42 = vld [vmem:[%s5936_s26 + $0x6a0] sm:$0xff]  ;;  %v1183_v43 = vld [vmem:[%s5936_s26 + $0x6b0] sm:$0xff]  ;;  %1180 = vst [vmem:[%s5944_s27 + $0x348] sm:$0xff] %v1179_v41 }
  0x47   : > { %1182 = vst [vmem:[%s5944_s27 + $0x350] sm:$0xff] %v1181_v42  ;;  %1184 = vst [vmem:[%s5944_s27 + $0x358] sm:$0xff] %v1183_v43  ;;  %v1185_v44 = vld [vmem:[%s5936_s26 + $0x6c0] sm:$0xff]  ;;  %v1187_v45 = vld [vmem:[%s5936_s26 + $0x6d0] sm:$0xff] }
  0x48   : > { %v1189_v46 = vld [vmem:[%s5936_s26 + $0x6e0] sm:$0xff]  ;;  %1186 = vst [vmem:[%s5944_s27 + $0x360] sm:$0xff] %v1185_v44  ;;  %1188 = vst [vmem:[%s5944_s27 + $0x368] sm:$0xff] %v1187_v45  ;;  %v1191_v47 = vld [vmem:[%s5936_s26 + $0x6f0] sm:$0xff] }
  0x49   : > { %1190 = vst [vmem:[%s5944_s27 + $0x370] sm:$0xff] %v1189_v46  ;;  %v1193_v48 = vld [vmem:[%s5936_s26 + $0x700] sm:$0xff]  ;;  %v1195_v49 = vld [vmem:[%s5936_s26 + $0x710] sm:$0xff]  ;;  %1192 = vst [vmem:[%s5944_s27 + $0x378] sm:$0xff] %v1191_v47 }
  0x4a   : > { %1194 = vst [vmem:[%s5944_s27 + $0x380] sm:$0xff] %v1193_v48  ;;  %1196 = vst [vmem:[%s5944_s27 + $0x388] sm:$0xff] %v1195_v49  ;;  %v1197_v50 = vld [vmem:[%s5936_s26 + $0x720] sm:$0xff]  ;;  %v1199_v51 = vld [vmem:[%s5936_s26 + $0x730] sm:$0xff] }
  0x4b   : > { %v1201_v52 = vld [vmem:[%s5936_s26 + $0x740] sm:$0xff]  ;;  %1198 = vst [vmem:[%s5944_s27 + $0x390] sm:$0xff] %v1197_v50  ;;  %1200 = vst [vmem:[%s5944_s27 + $0x398] sm:$0xff] %v1199_v51  ;;  %v1203_v53 = vld [vmem:[%s5936_s26 + $0x750] sm:$0xff] }
  0x4c   : > { %1202 = vst [vmem:[%s5944_s27 + $0x3a0] sm:$0xff] %v1201_v52  ;;  %v1205_v54 = vld [vmem:[%s5936_s26 + $0x760] sm:$0xff]  ;;  %v1207_v55 = vld [vmem:[%s5936_s26 + $0x770] sm:$0xff]  ;;  %1204 = vst [vmem:[%s5944_s27 + $0x3a8] sm:$0xff] %v1203_v53 }
  0x4d   : > { %1206 = vst [vmem:[%s5944_s27 + $0x3b0] sm:$0xff] %v1205_v54  ;;  %1208 = vst [vmem:[%s5944_s27 + $0x3b8] sm:$0xff] %v1207_v55  ;;  %v1209_v56 = vld [vmem:[%s5936_s26 + $0x780] sm:$0xff]  ;;  %v1211_v57 = vld [vmem:[%s5936_s26 + $0x790] sm:$0xff] }
  0x4e   : > { %v1213_v58 = vld [vmem:[%s5936_s26 + $0x7a0] sm:$0xff]  ;;  %1210 = vst [vmem:[%s5944_s27 + $0x3c0] sm:$0xff] %v1209_v56  ;;  %1212 = vst [vmem:[%s5944_s27 + $0x3c8] sm:$0xff] %v1211_v57  ;;  %v1215_v59 = vld [vmem:[%s5936_s26 + $0x7b0] sm:$0xff] }
  0x4f   : > { %1214 = vst [vmem:[%s5944_s27 + $0x3d0] sm:$0xff] %v1213_v58  ;;  %v1217_v60 = vld [vmem:[%s5936_s26 + $0x7c0] sm:$0xff]  ;;  %v1219_v61 = vld [vmem:[%s5936_s26 + $0x7d0] sm:$0xff]  ;;  %1216 = vst [vmem:[%s5944_s27 + $0x3d8] sm:$0xff] %v1215_v59 }
  0x50   : > { %1218 = vst [vmem:[%s5944_s27 + $0x3e0] sm:$0xff] %v1217_v60  ;;  %1220 = vst [vmem:[%s5944_s27 + $0x3e8] sm:$0xff] %v1219_v61  ;;  %v1221_v62 = vld [vmem:[%s5936_s26 + $0x7e0] sm:$0xff]  ;;  %v1223_v63 = vld [vmem:[%s5936_s26 + $0x7f0] sm:$0xff] }
  0x51   : > { %v1225_v0 = vld [vmem:[%s5936_s26 + $0x800] sm:$0xff]  ;;  %1222 = vst [vmem:[%s5944_s27 + $0x3f0] sm:$0xff] %v1221_v62  ;;  %1224 = vst [vmem:[%s5944_s27 + $0x3f8] sm:$0xff] %v1223_v63  ;;  %v1227_v1 = vld [vmem:[%s5936_s26 + $0x810] sm:$0xff] }
  0x52   : > { %1226 = vst [vmem:[%s5944_s27 + $0x400] sm:$0xff] %v1225_v0  ;;  %v1229_v2 = vld [vmem:[%s5936_s26 + $0x820] sm:$0xff]  ;;  %v1231_v3 = vld [vmem:[%s5936_s26 + $0x830] sm:$0xff]  ;;  %1228 = vst [vmem:[%s5944_s27 + $0x408] sm:$0xff] %v1227_v1 }
  0x53   : > { %1230 = vst [vmem:[%s5944_s27 + $0x410] sm:$0xff] %v1229_v2  ;;  %1232 = vst [vmem:[%s5944_s27 + $0x418] sm:$0xff] %v1231_v3  ;;  %v1233_v4 = vld [vmem:[%s5936_s26 + $0x840] sm:$0xff]  ;;  %v1235_v5 = vld [vmem:[%s5936_s26 + $0x850] sm:$0xff] }
  0x54   : > { %v1237_v6 = vld [vmem:[%s5936_s26 + $0x860] sm:$0xff]  ;;  %1234 = vst [vmem:[%s5944_s27 + $0x420] sm:$0xff] %v1233_v4  ;;  %1236 = vst [vmem:[%s5944_s27 + $0x428] sm:$0xff] %v1235_v5  ;;  %v1239_v7 = vld [vmem:[%s5936_s26 + $0x870] sm:$0xff] }
  0x55   : > { %1238 = vst [vmem:[%s5944_s27 + $0x430] sm:$0xff] %v1237_v6  ;;  %v1241_v8 = vld [vmem:[%s5936_s26 + $0x880] sm:$0xff]  ;;  %v1243_v9 = vld [vmem:[%s5936_s26 + $0x890] sm:$0xff]  ;;  %1240 = vst [vmem:[%s5944_s27 + $0x438] sm:$0xff] %v1239_v7 }
  0x56   : > { %1242 = vst [vmem:[%s5944_s27 + $0x440] sm:$0xff] %v1241_v8  ;;  %1244 = vst [vmem:[%s5944_s27 + $0x448] sm:$0xff] %v1243_v9  ;;  %v1245_v10 = vld [vmem:[%s5936_s26 + $0x8a0] sm:$0xff]  ;;  %v1247_v11 = vld [vmem:[%s5936_s26 + $0x8b0] sm:$0xff] }
  0x57   : > { %v1249_v12 = vld [vmem:[%s5936_s26 + $0x8c0] sm:$0xff]  ;;  %1246 = vst [vmem:[%s5944_s27 + $0x450] sm:$0xff] %v1245_v10  ;;  %1248 = vst [vmem:[%s5944_s27 + $0x458] sm:$0xff] %v1247_v11  ;;  %v1251_v13 = vld [vmem:[%s5936_s26 + $0x8d0] sm:$0xff] }
  0x58   : > { %1250 = vst [vmem:[%s5944_s27 + $0x460] sm:$0xff] %v1249_v12  ;;  %v1253_v14 = vld [vmem:[%s5936_s26 + $0x8e0] sm:$0xff]  ;;  %v1255_v15 = vld [vmem:[%s5936_s26 + $0x8f0] sm:$0xff]  ;;  %1252 = vst [vmem:[%s5944_s27 + $0x468] sm:$0xff] %v1251_v13 }
  0x59   : > { %1254 = vst [vmem:[%s5944_s27 + $0x470] sm:$0xff] %v1253_v14  ;;  %1256 = vst [vmem:[%s5944_s27 + $0x478] sm:$0xff] %v1255_v15  ;;  %v1257_v16 = vld [vmem:[%s5936_s26 + $0x900] sm:$0xff]  ;;  %v1259_v17 = vld [vmem:[%s5936_s26 + $0x910] sm:$0xff] }
  0x5a   : > { %v1261_v18 = vld [vmem:[%s5936_s26 + $0x920] sm:$0xff]  ;;  %1258 = vst [vmem:[%s5944_s27 + $0x480] sm:$0xff] %v1257_v16  ;;  %1260 = vst [vmem:[%s5944_s27 + $0x488] sm:$0xff] %v1259_v17  ;;  %v1263_v19 = vld [vmem:[%s5936_s26 + $0x930] sm:$0xff] }
  0x5b   : > { %1262 = vst [vmem:[%s5944_s27 + $0x490] sm:$0xff] %v1261_v18  ;;  %v1265_v20 = vld [vmem:[%s5936_s26 + $0x940] sm:$0xff]  ;;  %v1267_v21 = vld [vmem:[%s5936_s26 + $0x950] sm:$0xff]  ;;  %1264 = vst [vmem:[%s5944_s27 + $0x498] sm:$0xff] %v1263_v19 }
  0x5c   : > { %1266 = vst [vmem:[%s5944_s27 + $0x4a0] sm:$0xff] %v1265_v20  ;;  %1268 = vst [vmem:[%s5944_s27 + $0x4a8] sm:$0xff] %v1267_v21  ;;  %v1269_v22 = vld [vmem:[%s5936_s26 + $0x960] sm:$0xff]  ;;  %v1271_v23 = vld [vmem:[%s5936_s26 + $0x970] sm:$0xff] }
  0x5d   : > { %v1273_v24 = vld [vmem:[%s5936_s26 + $0x980] sm:$0xff]  ;;  %1270 = vst [vmem:[%s5944_s27 + $0x4b0] sm:$0xff] %v1269_v22  ;;  %1272 = vst [vmem:[%s5944_s27 + $0x4b8] sm:$0xff] %v1271_v23  ;;  %v1275_v25 = vld [vmem:[%s5936_s26 + $0x990] sm:$0xff] }
  0x5e   : > { %1274 = vst [vmem:[%s5944_s27 + $0x4c0] sm:$0xff] %v1273_v24  ;;  %v1277_v26 = vld [vmem:[%s5936_s26 + $0x9a0] sm:$0xff]  ;;  %v1279_v27 = vld [vmem:[%s5936_s26 + $0x9b0] sm:$0xff]  ;;  %1276 = vst [vmem:[%s5944_s27 + $0x4c8] sm:$0xff] %v1275_v25 }
  0x5f   : > { %1278 = vst [vmem:[%s5944_s27 + $0x4d0] sm:$0xff] %v1277_v26  ;;  %1280 = vst [vmem:[%s5944_s27 + $0x4d8] sm:$0xff] %v1279_v27  ;;  %v1281_v28 = vld [vmem:[%s5936_s26 + $0x9c0] sm:$0xff]  ;;  %v1283_v29 = vld [vmem:[%s5936_s26 + $0x9d0] sm:$0xff] }
  0x60   : > { %v1285_v30 = vld [vmem:[%s5936_s26 + $0x9e0] sm:$0xff]  ;;  %1282 = vst [vmem:[%s5944_s27 + $0x4e0] sm:$0xff] %v1281_v28  ;;  %1284 = vst [vmem:[%s5944_s27 + $0x4e8] sm:$0xff] %v1283_v29  ;;  %v1287_v31 = vld [vmem:[%s5936_s26 + $0x9f0] sm:$0xff] }
  0x61   : > { %1286 = vst [vmem:[%s5944_s27 + $0x4f0] sm:$0xff] %v1285_v30  ;;  %v1289_v32 = vld [vmem:[%s5936_s26 + $0xa00] sm:$0xff]  ;;  %v1291_v33 = vld [vmem:[%s5936_s26 + $0xa10] sm:$0xff]  ;;  %1288 = vst [vmem:[%s5944_s27 + $0x4f8] sm:$0xff] %v1287_v31 }
  0x62   : > { %1290 = vst [vmem:[%s5944_s27 + $0x500] sm:$0xff] %v1289_v32  ;;  %1292 = vst [vmem:[%s5944_s27 + $0x508] sm:$0xff] %v1291_v33  ;;  %v1293_v34 = vld [vmem:[%s5936_s26 + $0xa20] sm:$0xff]  ;;  %v1295_v35 = vld [vmem:[%s5936_s26 + $0xa30] sm:$0xff] }
  0x63   : > { %v1297_v36 = vld [vmem:[%s5936_s26 + $0xa40] sm:$0xff]  ;;  %1294 = vst [vmem:[%s5944_s27 + $0x510] sm:$0xff] %v1293_v34  ;;  %1296 = vst [vmem:[%s5944_s27 + $0x518] sm:$0xff] %v1295_v35  ;;  %v1299_v37 = vld [vmem:[%s5936_s26 + $0xa50] sm:$0xff] }
  0x64   : > { %1298 = vst [vmem:[%s5944_s27 + $0x520] sm:$0xff] %v1297_v36  ;;  %v1301_v38 = vld [vmem:[%s5936_s26 + $0xa60] sm:$0xff]  ;;  %v1303_v39 = vld [vmem:[%s5936_s26 + $0xa70] sm:$0xff]  ;;  %1300 = vst [vmem:[%s5944_s27 + $0x528] sm:$0xff] %v1299_v37 }
  0x65   : > { %1302 = vst [vmem:[%s5944_s27 + $0x530] sm:$0xff] %v1301_v38  ;;  %1304 = vst [vmem:[%s5944_s27 + $0x538] sm:$0xff] %v1303_v39  ;;  %v1305_v40 = vld [vmem:[%s5936_s26 + $0xa80] sm:$0xff]  ;;  %v1307_v41 = vld [vmem:[%s5936_s26 + $0xa90] sm:$0xff] }
  0x66   : > { %v1309_v42 = vld [vmem:[%s5936_s26 + $0xaa0] sm:$0xff]  ;;  %1306 = vst [vmem:[%s5944_s27 + $0x540] sm:$0xff] %v1305_v40  ;;  %1308 = vst [vmem:[%s5944_s27 + $0x548] sm:$0xff] %v1307_v41  ;;  %v1311_v43 = vld [vmem:[%s5936_s26 + $0xab0] sm:$0xff] }
  0x67   : > { %1310 = vst [vmem:[%s5944_s27 + $0x550] sm:$0xff] %v1309_v42  ;;  %v1313_v44 = vld [vmem:[%s5936_s26 + $0xac0] sm:$0xff]  ;;  %v1315_v45 = vld [vmem:[%s5936_s26 + $0xad0] sm:$0xff]  ;;  %1312 = vst [vmem:[%s5944_s27 + $0x558] sm:$0xff] %v1311_v43 }
  0x68   : > { %1314 = vst [vmem:[%s5944_s27 + $0x560] sm:$0xff] %v1313_v44  ;;  %1316 = vst [vmem:[%s5944_s27 + $0x568] sm:$0xff] %v1315_v45  ;;  %v1317_v46 = vld [vmem:[%s5936_s26 + $0xae0] sm:$0xff]  ;;  %v1319_v47 = vld [vmem:[%s5936_s26 + $0xaf0] sm:$0xff] }
  0x69   : > { %v1321_v48 = vld [vmem:[%s5936_s26 + $0xb00] sm:$0xff]  ;;  %1318 = vst [vmem:[%s5944_s27 + $0x570] sm:$0xff] %v1317_v46  ;;  %1320 = vst [vmem:[%s5944_s27 + $0x578] sm:$0xff] %v1319_v47  ;;  %v1323_v49 = vld [vmem:[%s5936_s26 + $0xb10] sm:$0xff] }
  0x6a   : > { %1322 = vst [vmem:[%s5944_s27 + $0x580] sm:$0xff] %v1321_v48  ;;  %v1325_v50 = vld [vmem:[%s5936_s26 + $0xb20] sm:$0xff]  ;;  %v1327_v51 = vld [vmem:[%s5936_s26 + $0xb30] sm:$0xff]  ;;  %1324 = vst [vmem:[%s5944_s27 + $0x588] sm:$0xff] %v1323_v49 }
  0x6b   : > { %1326 = vst [vmem:[%s5944_s27 + $0x590] sm:$0xff] %v1325_v50  ;;  %1328 = vst [vmem:[%s5944_s27 + $0x598] sm:$0xff] %v1327_v51  ;;  %v1329_v52 = vld [vmem:[%s5936_s26 + $0xb40] sm:$0xff]  ;;  %v1331_v53 = vld [vmem:[%s5936_s26 + $0xb50] sm:$0xff] }
  0x6c   : > { %v1333_v54 = vld [vmem:[%s5936_s26 + $0xb60] sm:$0xff]  ;;  %1330 = vst [vmem:[%s5944_s27 + $0x5a0] sm:$0xff] %v1329_v52  ;;  %1332 = vst [vmem:[%s5944_s27 + $0x5a8] sm:$0xff] %v1331_v53  ;;  %v1335_v55 = vld [vmem:[%s5936_s26 + $0xb70] sm:$0xff] }
  0x6d   : > { %1334 = vst [vmem:[%s5944_s27 + $0x5b0] sm:$0xff] %v1333_v54  ;;  %v1337_v56 = vld [vmem:[%s5936_s26 + $0xb80] sm:$0xff]  ;;  %v1339_v57 = vld [vmem:[%s5936_s26 + $0xb90] sm:$0xff]  ;;  %1336 = vst [vmem:[%s5944_s27 + $0x5b8] sm:$0xff] %v1335_v55 }
  0x6e   : > { %1338 = vst [vmem:[%s5944_s27 + $0x5c0] sm:$0xff] %v1337_v56  ;;  %1340 = vst [vmem:[%s5944_s27 + $0x5c8] sm:$0xff] %v1339_v57  ;;  %v1341_v58 = vld [vmem:[%s5936_s26 + $0xba0] sm:$0xff]  ;;  %v1343_v59 = vld [vmem:[%s5936_s26 + $0xbb0] sm:$0xff] }
  0x6f   : > { %v1345_v60 = vld [vmem:[%s5936_s26 + $0xbc0] sm:$0xff]  ;;  %1342 = vst [vmem:[%s5944_s27 + $0x5d0] sm:$0xff] %v1341_v58  ;;  %1344 = vst [vmem:[%s5944_s27 + $0x5d8] sm:$0xff] %v1343_v59  ;;  %v1347_v61 = vld [vmem:[%s5936_s26 + $0xbd0] sm:$0xff] }
  0x70   : > { %1346 = vst [vmem:[%s5944_s27 + $0x5e0] sm:$0xff] %v1345_v60  ;;  %v1349_v62 = vld [vmem:[%s5936_s26 + $0xbe0] sm:$0xff]  ;;  %v1351_v63 = vld [vmem:[%s5936_s26 + $0xbf0] sm:$0xff]  ;;  %1348 = vst [vmem:[%s5944_s27 + $0x5e8] sm:$0xff] %v1347_v61 }
  0x71   : > { %1350 = vst [vmem:[%s5944_s27 + $0x5f0] sm:$0xff] %v1349_v62  ;;  %1352 = vst [vmem:[%s5944_s27 + $0x5f8] sm:$0xff] %v1351_v63  ;;  %v1353_v0 = vld [vmem:[%s5936_s26 + $0xc00] sm:$0xff]  ;;  %v1355_v1 = vld [vmem:[%s5936_s26 + $0xc10] sm:$0xff] }
  0x72   : > { %v1357_v2 = vld [vmem:[%s5936_s26 + $0xc20] sm:$0xff]  ;;  %1354 = vst [vmem:[%s5944_s27 + $0x600] sm:$0xff] %v1353_v0  ;;  %1356 = vst [vmem:[%s5944_s27 + $0x608] sm:$0xff] %v1355_v1  ;;  %v1359_v3 = vld [vmem:[%s5936_s26 + $0xc30] sm:$0xff] }
  0x73   : > { %1358 = vst [vmem:[%s5944_s27 + $0x610] sm:$0xff] %v1357_v2  ;;  %v1361_v4 = vld [vmem:[%s5936_s26 + $0xc40] sm:$0xff]  ;;  %v1363_v5 = vld [vmem:[%s5936_s26 + $0xc50] sm:$0xff]  ;;  %1360 = vst [vmem:[%s5944_s27 + $0x618] sm:$0xff] %v1359_v3 }
  0x74   : > { %1362 = vst [vmem:[%s5944_s27 + $0x620] sm:$0xff] %v1361_v4  ;;  %1364 = vst [vmem:[%s5944_s27 + $0x628] sm:$0xff] %v1363_v5  ;;  %v1365_v6 = vld [vmem:[%s5936_s26 + $0xc60] sm:$0xff]  ;;  %v1367_v7 = vld [vmem:[%s5936_s26 + $0xc70] sm:$0xff] }
  0x75   : > { %v1369_v8 = vld [vmem:[%s5936_s26 + $0xc80] sm:$0xff]  ;;  %1366 = vst [vmem:[%s5944_s27 + $0x630] sm:$0xff] %v1365_v6  ;;  %1368 = vst [vmem:[%s5944_s27 + $0x638] sm:$0xff] %v1367_v7  ;;  %v1371_v9 = vld [vmem:[%s5936_s26 + $0xc90] sm:$0xff] }
  0x76   : > { %1370 = vst [vmem:[%s5944_s27 + $0x640] sm:$0xff] %v1369_v8  ;;  %v1373_v10 = vld [vmem:[%s5936_s26 + $0xca0] sm:$0xff]  ;;  %v1375_v11 = vld [vmem:[%s5936_s26 + $0xcb0] sm:$0xff]  ;;  %1372 = vst [vmem:[%s5944_s27 + $0x648] sm:$0xff] %v1371_v9 }
  0x77   : > { %1374 = vst [vmem:[%s5944_s27 + $0x650] sm:$0xff] %v1373_v10  ;;  %1376 = vst [vmem:[%s5944_s27 + $0x658] sm:$0xff] %v1375_v11  ;;  %v1377_v12 = vld [vmem:[%s5936_s26 + $0xcc0] sm:$0xff]  ;;  %v1379_v13 = vld [vmem:[%s5936_s26 + $0xcd0] sm:$0xff] }
  0x78   : > { %v1381_v14 = vld [vmem:[%s5936_s26 + $0xce0] sm:$0xff]  ;;  %1378 = vst [vmem:[%s5944_s27 + $0x660] sm:$0xff] %v1377_v12  ;;  %1380 = vst [vmem:[%s5944_s27 + $0x668] sm:$0xff] %v1379_v13  ;;  %v1383_v15 = vld [vmem:[%s5936_s26 + $0xcf0] sm:$0xff] }
  0x79   : > { %1382 = vst [vmem:[%s5944_s27 + $0x670] sm:$0xff] %v1381_v14  ;;  %v1385_v16 = vld [vmem:[%s5936_s26 + $0xd00] sm:$0xff]  ;;  %v1387_v17 = vld [vmem:[%s5936_s26 + $0xd10] sm:$0xff]  ;;  %1384 = vst [vmem:[%s5944_s27 + $0x678] sm:$0xff] %v1383_v15 }
  0x7a   : > { %1386 = vst [vmem:[%s5944_s27 + $0x680] sm:$0xff] %v1385_v16  ;;  %1388 = vst [vmem:[%s5944_s27 + $0x688] sm:$0xff] %v1387_v17  ;;  %v1389_v18 = vld [vmem:[%s5936_s26 + $0xd20] sm:$0xff]  ;;  %v1391_v19 = vld [vmem:[%s5936_s26 + $0xd30] sm:$0xff] }
  0x7b   : > { %v1393_v20 = vld [vmem:[%s5936_s26 + $0xd40] sm:$0xff]  ;;  %1390 = vst [vmem:[%s5944_s27 + $0x690] sm:$0xff] %v1389_v18  ;;  %1392 = vst [vmem:[%s5944_s27 + $0x698] sm:$0xff] %v1391_v19  ;;  %v1395_v21 = vld [vmem:[%s5936_s26 + $0xd50] sm:$0xff] }
  0x7c   : > { %1394 = vst [vmem:[%s5944_s27 + $0x6a0] sm:$0xff] %v1393_v20  ;;  %v1397_v22 = vld [vmem:[%s5936_s26 + $0xd60] sm:$0xff]  ;;  %v1399_v23 = vld [vmem:[%s5936_s26 + $0xd70] sm:$0xff]  ;;  %1396 = vst [vmem:[%s5944_s27 + $0x6a8] sm:$0xff] %v1395_v21 }
  0x7d   : > { %1398 = vst [vmem:[%s5944_s27 + $0x6b0] sm:$0xff] %v1397_v22  ;;  %1400 = vst [vmem:[%s5944_s27 + $0x6b8] sm:$0xff] %v1399_v23  ;;  %v1401_v24 = vld [vmem:[%s5936_s26 + $0xd80] sm:$0xff]  ;;  %v1403_v25 = vld [vmem:[%s5936_s26 + $0xd90] sm:$0xff] }
  0x7e   : > { %v1405_v26 = vld [vmem:[%s5936_s26 + $0xda0] sm:$0xff]  ;;  %1402 = vst [vmem:[%s5944_s27 + $0x6c0] sm:$0xff] %v1401_v24  ;;  %1404 = vst [vmem:[%s5944_s27 + $0x6c8] sm:$0xff] %v1403_v25  ;;  %v1407_v27 = vld [vmem:[%s5936_s26 + $0xdb0] sm:$0xff] }
  0x7f   : > { %1406 = vst [vmem:[%s5944_s27 + $0x6d0] sm:$0xff] %v1405_v26  ;;  %v1409_v28 = vld [vmem:[%s5936_s26 + $0xdc0] sm:$0xff]  ;;  %v1411_v29 = vld [vmem:[%s5936_s26 + $0xdd0] sm:$0xff]  ;;  %1408 = vst [vmem:[%s5944_s27 + $0x6d8] sm:$0xff] %v1407_v27 }
  0x80   : > { %1410 = vst [vmem:[%s5944_s27 + $0x6e0] sm:$0xff] %v1409_v28  ;;  %1412 = vst [vmem:[%s5944_s27 + $0x6e8] sm:$0xff] %v1411_v29  ;;  %v1413_v30 = vld [vmem:[%s5936_s26 + $0xde0] sm:$0xff]  ;;  %v1415_v31 = vld [vmem:[%s5936_s26 + $0xdf0] sm:$0xff] }
  0x81   : > { %v1417_v32 = vld [vmem:[%s5936_s26 + $0xe00] sm:$0xff]  ;;  %1414 = vst [vmem:[%s5944_s27 + $0x6f0] sm:$0xff] %v1413_v30  ;;  %1416 = vst [vmem:[%s5944_s27 + $0x6f8] sm:$0xff] %v1415_v31  ;;  %v1419_v33 = vld [vmem:[%s5936_s26 + $0xe10] sm:$0xff] }
  0x82   : > { %1418 = vst [vmem:[%s5944_s27 + $0x700] sm:$0xff] %v1417_v32  ;;  %v1421_v34 = vld [vmem:[%s5936_s26 + $0xe20] sm:$0xff]  ;;  %v1423_v35 = vld [vmem:[%s5936_s26 + $0xe30] sm:$0xff]  ;;  %1420 = vst [vmem:[%s5944_s27 + $0x708] sm:$0xff] %v1419_v33 }
  0x83   : > { %1422 = vst [vmem:[%s5944_s27 + $0x710] sm:$0xff] %v1421_v34  ;;  %1424 = vst [vmem:[%s5944_s27 + $0x718] sm:$0xff] %v1423_v35  ;;  %v1425_v36 = vld [vmem:[%s5936_s26 + $0xe40] sm:$0xff]  ;;  %v1427_v37 = vld [vmem:[%s5936_s26 + $0xe50] sm:$0xff] }
  0x84   : > { %v1429_v38 = vld [vmem:[%s5936_s26 + $0xe60] sm:$0xff]  ;;  %1426 = vst [vmem:[%s5944_s27 + $0x720] sm:$0xff] %v1425_v36  ;;  %1428 = vst [vmem:[%s5944_s27 + $0x728] sm:$0xff] %v1427_v37  ;;  %v1431_v39 = vld [vmem:[%s5936_s26 + $0xe70] sm:$0xff] }
  0x85   : > { %1430 = vst [vmem:[%s5944_s27 + $0x730] sm:$0xff] %v1429_v38  ;;  %v1433_v40 = vld [vmem:[%s5936_s26 + $0xe80] sm:$0xff]  ;;  %v1435_v41 = vld [vmem:[%s5936_s26 + $0xe90] sm:$0xff]  ;;  %1432 = vst [vmem:[%s5944_s27 + $0x738] sm:$0xff] %v1431_v39 }
  0x86   : > { %1434 = vst [vmem:[%s5944_s27 + $0x740] sm:$0xff] %v1433_v40  ;;  %1436 = vst [vmem:[%s5944_s27 + $0x748] sm:$0xff] %v1435_v41  ;;  %v1437_v42 = vld [vmem:[%s5936_s26 + $0xea0] sm:$0xff]  ;;  %v1439_v43 = vld [vmem:[%s5936_s26 + $0xeb0] sm:$0xff] }
  0x87   : > { %v1441_v44 = vld [vmem:[%s5936_s26 + $0xec0] sm:$0xff]  ;;  %1438 = vst [vmem:[%s5944_s27 + $0x750] sm:$0xff] %v1437_v42  ;;  %1440 = vst [vmem:[%s5944_s27 + $0x758] sm:$0xff] %v1439_v43  ;;  %v1443_v45 = vld [vmem:[%s5936_s26 + $0xed0] sm:$0xff] }
  0x88   : > { %1442 = vst [vmem:[%s5944_s27 + $0x760] sm:$0xff] %v1441_v44  ;;  %v1445_v46 = vld [vmem:[%s5936_s26 + $0xee0] sm:$0xff]  ;;  %v1447_v47 = vld [vmem:[%s5936_s26 + $0xef0] sm:$0xff]  ;;  %1444 = vst [vmem:[%s5944_s27 + $0x768] sm:$0xff] %v1443_v45 }
  0x89   : > { %1446 = vst [vmem:[%s5944_s27 + $0x770] sm:$0xff] %v1445_v46  ;;  %1448 = vst [vmem:[%s5944_s27 + $0x778] sm:$0xff] %v1447_v47  ;;  %v1449_v48 = vld [vmem:[%s5936_s26 + $0xf00] sm:$0xff]  ;;  %v1451_v49 = vld [vmem:[%s5936_s26 + $0xf10] sm:$0xff] }
  0x8a   : > { %v1453_v50 = vld [vmem:[%s5936_s26 + $0xf20] sm:$0xff]  ;;  %1450 = vst [vmem:[%s5944_s27 + $0x780] sm:$0xff] %v1449_v48  ;;  %1452 = vst [vmem:[%s5944_s27 + $0x788] sm:$0xff] %v1451_v49  ;;  %v1455_v51 = vld [vmem:[%s5936_s26 + $0xf30] sm:$0xff] }
  0x8b   : > { %1454 = vst [vmem:[%s5944_s27 + $0x790] sm:$0xff] %v1453_v50  ;;  %v1457_v52 = vld [vmem:[%s5936_s26 + $0xf40] sm:$0xff]  ;;  %v1459_v53 = vld [vmem:[%s5936_s26 + $0xf50] sm:$0xff]  ;;  %1456 = vst [vmem:[%s5944_s27 + $0x798] sm:$0xff] %v1455_v51 }
  0x8c   : > { %1458 = vst [vmem:[%s5944_s27 + $0x7a0] sm:$0xff] %v1457_v52  ;;  %1460 = vst [vmem:[%s5944_s27 + $0x7a8] sm:$0xff] %v1459_v53  ;;  %v1461_v54 = vld [vmem:[%s5936_s26 + $0xf60] sm:$0xff]  ;;  %v1463_v55 = vld [vmem:[%s5936_s26 + $0xf70] sm:$0xff] }
  0x8d   : > { %v1465_v56 = vld [vmem:[%s5936_s26 + $0xf80] sm:$0xff]  ;;  %1462 = vst [vmem:[%s5944_s27 + $0x7b0] sm:$0xff] %v1461_v54  ;;  %1464 = vst [vmem:[%s5944_s27 + $0x7b8] sm:$0xff] %v1463_v55  ;;  %v1467_v57 = vld [vmem:[%s5936_s26 + $0xf90] sm:$0xff] }
  0x8e   : > { %1466 = vst [vmem:[%s5944_s27 + $0x7c0] sm:$0xff] %v1465_v56  ;;  %v1469_v58 = vld [vmem:[%s5936_s26 + $0xfa0] sm:$0xff]  ;;  %v1471_v59 = vld [vmem:[%s5936_s26 + $0xfb0] sm:$0xff]  ;;  %1468 = vst [vmem:[%s5944_s27 + $0x7c8] sm:$0xff] %v1467_v57 }
  0x8f   : > { %1470 = vst [vmem:[%s5944_s27 + $0x7d0] sm:$0xff] %v1469_v58  ;;  %1472 = vst [vmem:[%s5944_s27 + $0x7d8] sm:$0xff] %v1471_v59  ;;  %v1473_v60 = vld [vmem:[%s5936_s26 + $0xfc0] sm:$0xff]  ;;  %v1475_v61 = vld [vmem:[%s5936_s26 + $0xfd0] sm:$0xff] }
  0x90   : > { %v1477_v62 = vld [vmem:[%s5936_s26 + $0xfe0] sm:$0xff]  ;;  %1474 = vst [vmem:[%s5944_s27 + $0x7e0] sm:$0xff] %v1473_v60  ;;  %1476 = vst [vmem:[%s5944_s27 + $0x7e8] sm:$0xff] %v1475_v61  ;;  %v1479_v63 = vld [vmem:[%s5936_s26 + $0xff0] sm:$0xff] }
  0x91   : > { %1478 = vst [vmem:[%s5944_s27 + $0x7f0] sm:$0xff] %v1477_v62  ;;  %v1481_v0 = vld [vmem:[%s5936_s26 + $0x1000] sm:$0xff]  ;;  %v1483_v1 = vld [vmem:[%s5936_s26 + $0x1010] sm:$0xff]  ;;  %1480 = vst [vmem:[%s5944_s27 + $0x7f8] sm:$0xff] %v1479_v63 }
  0x92   : > { %1482 = vst [vmem:[%s5944_s27 + $0x800] sm:$0xff] %v1481_v0  ;;  %1484 = vst [vmem:[%s5944_s27 + $0x808] sm:$0xff] %v1483_v1  ;;  %v1485_v2 = vld [vmem:[%s5936_s26 + $0x1020] sm:$0xff]  ;;  %v1487_v3 = vld [vmem:[%s5936_s26 + $0x1030] sm:$0xff] }
  0x93   : > { %v1489_v4 = vld [vmem:[%s5936_s26 + $0x1040] sm:$0xff]  ;;  %1486 = vst [vmem:[%s5944_s27 + $0x810] sm:$0xff] %v1485_v2  ;;  %1488 = vst [vmem:[%s5944_s27 + $0x818] sm:$0xff] %v1487_v3  ;;  %v1491_v5 = vld [vmem:[%s5936_s26 + $0x1050] sm:$0xff] }
  0x94   : > { %1490 = vst [vmem:[%s5944_s27 + $0x820] sm:$0xff] %v1489_v4  ;;  %v1493_v6 = vld [vmem:[%s5936_s26 + $0x1060] sm:$0xff]  ;;  %v1495_v7 = vld [vmem:[%s5936_s26 + $0x1070] sm:$0xff]  ;;  %1492 = vst [vmem:[%s5944_s27 + $0x828] sm:$0xff] %v1491_v5 }
  0x95   : > { %1494 = vst [vmem:[%s5944_s27 + $0x830] sm:$0xff] %v1493_v6  ;;  %1496 = vst [vmem:[%s5944_s27 + $0x838] sm:$0xff] %v1495_v7  ;;  %v1497_v8 = vld [vmem:[%s5936_s26 + $0x1080] sm:$0xff]  ;;  %v1499_v9 = vld [vmem:[%s5936_s26 + $0x1090] sm:$0xff] }
  0x96   : > { %v1501_v10 = vld [vmem:[%s5936_s26 + $0x10a0] sm:$0xff]  ;;  %1498 = vst [vmem:[%s5944_s27 + $0x840] sm:$0xff] %v1497_v8  ;;  %1500 = vst [vmem:[%s5944_s27 + $0x848] sm:$0xff] %v1499_v9  ;;  %v1503_v11 = vld [vmem:[%s5936_s26 + $0x10b0] sm:$0xff] }
  0x97   : > { %1502 = vst [vmem:[%s5944_s27 + $0x850] sm:$0xff] %v1501_v10  ;;  %v1505_v12 = vld [vmem:[%s5936_s26 + $0x10c0] sm:$0xff]  ;;  %v1507_v13 = vld [vmem:[%s5936_s26 + $0x10d0] sm:$0xff]  ;;  %1504 = vst [vmem:[%s5944_s27 + $0x858] sm:$0xff] %v1503_v11 }
  0x98   : > { %1506 = vst [vmem:[%s5944_s27 + $0x860] sm:$0xff] %v1505_v12  ;;  %1508 = vst [vmem:[%s5944_s27 + $0x868] sm:$0xff] %v1507_v13  ;;  %v1509_v14 = vld [vmem:[%s5936_s26 + $0x10e0] sm:$0xff]  ;;  %v1511_v15 = vld [vmem:[%s5936_s26 + $0x10f0] sm:$0xff] }
  0x99   : > { %v1513_v16 = vld [vmem:[%s5936_s26 + $0x1100] sm:$0xff]  ;;  %1510 = vst [vmem:[%s5944_s27 + $0x870] sm:$0xff] %v1509_v14  ;;  %1512 = vst [vmem:[%s5944_s27 + $0x878] sm:$0xff] %v1511_v15  ;;  %v1515_v17 = vld [vmem:[%s5936_s26 + $0x1110] sm:$0xff] }
  0x9a   : > { %1514 = vst [vmem:[%s5944_s27 + $0x880] sm:$0xff] %v1513_v16  ;;  %v1517_v18 = vld [vmem:[%s5936_s26 + $0x1120] sm:$0xff]  ;;  %v1519_v19 = vld [vmem:[%s5936_s26 + $0x1130] sm:$0xff]  ;;  %1516 = vst [vmem:[%s5944_s27 + $0x888] sm:$0xff] %v1515_v17 }
  0x9b   : > { %1518 = vst [vmem:[%s5944_s27 + $0x890] sm:$0xff] %v1517_v18  ;;  %1520 = vst [vmem:[%s5944_s27 + $0x898] sm:$0xff] %v1519_v19  ;;  %v1521_v20 = vld [vmem:[%s5936_s26 + $0x1140] sm:$0xff]  ;;  %v1523_v21 = vld [vmem:[%s5936_s26 + $0x1150] sm:$0xff] }
  0x9c   : > { %v1525_v22 = vld [vmem:[%s5936_s26 + $0x1160] sm:$0xff]  ;;  %1522 = vst [vmem:[%s5944_s27 + $0x8a0] sm:$0xff] %v1521_v20  ;;  %1524 = vst [vmem:[%s5944_s27 + $0x8a8] sm:$0xff] %v1523_v21  ;;  %v1527_v23 = vld [vmem:[%s5936_s26 + $0x1170] sm:$0xff] }
  0x9d   : > { %1526 = vst [vmem:[%s5944_s27 + $0x8b0] sm:$0xff] %v1525_v22  ;;  %v1529_v24 = vld [vmem:[%s5936_s26 + $0x1180] sm:$0xff]  ;;  %v1531_v25 = vld [vmem:[%s5936_s26 + $0x1190] sm:$0xff]  ;;  %1528 = vst [vmem:[%s5944_s27 + $0x8b8] sm:$0xff] %v1527_v23 }
  0x9e   : > { %1530 = vst [vmem:[%s5944_s27 + $0x8c0] sm:$0xff] %v1529_v24  ;;  %1532 = vst [vmem:[%s5944_s27 + $0x8c8] sm:$0xff] %v1531_v25  ;;  %v1533_v26 = vld [vmem:[%s5936_s26 + $0x11a0] sm:$0xff]  ;;  %v1535_v27 = vld [vmem:[%s5936_s26 + $0x11b0] sm:$0xff] }
  0x9f   : > { %v1537_v28 = vld [vmem:[%s5936_s26 + $0x11c0] sm:$0xff]  ;;  %1534 = vst [vmem:[%s5944_s27 + $0x8d0] sm:$0xff] %v1533_v26  ;;  %1536 = vst [vmem:[%s5944_s27 + $0x8d8] sm:$0xff] %v1535_v27  ;;  %v1539_v29 = vld [vmem:[%s5936_s26 + $0x11d0] sm:$0xff] }
  0xa0   : > { %1538 = vst [vmem:[%s5944_s27 + $0x8e0] sm:$0xff] %v1537_v28  ;;  %v1541_v30 = vld [vmem:[%s5936_s26 + $0x11e0] sm:$0xff]  ;;  %v1543_v31 = vld [vmem:[%s5936_s26 + $0x11f0] sm:$0xff]  ;;  %1540 = vst [vmem:[%s5944_s27 + $0x8e8] sm:$0xff] %v1539_v29 }
  0xa1   : > { %1542 = vst [vmem:[%s5944_s27 + $0x8f0] sm:$0xff] %v1541_v30  ;;  %1544 = vst [vmem:[%s5944_s27 + $0x8f8] sm:$0xff] %v1543_v31  ;;  %v1545_v32 = vld [vmem:[%s5936_s26 + $0x1200] sm:$0xff]  ;;  %v1547_v33 = vld [vmem:[%s5936_s26 + $0x1210] sm:$0xff] }
  0xa2   : > { %v1549_v34 = vld [vmem:[%s5936_s26 + $0x1220] sm:$0xff]  ;;  %1546 = vst [vmem:[%s5944_s27 + $0x900] sm:$0xff] %v1545_v32  ;;  %1548 = vst [vmem:[%s5944_s27 + $0x908] sm:$0xff] %v1547_v33  ;;  %v1551_v35 = vld [vmem:[%s5936_s26 + $0x1230] sm:$0xff] }
  0xa3   : > { %1550 = vst [vmem:[%s5944_s27 + $0x910] sm:$0xff] %v1549_v34  ;;  %v1553_v36 = vld [vmem:[%s5936_s26 + $0x1240] sm:$0xff]  ;;  %v1555_v37 = vld [vmem:[%s5936_s26 + $0x1250] sm:$0xff]  ;;  %1552 = vst [vmem:[%s5944_s27 + $0x918] sm:$0xff] %v1551_v35 }
  0xa4   : > { %1554 = vst [vmem:[%s5944_s27 + $0x920] sm:$0xff] %v1553_v36  ;;  %1556 = vst [vmem:[%s5944_s27 + $0x928] sm:$0xff] %v1555_v37  ;;  %v1557_v38 = vld [vmem:[%s5936_s26 + $0x1260] sm:$0xff]  ;;  %v1559_v39 = vld [vmem:[%s5936_s26 + $0x1270] sm:$0xff] }
  0xa5   : > { %v1561_v40 = vld [vmem:[%s5936_s26 + $0x1280] sm:$0xff]  ;;  %1558 = vst [vmem:[%s5944_s27 + $0x930] sm:$0xff] %v1557_v38  ;;  %1560 = vst [vmem:[%s5944_s27 + $0x938] sm:$0xff] %v1559_v39  ;;  %v1563_v41 = vld [vmem:[%s5936_s26 + $0x1290] sm:$0xff] }
  0xa6   : > { %1562 = vst [vmem:[%s5944_s27 + $0x940] sm:$0xff] %v1561_v40  ;;  %v1565_v42 = vld [vmem:[%s5936_s26 + $0x12a0] sm:$0xff]  ;;  %v1567_v43 = vld [vmem:[%s5936_s26 + $0x12b0] sm:$0xff]  ;;  %1564 = vst [vmem:[%s5944_s27 + $0x948] sm:$0xff] %v1563_v41 }
  0xa7   : > { %1566 = vst [vmem:[%s5944_s27 + $0x950] sm:$0xff] %v1565_v42  ;;  %1568 = vst [vmem:[%s5944_s27 + $0x958] sm:$0xff] %v1567_v43  ;;  %v1569_v44 = vld [vmem:[%s5936_s26 + $0x12c0] sm:$0xff]  ;;  %v1571_v45 = vld [vmem:[%s5936_s26 + $0x12d0] sm:$0xff] }
  0xa8   : > { %v1573_v46 = vld [vmem:[%s5936_s26 + $0x12e0] sm:$0xff]  ;;  %1570 = vst [vmem:[%s5944_s27 + $0x960] sm:$0xff] %v1569_v44  ;;  %1572 = vst [vmem:[%s5944_s27 + $0x968] sm:$0xff] %v1571_v45  ;;  %v1575_v47 = vld [vmem:[%s5936_s26 + $0x12f0] sm:$0xff] }
  0xa9   : > { %1574 = vst [vmem:[%s5944_s27 + $0x970] sm:$0xff] %v1573_v46  ;;  %v1577_v48 = vld [vmem:[%s5936_s26 + $0x1300] sm:$0xff]  ;;  %v1579_v49 = vld [vmem:[%s5936_s26 + $0x1310] sm:$0xff]  ;;  %1576 = vst [vmem:[%s5944_s27 + $0x978] sm:$0xff] %v1575_v47 }
  0xaa   : > { %1578 = vst [vmem:[%s5944_s27 + $0x980] sm:$0xff] %v1577_v48  ;;  %1580 = vst [vmem:[%s5944_s27 + $0x988] sm:$0xff] %v1579_v49  ;;  %v1581_v50 = vld [vmem:[%s5936_s26 + $0x1320] sm:$0xff]  ;;  %v1583_v51 = vld [vmem:[%s5936_s26 + $0x1330] sm:$0xff] }
  0xab   : > { %v1585_v52 = vld [vmem:[%s5936_s26 + $0x1340] sm:$0xff]  ;;  %1582 = vst [vmem:[%s5944_s27 + $0x990] sm:$0xff] %v1581_v50  ;;  %1584 = vst [vmem:[%s5944_s27 + $0x998] sm:$0xff] %v1583_v51  ;;  %v1587_v53 = vld [vmem:[%s5936_s26 + $0x1350] sm:$0xff] }
  0xac   : > { %1586 = vst [vmem:[%s5944_s27 + $0x9a0] sm:$0xff] %v1585_v52  ;;  %v1589_v54 = vld [vmem:[%s5936_s26 + $0x1360] sm:$0xff]  ;;  %v1591_v55 = vld [vmem:[%s5936_s26 + $0x1370] sm:$0xff]  ;;  %1588 = vst [vmem:[%s5944_s27 + $0x9a8] sm:$0xff] %v1587_v53 }
  0xad   : > { %1590 = vst [vmem:[%s5944_s27 + $0x9b0] sm:$0xff] %v1589_v54  ;;  %1592 = vst [vmem:[%s5944_s27 + $0x9b8] sm:$0xff] %v1591_v55  ;;  %v1593_v56 = vld [vmem:[%s5936_s26 + $0x1380] sm:$0xff]  ;;  %v1595_v57 = vld [vmem:[%s5936_s26 + $0x1390] sm:$0xff] }
  0xae   : > { %v1597_v58 = vld [vmem:[%s5936_s26 + $0x13a0] sm:$0xff]  ;;  %1594 = vst [vmem:[%s5944_s27 + $0x9c0] sm:$0xff] %v1593_v56  ;;  %1596 = vst [vmem:[%s5944_s27 + $0x9c8] sm:$0xff] %v1595_v57  ;;  %v1599_v59 = vld [vmem:[%s5936_s26 + $0x13b0] sm:$0xff] }
  0xaf   : > { %1598 = vst [vmem:[%s5944_s27 + $0x9d0] sm:$0xff] %v1597_v58  ;;  %v1601_v60 = vld [vmem:[%s5936_s26 + $0x13c0] sm:$0xff]  ;;  %v1603_v61 = vld [vmem:[%s5936_s26 + $0x13d0] sm:$0xff]  ;;  %1600 = vst [vmem:[%s5944_s27 + $0x9d8] sm:$0xff] %v1599_v59 }
  0xb0   : > { %1602 = vst [vmem:[%s5944_s27 + $0x9e0] sm:$0xff] %v1601_v60  ;;  %1604 = vst [vmem:[%s5944_s27 + $0x9e8] sm:$0xff] %v1603_v61  ;;  %v1605_v62 = vld [vmem:[%s5936_s26 + $0x13e0] sm:$0xff]  ;;  %v1607_v63 = vld [vmem:[%s5936_s26 + $0x13f0] sm:$0xff] }
  0xb1   : > { %v1609_v0 = vld [vmem:[%s5936_s26 + $0x1400] sm:$0xff]  ;;  %1606 = vst [vmem:[%s5944_s27 + $0x9f0] sm:$0xff] %v1605_v62  ;;  %1608 = vst [vmem:[%s5944_s27 + $0x9f8] sm:$0xff] %v1607_v63  ;;  %v1611_v1 = vld [vmem:[%s5936_s26 + $0x1410] sm:$0xff] }
  0xb2   : > { %1610 = vst [vmem:[%s5944_s27 + $0xa00] sm:$0xff] %v1609_v0  ;;  %v1613_v2 = vld [vmem:[%s5936_s26 + $0x1420] sm:$0xff]  ;;  %v1615_v3 = vld [vmem:[%s5936_s26 + $0x1430] sm:$0xff]  ;;  %1612 = vst [vmem:[%s5944_s27 + $0xa08] sm:$0xff] %v1611_v1 }
  0xb3   : > { %1614 = vst [vmem:[%s5944_s27 + $0xa10] sm:$0xff] %v1613_v2  ;;  %1616 = vst [vmem:[%s5944_s27 + $0xa18] sm:$0xff] %v1615_v3  ;;  %v1617_v4 = vld [vmem:[%s5936_s26 + $0x1440] sm:$0xff]  ;;  %v1619_v5 = vld [vmem:[%s5936_s26 + $0x1450] sm:$0xff] }
  0xb4   : > { %v1621_v6 = vld [vmem:[%s5936_s26 + $0x1460] sm:$0xff]  ;;  %1618 = vst [vmem:[%s5944_s27 + $0xa20] sm:$0xff] %v1617_v4  ;;  %1620 = vst [vmem:[%s5944_s27 + $0xa28] sm:$0xff] %v1619_v5  ;;  %v1623_v7 = vld [vmem:[%s5936_s26 + $0x1470] sm:$0xff] }
  0xb5   : > { %1622 = vst [vmem:[%s5944_s27 + $0xa30] sm:$0xff] %v1621_v6  ;;  %v1625_v8 = vld [vmem:[%s5936_s26 + $0x1480] sm:$0xff]  ;;  %v1627_v9 = vld [vmem:[%s5936_s26 + $0x1490] sm:$0xff]  ;;  %1624 = vst [vmem:[%s5944_s27 + $0xa38] sm:$0xff] %v1623_v7 }
  0xb6   : > { %1626 = vst [vmem:[%s5944_s27 + $0xa40] sm:$0xff] %v1625_v8  ;;  %1628 = vst [vmem:[%s5944_s27 + $0xa48] sm:$0xff] %v1627_v9  ;;  %v1629_v10 = vld [vmem:[%s5936_s26 + $0x14a0] sm:$0xff]  ;;  %v1631_v11 = vld [vmem:[%s5936_s26 + $0x14b0] sm:$0xff] }
  0xb7   : > { %v1633_v12 = vld [vmem:[%s5936_s26 + $0x14c0] sm:$0xff]  ;;  %1630 = vst [vmem:[%s5944_s27 + $0xa50] sm:$0xff] %v1629_v10  ;;  %1632 = vst [vmem:[%s5944_s27 + $0xa58] sm:$0xff] %v1631_v11  ;;  %v1635_v13 = vld [vmem:[%s5936_s26 + $0x14d0] sm:$0xff] }
  0xb8   : > { %1634 = vst [vmem:[%s5944_s27 + $0xa60] sm:$0xff] %v1633_v12  ;;  %v1637_v14 = vld [vmem:[%s5936_s26 + $0x14e0] sm:$0xff]  ;;  %v1639_v15 = vld [vmem:[%s5936_s26 + $0x14f0] sm:$0xff]  ;;  %1636 = vst [vmem:[%s5944_s27 + $0xa68] sm:$0xff] %v1635_v13 }
  0xb9   : > { %1638 = vst [vmem:[%s5944_s27 + $0xa70] sm:$0xff] %v1637_v14  ;;  %1640 = vst [vmem:[%s5944_s27 + $0xa78] sm:$0xff] %v1639_v15  ;;  %v1641_v16 = vld [vmem:[%s5936_s26 + $0x1500] sm:$0xff]  ;;  %v1643_v17 = vld [vmem:[%s5936_s26 + $0x1510] sm:$0xff] }
  0xba   : > { %v1645_v18 = vld [vmem:[%s5936_s26 + $0x1520] sm:$0xff]  ;;  %1642 = vst [vmem:[%s5944_s27 + $0xa80] sm:$0xff] %v1641_v16  ;;  %1644 = vst [vmem:[%s5944_s27 + $0xa88] sm:$0xff] %v1643_v17  ;;  %v1647_v19 = vld [vmem:[%s5936_s26 + $0x1530] sm:$0xff] }
  0xbb   : > { %1646 = vst [vmem:[%s5944_s27 + $0xa90] sm:$0xff] %v1645_v18  ;;  %v1649_v20 = vld [vmem:[%s5936_s26 + $0x1540] sm:$0xff]  ;;  %v1651_v21 = vld [vmem:[%s5936_s26 + $0x1550] sm:$0xff]  ;;  %1648 = vst [vmem:[%s5944_s27 + $0xa98] sm:$0xff] %v1647_v19 }
  0xbc   : > { %1650 = vst [vmem:[%s5944_s27 + $0xaa0] sm:$0xff] %v1649_v20  ;;  %1652 = vst [vmem:[%s5944_s27 + $0xaa8] sm:$0xff] %v1651_v21  ;;  %v1653_v22 = vld [vmem:[%s5936_s26 + $0x1560] sm:$0xff]  ;;  %v1655_v23 = vld [vmem:[%s5936_s26 + $0x1570] sm:$0xff] }
  0xbd   : > { %v1657_v24 = vld [vmem:[%s5936_s26 + $0x1580] sm:$0xff]  ;;  %1654 = vst [vmem:[%s5944_s27 + $0xab0] sm:$0xff] %v1653_v22  ;;  %1656 = vst [vmem:[%s5944_s27 + $0xab8] sm:$0xff] %v1655_v23  ;;  %v1659_v25 = vld [vmem:[%s5936_s26 + $0x1590] sm:$0xff] }
  0xbe   : > { %1658 = vst [vmem:[%s5944_s27 + $0xac0] sm:$0xff] %v1657_v24  ;;  %v1661_v26 = vld [vmem:[%s5936_s26 + $0x15a0] sm:$0xff]  ;;  %v1663_v27 = vld [vmem:[%s5936_s26 + $0x15b0] sm:$0xff]  ;;  %1660 = vst [vmem:[%s5944_s27 + $0xac8] sm:$0xff] %v1659_v25 }
  0xbf   : > { %1662 = vst [vmem:[%s5944_s27 + $0xad0] sm:$0xff] %v1661_v26  ;;  %1664 = vst [vmem:[%s5944_s27 + $0xad8] sm:$0xff] %v1663_v27  ;;  %v1665_v28 = vld [vmem:[%s5936_s26 + $0x15c0] sm:$0xff]  ;;  %v1667_v29 = vld [vmem:[%s5936_s26 + $0x15d0] sm:$0xff] }
  0xc0   : > { %v1669_v30 = vld [vmem:[%s5936_s26 + $0x15e0] sm:$0xff]  ;;  %1666 = vst [vmem:[%s5944_s27 + $0xae0] sm:$0xff] %v1665_v28  ;;  %1668 = vst [vmem:[%s5944_s27 + $0xae8] sm:$0xff] %v1667_v29  ;;  %v1671_v31 = vld [vmem:[%s5936_s26 + $0x15f0] sm:$0xff] }
  0xc1   : > { %1670 = vst [vmem:[%s5944_s27 + $0xaf0] sm:$0xff] %v1669_v30  ;;  %v1673_v32 = vld [vmem:[%s5936_s26 + $0x1600] sm:$0xff]  ;;  %v1675_v33 = vld [vmem:[%s5936_s26 + $0x1610] sm:$0xff]  ;;  %1672 = vst [vmem:[%s5944_s27 + $0xaf8] sm:$0xff] %v1671_v31 }
  0xc2   : > { %1674 = vst [vmem:[%s5944_s27 + $0xb00] sm:$0xff] %v1673_v32  ;;  %1676 = vst [vmem:[%s5944_s27 + $0xb08] sm:$0xff] %v1675_v33  ;;  %v1677_v34 = vld [vmem:[%s5936_s26 + $0x1620] sm:$0xff]  ;;  %v1679_v35 = vld [vmem:[%s5936_s26 + $0x1630] sm:$0xff] }
  0xc3   : > { %v1681_v36 = vld [vmem:[%s5936_s26 + $0x1640] sm:$0xff]  ;;  %1678 = vst [vmem:[%s5944_s27 + $0xb10] sm:$0xff] %v1677_v34  ;;  %1680 = vst [vmem:[%s5944_s27 + $0xb18] sm:$0xff] %v1679_v35  ;;  %v1683_v37 = vld [vmem:[%s5936_s26 + $0x1650] sm:$0xff] }
  0xc4   : > { %1682 = vst [vmem:[%s5944_s27 + $0xb20] sm:$0xff] %v1681_v36  ;;  %v1685_v38 = vld [vmem:[%s5936_s26 + $0x1660] sm:$0xff]  ;;  %v1687_v39 = vld [vmem:[%s5936_s26 + $0x1670] sm:$0xff]  ;;  %1684 = vst [vmem:[%s5944_s27 + $0xb28] sm:$0xff] %v1683_v37 }
  0xc5   : > { %1686 = vst [vmem:[%s5944_s27 + $0xb30] sm:$0xff] %v1685_v38  ;;  %1688 = vst [vmem:[%s5944_s27 + $0xb38] sm:$0xff] %v1687_v39  ;;  %v1689_v40 = vld [vmem:[%s5936_s26 + $0x1680] sm:$0xff]  ;;  %v1691_v41 = vld [vmem:[%s5936_s26 + $0x1690] sm:$0xff] }
  0xc6   : > { %v1693_v42 = vld [vmem:[%s5936_s26 + $0x16a0] sm:$0xff]  ;;  %1690 = vst [vmem:[%s5944_s27 + $0xb40] sm:$0xff] %v1689_v40  ;;  %1692 = vst [vmem:[%s5944_s27 + $0xb48] sm:$0xff] %v1691_v41  ;;  %v1695_v43 = vld [vmem:[%s5936_s26 + $0x16b0] sm:$0xff] }
  0xc7   : > { %1694 = vst [vmem:[%s5944_s27 + $0xb50] sm:$0xff] %v1693_v42  ;;  %v1697_v44 = vld [vmem:[%s5936_s26 + $0x16c0] sm:$0xff]  ;;  %v1699_v45 = vld [vmem:[%s5936_s26 + $0x16d0] sm:$0xff]  ;;  %1696 = vst [vmem:[%s5944_s27 + $0xb58] sm:$0xff] %v1695_v43 }
  0xc8   : > { %1698 = vst [vmem:[%s5944_s27 + $0xb60] sm:$0xff] %v1697_v44  ;;  %1700 = vst [vmem:[%s5944_s27 + $0xb68] sm:$0xff] %v1699_v45  ;;  %v1701_v46 = vld [vmem:[%s5936_s26 + $0x16e0] sm:$0xff]  ;;  %v1703_v47 = vld [vmem:[%s5936_s26 + $0x16f0] sm:$0xff] }
  0xc9   : > { %v1705_v48 = vld [vmem:[%s5936_s26 + $0x1700] sm:$0xff]  ;;  %1702 = vst [vmem:[%s5944_s27 + $0xb70] sm:$0xff] %v1701_v46  ;;  %1704 = vst [vmem:[%s5944_s27 + $0xb78] sm:$0xff] %v1703_v47  ;;  %v1707_v49 = vld [vmem:[%s5936_s26 + $0x1710] sm:$0xff] }
  0xca   : > { %1706 = vst [vmem:[%s5944_s27 + $0xb80] sm:$0xff] %v1705_v48  ;;  %v1709_v50 = vld [vmem:[%s5936_s26 + $0x1720] sm:$0xff]  ;;  %v1711_v51 = vld [vmem:[%s5936_s26 + $0x1730] sm:$0xff]  ;;  %1708 = vst [vmem:[%s5944_s27 + $0xb88] sm:$0xff] %v1707_v49 }
  0xcb   : > { %1710 = vst [vmem:[%s5944_s27 + $0xb90] sm:$0xff] %v1709_v50  ;;  %1712 = vst [vmem:[%s5944_s27 + $0xb98] sm:$0xff] %v1711_v51  ;;  %v1713_v52 = vld [vmem:[%s5936_s26 + $0x1740] sm:$0xff]  ;;  %v1715_v53 = vld [vmem:[%s5936_s26 + $0x1750] sm:$0xff] }
  0xcc   : > { %v1717_v54 = vld [vmem:[%s5936_s26 + $0x1760] sm:$0xff]  ;;  %1714 = vst [vmem:[%s5944_s27 + $0xba0] sm:$0xff] %v1713_v52  ;;  %1716 = vst [vmem:[%s5944_s27 + $0xba8] sm:$0xff] %v1715_v53  ;;  %v1719_v55 = vld [vmem:[%s5936_s26 + $0x1770] sm:$0xff] }
  0xcd   : > { %1718 = vst [vmem:[%s5944_s27 + $0xbb0] sm:$0xff] %v1717_v54  ;;  %v1721_v56 = vld [vmem:[%s5936_s26 + $0x1780] sm:$0xff]  ;;  %v1723_v57 = vld [vmem:[%s5936_s26 + $0x1790] sm:$0xff]  ;;  %1720 = vst [vmem:[%s5944_s27 + $0xbb8] sm:$0xff] %v1719_v55 }
  0xce   : > { %1722 = vst [vmem:[%s5944_s27 + $0xbc0] sm:$0xff] %v1721_v56  ;;  %1724 = vst [vmem:[%s5944_s27 + $0xbc8] sm:$0xff] %v1723_v57  ;;  %v1725_v58 = vld [vmem:[%s5936_s26 + $0x17a0] sm:$0xff]  ;;  %v1727_v59 = vld [vmem:[%s5936_s26 + $0x17b0] sm:$0xff] }
  0xcf   : > { %v1729_v60 = vld [vmem:[%s5936_s26 + $0x17c0] sm:$0xff]  ;;  %1726 = vst [vmem:[%s5944_s27 + $0xbd0] sm:$0xff] %v1725_v58  ;;  %1728 = vst [vmem:[%s5944_s27 + $0xbd8] sm:$0xff] %v1727_v59  ;;  %v1731_v61 = vld [vmem:[%s5936_s26 + $0x17d0] sm:$0xff] }
  0xd0   : > { %1730 = vst [vmem:[%s5944_s27 + $0xbe0] sm:$0xff] %v1729_v60  ;;  %v1733_v62 = vld [vmem:[%s5936_s26 + $0x17e0] sm:$0xff]  ;;  %v1735_v63 = vld [vmem:[%s5936_s26 + $0x17f0] sm:$0xff]  ;;  %1732 = vst [vmem:[%s5944_s27 + $0xbe8] sm:$0xff] %v1731_v61 }
  0xd1   : > { %1734 = vst [vmem:[%s5944_s27 + $0xbf0] sm:$0xff] %v1733_v62  ;;  %1736 = vst [vmem:[%s5944_s27 + $0xbf8] sm:$0xff] %v1735_v63 }
  0xd2 PF: > { %p4824_p6 = scmp.ge.s32.totalorder %s5871_s16, 1  ;;  %p1749_p7 = scmp.lt.s32.totalorder %s5871_s16, 3 }
  0xd4   : > { %p1750_p8 = pnand %p4824_p6, %p1749_p7 }
  0xd5   : > { %s1756_s28 = sand.u32 (!%p1750_p8), 1, %s5855_s12   ;;  %v1826_v0 = vld [vmem:[%s7203_s0 + $0x8] sm:$0xff] (!%p1750_p8)  ;;  %v1828_v1 = vld [vmem:[%s7203_s0 + $0x18] sm:$0xff] (!%p1750_p8) }
  0xd6   : > { %1753 = sbr.rel (%p1750_p8) target bundleno = 825 (0x339), region = 66  ;;  %v1852_v2 = vpack.c.bf16 (!%p1750_p8), %v1826_v0, %v1826_v0  ;;  %v1854_v3 = vpack.c.bf16 (!%p1750_p8), %v1828_v1, %v1828_v1 }
  0xd7   : > { %s5216_s6 = smul.u32 (!%p1750_p8), 3072, %s1756_s28 }
  0xd8   : > { %4211 = vmatprep.mubr.bf16.mxu0 (!%p1750_p8), %v1852_v2  ;;  %4252 = vmatprep.mubr.bf16.mxu1 (!%p1750_p8), %v1854_v3  ;;  %v1825_v2 = vld [vmem:[%s7203_s0] sm:$0xff] (!%p1750_p8)  ;;  %v1827_v3 = vld [vmem:[%s7203_s0 + $0x10] sm:$0xff] (!%p1750_p8) }
  0xd9   : > { %s6717_s7 = scalar_lea.vmem (!%p1750_p8), [#allocation3], %s5216_s6 }
  0xda   : > { %v5257_v4 = vld [vmem:[%s6717_s7 + $0x4] ss:$8 sps:$4 sm:$0xff] (!%p1750_p8)   ;;  %v5261_v6 = vld [vmem:[%s6717_s7] ss:$8 sps:$4 sm:$0xff] (!%p1750_p8)   ;;  %v5263_v8 = vld [vmem:[%s6717_s7 + $0x14] ss:$8 sps:$4 sm:$0xff] (!%p1750_p8)  }
  0xdb   : > { %v5259_v5 = vld [vmem:[%s6717_s7 + $0x104] ss:$8 sps:$4 sm:$0xff] (!%p1750_p8)   ;;  %4179 = vmatprep.subr.bf16.mxu0 (!%p1750_p8), %v5257_v4  ;;  %v5262_v7 = vld [vmem:[%s6717_s7 + $0x100] ss:$8 sps:$4 sm:$0xff] (!%p1750_p8)   ;;  %v5265_v9 = vld [vmem:[%s6717_s7 + $0x114] ss:$8 sps:$4 sm:$0xff] (!%p1750_p8)  }
  0xdc   : > { %4220 = vmatprep.subr.bf16.mxu1 (!%p1750_p8), %v5259_v5  ;;  %4180 = vmatpush1.bf16.msra.mxu0 (!%p1750_p8), %v5261_v6  ;;  %v5267_v10 = vld [vmem:[%s6717_s7 + $0x10] ss:$8 sps:$4 sm:$0xff] (!%p1750_p8)   ;;  %v5269_v12 = vld [vmem:[%s6717_s7 + $0x24] ss:$8 sps:$4 sm:$0xff] (!%p1750_p8)   ;;  %v5273_v14 = vld [vmem:[%s6717_s7 + $0x20] ss:$8 sps:$4 sm:$0xff] (!%p1750_p8)  }
  0xdd   : > { %4221 = vmatpush1.bf16.msra.mxu1 %v5262_v7  ;;  %4181 = vmatprep.subr.bf16.mxu0 %v5263_v8  ;;  %v5268_v11 = vld [vmem:[%s6717_s7 + $0x110] ss:$8 sps:$4 sm:$0xff]   ;;  %v5271_v13 = vld [vmem:[%s6717_s7 + $0x124] ss:$8 sps:$4 sm:$0xff]   ;;  %v5274_v15 = vld [vmem:[%s6717_s7 + $0x120] ss:$8 sps:$4 sm:$0xff]  }
  0xde   : > { %4222 = vmatprep.subr.bf16.mxu1 %v5265_v9  ;;  %v5275_v16 = vld [vmem:[%s6717_s7 + $0x34] ss:$8 sps:$4 sm:$0xff]   ;;  %v5279_v18 = vld [vmem:[%s6717_s7 + $0x30] ss:$8 sps:$4 sm:$0xff]   ;;  %v5281_v20 = vld [vmem:[%s6717_s7 + $0x44] ss:$8 sps:$4 sm:$0xff]  }
  0xdf   : > { %v5277_v17 = vld [vmem:[%s6717_s7 + $0x134] ss:$8 sps:$4 sm:$0xff]   ;;  %v5280_v19 = vld [vmem:[%s6717_s7 + $0x130] ss:$8 sps:$4 sm:$0xff]   ;;  %v5283_v21 = vld [vmem:[%s6717_s7 + $0x144] ss:$8 sps:$4 sm:$0xff]  }
  0xe0   : > { %4182 = vmatpush1.bf16.msra.mxu0 %v5267_v10  ;;  %v5285_v22 = vld [vmem:[%s6717_s7 + $0x40] ss:$8 sps:$4 sm:$0xff]   ;;  %v5287_v24 = vld [vmem:[%s6717_s7 + $0x54] ss:$8 sps:$4 sm:$0xff]   ;;  %v5291_v26 = vld [vmem:[%s6717_s7 + $0x50] ss:$8 sps:$4 sm:$0xff]   ;;  %v1851_v10 = vpack.c.bf16 %v1825_v2, %v1825_v2 }
  0xe1   : > { %4223 = vmatpush1.bf16.msra.mxu1 %v5268_v11  ;;  %4183 = vmatprep.subr.bf16.mxu0 %v5269_v12  ;;  %v5286_v23 = vld [vmem:[%s6717_s7 + $0x140] ss:$8 sps:$4 sm:$0xff]   ;;  %v5289_v25 = vld [vmem:[%s6717_s7 + $0x154] ss:$8 sps:$4 sm:$0xff]   ;;  %v5292_v27 = vld [vmem:[%s6717_s7 + $0x150] ss:$8 sps:$4 sm:$0xff]   ;;  %v1853_v11 = vpack.c.bf16 %v1827_v3, %v1827_v3 }
  0xe2   : > { %4224 = vmatprep.subr.bf16.mxu1 %v5271_v13  ;;  %v5293_v28 = vld [vmem:[%s6717_s7 + $0x64] ss:$8 sps:$4 sm:$0xff]   ;;  %v5297_v30 = vld [vmem:[%s6717_s7 + $0x60] ss:$8 sps:$4 sm:$0xff]   ;;  %v5299_v32 = vld [vmem:[%s6717_s7 + $0x74] ss:$8 sps:$4 sm:$0xff]  }
  0xe3   : > { %v5295_v29 = vld [vmem:[%s6717_s7 + $0x164] ss:$8 sps:$4 sm:$0xff]   ;;  %v5298_v31 = vld [vmem:[%s6717_s7 + $0x160] ss:$8 sps:$4 sm:$0xff]   ;;  %v5301_v33 = vld [vmem:[%s6717_s7 + $0x174] ss:$8 sps:$4 sm:$0xff]  }
  0xe4   : > { %4184 = vmatpush1.bf16.msra.mxu0 %v5273_v14  ;;  %v5303_v34 = vld [vmem:[%s6717_s7 + $0x70] ss:$8 sps:$4 sm:$0xff]   ;;  %v5305_v36 = vld [vmem:[%s6717_s7 + $0x84] ss:$8 sps:$4 sm:$0xff]   ;;  %v5309_v38 = vld [vmem:[%s6717_s7 + $0x80] ss:$8 sps:$4 sm:$0xff]  }
  0xe5   : > { %4225 = vmatpush1.bf16.msra.mxu1 %v5274_v15  ;;  %4185 = vmatprep.subr.bf16.mxu0 %v5275_v16  ;;  %v5304_v35 = vld [vmem:[%s6717_s7 + $0x170] ss:$8 sps:$4 sm:$0xff]   ;;  %v5307_v37 = vld [vmem:[%s6717_s7 + $0x184] ss:$8 sps:$4 sm:$0xff]   ;;  %v5310_v39 = vld [vmem:[%s6717_s7 + $0x180] ss:$8 sps:$4 sm:$0xff]  }
  0xe6   : > { %4226 = vmatprep.subr.bf16.mxu1 %v5277_v17  ;;  %v5311_v40 = vld [vmem:[%s6717_s7 + $0x94] ss:$8 sps:$4 sm:$0xff]   ;;  %v5315_v42 = vld [vmem:[%s6717_s7 + $0x90] ss:$8 sps:$4 sm:$0xff]   ;;  %v5317_v44 = vld [vmem:[%s6717_s7 + $0xa4] ss:$8 sps:$4 sm:$0xff]  }
  0xe7   : > { %v5313_v41 = vld [vmem:[%s6717_s7 + $0x194] ss:$8 sps:$4 sm:$0xff]   ;;  %v5316_v43 = vld [vmem:[%s6717_s7 + $0x190] ss:$8 sps:$4 sm:$0xff]   ;;  %v5319_v45 = vld [vmem:[%s6717_s7 + $0x1a4] ss:$8 sps:$4 sm:$0xff]  }
  0xe8   : > { %4186 = vmatpush1.bf16.msra.mxu0 %v5279_v18  ;;  %v5321_v46 = vld [vmem:[%s6717_s7 + $0xa0] ss:$8 sps:$4 sm:$0xff]   ;;  %v5323_v48 = vld [vmem:[%s6717_s7 + $0xb4] ss:$8 sps:$4 sm:$0xff]   ;;  %v5327_v50 = vld [vmem:[%s6717_s7 + $0xb0] ss:$8 sps:$4 sm:$0xff]  }
  0xe9   : > { %4227 = vmatpush1.bf16.msra.mxu1 %v5280_v19  ;;  %4187 = vmatprep.subr.bf16.mxu0 %v5281_v20  ;;  %v5322_v47 = vld [vmem:[%s6717_s7 + $0x1a0] ss:$8 sps:$4 sm:$0xff]   ;;  %v5325_v49 = vld [vmem:[%s6717_s7 + $0x1b4] ss:$8 sps:$4 sm:$0xff]   ;;  %v5328_v51 = vld [vmem:[%s6717_s7 + $0x1b0] ss:$8 sps:$4 sm:$0xff]  }
  0xea   : > { %4228 = vmatprep.subr.bf16.mxu1 %v5283_v21  ;;  %v5329_v52 = vld [vmem:[%s6717_s7 + $0xc4] ss:$8 sps:$4 sm:$0xff]   ;;  %v5333_v54 = vld [vmem:[%s6717_s7 + $0xc0] ss:$8 sps:$4 sm:$0xff]   ;;  %v5335_v56 = vld [vmem:[%s6717_s7 + $0xd4] ss:$8 sps:$4 sm:$0xff]  }
  0xeb   : > { %v5331_v53 = vld [vmem:[%s6717_s7 + $0x1c4] ss:$8 sps:$4 sm:$0xff]   ;;  %v5334_v55 = vld [vmem:[%s6717_s7 + $0x1c0] ss:$8 sps:$4 sm:$0xff]   ;;  %v5337_v57 = vld [vmem:[%s6717_s7 + $0x1d4] ss:$8 sps:$4 sm:$0xff]  }
  0xec   : > { %4188 = vmatpush1.bf16.msra.mxu0 %v5285_v22  ;;  %v5339_v58 = vld [vmem:[%s6717_s7 + $0xd0] ss:$8 sps:$4 sm:$0xff]   ;;  %v5341_v60 = vld [vmem:[%s6717_s7 + $0xe4] ss:$8 sps:$4 sm:$0xff]   ;;  %v5345_v62 = vld [vmem:[%s6717_s7 + $0xe0] ss:$8 sps:$4 sm:$0xff]  }
  0xed   : > { %4229 = vmatpush1.bf16.msra.mxu1 %v5286_v23  ;;  %4189 = vmatprep.subr.bf16.mxu0 %v5287_v24  ;;  %v5340_v59 = vld [vmem:[%s6717_s7 + $0x1d0] ss:$8 sps:$4 sm:$0xff]   ;;  %v5343_v61 = vld [vmem:[%s6717_s7 + $0x1e4] ss:$8 sps:$4 sm:$0xff]   ;;  %v5346_v63 = vld [vmem:[%s6717_s7 + $0x1e0] ss:$8 sps:$4 sm:$0xff]  }
  0xee   : > { %4230 = vmatprep.subr.bf16.mxu1 %v5289_v25  ;;  %v5347_v0 = vld [vmem:[%s6717_s7 + $0xf4] ss:$8 sps:$4 sm:$0xff]   ;;  %v5351_v4 = vld [vmem:[%s6717_s7 + $0xf0] ss:$8 sps:$4 sm:$0xff]   ;;  %v5355_v6 = vld [vmem:[%s6717_s7 + $0x204] ss:$8 sps:$4 sm:$0xff]  }
  0xef   : > { %v5349_v1 = vld [vmem:[%s6717_s7 + $0x1f4] ss:$8 sps:$4 sm:$0xff]   ;;  %v5352_v5 = vld [vmem:[%s6717_s7 + $0x1f0] ss:$8 sps:$4 sm:$0xff]   ;;  %v5358_v7 = vld [vmem:[%s6717_s7 + $0x304] ss:$8 sps:$4 sm:$0xff]  }
  0xf0   : > { %4190 = vmatpush1.bf16.msra.mxu0 %v5291_v26  ;;  %v1830_v8 = vld [vmem:[%s7203_s0 + $0x28] sm:$0xff]  ;;  %v1832_v9 = vld [vmem:[%s7203_s0 + $0x38] sm:$0xff] }
  0xf1   : > { %4231 = vmatpush1.bf16.msra.mxu1 %v5292_v27  ;;  %4191 = vmatprep.subr.bf16.mxu0 %v5293_v28  ;;  %v5353_v12 = vld [vmem:[%s6717_s7 + $0x200] ss:$8 sps:$4 sm:$0xff]   ;;  %v5361_v14 = vld [vmem:[%s6717_s7 + $0x214] ss:$8 sps:$4 sm:$0xff]   ;;  %v1856_v16 = vpack.c.bf16 %v1830_v8, %v1830_v8  ;;  %v1858_v17 = vpack.c.bf16 %v1832_v9, %v1832_v9  ;;  %v5359_v18 = vld [vmem:[%s6717_s7 + $0x210] ss:$8 sps:$4 sm:$0xff]  }
  0xf2   : > { %4232 = vmatprep.subr.bf16.mxu1 %v5295_v29  ;;  %v5356_v13 = vld [vmem:[%s6717_s7 + $0x300] ss:$8 sps:$4 sm:$0xff]   ;;  %v5364_v15 = vld [vmem:[%s6717_s7 + $0x314] ss:$8 sps:$4 sm:$0xff]   ;;  %v5362_v19 = vld [vmem:[%s6717_s7 + $0x310] ss:$8 sps:$4 sm:$0xff]  }
  0xf3   : > { %v5367_v20 = vld [vmem:[%s6717_s7 + $0x224] ss:$8 sps:$4 sm:$0xff]   ;;  %v5365_v22 = vld [vmem:[%s6717_s7 + $0x220] ss:$8 sps:$4 sm:$0xff]   ;;  %v5373_v24 = vld [vmem:[%s6717_s7 + $0x234] ss:$8 sps:$4 sm:$0xff]  }
  0xf4   : > { %4192 = vmatpush1.bf16.msra.mxu0 %v5297_v30  ;;  %v5370_v21 = vld [vmem:[%s6717_s7 + $0x324] ss:$8 sps:$4 sm:$0xff]   ;;  %v5368_v23 = vld [vmem:[%s6717_s7 + $0x320] ss:$8 sps:$4 sm:$0xff]   ;;  %v5376_v25 = vld [vmem:[%s6717_s7 + $0x334] ss:$8 sps:$4 sm:$0xff]  }
  0xf5   : > { %4233 = vmatpush1.bf16.msra.mxu1 %v5298_v31  ;;  %4193 = vmatprep.subr.bf16.mxu0 %v5299_v32  ;;  %v5371_v26 = vld [vmem:[%s6717_s7 + $0x230] ss:$8 sps:$4 sm:$0xff]   ;;  %v5379_v28 = vld [vmem:[%s6717_s7 + $0x244] ss:$8 sps:$4 sm:$0xff]   ;;  %v5377_v30 = vld [vmem:[%s6717_s7 + $0x240] ss:$8 sps:$4 sm:$0xff]  }
  0xf6   : > { %4234 = vmatprep.subr.bf16.mxu1 %v5301_v33  ;;  %v5374_v27 = vld [vmem:[%s6717_s7 + $0x330] ss:$8 sps:$4 sm:$0xff]   ;;  %v5382_v29 = vld [vmem:[%s6717_s7 + $0x344] ss:$8 sps:$4 sm:$0xff]   ;;  %v5380_v31 = vld [vmem:[%s6717_s7 + $0x340] ss:$8 sps:$4 sm:$0xff]  }
  0xf7   : > { %v5385_v32 = vld [vmem:[%s6717_s7 + $0x254] ss:$8 sps:$4 sm:$0xff]   ;;  %v5431_v2 = vld [vmem:[%s6717_s7 + $0x2d0] ss:$8 sps:$4 sm:$0xff]  }
  0xf8   : > { %4194 = vmatpush1.bf16.msra.mxu0 %v5303_v34  ;;  %v5388_v33 = vld [vmem:[%s6717_s7 + $0x354] ss:$8 sps:$4 sm:$0xff]   ;;  %v5383_v34 = vld [vmem:[%s6717_s7 + $0x250] ss:$8 sps:$4 sm:$0xff]  }
  0xf9   : > { %4235 = vmatpush1.bf16.msra.mxu1 %v5304_v35  ;;  %4195 = vmatprep.subr.bf16.mxu0 %v5305_v36  ;;  %v5386_v35 = vld [vmem:[%s6717_s7 + $0x350] ss:$8 sps:$4 sm:$0xff]   ;;  %v5391_v36 = vld [vmem:[%s6717_s7 + $0x264] ss:$8 sps:$4 sm:$0xff]   ;;  %v5445_v8 = vld [vmem:[%s6717_s7 + $0x2f4] ss:$8 sps:$4 sm:$0xff]  }
  0xfa   : > { %4236 = vmatprep.subr.bf16.mxu1 %v5307_v37  ;;  %v5394_v37 = vld [vmem:[%s6717_s7 + $0x364] ss:$8 sps:$4 sm:$0xff]   ;;  %v5434_v3 = vld [vmem:[%s6717_s7 + $0x3d0] ss:$8 sps:$4 sm:$0xff]   ;;  %v5448_v9 = vld [vmem:[%s6717_s7 + $0x3f4] ss:$8 sps:$4 sm:$0xff]  }
  0xfc   : > { %4196 = vmatpush1.bf16.msra.mxu0 %v5309_v38  ;;  %v5389_v38 = vld [vmem:[%s6717_s7 + $0x260] ss:$8 sps:$4 sm:$0xff]  }
  0xfd   : > { %4237 = vmatpush1.bf16.msra.mxu1 %v5310_v39  ;;  %4197 = vmatprep.subr.bf16.mxu0 %v5311_v40  ;;  %v5392_v39 = vld [vmem:[%s6717_s7 + $0x360] ss:$8 sps:$4 sm:$0xff]   ;;  %v5397_v40 = vld [vmem:[%s6717_s7 + $0x274] ss:$8 sps:$4 sm:$0xff]  }
  0xfe   : > { %4238 = vmatprep.subr.bf16.mxu1 %v5313_v41  ;;  %v5400_v41 = vld [vmem:[%s6717_s7 + $0x374] ss:$8 sps:$4 sm:$0xff]  }
 0x100   : > { %4198 = vmatpush1.bf16.msra.mxu0 %v5315_v42  ;;  %v5395_v42 = vld [vmem:[%s6717_s7 + $0x270] ss:$8 sps:$4 sm:$0xff]  }
 0x101   : > { %4239 = vmatpush1.bf16.msra.mxu1 %v5316_v43  ;;  %4199 = vmatprep.subr.bf16.mxu0 %v5317_v44  ;;  %v5398_v43 = vld [vmem:[%s6717_s7 + $0x370] ss:$8 sps:$4 sm:$0xff]   ;;  %v5403_v44 = vld [vmem:[%s6717_s7 + $0x284] ss:$8 sps:$4 sm:$0xff]  }
 0x102   : > { %4240 = vmatprep.subr.bf16.mxu1 %v5319_v45  ;;  %v5406_v45 = vld [vmem:[%s6717_s7 + $0x384] ss:$8 sps:$4 sm:$0xff]  }
 0x104   : > { %4200 = vmatpush1.bf16.msra.mxu0 %v5321_v46  ;;  %v5401_v46 = vld [vmem:[%s6717_s7 + $0x280] ss:$8 sps:$4 sm:$0xff]  }
 0x105   : > { %4241 = vmatpush1.bf16.msra.mxu1 %v5322_v47  ;;  %4201 = vmatprep.subr.bf16.mxu0 %v5323_v48  ;;  %v5404_v47 = vld [vmem:[%s6717_s7 + $0x380] ss:$8 sps:$4 sm:$0xff]   ;;  %v5409_v48 = vld [vmem:[%s6717_s7 + $0x294] ss:$8 sps:$4 sm:$0xff]  }
 0x106   : > { %4242 = vmatprep.subr.bf16.mxu1 %v5325_v49  ;;  %v5412_v49 = vld [vmem:[%s6717_s7 + $0x394] ss:$8 sps:$4 sm:$0xff]  }
 0x108   : > { %4202 = vmatpush1.bf16.msra.mxu0 %v5327_v50  ;;  %v5407_v50 = vld [vmem:[%s6717_s7 + $0x290] ss:$8 sps:$4 sm:$0xff]  }
 0x109   : > { %4243 = vmatpush1.bf16.msra.mxu1 %v5328_v51  ;;  %4203 = vmatprep.subr.bf16.mxu0 %v5329_v52  ;;  %v5410_v51 = vld [vmem:[%s6717_s7 + $0x390] ss:$8 sps:$4 sm:$0xff]   ;;  %v5415_v52 = vld [vmem:[%s6717_s7 + $0x2a4] ss:$8 sps:$4 sm:$0xff]  }
 0x10a   : > { %4244 = vmatprep.subr.bf16.mxu1 %v5331_v53  ;;  %v5418_v53 = vld [vmem:[%s6717_s7 + $0x3a4] ss:$8 sps:$4 sm:$0xff]  }
 0x10c   : > { %4204 = vmatpush1.bf16.msra.mxu0 %v5333_v54  ;;  %v5413_v54 = vld [vmem:[%s6717_s7 + $0x2a0] ss:$8 sps:$4 sm:$0xff]  }
 0x10d   : > { %4245 = vmatpush1.bf16.msra.mxu1 %v5334_v55  ;;  %4205 = vmatprep.subr.bf16.mxu0 %v5335_v56  ;;  %v5416_v55 = vld [vmem:[%s6717_s7 + $0x3a0] ss:$8 sps:$4 sm:$0xff]   ;;  %v5421_v56 = vld [vmem:[%s6717_s7 + $0x2b4] ss:$8 sps:$4 sm:$0xff]  }
 0x10e   : > { %4246 = vmatprep.subr.bf16.mxu1 %v5337_v57  ;;  %v5424_v57 = vld [vmem:[%s6717_s7 + $0x3b4] ss:$8 sps:$4 sm:$0xff]  }
 0x110   : > { %4206 = vmatpush1.bf16.msra.mxu0 %v5339_v58  ;;  %v5419_v58 = vld [vmem:[%s6717_s7 + $0x2b0] ss:$8 sps:$4 sm:$0xff]  }
 0x111   : > { %4247 = vmatpush1.bf16.msra.mxu1 %v5340_v59  ;;  %4207 = vmatprep.subr.bf16.mxu0 %v5341_v60  ;;  %v5422_v59 = vld [vmem:[%s6717_s7 + $0x3b0] ss:$8 sps:$4 sm:$0xff]   ;;  %v5427_v60 = vld [vmem:[%s6717_s7 + $0x2c4] ss:$8 sps:$4 sm:$0xff]  }
 0x112   : > { %4248 = vmatprep.subr.bf16.mxu1 %v5343_v61  ;;  %v5430_v61 = vld [vmem:[%s6717_s7 + $0x3c4] ss:$8 sps:$4 sm:$0xff]  }
 0x114   : > { %4208 = vmatpush1.bf16.msra.mxu0 %v5345_v62  ;;  %v5425_v62 = vld [vmem:[%s6717_s7 + $0x2c0] ss:$8 sps:$4 sm:$0xff]  }
 0x115   : > { %4249 = vmatpush1.bf16.msra.mxu1 %v5346_v63  ;;  %4209 = vmatprep.subr.bf16.mxu0 %v5347_v0  ;;  %v5428_v63 = vld [vmem:[%s6717_s7 + $0x3c0] ss:$8 sps:$4 sm:$0xff]   ;;  %v5433_v0 = vld [vmem:[%s6717_s7 + $0x2d4] ss:$8 sps:$4 sm:$0xff]  }
 0x116   : > { %4250 = vmatprep.subr.bf16.mxu1 %v5349_v1  ;;  %v5436_v1 = vld [vmem:[%s6717_s7 + $0x3d4] ss:$8 sps:$4 sm:$0xff]  }
 0x118   : > { %4210 = vmatpush1.bf16.msra.mxu0 %v5351_v4  ;;  %v5439_v4 = vld [vmem:[%s6717_s7 + $0x2e4] ss:$8 sps:$4 sm:$0xff]  }
 0x119   : > { %4251 = vmatpush1.bf16.msra.mxu1 %v5352_v5  ;;  %4261 = vmatprep.subr.bf16.mxu0 %v5355_v6  ;;  %v5442_v5 = vld [vmem:[%s6717_s7 + $0x3e4] ss:$8 sps:$4 sm:$0xff]   ;;  %v5437_v6 = vld [vmem:[%s6717_s7 + $0x2e0] ss:$8 sps:$4 sm:$0xff]  }
 0x11a   : > { %4302 = vmatprep.subr.bf16.mxu1 %v5358_v7  ;;  %v5440_v7 = vld [vmem:[%s6717_s7 + $0x3e0] ss:$8 sps:$4 sm:$0xff]  }
 0x11b   : > { %4212 = vmatmul.mubr.bf16.vlgmr.msra.gmra.mrb[0].mxu0 %v1851_v10  ;;  %v5443_v10 = vld [vmem:[%s6717_s7 + $0x2f0] ss:$8 sps:$4 sm:$0xff]  }
 0x11c   : > { %4253 = vmatmul.mubr.bf16.vlgmr.msra.gmra.mrb[0].mxu1 %v1853_v11  ;;  %4262 = vmatpush1.bf16.msra.mxu0 %v5353_v12  ;;  %v5446_v11 = vld [vmem:[%s6717_s7 + $0x3f0] ss:$8 sps:$4 sm:$0xff]   ;;  %v1829_v12 = vld [vmem:[%s7203_s0 + $0x20] sm:$0xff] }
 0x11d   : > { %4303 = vmatpush1.bf16.msra.mxu1 %v5356_v13  ;;  %4263 = vmatprep.subr.bf16.mxu0 %v5361_v14  ;;  %v1831_v13 = vld [vmem:[%s7203_s0 + $0x30] sm:$0xff]  ;;  %v5451_v14 = vld [vmem:[%s6717_s7 + $0x404] ss:$8 sps:$4 sm:$0xff]  }
 0x11e   : > { %4304 = vmatprep.subr.bf16.mxu1 %v5364_v15  ;;  %4293 = vmatprep.mubr.bf16.mxu0 %v1856_v16  ;;  %v5454_v15 = vld [vmem:[%s6717_s7 + $0x504] ss:$8 sps:$4 sm:$0xff]   ;;  %v1855_v16 = vpack.c.bf16 %v1829_v12, %v1829_v12 }
 0x11f   : > { %4334 = vmatprep.mubr.bf16.mxu1 %v1858_v17  ;;  %v1857_v17 = vpack.c.bf16 %v1831_v13, %v1831_v13  ;;  %v5535_v12 = vld [vmem:[%s6717_s7 + $0x4e4] ss:$8 sps:$4 sm:$0xff]  }
 0x120   : > { %4264 = vmatpush1.bf16.msra.mxu0 %v5359_v18  ;;  %v5449_v18 = vld [vmem:[%s6717_s7 + $0x400] ss:$8 sps:$4 sm:$0xff]   ;;  %v5538_v13 = vld [vmem:[%s6717_s7 + $0x5e4] ss:$8 sps:$4 sm:$0xff]  }
 0x121   : > { %4305 = vmatpush1.bf16.msra.mxu1 %v5362_v19  ;;  %4265 = vmatprep.subr.bf16.mxu0 %v5367_v20  ;;  %v5452_v19 = vld [vmem:[%s6717_s7 + $0x500] ss:$8 sps:$4 sm:$0xff]  }
 0x122   : > { %4306 = vmatprep.subr.bf16.mxu1 %v5370_v21  ;;  %v1834_v20 = vld [vmem:[%s7203_s0 + $0x48] sm:$0xff]  ;;  %v5457_v21 = vld [vmem:[%s6717_s7 + $0x414] ss:$8 sps:$4 sm:$0xff]  }
 0x124   : > { %4266 = vmatpush1.bf16.msra.mxu0 %v5365_v22  ;;  %v5460_v22 = vld [vmem:[%s6717_s7 + $0x514] ss:$8 sps:$4 sm:$0xff]  }
 0x125   : > { %4307 = vmatpush1.bf16.msra.mxu1 %v5368_v23  ;;  %4267 = vmatprep.subr.bf16.mxu0 %v5373_v24  ;;  %v1836_v23 = vld [vmem:[%s7203_s0 + $0x58] sm:$0xff]  ;;  %v1860_v24 = vpack.c.bf16 %v1834_v20, %v1834_v20  ;;  %v1833_v20 = vld [vmem:[%s7203_s0 + $0x40] sm:$0xff] }
 0x126   : > { %4308 = vmatprep.subr.bf16.mxu1 %v5376_v25  ;;  %v1862_v25 = vpack.c.bf16 %v1836_v23, %v1836_v23  ;;  %v5550_v23 = vld [vmem:[%s6717_s7 + $0x704] ss:$8 sps:$4 sm:$0xff]  }
 0x128   : > { %4268 = vmatpush1.bf16.msra.mxu0 %v5371_v26  ;;  %v5455_v26 = vld [vmem:[%s6717_s7 + $0x410] ss:$8 sps:$4 sm:$0xff]  }
 0x129   : > { %4309 = vmatpush1.bf16.msra.mxu1 %v5374_v27  ;;  %4269 = vmatprep.subr.bf16.mxu0 %v5379_v28  ;;  %v5458_v27 = vld [vmem:[%s6717_s7 + $0x510] ss:$8 sps:$4 sm:$0xff]   ;;  %v5463_v28 = vld [vmem:[%s6717_s7 + $0x424] ss:$8 sps:$4 sm:$0xff]  }
 0x12a   : > { %4310 = vmatprep.subr.bf16.mxu1 %v5382_v29  ;;  %v5466_v29 = vld [vmem:[%s6717_s7 + $0x524] ss:$8 sps:$4 sm:$0xff]  }
 0x12c   : > { %4270 = vmatpush1.bf16.msra.mxu0 %v5377_v30  ;;  %v5461_v30 = vld [vmem:[%s6717_s7 + $0x420] ss:$8 sps:$4 sm:$0xff]  }
 0x12d   : > { %4311 = vmatpush1.bf16.msra.mxu1 %v5380_v31  ;;  %4271 = vmatprep.subr.bf16.mxu0 %v5385_v32  ;;  %v5464_v31 = vld [vmem:[%s6717_s7 + $0x520] ss:$8 sps:$4 sm:$0xff]   ;;  %v5469_v32 = vld [vmem:[%s6717_s7 + $0x434] ss:$8 sps:$4 sm:$0xff]  }
 0x12e   : > { %4312 = vmatprep.subr.bf16.mxu1 %v5388_v33  ;;  %v5472_v33 = vld [vmem:[%s6717_s7 + $0x534] ss:$8 sps:$4 sm:$0xff]  }
 0x130   : > { %4272 = vmatpush1.bf16.msra.mxu0 %v5383_v34  ;;  %v5467_v34 = vld [vmem:[%s6717_s7 + $0x430] ss:$8 sps:$4 sm:$0xff]  }
 0x131   : > { %4313 = vmatpush1.bf16.msra.mxu1 %v5386_v35  ;;  %4273 = vmatprep.subr.bf16.mxu0 %v5391_v36  ;;  %v5470_v35 = vld [vmem:[%s6717_s7 + $0x530] ss:$8 sps:$4 sm:$0xff]   ;;  %v5475_v36 = vld [vmem:[%s6717_s7 + $0x444] ss:$8 sps:$4 sm:$0xff]  }
 0x132   : > { %4314 = vmatprep.subr.bf16.mxu1 %v5394_v37  ;;  %v5478_v37 = vld [vmem:[%s6717_s7 + $0x544] ss:$8 sps:$4 sm:$0xff]  }
 0x134   : > { %4274 = vmatpush1.bf16.msra.mxu0 %v5389_v38  ;;  %v5473_v38 = vld [vmem:[%s6717_s7 + $0x440] ss:$8 sps:$4 sm:$0xff]  }
 0x135   : > { %4315 = vmatpush1.bf16.msra.mxu1 %v5392_v39  ;;  %4275 = vmatprep.subr.bf16.mxu0 %v5397_v40  ;;  %v5476_v39 = vld [vmem:[%s6717_s7 + $0x540] ss:$8 sps:$4 sm:$0xff]   ;;  %v5481_v40 = vld [vmem:[%s6717_s7 + $0x454] ss:$8 sps:$4 sm:$0xff]  }
 0x136   : > { %4316 = vmatprep.subr.bf16.mxu1 %v5400_v41  ;;  %v5484_v41 = vld [vmem:[%s6717_s7 + $0x554] ss:$8 sps:$4 sm:$0xff]  }
 0x138   : > { %4276 = vmatpush1.bf16.msra.mxu0 %v5395_v42  ;;  %v5479_v42 = vld [vmem:[%s6717_s7 + $0x450] ss:$8 sps:$4 sm:$0xff]  }
 0x139   : > { %4317 = vmatpush1.bf16.msra.mxu1 %v5398_v43  ;;  %4277 = vmatprep.subr.bf16.mxu0 %v5403_v44  ;;  %v5482_v43 = vld [vmem:[%s6717_s7 + $0x550] ss:$8 sps:$4 sm:$0xff]   ;;  %v5487_v44 = vld [vmem:[%s6717_s7 + $0x464] ss:$8 sps:$4 sm:$0xff]  }
 0x13a   : > { %4318 = vmatprep.subr.bf16.mxu1 %v5406_v45  ;;  %v5490_v45 = vld [vmem:[%s6717_s7 + $0x564] ss:$8 sps:$4 sm:$0xff]  }
 0x13c   : > { %4278 = vmatpush1.bf16.msra.mxu0 %v5401_v46  ;;  %v5485_v46 = vld [vmem:[%s6717_s7 + $0x460] ss:$8 sps:$4 sm:$0xff]  }
 0x13d   : > { %4319 = vmatpush1.bf16.msra.mxu1 %v5404_v47  ;;  %4279 = vmatprep.subr.bf16.mxu0 %v5409_v48  ;;  %v5488_v47 = vld [vmem:[%s6717_s7 + $0x560] ss:$8 sps:$4 sm:$0xff]   ;;  %v5493_v48 = vld [vmem:[%s6717_s7 + $0x474] ss:$8 sps:$4 sm:$0xff]  }
 0x13e   : > { %4320 = vmatprep.subr.bf16.mxu1 %v5412_v49  ;;  %v5496_v49 = vld [vmem:[%s6717_s7 + $0x574] ss:$8 sps:$4 sm:$0xff]  }
 0x140   : > { %4280 = vmatpush1.bf16.msra.mxu0 %v5407_v50  ;;  %v5491_v50 = vld [vmem:[%s6717_s7 + $0x470] ss:$8 sps:$4 sm:$0xff]  }
 0x141   : > { %4321 = vmatpush1.bf16.msra.mxu1 %v5410_v51  ;;  %4281 = vmatprep.subr.bf16.mxu0 %v5415_v52  ;;  %v5494_v51 = vld [vmem:[%s6717_s7 + $0x570] ss:$8 sps:$4 sm:$0xff]   ;;  %v5499_v52 = vld [vmem:[%s6717_s7 + $0x484] ss:$8 sps:$4 sm:$0xff]  }
 0x142   : > { %4322 = vmatprep.subr.bf16.mxu1 %v5418_v53  ;;  %v5502_v53 = vld [vmem:[%s6717_s7 + $0x584] ss:$8 sps:$4 sm:$0xff]  }
 0x144   : > { %4282 = vmatpush1.bf16.msra.mxu0 %v5413_v54  ;;  %v5497_v54 = vld [vmem:[%s6717_s7 + $0x480] ss:$8 sps:$4 sm:$0xff]  }
 0x145   : > { %4323 = vmatpush1.bf16.msra.mxu1 %v5416_v55  ;;  %4283 = vmatprep.subr.bf16.mxu0 %v5421_v56  ;;  %v5500_v55 = vld [vmem:[%s6717_s7 + $0x580] ss:$8 sps:$4 sm:$0xff]   ;;  %v5505_v56 = vld [vmem:[%s6717_s7 + $0x494] ss:$8 sps:$4 sm:$0xff]  }
 0x146   : > { %4324 = vmatprep.subr.bf16.mxu1 %v5424_v57  ;;  %v5508_v57 = vld [vmem:[%s6717_s7 + $0x594] ss:$8 sps:$4 sm:$0xff]  }
 0x148   : > { %4284 = vmatpush1.bf16.msra.mxu0 %v5419_v58  ;;  %v5503_v58 = vld [vmem:[%s6717_s7 + $0x490] ss:$8 sps:$4 sm:$0xff]  }
 0x149   : > { %4325 = vmatpush1.bf16.msra.mxu1 %v5422_v59  ;;  %4285 = vmatprep.subr.bf16.mxu0 %v5427_v60  ;;  %v5506_v59 = vld [vmem:[%s6717_s7 + $0x590] ss:$8 sps:$4 sm:$0xff]   ;;  %v5511_v60 = vld [vmem:[%s6717_s7 + $0x4a4] ss:$8 sps:$4 sm:$0xff]  }
 0x14a   : > { %4326 = vmatprep.subr.bf16.mxu1 %v5430_v61  ;;  %v5514_v61 = vld [vmem:[%s6717_s7 + $0x5a4] ss:$8 sps:$4 sm:$0xff]  }
 0x14c   : > { %4286 = vmatpush1.bf16.msra.mxu0 %v5425_v62  ;;  %v5509_v62 = vld [vmem:[%s6717_s7 + $0x4a0] ss:$8 sps:$4 sm:$0xff]  }
 0x14d   : > { %4327 = vmatpush1.bf16.msra.mxu1 %v5428_v63  ;;  %4287 = vmatprep.subr.bf16.mxu0 %v5433_v0  ;;  %v5512_v63 = vld [vmem:[%s6717_s7 + $0x5a0] ss:$8 sps:$4 sm:$0xff]   ;;  %v5517_v0 = vld [vmem:[%s6717_s7 + $0x4b4] ss:$8 sps:$4 sm:$0xff]  }
 0x14e   : > { %4328 = vmatprep.subr.bf16.mxu1 %v5436_v1  ;;  %v5520_v1 = vld [vmem:[%s6717_s7 + $0x5b4] ss:$8 sps:$4 sm:$0xff]  }
 0x150   : > { %4288 = vmatpush1.bf16.msra.mxu0 %v5431_v2  ;;  %v5515_v2 = vld [vmem:[%s6717_s7 + $0x4b0] ss:$8 sps:$4 sm:$0xff]  }
 0x151   : > { %4329 = vmatpush1.bf16.msra.mxu1 %v5434_v3  ;;  %4289 = vmatprep.subr.bf16.mxu0 %v5439_v4  ;;  %v5518_v3 = vld [vmem:[%s6717_s7 + $0x5b0] ss:$8 sps:$4 sm:$0xff]   ;;  %v5523_v4 = vld [vmem:[%s6717_s7 + $0x4c4] ss:$8 sps:$4 sm:$0xff]  }
 0x152   : > { %4330 = vmatprep.subr.bf16.mxu1 %v5442_v5  ;;  %v5526_v5 = vld [vmem:[%s6717_s7 + $0x5c4] ss:$8 sps:$4 sm:$0xff]  }
 0x154   : > { %4290 = vmatpush1.bf16.msra.mxu0 %v5437_v6  ;;  %v5521_v6 = vld [vmem:[%s6717_s7 + $0x4c0] ss:$8 sps:$4 sm:$0xff]  }
 0x155   : > { %4331 = vmatpush1.bf16.msra.mxu1 %v5440_v7  ;;  %4291 = vmatprep.subr.bf16.mxu0 %v5445_v8  ;;  %v5524_v7 = vld [vmem:[%s6717_s7 + $0x5c0] ss:$8 sps:$4 sm:$0xff]   ;;  %v5529_v8 = vld [vmem:[%s6717_s7 + $0x4d4] ss:$8 sps:$4 sm:$0xff]  }
 0x156   : > { %4332 = vmatprep.subr.bf16.mxu1 %v5448_v9  ;;  %v5532_v9 = vld [vmem:[%s6717_s7 + $0x5d4] ss:$8 sps:$4 sm:$0xff]  }
 0x158   : > { %4292 = vmatpush1.bf16.msra.mxu0 %v5443_v10  ;;  %v5527_v10 = vld [vmem:[%s6717_s7 + $0x4d0] ss:$8 sps:$4 sm:$0xff]  }
 0x159   : > { %4333 = vmatpush1.bf16.msra.mxu1 %v5446_v11  ;;  %4343 = vmatprep.subr.bf16.mxu0 %v5451_v14  ;;  %v5530_v11 = vld [vmem:[%s6717_s7 + $0x5d0] ss:$8 sps:$4 sm:$0xff]   ;;  %v5533_v14 = vld [vmem:[%s6717_s7 + $0x4e0] ss:$8 sps:$4 sm:$0xff]  }
 0x15a   : > { %4384 = vmatprep.subr.bf16.mxu1 %v5454_v15  ;;  %v5536_v15 = vld [vmem:[%s6717_s7 + $0x5e0] ss:$8 sps:$4 sm:$0xff]  }
 0x15b   : > { %4294 = vmatmul.mubr.bf16.vlgmr.msra.gmra.mrb[4].mxu0 %v1855_v16  ;;  %v5541_v16 = vld [vmem:[%s6717_s7 + $0x4f4] ss:$8 sps:$4 sm:$0xff]  }
 0x15c   : > { %4335 = vmatmul.mubr.bf16.vlgmr.msra.gmra.mrb[4].mxu1 %v1857_v17  ;;  %4344 = vmatpush1.bf16.msra.mxu0 %v5449_v18  ;;  %v5544_v17 = vld [vmem:[%s6717_s7 + $0x5f4] ss:$8 sps:$4 sm:$0xff]   ;;  %v5539_v18 = vld [vmem:[%s6717_s7 + $0x4f0] ss:$8 sps:$4 sm:$0xff]  }
 0x15d   : > { %4385 = vmatpush1.bf16.msra.mxu1 %v5452_v19  ;;  %4345 = vmatprep.subr.bf16.mxu0 %v5457_v21  ;;  %v5542_v19 = vld [vmem:[%s6717_s7 + $0x5f0] ss:$8 sps:$4 sm:$0xff]  }
 0x15e   : > { %4386 = vmatprep.subr.bf16.mxu1 %v5460_v22  ;;  %4375 = vmatprep.mubr.bf16.mxu0 %v1860_v24  ;;  %v1835_v21 = vld [vmem:[%s7203_s0 + $0x50] sm:$0xff]  ;;  %v5547_v22 = vld [vmem:[%s6717_s7 + $0x604] ss:$8 sps:$4 sm:$0xff]  }
 0x15f   : > { %4416 = vmatprep.mubr.bf16.mxu1 %v1862_v25  ;;  %v1838_v24 = vld [vmem:[%s7203_s0 + $0x68] sm:$0xff]  ;;  %v1859_v25 = vpack.c.bf16 %v1833_v20, %v1833_v20 }
 0x160   : > { %4346 = vmatpush1.bf16.msra.mxu0 %v5455_v26  ;;  %v1861_v26 = vpack.c.bf16 %v1835_v21, %v1835_v21  ;;  %v5631_v20 = vld [vmem:[%s6717_s7 + $0x6e4] ss:$8 sps:$4 sm:$0xff]  }
 0x161   : > { %4387 = vmatpush1.bf16.msra.mxu1 %v5458_v27  ;;  %4347 = vmatprep.subr.bf16.mxu0 %v5463_v28  ;;  %v1840_v27 = vld [vmem:[%s7203_s0 + $0x78] sm:$0xff]  ;;  %v5545_v28 = vld [vmem:[%s6717_s7 + $0x600] ss:$8 sps:$4 sm:$0xff]   ;;  %v5634_v21 = vld [vmem:[%s6717_s7 + $0x7e4] ss:$8 sps:$4 sm:$0xff]  }
 0x162   : > { %4388 = vmatprep.subr.bf16.mxu1 %v5466_v29  ;;  %v5548_v29 = vld [vmem:[%s6717_s7 + $0x700] ss:$8 sps:$4 sm:$0xff]  }
 0x164   : > { %4348 = vmatpush1.bf16.msra.mxu0 %v5461_v30  ;;  %v5553_v30 = vld [vmem:[%s6717_s7 + $0x614] ss:$8 sps:$4 sm:$0xff]  }
 0x165   : > { %4389 = vmatpush1.bf16.msra.mxu1 %v5464_v31  ;;  %4349 = vmatprep.subr.bf16.mxu0 %v5469_v32  ;;  %v5556_v31 = vld [vmem:[%s6717_s7 + $0x714] ss:$8 sps:$4 sm:$0xff]   ;;  %v1864_v32 = vpack.c.bf16 %v1838_v24, %v1838_v24 }
 0x166   : > { %4390 = vmatprep.subr.bf16.mxu1 %v5472_v33  ;;  %v1866_v33 = vpack.c.bf16 %v1840_v27, %v1840_v27  ;;  %v5637_v24 = vld [vmem:[%s6717_s7 + $0x6f4] ss:$8 sps:$4 sm:$0xff]   ;;  %v5638_v27 = vld [vmem:[%s6717_s7 + $0x7f0] ss:$8 sps:$4 sm:$0xff]  }
 0x168   : > { %4350 = vmatpush1.bf16.msra.mxu0 %v5467_v34  ;;  %v5551_v34 = vld [vmem:[%s6717_s7 + $0x610] ss:$8 sps:$4 sm:$0xff]  }
 0x169   : > { %4391 = vmatpush1.bf16.msra.mxu1 %v5470_v35  ;;  %4351 = vmatprep.subr.bf16.mxu0 %v5475_v36  ;;  %v5554_v35 = vld [vmem:[%s6717_s7 + $0x710] ss:$8 sps:$4 sm:$0xff]   ;;  %v5559_v36 = vld [vmem:[%s6717_s7 + $0x624] ss:$8 sps:$4 sm:$0xff]  }
 0x16a   : > { %4392 = vmatprep.subr.bf16.mxu1 %v5478_v37  ;;  %v5562_v37 = vld [vmem:[%s6717_s7 + $0x724] ss:$8 sps:$4 sm:$0xff]  }
 0x16c   : > { %4352 = vmatpush1.bf16.msra.mxu0 %v5473_v38  ;;  %v5557_v38 = vld [vmem:[%s6717_s7 + $0x620] ss:$8 sps:$4 sm:$0xff]  }
 0x16d   : > { %4393 = vmatpush1.bf16.msra.mxu1 %v5476_v39  ;;  %4353 = vmatprep.subr.bf16.mxu0 %v5481_v40  ;;  %v5560_v39 = vld [vmem:[%s6717_s7 + $0x720] ss:$8 sps:$4 sm:$0xff]   ;;  %v5565_v40 = vld [vmem:[%s6717_s7 + $0x634] ss:$8 sps:$4 sm:$0xff]  }
 0x16e   : > { %4394 = vmatprep.subr.bf16.mxu1 %v5484_v41  ;;  %v5568_v41 = vld [vmem:[%s6717_s7 + $0x734] ss:$8 sps:$4 sm:$0xff]  }
 0x170   : > { %4354 = vmatpush1.bf16.msra.mxu0 %v5479_v42  ;;  %v5563_v42 = vld [vmem:[%s6717_s7 + $0x630] ss:$8 sps:$4 sm:$0xff]  }
 0x171   : > { %4395 = vmatpush1.bf16.msra.mxu1 %v5482_v43  ;;  %4355 = vmatprep.subr.bf16.mxu0 %v5487_v44  ;;  %v5566_v43 = vld [vmem:[%s6717_s7 + $0x730] ss:$8 sps:$4 sm:$0xff]   ;;  %v5571_v44 = vld [vmem:[%s6717_s7 + $0x644] ss:$8 sps:$4 sm:$0xff]  }
 0x172   : > { %4396 = vmatprep.subr.bf16.mxu1 %v5490_v45  ;;  %v5574_v45 = vld [vmem:[%s6717_s7 + $0x744] ss:$8 sps:$4 sm:$0xff]  }
 0x174   : > { %4356 = vmatpush1.bf16.msra.mxu0 %v5485_v46  ;;  %v5569_v46 = vld [vmem:[%s6717_s7 + $0x640] ss:$8 sps:$4 sm:$0xff]  }
 0x175   : > { %4397 = vmatpush1.bf16.msra.mxu1 %v5488_v47  ;;  %4357 = vmatprep.subr.bf16.mxu0 %v5493_v48  ;;  %v5572_v47 = vld [vmem:[%s6717_s7 + $0x740] ss:$8 sps:$4 sm:$0xff]   ;;  %v5577_v48 = vld [vmem:[%s6717_s7 + $0x654] ss:$8 sps:$4 sm:$0xff]  }
 0x176   : > { %4398 = vmatprep.subr.bf16.mxu1 %v5496_v49  ;;  %v5580_v49 = vld [vmem:[%s6717_s7 + $0x754] ss:$8 sps:$4 sm:$0xff]  }
 0x178   : > { %4358 = vmatpush1.bf16.msra.mxu0 %v5491_v50  ;;  %v5575_v50 = vld [vmem:[%s6717_s7 + $0x650] ss:$8 sps:$4 sm:$0xff]  }
 0x179   : > { %4399 = vmatpush1.bf16.msra.mxu1 %v5494_v51  ;;  %4359 = vmatprep.subr.bf16.mxu0 %v5499_v52  ;;  %v5578_v51 = vld [vmem:[%s6717_s7 + $0x750] ss:$8 sps:$4 sm:$0xff]   ;;  %v5583_v52 = vld [vmem:[%s6717_s7 + $0x664] ss:$8 sps:$4 sm:$0xff]  }
 0x17a   : > { %4400 = vmatprep.subr.bf16.mxu1 %v5502_v53  ;;  %v5586_v53 = vld [vmem:[%s6717_s7 + $0x764] ss:$8 sps:$4 sm:$0xff]  }
 0x17c   : > { %4360 = vmatpush1.bf16.msra.mxu0 %v5497_v54  ;;  %v5581_v54 = vld [vmem:[%s6717_s7 + $0x660] ss:$8 sps:$4 sm:$0xff]  }
 0x17d   : > { %4401 = vmatpush1.bf16.msra.mxu1 %v5500_v55  ;;  %4361 = vmatprep.subr.bf16.mxu0 %v5505_v56  ;;  %v5584_v55 = vld [vmem:[%s6717_s7 + $0x760] ss:$8 sps:$4 sm:$0xff]   ;;  %v5589_v56 = vld [vmem:[%s6717_s7 + $0x674] ss:$8 sps:$4 sm:$0xff]  }
 0x17e   : > { %4402 = vmatprep.subr.bf16.mxu1 %v5508_v57  ;;  %v5592_v57 = vld [vmem:[%s6717_s7 + $0x774] ss:$8 sps:$4 sm:$0xff]  }
 0x180   : > { %4362 = vmatpush1.bf16.msra.mxu0 %v5503_v58  ;;  %v5587_v58 = vld [vmem:[%s6717_s7 + $0x670] ss:$8 sps:$4 sm:$0xff]  }
 0x181   : > { %4403 = vmatpush1.bf16.msra.mxu1 %v5506_v59  ;;  %4363 = vmatprep.subr.bf16.mxu0 %v5511_v60  ;;  %v5590_v59 = vld [vmem:[%s6717_s7 + $0x770] ss:$8 sps:$4 sm:$0xff]   ;;  %v5595_v60 = vld [vmem:[%s6717_s7 + $0x684] ss:$8 sps:$4 sm:$0xff]  }
 0x182   : > { %4404 = vmatprep.subr.bf16.mxu1 %v5514_v61  ;;  %v5598_v61 = vld [vmem:[%s6717_s7 + $0x784] ss:$8 sps:$4 sm:$0xff]  }
 0x184   : > { %4364 = vmatpush1.bf16.msra.mxu0 %v5509_v62  ;;  %v5593_v62 = vld [vmem:[%s6717_s7 + $0x680] ss:$8 sps:$4 sm:$0xff]  }
 0x185   : > { %4405 = vmatpush1.bf16.msra.mxu1 %v5512_v63  ;;  %4365 = vmatprep.subr.bf16.mxu0 %v5517_v0  ;;  %v5596_v63 = vld [vmem:[%s6717_s7 + $0x780] ss:$8 sps:$4 sm:$0xff]   ;;  %v5601_v0 = vld [vmem:[%s6717_s7 + $0x694] ss:$8 sps:$4 sm:$0xff]  }
 0x186   : > { %4406 = vmatprep.subr.bf16.mxu1 %v5520_v1  ;;  %v5604_v1 = vld [vmem:[%s6717_s7 + $0x794] ss:$8 sps:$4 sm:$0xff]  }
 0x188   : > { %4366 = vmatpush1.bf16.msra.mxu0 %v5515_v2  ;;  %v5599_v2 = vld [vmem:[%s6717_s7 + $0x690] ss:$8 sps:$4 sm:$0xff]  }
 0x189   : > { %4407 = vmatpush1.bf16.msra.mxu1 %v5518_v3  ;;  %4367 = vmatprep.subr.bf16.mxu0 %v5523_v4  ;;  %v5602_v3 = vld [vmem:[%s6717_s7 + $0x790] ss:$8 sps:$4 sm:$0xff]   ;;  %v5607_v4 = vld [vmem:[%s6717_s7 + $0x6a4] ss:$8 sps:$4 sm:$0xff]  }
 0x18a   : > { %4408 = vmatprep.subr.bf16.mxu1 %v5526_v5  ;;  %v5610_v5 = vld [vmem:[%s6717_s7 + $0x7a4] ss:$8 sps:$4 sm:$0xff]  }
 0x18c   : > { %4368 = vmatpush1.bf16.msra.mxu0 %v5521_v6  ;;  %v5605_v6 = vld [vmem:[%s6717_s7 + $0x6a0] ss:$8 sps:$4 sm:$0xff]  }
 0x18d   : > { %4409 = vmatpush1.bf16.msra.mxu1 %v5524_v7  ;;  %4369 = vmatprep.subr.bf16.mxu0 %v5529_v8  ;;  %v5608_v7 = vld [vmem:[%s6717_s7 + $0x7a0] ss:$8 sps:$4 sm:$0xff]   ;;  %v5613_v8 = vld [vmem:[%s6717_s7 + $0x6b4] ss:$8 sps:$4 sm:$0xff]  }
 0x18e   : > { %4410 = vmatprep.subr.bf16.mxu1 %v5532_v9  ;;  %v5616_v9 = vld [vmem:[%s6717_s7 + $0x7b4] ss:$8 sps:$4 sm:$0xff]  }
 0x190   : > { %4370 = vmatpush1.bf16.msra.mxu0 %v5527_v10  ;;  %v5611_v10 = vld [vmem:[%s6717_s7 + $0x6b0] ss:$8 sps:$4 sm:$0xff]  }
 0x191   : > { %4411 = vmatpush1.bf16.msra.mxu1 %v5530_v11  ;;  %4371 = vmatprep.subr.bf16.mxu0 %v5535_v12  ;;  %v5614_v11 = vld [vmem:[%s6717_s7 + $0x7b0] ss:$8 sps:$4 sm:$0xff]   ;;  %v5619_v12 = vld [vmem:[%s6717_s7 + $0x6c4] ss:$8 sps:$4 sm:$0xff]  }
 0x192   : > { %4412 = vmatprep.subr.bf16.mxu1 %v5538_v13  ;;  %v5622_v13 = vld [vmem:[%s6717_s7 + $0x7c4] ss:$8 sps:$4 sm:$0xff]  }
 0x194   : > { %4372 = vmatpush1.bf16.msra.mxu0 %v5533_v14  ;;  %v5617_v14 = vld [vmem:[%s6717_s7 + $0x6c0] ss:$8 sps:$4 sm:$0xff]  }
 0x195   : > { %4413 = vmatpush1.bf16.msra.mxu1 %v5536_v15  ;;  %4373 = vmatprep.subr.bf16.mxu0 %v5541_v16  ;;  %v5620_v15 = vld [vmem:[%s6717_s7 + $0x7c0] ss:$8 sps:$4 sm:$0xff]   ;;  %v5625_v16 = vld [vmem:[%s6717_s7 + $0x6d4] ss:$8 sps:$4 sm:$0xff]  }
 0x196   : > { %4414 = vmatprep.subr.bf16.mxu1 %v5544_v17  ;;  %v5628_v17 = vld [vmem:[%s6717_s7 + $0x7d4] ss:$8 sps:$4 sm:$0xff]  }
 0x198   : > { %4374 = vmatpush1.bf16.msra.mxu0 %v5539_v18  ;;  %v5623_v18 = vld [vmem:[%s6717_s7 + $0x6d0] ss:$8 sps:$4 sm:$0xff]  }
 0x199   : > { %4415 = vmatpush1.bf16.msra.mxu1 %v5542_v19  ;;  %4425 = vmatprep.subr.bf16.mxu0 %v5547_v22  ;;  %v5626_v19 = vld [vmem:[%s6717_s7 + $0x7d0] ss:$8 sps:$4 sm:$0xff]   ;;  %v5629_v22 = vld [vmem:[%s6717_s7 + $0x6e0] ss:$8 sps:$4 sm:$0xff]  }
 0x19a   : > { %4466 = vmatprep.subr.bf16.mxu1 %v5550_v23  ;;  %v5632_v23 = vld [vmem:[%s6717_s7 + $0x7e0] ss:$8 sps:$4 sm:$0xff]  }
 0x19b   : > { %4376 = vmatmul.mubr.bf16.vlgmr.msra.gmra.mrb[8].mxu0 %v1859_v25  ;;  %v5640_v25 = vld [vmem:[%s6717_s7 + $0x7f4] ss:$8 sps:$4 sm:$0xff]  }
 0x19c   : > { %4417 = vmatmul.mubr.bf16.vlgmr.msra.gmra.mrb[8].mxu1 %v1861_v26  ;;  %4426 = vmatpush1.bf16.msra.mxu0 %v5545_v28  ;;  %v5635_v26 = vld [vmem:[%s6717_s7 + $0x6f0] ss:$8 sps:$4 sm:$0xff]   ;;  %v1837_v28 = vld [vmem:[%s7203_s0 + $0x60] sm:$0xff] }
 0x19d   : > { %4467 = vmatpush1.bf16.msra.mxu1 %v5548_v29  ;;  %4427 = vmatprep.subr.bf16.mxu0 %v5553_v30  ;;  %v1839_v29 = vld [vmem:[%s7203_s0 + $0x70] sm:$0xff]  ;;  %v5643_v30 = vld [vmem:[%s6717_s7 + $0x804] ss:$8 sps:$4 sm:$0xff]  }
 0x19e   : > { %4468 = vmatprep.subr.bf16.mxu1 %v5556_v31  ;;  %4457 = vmatprep.mubr.bf16.mxu0 %v1864_v32  ;;  %v5646_v31 = vld [vmem:[%s6717_s7 + $0x904] ss:$8 sps:$4 sm:$0xff]  }
 0x19f   : > { %4498 = vmatprep.mubr.bf16.mxu1 %v1866_v33  ;;  %v1842_v32 = vld [vmem:[%s7203_s0 + $0x88] sm:$0xff]  ;;  %v1863_v33 = vpack.c.bf16 %v1837_v28, %v1837_v28  ;;  %v5707_v28 = vld [vmem:[%s6717_s7 + $0x8b0] ss:$8 sps:$4 sm:$0xff]  }
 0x1a0   : > { %4428 = vmatpush1.bf16.msra.mxu0 %v5551_v34  ;;  %v1865_v34 = vpack.c.bf16 %v1839_v29, %v1839_v29  ;;  %v5710_v29 = vld [vmem:[%s6717_s7 + $0x9b0] ss:$8 sps:$4 sm:$0xff]  }
 0x1a1   : > { %4469 = vmatpush1.bf16.msra.mxu1 %v5554_v35  ;;  %4429 = vmatprep.subr.bf16.mxu0 %v5559_v36  ;;  %v1844_v35 = vld [vmem:[%s7203_s0 + $0x98] sm:$0xff]  ;;  %v5641_v36 = vld [vmem:[%s6717_s7 + $0x800] ss:$8 sps:$4 sm:$0xff]  }
 0x1a2   : > { %4470 = vmatprep.subr.bf16.mxu1 %v5562_v37  ;;  %v5644_v37 = vld [vmem:[%s6717_s7 + $0x900] ss:$8 sps:$4 sm:$0xff]  }
 0x1a4   : > { %4430 = vmatpush1.bf16.msra.mxu0 %v5557_v38  ;;  %v5649_v38 = vld [vmem:[%s6717_s7 + $0x814] ss:$8 sps:$4 sm:$0xff]  }
 0x1a5   : > { %4471 = vmatpush1.bf16.msra.mxu1 %v5560_v39  ;;  %4431 = vmatprep.subr.bf16.mxu0 %v5565_v40  ;;  %v5652_v39 = vld [vmem:[%s6717_s7 + $0x914] ss:$8 sps:$4 sm:$0xff]   ;;  %v1868_v40 = vpack.c.bf16 %v1842_v32, %v1842_v32  ;;  %v5713_v32 = vld [vmem:[%s6717_s7 + $0x8c0] ss:$8 sps:$4 sm:$0xff]  }
 0x1a6   : > { %4472 = vmatprep.subr.bf16.mxu1 %v5568_v41  ;;  %v1870_v41 = vpack.c.bf16 %v1844_v35, %v1844_v35  ;;  %v5724_v35 = vld [vmem:[%s6717_s7 + $0x9d4] ss:$8 sps:$4 sm:$0xff]  }
 0x1a8   : > { %4432 = vmatpush1.bf16.msra.mxu0 %v5563_v42  ;;  %v5647_v42 = vld [vmem:[%s6717_s7 + $0x810] ss:$8 sps:$4 sm:$0xff]  }
 0x1a9   : > { %4473 = vmatpush1.bf16.msra.mxu1 %v5566_v43  ;;  %4433 = vmatprep.subr.bf16.mxu0 %v5571_v44  ;;  %v5650_v43 = vld [vmem:[%s6717_s7 + $0x910] ss:$8 sps:$4 sm:$0xff]   ;;  %v5655_v44 = vld [vmem:[%s6717_s7 + $0x824] ss:$8 sps:$4 sm:$0xff]  }
 0x1aa   : > { %4474 = vmatprep.subr.bf16.mxu1 %v5574_v45  ;;  %v5658_v45 = vld [vmem:[%s6717_s7 + $0x924] ss:$8 sps:$4 sm:$0xff]  }
 0x1ac   : > { %4434 = vmatpush1.bf16.msra.mxu0 %v5569_v46  ;;  %v5653_v46 = vld [vmem:[%s6717_s7 + $0x820] ss:$8 sps:$4 sm:$0xff]  }
 0x1ad   : > { %4475 = vmatpush1.bf16.msra.mxu1 %v5572_v47  ;;  %4435 = vmatprep.subr.bf16.mxu0 %v5577_v48  ;;  %v5656_v47 = vld [vmem:[%s6717_s7 + $0x920] ss:$8 sps:$4 sm:$0xff]   ;;  %v5661_v48 = vld [vmem:[%s6717_s7 + $0x834] ss:$8 sps:$4 sm:$0xff]  }
 0x1ae   : > { %4476 = vmatprep.subr.bf16.mxu1 %v5580_v49  ;;  %v5664_v49 = vld [vmem:[%s6717_s7 + $0x934] ss:$8 sps:$4 sm:$0xff]  }
 0x1b0   : > { %4436 = vmatpush1.bf16.msra.mxu0 %v5575_v50  ;;  %v5659_v50 = vld [vmem:[%s6717_s7 + $0x830] ss:$8 sps:$4 sm:$0xff]  }
 0x1b1   : > { %4477 = vmatpush1.bf16.msra.mxu1 %v5578_v51  ;;  %4437 = vmatprep.subr.bf16.mxu0 %v5583_v52  ;;  %v5662_v51 = vld [vmem:[%s6717_s7 + $0x930] ss:$8 sps:$4 sm:$0xff]   ;;  %v5667_v52 = vld [vmem:[%s6717_s7 + $0x844] ss:$8 sps:$4 sm:$0xff]  }
 0x1b2   : > { %4478 = vmatprep.subr.bf16.mxu1 %v5586_v53  ;;  %v5670_v53 = vld [vmem:[%s6717_s7 + $0x944] ss:$8 sps:$4 sm:$0xff]  }
 0x1b4   : > { %4438 = vmatpush1.bf16.msra.mxu0 %v5581_v54  ;;  %v5665_v54 = vld [vmem:[%s6717_s7 + $0x840] ss:$8 sps:$4 sm:$0xff]  }
 0x1b5   : > { %4479 = vmatpush1.bf16.msra.mxu1 %v5584_v55  ;;  %4439 = vmatprep.subr.bf16.mxu0 %v5589_v56  ;;  %v5668_v55 = vld [vmem:[%s6717_s7 + $0x940] ss:$8 sps:$4 sm:$0xff]   ;;  %v5673_v56 = vld [vmem:[%s6717_s7 + $0x854] ss:$8 sps:$4 sm:$0xff]  }
 0x1b6   : > { %4480 = vmatprep.subr.bf16.mxu1 %v5592_v57  ;;  %v5676_v57 = vld [vmem:[%s6717_s7 + $0x954] ss:$8 sps:$4 sm:$0xff]  }
 0x1b8   : > { %4440 = vmatpush1.bf16.msra.mxu0 %v5587_v58  ;;  %v5671_v58 = vld [vmem:[%s6717_s7 + $0x850] ss:$8 sps:$4 sm:$0xff]  }
 0x1b9   : > { %4481 = vmatpush1.bf16.msra.mxu1 %v5590_v59  ;;  %4441 = vmatprep.subr.bf16.mxu0 %v5595_v60  ;;  %v5674_v59 = vld [vmem:[%s6717_s7 + $0x950] ss:$8 sps:$4 sm:$0xff]   ;;  %v5679_v60 = vld [vmem:[%s6717_s7 + $0x864] ss:$8 sps:$4 sm:$0xff]  }
 0x1ba   : > { %4482 = vmatprep.subr.bf16.mxu1 %v5598_v61  ;;  %v5682_v61 = vld [vmem:[%s6717_s7 + $0x964] ss:$8 sps:$4 sm:$0xff]  }
 0x1bc   : > { %4442 = vmatpush1.bf16.msra.mxu0 %v5593_v62 }
 0x1bd   : > { %4483 = vmatpush1.bf16.msra.mxu1 %v5596_v63  ;;  %4443 = vmatprep.subr.bf16.mxu0 %v5601_v0 }
 0x1be   : > { %4484 = vmatprep.subr.bf16.mxu1 %v5604_v1 }
 0x1c0   : > { %4444 = vmatpush1.bf16.msra.mxu0 %v5599_v2 }
 0x1c1   : > { %4485 = vmatpush1.bf16.msra.mxu1 %v5602_v3  ;;  %4445 = vmatprep.subr.bf16.mxu0 %v5607_v4 }
 0x1c2   : > { %4486 = vmatprep.subr.bf16.mxu1 %v5610_v5 }
 0x1c4   : > { %4446 = vmatpush1.bf16.msra.mxu0 %v5605_v6  ;;  %v5677_v6 = vld [vmem:[%s6717_s7 + $0x860] ss:$8 sps:$4 sm:$0xff]  }
 0x1c5   : > { %4487 = vmatpush1.bf16.msra.mxu1 %v5608_v7  ;;  %4447 = vmatprep.subr.bf16.mxu0 %v5613_v8  ;;  %v5680_v7 = vld [vmem:[%s6717_s7 + $0x960] ss:$8 sps:$4 sm:$0xff]  }
 0x1c6   : > { %4488 = vmatprep.subr.bf16.mxu1 %v5616_v9 }
 0x1c8   : > { %4448 = vmatpush1.bf16.msra.mxu0 %v5611_v10  ;;  %v5685_v10 = vld [vmem:[%s6717_s7 + $0x874] ss:$8 sps:$4 sm:$0xff]  }
 0x1c9   : > { %4489 = vmatpush1.bf16.msra.mxu1 %v5614_v11  ;;  %4449 = vmatprep.subr.bf16.mxu0 %v5619_v12  ;;  %v5688_v11 = vld [vmem:[%s6717_s7 + $0x974] ss:$8 sps:$4 sm:$0xff]   ;;  %v5683_v12 = vld [vmem:[%s6717_s7 + $0x870] ss:$8 sps:$4 sm:$0xff]  }
 0x1ca   : > { %4490 = vmatprep.subr.bf16.mxu1 %v5622_v13  ;;  %v5686_v13 = vld [vmem:[%s6717_s7 + $0x970] ss:$8 sps:$4 sm:$0xff]  }
 0x1cc   : > { %4450 = vmatpush1.bf16.msra.mxu0 %v5617_v14  ;;  %v5691_v14 = vld [vmem:[%s6717_s7 + $0x884] ss:$8 sps:$4 sm:$0xff]  }
 0x1cd   : > { %4491 = vmatpush1.bf16.msra.mxu1 %v5620_v15  ;;  %4451 = vmatprep.subr.bf16.mxu0 %v5625_v16  ;;  %v5694_v15 = vld [vmem:[%s6717_s7 + $0x984] ss:$8 sps:$4 sm:$0xff]   ;;  %v5689_v16 = vld [vmem:[%s6717_s7 + $0x880] ss:$8 sps:$4 sm:$0xff]  }
 0x1ce   : > { %4492 = vmatprep.subr.bf16.mxu1 %v5628_v17  ;;  %v5692_v17 = vld [vmem:[%s6717_s7 + $0x980] ss:$8 sps:$4 sm:$0xff]  }
 0x1d0   : > { %4452 = vmatpush1.bf16.msra.mxu0 %v5623_v18  ;;  %v5697_v18 = vld [vmem:[%s6717_s7 + $0x894] ss:$8 sps:$4 sm:$0xff]  }
 0x1d1   : > { %4493 = vmatpush1.bf16.msra.mxu1 %v5626_v19  ;;  %4453 = vmatprep.subr.bf16.mxu0 %v5631_v20  ;;  %v5700_v19 = vld [vmem:[%s6717_s7 + $0x994] ss:$8 sps:$4 sm:$0xff]   ;;  %v5695_v20 = vld [vmem:[%s6717_s7 + $0x890] ss:$8 sps:$4 sm:$0xff]  }
 0x1d2   : > { %4494 = vmatprep.subr.bf16.mxu1 %v5634_v21  ;;  %v5698_v21 = vld [vmem:[%s6717_s7 + $0x990] ss:$8 sps:$4 sm:$0xff]  }
 0x1d4   : > { %4454 = vmatpush1.bf16.msra.mxu0 %v5629_v22  ;;  %v5703_v22 = vld [vmem:[%s6717_s7 + $0x8a4] ss:$8 sps:$4 sm:$0xff]  }
 0x1d5   : > { %4495 = vmatpush1.bf16.msra.mxu1 %v5632_v23  ;;  %4455 = vmatprep.subr.bf16.mxu0 %v5637_v24  ;;  %v5706_v23 = vld [vmem:[%s6717_s7 + $0x9a4] ss:$8 sps:$4 sm:$0xff]   ;;  %v5701_v24 = vld [vmem:[%s6717_s7 + $0x8a0] ss:$8 sps:$4 sm:$0xff]  }
 0x1d6   : > { %4496 = vmatprep.subr.bf16.mxu1 %v5640_v25  ;;  %v5704_v25 = vld [vmem:[%s6717_s7 + $0x9a0] ss:$8 sps:$4 sm:$0xff]  }
 0x1d8   : > { %4456 = vmatpush1.bf16.msra.mxu0 %v5635_v26  ;;  %v5709_v26 = vld [vmem:[%s6717_s7 + $0x8b4] ss:$8 sps:$4 sm:$0xff]  }
 0x1d9   : > { %4497 = vmatpush1.bf16.msra.mxu1 %v5638_v27  ;;  %4507 = vmatprep.subr.bf16.mxu0 %v5643_v30  ;;  %v5712_v27 = vld [vmem:[%s6717_s7 + $0x9b4] ss:$8 sps:$4 sm:$0xff]   ;;  %v5715_v30 = vld [vmem:[%s6717_s7 + $0x8c4] ss:$8 sps:$4 sm:$0xff]  }
 0x1da   : > { %4548 = vmatprep.subr.bf16.mxu1 %v5646_v31  ;;  %v5718_v31 = vld [vmem:[%s6717_s7 + $0x9c4] ss:$8 sps:$4 sm:$0xff]  }
 0x1db   : > { %4458 = vmatmul.mubr.bf16.vlgmr.msra.gmra.mrb[12].mxu0 %v1863_v33  ;;  %v5716_v33 = vld [vmem:[%s6717_s7 + $0x9c0] ss:$8 sps:$4 sm:$0xff]  }
 0x1dc   : > { %4499 = vmatmul.mubr.bf16.vlgmr.msra.gmra.mrb[12].mxu1 %v1865_v34  ;;  %4508 = vmatpush1.bf16.msra.mxu0 %v5641_v36  ;;  %v5721_v34 = vld [vmem:[%s6717_s7 + $0x8d4] ss:$8 sps:$4 sm:$0xff]   ;;  %v5719_v36 = vld [vmem:[%s6717_s7 + $0x8d0] ss:$8 sps:$4 sm:$0xff]  }
 0x1dd   : > { %4549 = vmatpush1.bf16.msra.mxu1 %v5644_v37  ;;  %4509 = vmatprep.subr.bf16.mxu0 %v5649_v38  ;;  %v5722_v37 = vld [vmem:[%s6717_s7 + $0x9d0] ss:$8 sps:$4 sm:$0xff]   ;;  %v5727_v38 = vld [vmem:[%s6717_s7 + $0x8e4] ss:$8 sps:$4 sm:$0xff]  }
 0x1de   : > { %4550 = vmatprep.subr.bf16.mxu1 %v5652_v39  ;;  %4539 = vmatprep.mubr.bf16.mxu0 %v1868_v40  ;;  %v5730_v39 = vld [vmem:[%s6717_s7 + $0x9e4] ss:$8 sps:$4 sm:$0xff]   ;;  %v5725_v40 = vld [vmem:[%s6717_s7 + $0x8e0] ss:$8 sps:$4 sm:$0xff]  }
 0x1df   : > { %4580 = vmatprep.mubr.bf16.mxu1 %v1870_v41  ;;  %v5728_v41 = vld [vmem:[%s6717_s7 + $0x9e0] ss:$8 sps:$4 sm:$0xff]  }
 0x1e0   : > { %4510 = vmatpush1.bf16.msra.mxu0 %v5647_v42  ;;  %v5733_v42 = vld [vmem:[%s6717_s7 + $0x8f4] ss:$8 sps:$4 sm:$0xff]  }
 0x1e1   : > { %4551 = vmatpush1.bf16.msra.mxu1 %v5650_v43  ;;  %4511 = vmatprep.subr.bf16.mxu0 %v5655_v44  ;;  %v5736_v43 = vld [vmem:[%s6717_s7 + $0x9f4] ss:$8 sps:$4 sm:$0xff]   ;;  %v5731_v44 = vld [vmem:[%s6717_s7 + $0x8f0] ss:$8 sps:$4 sm:$0xff]  }
 0x1e2   : > { %4552 = vmatprep.subr.bf16.mxu1 %v5658_v45  ;;  %v5734_v45 = vld [vmem:[%s6717_s7 + $0x9f0] ss:$8 sps:$4 sm:$0xff]  }
 0x1e4   : > { %4512 = vmatpush1.bf16.msra.mxu0 %v5653_v46  ;;  %v1841_v46 = vld [vmem:[%s7203_s0 + $0x80] sm:$0xff] }
 0x1e5   : > { %4553 = vmatpush1.bf16.msra.mxu1 %v5656_v47  ;;  %4513 = vmatprep.subr.bf16.mxu0 %v5661_v48  ;;  %v1843_v47 = vld [vmem:[%s7203_s0 + $0x90] sm:$0xff]  ;;  %v5739_v48 = vld [vmem:[%s6717_s7 + $0xa04] ss:$8 sps:$4 sm:$0xff]  }
 0x1e6   : > { %4554 = vmatprep.subr.bf16.mxu1 %v5664_v49  ;;  %v5742_v49 = vld [vmem:[%s6717_s7 + $0xb04] ss:$8 sps:$4 sm:$0xff]  }
 0x1e8   : > { %4514 = vmatpush1.bf16.msra.mxu0 %v5659_v50  ;;  %v1867_v50 = vpack.c.bf16 %v1841_v46, %v1841_v46  ;;  %v5805_v46 = vld [vmem:[%s6717_s7 + $0xab4] ss:$8 sps:$4 sm:$0xff]  }
 0x1e9   : > { %4555 = vmatpush1.bf16.msra.mxu1 %v5662_v51  ;;  %4515 = vmatprep.subr.bf16.mxu0 %v5667_v52  ;;  %v1869_v51 = vpack.c.bf16 %v1843_v47, %v1843_v47  ;;  %v1846_v52 = vld [vmem:[%s7203_s0 + $0xa8] sm:$0xff]  ;;  %v5808_v47 = vld [vmem:[%s6717_s7 + $0xbb4] ss:$8 sps:$4 sm:$0xff]  }
 0x1ea   : > { %4556 = vmatprep.subr.bf16.mxu1 %v5670_v53  ;;  %v1848_v53 = vld [vmem:[%s7203_s0 + $0xb8] sm:$0xff] }
 0x1ec   : > { %4516 = vmatpush1.bf16.msra.mxu0 %v5665_v54  ;;  %v5737_v54 = vld [vmem:[%s6717_s7 + $0xa00] ss:$8 sps:$4 sm:$0xff]  }
 0x1ed   : > { %4557 = vmatpush1.bf16.msra.mxu1 %v5668_v55  ;;  %4517 = vmatprep.subr.bf16.mxu0 %v5673_v56  ;;  %v5740_v55 = vld [vmem:[%s6717_s7 + $0xb00] ss:$8 sps:$4 sm:$0xff]   ;;  %v5745_v56 = vld [vmem:[%s6717_s7 + $0xa14] ss:$8 sps:$4 sm:$0xff]  }
 0x1ee   : > { %4558 = vmatprep.subr.bf16.mxu1 %v5676_v57  ;;  %v4213_v62 = vpop.f32.mrb[0].mxu0  ;;  %v5748_v57 = vld [vmem:[%s6717_s7 + $0xb14] ss:$8 sps:$4 sm:$0xff]  }
 0x1ef   : > { %v4254_v63 = vpop.f32.mrb[0].mxu1  ;;  %v4215_v1 = vpop.f32.mrb[1].mxu0 }
 0x1f0   : > { %v7049_v0 = vadd.f32 %v4254_v63, %v4213_v62  ;;  %v4256_v2 = vpop.f32.mrb[1].mxu1  ;;  %v4217_v4 = vpop.f32.mrb[2].mxu0  ;;  %4518 = vmatpush1.bf16.msra.mxu0 %v5671_v58  ;;  %v1872_v58 = vpack.c.bf16 %v1846_v52, %v1846_v52  ;;  %v5751_v62 = vld [vmem:[%s6717_s7 + $0xa24] ss:$8 sps:$4 sm:$0xff]   ;;  %v5809_v52 = vld [vmem:[%s6717_s7 + $0xac0] ss:$8 sps:$4 sm:$0xff]  }
 0x1f1   : > { %v7051_v3 = vadd.f32 %v4256_v2, %v4215_v1  ;;  %v4258_v5 = vpop.f32.mrb[2].mxu1  ;;  %4559 = vmatpush1.bf16.msra.mxu1 %v5674_v59  ;;  %v4218_v8 = vpop.f32.mrb[3].mxu0  ;;  %4519 = vmatprep.subr.bf16.mxu0 %v5679_v60  ;;  %v1874_v59 = vpack.c.bf16 %v1848_v53, %v1848_v53  ;;  %v5743_v60 = vld [vmem:[%s6717_s7 + $0xa10] ss:$8 sps:$4 sm:$0xff]   ;;  %v5754_v63 = vld [vmem:[%s6717_s7 + $0xb24] ss:$8 sps:$4 sm:$0xff]  }
 0x1f2   : > { %v4259_v9 = vpop.f32.mrb[3].mxu1  ;;  %4560 = vmatprep.subr.bf16.mxu1 %v5682_v61  ;;  %v5746_v61 = vld [vmem:[%s6717_s7 + $0xb10] ss:$8 sps:$4 sm:$0xff]   ;;  %v5749_v1 = vld [vmem:[%s6717_s7 + $0xa20] ss:$8 sps:$4 sm:$0xff]  }
 0x1f3   : > { %v5752_v2 = vld [vmem:[%s6717_s7 + $0xb20] ss:$8 sps:$4 sm:$0xff]   ;;  %v5757_v4 = vld [vmem:[%s6717_s7 + $0xa34] ss:$8 sps:$4 sm:$0xff]   ;;  %v5763_v8 = vld [vmem:[%s6717_s7 + $0xa44] ss:$8 sps:$4 sm:$0xff]  }
 0x1f4   : > { %4520 = vmatpush1.bf16.msra.mxu0 %v5677_v6  ;;  %v5760_v5 = vld [vmem:[%s6717_s7 + $0xb34] ss:$8 sps:$4 sm:$0xff]   ;;  %v5755_v6 = vld [vmem:[%s6717_s7 + $0xa30] ss:$8 sps:$4 sm:$0xff]   ;;  %v5766_v9 = vld [vmem:[%s6717_s7 + $0xb44] ss:$8 sps:$4 sm:$0xff]  }
 0x1f5   : > { %4561 = vmatpush1.bf16.msra.mxu1 %v5680_v7  ;;  %4521 = vmatprep.subr.bf16.mxu0 %v5685_v10  ;;  %v5758_v7 = vld [vmem:[%s6717_s7 + $0xb30] ss:$8 sps:$4 sm:$0xff]   ;;  %v5761_v10 = vld [vmem:[%s6717_s7 + $0xa40] ss:$8 sps:$4 sm:$0xff]  }
 0x1f6   : > { %4562 = vmatprep.subr.bf16.mxu1 %v5688_v11  ;;  %v5764_v11 = vld [vmem:[%s6717_s7 + $0xb40] ss:$8 sps:$4 sm:$0xff]  }
 0x1f7   : > { %v5812_v53 = vld [vmem:[%s6717_s7 + $0xbc0] ss:$8 sps:$4 sm:$0xff]  }
 0x1f8   : > { %4522 = vmatpush1.bf16.msra.mxu0 %v5683_v12  ;;  %v5769_v12 = vld [vmem:[%s6717_s7 + $0xa54] ss:$8 sps:$4 sm:$0xff]  }
 0x1f9   : > { %4563 = vmatpush1.bf16.msra.mxu1 %v5686_v13  ;;  %4523 = vmatprep.subr.bf16.mxu0 %v5691_v14  ;;  %v5772_v13 = vld [vmem:[%s6717_s7 + $0xb54] ss:$8 sps:$4 sm:$0xff]   ;;  %v5767_v14 = vld [vmem:[%s6717_s7 + $0xa50] ss:$8 sps:$4 sm:$0xff]  }
 0x1fa   : > { %4564 = vmatprep.subr.bf16.mxu1 %v5694_v15  ;;  %v5770_v15 = vld [vmem:[%s6717_s7 + $0xb50] ss:$8 sps:$4 sm:$0xff]  }
 0x1fc   : > { %4524 = vmatpush1.bf16.msra.mxu0 %v5689_v16  ;;  %v5775_v16 = vld [vmem:[%s6717_s7 + $0xa64] ss:$8 sps:$4 sm:$0xff]  }
 0x1fd   : > { %4565 = vmatpush1.bf16.msra.mxu1 %v5692_v17  ;;  %4525 = vmatprep.subr.bf16.mxu0 %v5697_v18  ;;  %v5778_v17 = vld [vmem:[%s6717_s7 + $0xb64] ss:$8 sps:$4 sm:$0xff]  }
 0x1fe   : > { %4566 = vmatprep.subr.bf16.mxu1 %v5700_v19 }
 0x200   : > { %4526 = vmatpush1.bf16.msra.mxu0 %v5695_v20 }
 0x201   : > { %4567 = vmatpush1.bf16.msra.mxu1 %v5698_v21  ;;  %4527 = vmatprep.subr.bf16.mxu0 %v5703_v22 }
 0x202   : > { %4568 = vmatprep.subr.bf16.mxu1 %v5706_v23 }
 0x204   : > { %4528 = vmatpush1.bf16.msra.mxu0 %v5701_v24 }
 0x205   : > { %4569 = vmatpush1.bf16.msra.mxu1 %v5704_v25  ;;  %4529 = vmatprep.subr.bf16.mxu0 %v5709_v26  ;;  %v5773_v26 = vld [vmem:[%s6717_s7 + $0xa60] ss:$8 sps:$4 sm:$0xff]  }
 0x206   : > { %4570 = vmatprep.subr.bf16.mxu1 %v5712_v27  ;;  %v5776_v27 = vld [vmem:[%s6717_s7 + $0xb60] ss:$8 sps:$4 sm:$0xff]  }
 0x208   : > { %4530 = vmatpush1.bf16.msra.mxu0 %v5707_v28 }
 0x209   : > { %4571 = vmatpush1.bf16.msra.mxu1 %v5710_v29  ;;  %4531 = vmatprep.subr.bf16.mxu0 %v5715_v30 }
 0x20a   : > { %4572 = vmatprep.subr.bf16.mxu1 %v5718_v31 }
 0x20c   : > { %4532 = vmatpush1.bf16.msra.mxu0 %v5713_v32  ;;  %v5779_v32 = vld [vmem:[%s6717_s7 + $0xa70] ss:$8 sps:$4 sm:$0xff]  }
 0x20d   : > { %4573 = vmatpush1.bf16.msra.mxu1 %v5716_v33  ;;  %4533 = vmatprep.subr.bf16.mxu0 %v5721_v34  ;;  %v5782_v33 = vld [vmem:[%s6717_s7 + $0xb70] ss:$8 sps:$4 sm:$0xff]   ;;  %v5787_v34 = vld [vmem:[%s6717_s7 + $0xa84] ss:$8 sps:$4 sm:$0xff]  }
 0x20e   : > { %4574 = vmatprep.subr.bf16.mxu1 %v5724_v35  ;;  %v5790_v35 = vld [vmem:[%s6717_s7 + $0xb84] ss:$8 sps:$4 sm:$0xff]  }
 0x210   : > { %4534 = vmatpush1.bf16.msra.mxu0 %v5719_v36  ;;  %v5785_v36 = vld [vmem:[%s6717_s7 + $0xa80] ss:$8 sps:$4 sm:$0xff]  }
 0x211   : > { %4575 = vmatpush1.bf16.msra.mxu1 %v5722_v37  ;;  %4535 = vmatprep.subr.bf16.mxu0 %v5727_v38  ;;  %v5788_v37 = vld [vmem:[%s6717_s7 + $0xb80] ss:$8 sps:$4 sm:$0xff]   ;;  %v5793_v38 = vld [vmem:[%s6717_s7 + $0xa94] ss:$8 sps:$4 sm:$0xff]  }
 0x212   : > { %4576 = vmatprep.subr.bf16.mxu1 %v5730_v39  ;;  %v5796_v39 = vld [vmem:[%s6717_s7 + $0xb94] ss:$8 sps:$4 sm:$0xff]  }
 0x214   : > { %4536 = vmatpush1.bf16.msra.mxu0 %v5725_v40  ;;  %v5791_v40 = vld [vmem:[%s6717_s7 + $0xa90] ss:$8 sps:$4 sm:$0xff]  }
 0x215   : > { %4577 = vmatpush1.bf16.msra.mxu1 %v5728_v41  ;;  %4537 = vmatprep.subr.bf16.mxu0 %v5733_v42  ;;  %v5794_v41 = vld [vmem:[%s6717_s7 + $0xb90] ss:$8 sps:$4 sm:$0xff]   ;;  %v5799_v42 = vld [vmem:[%s6717_s7 + $0xaa4] ss:$8 sps:$4 sm:$0xff]  }
 0x216   : > { %4578 = vmatprep.subr.bf16.mxu1 %v5736_v43  ;;  %v5802_v43 = vld [vmem:[%s6717_s7 + $0xba4] ss:$8 sps:$4 sm:$0xff]  }
 0x218   : > { %4538 = vmatpush1.bf16.msra.mxu0 %v5731_v44  ;;  %v5797_v44 = vld [vmem:[%s6717_s7 + $0xaa0] ss:$8 sps:$4 sm:$0xff]  }
 0x219   : > { %4579 = vmatpush1.bf16.msra.mxu1 %v5734_v45  ;;  %4589 = vmatprep.subr.bf16.mxu0 %v5739_v48  ;;  %v5800_v45 = vld [vmem:[%s6717_s7 + $0xba0] ss:$8 sps:$4 sm:$0xff]   ;;  %v5803_v48 = vld [vmem:[%s6717_s7 + $0xab0] ss:$8 sps:$4 sm:$0xff]  }
 0x21a   : > { %4630 = vmatprep.subr.bf16.mxu1 %v5742_v49  ;;  %v5806_v49 = vld [vmem:[%s6717_s7 + $0xbb0] ss:$8 sps:$4 sm:$0xff]  }
 0x21b   : > { %4540 = vmatmul.mubr.bf16.vlgmr.msra.gmra.mrb[16].mxu0 %v1867_v50  ;;  %v5811_v50 = vld [vmem:[%s6717_s7 + $0xac4] ss:$8 sps:$4 sm:$0xff]  }
 0x21c   : > { %4581 = vmatmul.mubr.bf16.vlgmr.msra.gmra.mrb[16].mxu1 %v1869_v51  ;;  %4590 = vmatpush1.bf16.msra.mxu0 %v5737_v54  ;;  %v5814_v51 = vld [vmem:[%s6717_s7 + $0xbc4] ss:$8 sps:$4 sm:$0xff]   ;;  %v5817_v54 = vld [vmem:[%s6717_s7 + $0xad4] ss:$8 sps:$4 sm:$0xff]  }
 0x21d   : > { %4631 = vmatpush1.bf16.msra.mxu1 %v5740_v55  ;;  %4591 = vmatprep.subr.bf16.mxu0 %v5745_v56  ;;  %v5820_v55 = vld [vmem:[%s6717_s7 + $0xbd4] ss:$8 sps:$4 sm:$0xff]   ;;  %v5815_v56 = vld [vmem:[%s6717_s7 + $0xad0] ss:$8 sps:$4 sm:$0xff]  }
 0x21e   : > { %4632 = vmatprep.subr.bf16.mxu1 %v5748_v57  ;;  %4621 = vmatprep.mubr.bf16.mxu0 %v1872_v58  ;;  %v5818_v57 = vld [vmem:[%s6717_s7 + $0xbd0] ss:$8 sps:$4 sm:$0xff]   ;;  %v5823_v58 = vld [vmem:[%s6717_s7 + $0xae4] ss:$8 sps:$4 sm:$0xff]  }
 0x21f   : > { %4662 = vmatprep.mubr.bf16.mxu1 %v1874_v59  ;;  %v5826_v59 = vld [vmem:[%s6717_s7 + $0xbe4] ss:$8 sps:$4 sm:$0xff]  }
 0x220   : > { %4592 = vmatpush1.bf16.msra.mxu0 %v5743_v60  ;;  %v5821_v60 = vld [vmem:[%s6717_s7 + $0xae0] ss:$8 sps:$4 sm:$0xff]  }
 0x221   : > { %4633 = vmatpush1.bf16.msra.mxu1 %v5746_v61  ;;  %4593 = vmatprep.subr.bf16.mxu0 %v5751_v62  ;;  %v5824_v61 = vld [vmem:[%s6717_s7 + $0xbe0] ss:$8 sps:$4 sm:$0xff]   ;;  %v5829_v62 = vld [vmem:[%s6717_s7 + $0xaf4] ss:$8 sps:$4 sm:$0xff]  }
 0x222   : > { %4634 = vmatprep.subr.bf16.mxu1 %v5754_v63  ;;  %v5832_v63 = vld [vmem:[%s6717_s7 + $0xbf4] ss:$8 sps:$4 sm:$0xff]  }
 0x224   : > { %4594 = vmatpush1.bf16.msra.mxu0 %v5749_v1  ;;  %v5827_v1 = vld [vmem:[%s6717_s7 + $0xaf0] ss:$8 sps:$4 sm:$0xff]  }
 0x225   : > { %4635 = vmatpush1.bf16.msra.mxu1 %v5752_v2  ;;  %4595 = vmatprep.subr.bf16.mxu0 %v5757_v4  ;;  %v5830_v2 = vld [vmem:[%s6717_s7 + $0xbf0] ss:$8 sps:$4 sm:$0xff]   ;;  %v1845_v4 = vld [vmem:[%s7203_s0 + $0xa0] sm:$0xff] }
 0x226   : > { %4636 = vmatprep.subr.bf16.mxu1 %v5760_v5  ;;  %v1847_v5 = vld [vmem:[%s7203_s0 + $0xb0] sm:$0xff] }
 0x228   : > { %4596 = vmatpush1.bf16.msra.mxu0 %v5755_v6  ;;  %v1871_v6 = vpack.c.bf16 %v1845_v4, %v1845_v4 }
 0x229   : > { %4637 = vmatpush1.bf16.msra.mxu1 %v5758_v7  ;;  %4597 = vmatprep.subr.bf16.mxu0 %v5763_v8  ;;  %v1873_v7 = vpack.c.bf16 %v1847_v5, %v1847_v5 }
 0x22a   : > { %4638 = vmatprep.subr.bf16.mxu1 %v5766_v9 }
 0x22c   : > { %4598 = vmatpush1.bf16.msra.mxu0 %v5761_v10 }
 0x22d   : > { %4639 = vmatpush1.bf16.msra.mxu1 %v5764_v11  ;;  %4599 = vmatprep.subr.bf16.mxu0 %v5769_v12 }
 0x22e   : > { %4640 = vmatprep.subr.bf16.mxu1 %v5772_v13  ;;  %v4295_v18 = vpop.f32.mrb[4].mxu0 }
 0x22f   : > { %v4336_v19 = vpop.f32.mrb[4].mxu1  ;;  %v4296_v20 = vadd.f32 %v4295_v18, %v7049_v0  ;;  %v4297_v21 = vpop.f32.mrb[5].mxu0  ;;  %v5781_v0 = vld [vmem:[%s6717_s7 + $0xa74] ss:$8 sps:$4 sm:$0xff]  }
 0x230   : > { %v4338_v22 = vpop.f32.mrb[5].mxu1  ;;  %v4298_v23 = vadd.f32 %v4297_v21, %v7051_v3  ;;  %v4299_v24 = vpop.f32.mrb[6].mxu0  ;;  %4600 = vmatpush1.bf16.msra.mxu0 %v5767_v14  ;;  %v5784_v3 = vld [vmem:[%s6717_s7 + $0xb74] ss:$8 sps:$4 sm:$0xff]   ;;  %s4825_s7 = sshll.u32 %s5863_s14, 1 }
 0x231   : > { %v4340_v25 = vpop.f32.mrb[6].mxu1  ;;  %4641 = vmatpush1.bf16.msra.mxu1 %v5770_v15  ;;  %v7133_v28 = vadd.f32 %v4336_v19, %v4296_v20  ;;  %v4300_v29 = vpop.f32.mrb[7].mxu0  ;;  %4601 = vmatprep.subr.bf16.mxu0 %v5775_v16  ;;  %p1800_p9 = scmp.lt.s32.totalorder %s4825_s7, 3 }
 0x232   : > { %v4341_v30 = vpop.f32.mrb[7].mxu1  ;;  %4642 = vmatprep.subr.bf16.mxu1 %v5778_v17  ;;  %v7137_v31 = vadd.f32 %v4338_v22, %v4298_v23 }
 0x233   : > { %s7214_s7 = smov (!%p1800_p9, %s4825_s7), 3 }
 0x234   : > { %4602 = vmatpush1.bf16.msra.mxu0 %v5773_v26  ;;  %s1802_s19 = scalar_lea.vmem %s7205_s2, %s7214_s7  ;;  %s4827_s14 = sshll.u32 %s7214_s7, 3 }
 0x235   : > { %4643 = vmatpush1.bf16.msra.mxu1 %v5776_v27  ;;  %4603 = vmatprep.subr.bf16.mxu0 %v5781_v0  ;;  %s1812_s23 = scalar_lea.vmem %s7206_s3, %s4827_s14 }
 0x236   : > { %4644 = vmatprep.subr.bf16.mxu1 %v5784_v3 }
 0x238   : > { %4604 = vmatpush1.bf16.msra.mxu0 %v5779_v32 }
 0x239   : > { %4645 = vmatpush1.bf16.msra.mxu1 %v5782_v33  ;;  %4605 = vmatprep.subr.bf16.mxu0 %v5787_v34 }
 0x23a   : > { %4646 = vmatprep.subr.bf16.mxu1 %v5790_v35 }
 0x23c   : > { %4606 = vmatpush1.bf16.msra.mxu0 %v5785_v36 }
 0x23d   : > { %4647 = vmatpush1.bf16.msra.mxu1 %v5788_v37  ;;  %4607 = vmatprep.subr.bf16.mxu0 %v5793_v38 }
 0x23e   : > { %4648 = vmatprep.subr.bf16.mxu1 %v5796_v39 }
 0x240   : > { %4608 = vmatpush1.bf16.msra.mxu0 %v5791_v40 }
 0x241   : > { %4649 = vmatpush1.bf16.msra.mxu1 %v5794_v41  ;;  %4609 = vmatprep.subr.bf16.mxu0 %v5799_v42  ;;  %v4682_v42 = vlaneseq }
 0x242   : > { %4650 = vmatprep.subr.bf16.mxu1 %v5802_v43 }
 0x243   : > { %v4683_v43 = vshrl.u32 %v4682_v42, 7 }
 0x244   : > { %4610 = vmatpush1.bf16.msra.mxu0 %v5797_v44 }
 0x245   : > { %4651 = vmatpush1.bf16.msra.mxu1 %v5800_v45  ;;  %4611 = vmatprep.subr.bf16.mxu0 %v5805_v46  ;;  %v4684_v44 = vsub.s32 0, %v4683_v43  ;;  %v4680_v45 = vld [vmem:[%s1802_s19] sm:$0x3]  ;;  %v4688_v46 = vsub.s32 1, %v4683_v43 }
 0x246   : > { %4652 = vmatprep.subr.bf16.mxu1 %v5808_v47 }
 0x248   : > { %4612 = vmatpush1.bf16.msra.mxu0 %v5803_v48 }
 0x249   : > { %4653 = vmatpush1.bf16.msra.mxu1 %v5806_v49  ;;  %4613 = vmatprep.subr.bf16.mxu0 %v5811_v50  ;;  %v4685_v50 = vrot.slane %v4680_v45, %v4684_v44 }
 0x24a   : > { %4654 = vmatprep.subr.bf16.mxu1 %v5814_v51 }
 0x24c   : > { %4614 = vmatpush1.bf16.msra.mxu0 %v5809_v52 }
 0x24d   : > { %4655 = vmatpush1.bf16.msra.mxu1 %v5812_v53  ;;  %4615 = vmatprep.subr.bf16.mxu0 %v5817_v54  ;;  %v4689_v54 = vrot.slane %v4680_v45, %v4688_v46 }
 0x24e   : > { %4656 = vmatprep.subr.bf16.mxu1 %v5820_v55 }
 0x250   : > { %4616 = vmatpush1.bf16.msra.mxu0 %v5815_v56 }
 0x251   : > { %4657 = vmatpush1.bf16.msra.mxu1 %v5818_v57  ;;  %4617 = vmatprep.subr.bf16.mxu0 %v5823_v58 }
 0x252   : > { %4658 = vmatprep.subr.bf16.mxu1 %v5826_v59 }
 0x254   : > { %4618 = vmatpush1.bf16.msra.mxu0 %v5821_v60 }
 0x255   : > { %4659 = vmatpush1.bf16.msra.mxu1 %v5824_v61  ;;  %4619 = vmatprep.subr.bf16.mxu0 %v5829_v62 }
 0x256   : > { %4660 = vmatprep.subr.bf16.mxu1 %v5832_v63 }
 0x258   : > { %4620 = vmatpush1.bf16.msra.mxu0 %v5827_v1 }
 0x259   : > { %4661 = vmatpush1.bf16.msra.mxu1 %v5830_v2 }
 0x25b   : > { %4622 = vmatmul.mubr.bf16.vlgmr.msra.gmra.mrb[20].mxu0 %v1871_v6 }
 0x25c   : > { %4663 = vmatmul.mubr.bf16.vlgmr.msra.gmra.mrb[20].mxu1 %v1873_v7 }
 0x26e   : > { %v4377_v8 = vpop.f32.mrb[8].mxu0 }
 0x26f   : > { %v4418_v9 = vpop.f32.mrb[8].mxu1  ;;  %v4378_v10 = vadd.f32 %v4377_v8, %v7133_v28  ;;  %v4379_v11 = vpop.f32.mrb[9].mxu0 }
 0x270   : > { %v4420_v12 = vpop.f32.mrb[9].mxu1  ;;  %v4380_v13 = vadd.f32 %v4379_v11, %v7137_v31  ;;  %v4381_v14 = vpop.f32.mrb[10].mxu0 }
 0x271   : > { %v4422_v15 = vpop.f32.mrb[10].mxu1  ;;  %v4419_v16 = vadd.f32 %v4418_v9, %v4378_v10  ;;  %v4382_v17 = vpop.f32.mrb[11].mxu0 }
 0x272   : > { %v4423_v18 = vpop.f32.mrb[11].mxu1  ;;  %v4421_v19 = vadd.f32 %v4420_v12, %v4380_v13 }
 0x2ae   : > { %v4459_v20 = vpop.f32.mrb[12].mxu0 }
 0x2af   : > { %v4500_v21 = vpop.f32.mrb[12].mxu1  ;;  %v4460_v22 = vadd.f32 %v4459_v20, %v4419_v16  ;;  %v4461_v23 = vpop.f32.mrb[13].mxu0 }
 0x2b0   : > { %v4502_v24 = vpop.f32.mrb[13].mxu1  ;;  %v4462_v25 = vadd.f32 %v4461_v23, %v4421_v19  ;;  %v4463_v26 = vpop.f32.mrb[14].mxu0 }
 0x2b1   : > { %v4504_v27 = vpop.f32.mrb[14].mxu1  ;;  %v4501_v29 = vadd.f32 %v4500_v21, %v4460_v22  ;;  %v4464_v28 = vpop.f32.mrb[15].mxu0 }
 0x2b2   : > { %v4505_v30 = vpop.f32.mrb[15].mxu1  ;;  %v4503_v0 = vadd.f32 %v4502_v24, %v4462_v25 }
 0x2ee   : > { %v4541_v3 = vpop.f32.mrb[16].mxu0 }
 0x2ef   : > { %v4582_v31 = vpop.f32.mrb[16].mxu1  ;;  %v4542_v32 = vadd.f32 %v4541_v3, %v4501_v29  ;;  %v4543_v33 = vpop.f32.mrb[17].mxu0 }
 0x2f0   : > { %v4584_v34 = vpop.f32.mrb[17].mxu1  ;;  %v4544_v35 = vadd.f32 %v4543_v33, %v4503_v0  ;;  %v4545_v36 = vpop.f32.mrb[18].mxu0 }
 0x2f1   : > { %v4586_v37 = vpop.f32.mrb[18].mxu1  ;;  %v4583_v38 = vadd.f32 %v4582_v31, %v4542_v32  ;;  %v4546_v39 = vpop.f32.mrb[19].mxu0 }
 0x2f2   : > { %v4587_v40 = vpop.f32.mrb[19].mxu1  ;;  %v4585_v41 = vadd.f32 %v4584_v34, %v4544_v35 }
 0x32e   : > { %v4623_v47 = vpop.f32.mrb[20].mxu0 }
 0x32f   : > { %v4664_v48 = vpop.f32.mrb[20].mxu1  ;;  %v4624_v49 = vadd.f32 %v4623_v47, %v4583_v38  ;;  %v4625_v51 = vpop.f32.mrb[21].mxu0 }
 0x330   : > { %v4666_v52 = vpop.f32.mrb[21].mxu1  ;;  %v4626_v53 = vadd.f32 %v4625_v51, %v4585_v41  ;;  %v4627_v55 = vpop.f32.mrb[22].mxu0 }
 0x331   : > { %v4668_v56 = vpop.f32.mrb[22].mxu1  ;;  %v4665_v57 = vadd.f32 %v4664_v48, %v4624_v49  ;;  %v4628_v58 = vpop.f32.mrb[23].mxu0 }
 0x332   : > { %v4669_v59 = vpop.f32.mrb[23].mxu1  ;;  %v4667_v60 = vadd.f32 %v4666_v52, %v4626_v53 }
 0x333   : > { %v4692_v61 = vadd.f32 %v4685_v50, %v4665_v57 }
 0x334   : > { %v4693_v62 = vadd.f32 %v4689_v54, %v4667_v60 }
 0x335   : > { %v4694_v63 = vmax.f32 %v4692_v61, 0.0 }
 0x336   : > { %v4695_v1 = vmax.f32 %v4693_v62, 0.0 }
 0x337   : > { %4696 = vst [vmem:[%s1812_s23] sm:$0xff] %v4694_v63 }
 0x338   : > { %4697 = vst [vmem:[%s1812_s23 + $0x8] sm:$0xff] %v4695_v1 }
 0x339 PF: > { %s13_s16 = sadd.s32 1, %s5871_s16   ;;  %s7207_s12 = smov %s5859_s13 }
 0x33a   : > { %p10_p10 = scmp.ge.s32.totalorder %s13_s16, 4   ;;  %s7208_s13 = smov %s5928_s20 }
 0x33b   : > { %s7209_s14 = smov %s5867_s15  ;;  %s7210_s15 = smov %s7212_s17 }
 0x33c   :  { %12 = sbr.rel (!%p10_p10) target bundleno = 3 (0x3), region = 120 }

// kernel: autoencoder_forward.7
= control target key start
LH: loop header
LB: loop body
LE: loop exit
PB: predicated region body
PF: predicated region fallthrough
CT: control target
= control target key end

     0   :  { %s5189_s12 = smov 0   ;;  %s5191_s13 = smov 0   ;;  %s6517_s0 = inlined_call_operand.vmem [shape: f32[8,512], index: 0, kind: input, shape index: {}]   ;;  %s6518_s1 = inlined_call_operand.vmem [shape: bf16[512,3072], index: 1, kind: input, shape index: {}]   ;;  %s6519_s2 = inlined_call_operand.vmem [shape: f32[1,3072], index: 2, kind: input, shape index: {}]   ;;  %s6520_s3 = inlined_call_operand.vmem [shape: f32[8,3072], index: 3, kind: output, shape index: {}]  }
   0x1   :  { %s5193_s14 = smov 0   ;;  %s5195_s15 = smov 0  }
   0x2   :  { %s5197_s16 = smov 0  }
   0x3 LB: > { %s28_s17 = sadd.s32 1, %s5163_s15  ;;  %p74_p1 = scmp.ne.s32.totalorder %s5155_s13, %s5151_s12  ;;  %s5167_s16 = sphi %s5197_s16, %s13_s16   ;;  %s5163_s15 = sphi %s5195_s15, %s6524_s15   ;;  %s5159_s14 = sphi %s5193_s14, %s6523_s14   ;;  %s5155_s13 = sphi %s5191_s13, %s6522_s13   ;;  %s5151_s12 = sphi %s5189_s12, %s6521_s12  }
   0x4   : > { %p30_p0 = scmp.ge.s32.totalorder %s28_s17, 2  ;;  %p75_p2 = scmp.eq.s32.totalorder %s5167_s16, 0 }
   0x5   : > { %s67_s19 = sadd.s32 1, %s5155_s13  ;;  %p4120_p5 = scmp.ge.s32.totalorder %s5167_s16, 2 }
   0x6   : > { %s6526_s17 = smov (%p30_p0, %s28_s17), 0  ;;  %p76_p3 = por %p75_p2, %p74_p1 }
   0x7   : > { %s63_s18 = ssub.s32 %s5163_s15, %s6526_s17  ;;  %162 = sbr.rel (%p4120_p5) target bundleno = 211 (0xd3), region = 20 }
   0x8   : > { %p65_p4 = scmp.eq.s32.totalorder %s63_s18, 0 }
   0xa   : > { %s5224_s20 = scalar_select %p65_p4, %s5155_s13, %s67_s19  }
   0xe   : > { %165 = sbr.rel (!%p76_p3) target bundleno = 211 (0xd3), region = 24  ;;  %s167_s21 = sand.u32 (%p76_p3), 1, %s5155_s13  }
   0xf   : > { %s4510_s22 = smul.u32 (%p76_p3), 48, %s5163_s15 }
  0x10   : > { %s4511_s23 = smul.u32 (%p76_p3), 3072, %s167_s21 }
  0x11   : > { %s5232_s26 = scalar_lea.vmem (%p76_p3), %s6518_s1, %s4510_s22 }
  0x12   : > { %v188_v0 = vld [vmem:[%s5232_s26] sm:$0xff] (%p76_p3)  ;;  %v190_v1 = vld [vmem:[%s5232_s26 + $0x8] sm:$0xff] (%p76_p3)  ;;  %v192_v2 = vld [vmem:[%s5232_s26 + $0x10] sm:$0xff] (%p76_p3)  ;;  %s5237_s27 = scalar_lea.vmem (%p76_p3), [#allocation3], %s4511_s23 }
  0x13   : > { %189 = vst [vmem:[%s5237_s27] sm:$0xff] (%p76_p3), %v188_v0  ;;  %191 = vst [vmem:[%s5237_s27 + $0x8] sm:$0xff] (%p76_p3), %v190_v1  ;;  %v194_v3 = vld [vmem:[%s5232_s26 + $0x18] sm:$0xff] (%p76_p3)  ;;  %v196_v4 = vld [vmem:[%s5232_s26 + $0x20] sm:$0xff] (%p76_p3) }
  0x14   : > { %193 = vst [vmem:[%s5237_s27 + $0x10] sm:$0xff] (%p76_p3), %v192_v2  ;;  %v198_v5 = vld [vmem:[%s5232_s26 + $0x28] sm:$0xff] (%p76_p3)  ;;  %195 = vst [vmem:[%s5237_s27 + $0x18] sm:$0xff] (%p76_p3), %v194_v3  ;;  %v200_v6 = vld [vmem:[%s5232_s26 + $0x60] sm:$0xff] (%p76_p3) }
  0x15   : > { %197 = vst [vmem:[%s5237_s27 + $0x20] sm:$0xff] %v196_v4  ;;  %199 = vst [vmem:[%s5237_s27 + $0x28] sm:$0xff] %v198_v5  ;;  %v202_v7 = vld [vmem:[%s5232_s26 + $0x68] sm:$0xff]  ;;  %v204_v8 = vld [vmem:[%s5232_s26 + $0x70] sm:$0xff] }
  0x16   : > { %201 = vst [vmem:[%s5237_s27 + $0x30] sm:$0xff] %v200_v6  ;;  %203 = vst [vmem:[%s5237_s27 + $0x38] sm:$0xff] %v202_v7  ;;  %v206_v9 = vld [vmem:[%s5232_s26 + $0x78] sm:$0xff]  ;;  %v208_v10 = vld [vmem:[%s5232_s26 + $0x80] sm:$0xff] }
  0x17   : > { %205 = vst [vmem:[%s5237_s27 + $0x40] sm:$0xff] %v204_v8  ;;  %v210_v11 = vld [vmem:[%s5232_s26 + $0x88] sm:$0xff]  ;;  %207 = vst [vmem:[%s5237_s27 + $0x48] sm:$0xff] %v206_v9  ;;  %v212_v12 = vld [vmem:[%s5232_s26 + $0xc0] sm:$0xff] }
  0x18   : > { %209 = vst [vmem:[%s5237_s27 + $0x50] sm:$0xff] %v208_v10  ;;  %211 = vst [vmem:[%s5237_s27 + $0x58] sm:$0xff] %v210_v11  ;;  %v214_v13 = vld [vmem:[%s5232_s26 + $0xc8] sm:$0xff]  ;;  %v216_v14 = vld [vmem:[%s5232_s26 + $0xd0] sm:$0xff] }
  0x19   : > { %213 = vst [vmem:[%s5237_s27 + $0x60] sm:$0xff] %v212_v12  ;;  %215 = vst [vmem:[%s5237_s27 + $0x68] sm:$0xff] %v214_v13  ;;  %v218_v15 = vld [vmem:[%s5232_s26 + $0xd8] sm:$0xff]  ;;  %v220_v16 = vld [vmem:[%s5232_s26 + $0xe0] sm:$0xff] }
  0x1a   : > { %217 = vst [vmem:[%s5237_s27 + $0x70] sm:$0xff] %v216_v14  ;;  %v222_v17 = vld [vmem:[%s5232_s26 + $0xe8] sm:$0xff]  ;;  %219 = vst [vmem:[%s5237_s27 + $0x78] sm:$0xff] %v218_v15  ;;  %v224_v18 = vld [vmem:[%s5232_s26 + $0x120] sm:$0xff] }
  0x1b   : > { %221 = vst [vmem:[%s5237_s27 + $0x80] sm:$0xff] %v220_v16  ;;  %223 = vst [vmem:[%s5237_s27 + $0x88] sm:$0xff] %v222_v17  ;;  %v226_v19 = vld [vmem:[%s5232_s26 + $0x128] sm:$0xff]  ;;  %v228_v20 = vld [vmem:[%s5232_s26 + $0x130] sm:$0xff] }
  0x1c   : > { %225 = vst [vmem:[%s5237_s27 + $0x90] sm:$0xff] %v224_v18  ;;  %227 = vst [vmem:[%s5237_s27 + $0x98] sm:$0xff] %v226_v19  ;;  %v230_v21 = vld [vmem:[%s5232_s26 + $0x138] sm:$0xff]  ;;  %v232_v22 = vld [vmem:[%s5232_s26 + $0x140] sm:$0xff] }
  0x1d   : > { %229 = vst [vmem:[%s5237_s27 + $0xa0] sm:$0xff] %v228_v20  ;;  %v234_v23 = vld [vmem:[%s5232_s26 + $0x148] sm:$0xff]  ;;  %231 = vst [vmem:[%s5237_s27 + $0xa8] sm:$0xff] %v230_v21  ;;  %v236_v24 = vld [vmem:[%s5232_s26 + $0x180] sm:$0xff] }
  0x1e   : > { %233 = vst [vmem:[%s5237_s27 + $0xb0] sm:$0xff] %v232_v22  ;;  %235 = vst [vmem:[%s5237_s27 + $0xb8] sm:$0xff] %v234_v23  ;;  %v238_v25 = vld [vmem:[%s5232_s26 + $0x188] sm:$0xff]  ;;  %v240_v26 = vld [vmem:[%s5232_s26 + $0x190] sm:$0xff] }
  0x1f   : > { %237 = vst [vmem:[%s5237_s27 + $0xc0] sm:$0xff] %v236_v24  ;;  %239 = vst [vmem:[%s5237_s27 + $0xc8] sm:$0xff] %v238_v25  ;;  %v242_v27 = vld [vmem:[%s5232_s26 + $0x198] sm:$0xff]  ;;  %v244_v28 = vld [vmem:[%s5232_s26 + $0x1a0] sm:$0xff] }
  0x20   : > { %241 = vst [vmem:[%s5237_s27 + $0xd0] sm:$0xff] %v240_v26  ;;  %v246_v29 = vld [vmem:[%s5232_s26 + $0x1a8] sm:$0xff]  ;;  %243 = vst [vmem:[%s5237_s27 + $0xd8] sm:$0xff] %v242_v27  ;;  %v248_v30 = vld [vmem:[%s5232_s26 + $0x1e0] sm:$0xff] }
  0x21   : > { %245 = vst [vmem:[%s5237_s27 + $0xe0] sm:$0xff] %v244_v28  ;;  %247 = vst [vmem:[%s5237_s27 + $0xe8] sm:$0xff] %v246_v29  ;;  %v250_v31 = vld [vmem:[%s5232_s26 + $0x1e8] sm:$0xff]  ;;  %v252_v32 = vld [vmem:[%s5232_s26 + $0x1f0] sm:$0xff] }
  0x22   : > { %249 = vst [vmem:[%s5237_s27 + $0xf0] sm:$0xff] %v248_v30  ;;  %251 = vst [vmem:[%s5237_s27 + $0xf8] sm:$0xff] %v250_v31  ;;  %v254_v33 = vld [vmem:[%s5232_s26 + $0x1f8] sm:$0xff]  ;;  %v256_v34 = vld [vmem:[%s5232_s26 + $0x200] sm:$0xff] }
  0x23   : > { %253 = vst [vmem:[%s5237_s27 + $0x100] sm:$0xff] %v252_v32  ;;  %v258_v35 = vld [vmem:[%s5232_s26 + $0x208] sm:$0xff]  ;;  %255 = vst [vmem:[%s5237_s27 + $0x108] sm:$0xff] %v254_v33  ;;  %v260_v36 = vld [vmem:[%s5232_s26 + $0x240] sm:$0xff] }
  0x24   : > { %257 = vst [vmem:[%s5237_s27 + $0x110] sm:$0xff] %v256_v34  ;;  %259 = vst [vmem:[%s5237_s27 + $0x118] sm:$0xff] %v258_v35  ;;  %v262_v37 = vld [vmem:[%s5232_s26 + $0x248] sm:$0xff]  ;;  %v264_v38 = vld [vmem:[%s5232_s26 + $0x250] sm:$0xff] }
  0x25   : > { %261 = vst [vmem:[%s5237_s27 + $0x120] sm:$0xff] %v260_v36  ;;  %263 = vst [vmem:[%s5237_s27 + $0x128] sm:$0xff] %v262_v37  ;;  %v266_v39 = vld [vmem:[%s5232_s26 + $0x258] sm:$0xff]  ;;  %v268_v40 = vld [vmem:[%s5232_s26 + $0x260] sm:$0xff] }
  0x26   : > { %265 = vst [vmem:[%s5237_s27 + $0x130] sm:$0xff] %v264_v38  ;;  %v270_v41 = vld [vmem:[%s5232_s26 + $0x268] sm:$0xff]  ;;  %267 = vst [vmem:[%s5237_s27 + $0x138] sm:$0xff] %v266_v39  ;;  %v272_v42 = vld [vmem:[%s5232_s26 + $0x2a0] sm:$0xff] }
  0x27   : > { %269 = vst [vmem:[%s5237_s27 + $0x140] sm:$0xff] %v268_v40  ;;  %271 = vst [vmem:[%s5237_s27 + $0x148] sm:$0xff] %v270_v41  ;;  %v274_v43 = vld [vmem:[%s5232_s26 + $0x2a8] sm:$0xff]  ;;  %v276_v44 = vld [vmem:[%s5232_s26 + $0x2b0] sm:$0xff] }
  0x28   : > { %273 = vst [vmem:[%s5237_s27 + $0x150] sm:$0xff] %v272_v42  ;;  %275 = vst [vmem:[%s5237_s27 + $0x158] sm:$0xff] %v274_v43  ;;  %v278_v45 = vld [vmem:[%s5232_s26 + $0x2b8] sm:$0xff]  ;;  %v280_v46 = vld [vmem:[%s5232_s26 + $0x2c0] sm:$0xff] }
  0x29   : > { %277 = vst [vmem:[%s5237_s27 + $0x160] sm:$0xff] %v276_v44  ;;  %v282_v47 = vld [vmem:[%s5232_s26 + $0x2c8] sm:$0xff]  ;;  %279 = vst [vmem:[%s5237_s27 + $0x168] sm:$0xff] %v278_v45  ;;  %v284_v48 = vld [vmem:[%s5232_s26 + $0x300] sm:$0xff] }
  0x2a   : > { %281 = vst [vmem:[%s5237_s27 + $0x170] sm:$0xff] %v280_v46  ;;  %283 = vst [vmem:[%s5237_s27 + $0x178] sm:$0xff] %v282_v47  ;;  %v286_v49 = vld [vmem:[%s5232_s26 + $0x308] sm:$0xff]  ;;  %v288_v50 = vld [vmem:[%s5232_s26 + $0x310] sm:$0xff] }
  0x2b   : > { %285 = vst [vmem:[%s5237_s27 + $0x180] sm:$0xff] %v284_v48  ;;  %287 = vst [vmem:[%s5237_s27 + $0x188] sm:$0xff] %v286_v49  ;;  %v290_v51 = vld [vmem:[%s5232_s26 + $0x318] sm:$0xff]  ;;  %v292_v52 = vld [vmem:[%s5232_s26 + $0x320] sm:$0xff] }
  0x2c   : > { %289 = vst [vmem:[%s5237_s27 + $0x190] sm:$0xff] %v288_v50  ;;  %v294_v53 = vld [vmem:[%s5232_s26 + $0x328] sm:$0xff]  ;;  %291 = vst [vmem:[%s5237_s27 + $0x198] sm:$0xff] %v290_v51  ;;  %v296_v54 = vld [vmem:[%s5232_s26 + $0x360] sm:$0xff] }
  0x2d   : > { %293 = vst [vmem:[%s5237_s27 + $0x1a0] sm:$0xff] %v292_v52  ;;  %295 = vst [vmem:[%s5237_s27 + $0x1a8] sm:$0xff] %v294_v53  ;;  %v298_v55 = vld [vmem:[%s5232_s26 + $0x368] sm:$0xff]  ;;  %v300_v56 = vld [vmem:[%s5232_s26 + $0x370] sm:$0xff] }
  0x2e   : > { %297 = vst [vmem:[%s5237_s27 + $0x1b0] sm:$0xff] %v296_v54  ;;  %299 = vst [vmem:[%s5237_s27 + $0x1b8] sm:$0xff] %v298_v55  ;;  %v302_v57 = vld [vmem:[%s5232_s26 + $0x378] sm:$0xff]  ;;  %v304_v58 = vld [vmem:[%s5232_s26 + $0x380] sm:$0xff] }
  0x2f   : > { %301 = vst [vmem:[%s5237_s27 + $0x1c0] sm:$0xff] %v300_v56  ;;  %v306_v59 = vld [vmem:[%s5232_s26 + $0x388] sm:$0xff]  ;;  %303 = vst [vmem:[%s5237_s27 + $0x1c8] sm:$0xff] %v302_v57  ;;  %v308_v60 = vld [vmem:[%s5232_s26 + $0x3c0] sm:$0xff] }
  0x30   : > { %305 = vst [vmem:[%s5237_s27 + $0x1d0] sm:$0xff] %v304_v58  ;;  %307 = vst [vmem:[%s5237_s27 + $0x1d8] sm:$0xff] %v306_v59  ;;  %v310_v61 = vld [vmem:[%s5232_s26 + $0x3c8] sm:$0xff]  ;;  %v312_v62 = vld [vmem:[%s5232_s26 + $0x3d0] sm:$0xff] }
  0x31   : > { %309 = vst [vmem:[%s5237_s27 + $0x1e0] sm:$0xff] %v308_v60  ;;  %311 = vst [vmem:[%s5237_s27 + $0x1e8] sm:$0xff] %v310_v61  ;;  %v314_v63 = vld [vmem:[%s5232_s26 + $0x3d8] sm:$0xff]  ;;  %v316_v0 = vld [vmem:[%s5232_s26 + $0x3e0] sm:$0xff] }
  0x32   : > { %313 = vst [vmem:[%s5237_s27 + $0x1f0] sm:$0xff] %v312_v62  ;;  %v318_v1 = vld [vmem:[%s5232_s26 + $0x3e8] sm:$0xff]  ;;  %315 = vst [vmem:[%s5237_s27 + $0x1f8] sm:$0xff] %v314_v63  ;;  %v320_v2 = vld [vmem:[%s5232_s26 + $0x420] sm:$0xff] }
  0x33   : > { %317 = vst [vmem:[%s5237_s27 + $0x200] sm:$0xff] %v316_v0  ;;  %319 = vst [vmem:[%s5237_s27 + $0x208] sm:$0xff] %v318_v1  ;;  %v322_v3 = vld [vmem:[%s5232_s26 + $0x428] sm:$0xff]  ;;  %v324_v4 = vld [vmem:[%s5232_s26 + $0x430] sm:$0xff] }
  0x34   : > { %321 = vst [vmem:[%s5237_s27 + $0x210] sm:$0xff] %v320_v2  ;;  %323 = vst [vmem:[%s5237_s27 + $0x218] sm:$0xff] %v322_v3  ;;  %v326_v5 = vld [vmem:[%s5232_s26 + $0x438] sm:$0xff]  ;;  %v328_v6 = vld [vmem:[%s5232_s26 + $0x440] sm:$0xff] }
  0x35   : > { %325 = vst [vmem:[%s5237_s27 + $0x220] sm:$0xff] %v324_v4  ;;  %v330_v7 = vld [vmem:[%s5232_s26 + $0x448] sm:$0xff]  ;;  %327 = vst [vmem:[%s5237_s27 + $0x228] sm:$0xff] %v326_v5  ;;  %v332_v8 = vld [vmem:[%s5232_s26 + $0x480] sm:$0xff] }
  0x36   : > { %329 = vst [vmem:[%s5237_s27 + $0x230] sm:$0xff] %v328_v6  ;;  %331 = vst [vmem:[%s5237_s27 + $0x238] sm:$0xff] %v330_v7  ;;  %v334_v9 = vld [vmem:[%s5232_s26 + $0x488] sm:$0xff]  ;;  %v336_v10 = vld [vmem:[%s5232_s26 + $0x490] sm:$0xff] }
  0x37   : > { %333 = vst [vmem:[%s5237_s27 + $0x240] sm:$0xff] %v332_v8  ;;  %335 = vst [vmem:[%s5237_s27 + $0x248] sm:$0xff] %v334_v9  ;;  %v338_v11 = vld [vmem:[%s5232_s26 + $0x498] sm:$0xff]  ;;  %v340_v12 = vld [vmem:[%s5232_s26 + $0x4a0] sm:$0xff] }
  0x38   : > { %337 = vst [vmem:[%s5237_s27 + $0x250] sm:$0xff] %v336_v10  ;;  %v342_v13 = vld [vmem:[%s5232_s26 + $0x4a8] sm:$0xff]  ;;  %339 = vst [vmem:[%s5237_s27 + $0x258] sm:$0xff] %v338_v11  ;;  %v344_v14 = vld [vmem:[%s5232_s26 + $0x4e0] sm:$0xff] }
  0x39   : > { %341 = vst [vmem:[%s5237_s27 + $0x260] sm:$0xff] %v340_v12  ;;  %343 = vst [vmem:[%s5237_s27 + $0x268] sm:$0xff] %v342_v13  ;;  %v346_v15 = vld [vmem:[%s5232_s26 + $0x4e8] sm:$0xff]  ;;  %v348_v16 = vld [vmem:[%s5232_s26 + $0x4f0] sm:$0xff] }
  0x3a   : > { %345 = vst [vmem:[%s5237_s27 + $0x270] sm:$0xff] %v344_v14  ;;  %347 = vst [vmem:[%s5237_s27 + $0x278] sm:$0xff] %v346_v15  ;;  %v350_v17 = vld [vmem:[%s5232_s26 + $0x4f8] sm:$0xff]  ;;  %v352_v18 = vld [vmem:[%s5232_s26 + $0x500] sm:$0xff] }
  0x3b   : > { %349 = vst [vmem:[%s5237_s27 + $0x280] sm:$0xff] %v348_v16  ;;  %v354_v19 = vld [vmem:[%s5232_s26 + $0x508] sm:$0xff]  ;;  %351 = vst [vmem:[%s5237_s27 + $0x288] sm:$0xff] %v350_v17  ;;  %v356_v20 = vld [vmem:[%s5232_s26 + $0x540] sm:$0xff] }
  0x3c   : > { %353 = vst [vmem:[%s5237_s27 + $0x290] sm:$0xff] %v352_v18  ;;  %355 = vst [vmem:[%s5237_s27 + $0x298] sm:$0xff] %v354_v19  ;;  %v358_v21 = vld [vmem:[%s5232_s26 + $0x548] sm:$0xff]  ;;  %v360_v22 = vld [vmem:[%s5232_s26 + $0x550] sm:$0xff] }
  0x3d   : > { %357 = vst [vmem:[%s5237_s27 + $0x2a0] sm:$0xff] %v356_v20  ;;  %359 = vst [vmem:[%s5237_s27 + $0x2a8] sm:$0xff] %v358_v21  ;;  %v362_v23 = vld [vmem:[%s5232_s26 + $0x558] sm:$0xff]  ;;  %v364_v24 = vld [vmem:[%s5232_s26 + $0x560] sm:$0xff] }
  0x3e   : > { %361 = vst [vmem:[%s5237_s27 + $0x2b0] sm:$0xff] %v360_v22  ;;  %v366_v25 = vld [vmem:[%s5232_s26 + $0x568] sm:$0xff]  ;;  %363 = vst [vmem:[%s5237_s27 + $0x2b8] sm:$0xff] %v362_v23  ;;  %v368_v26 = vld [vmem:[%s5232_s26 + $0x5a0] sm:$0xff] }
  0x3f   : > { %365 = vst [vmem:[%s5237_s27 + $0x2c0] sm:$0xff] %v364_v24  ;;  %367 = vst [vmem:[%s5237_s27 + $0x2c8] sm:$0xff] %v366_v25  ;;  %v370_v27 = vld [vmem:[%s5232_s26 + $0x5a8] sm:$0xff]  ;;  %v372_v28 = vld [vmem:[%s5232_s26 + $0x5b0] sm:$0xff] }
  0x40   : > { %369 = vst [vmem:[%s5237_s27 + $0x2d0] sm:$0xff] %v368_v26  ;;  %371 = vst [vmem:[%s5237_s27 + $0x2d8] sm:$0xff] %v370_v27  ;;  %v374_v29 = vld [vmem:[%s5232_s26 + $0x5b8] sm:$0xff]  ;;  %v376_v30 = vld [vmem:[%s5232_s26 + $0x5c0] sm:$0xff] }
  0x41   : > { %373 = vst [vmem:[%s5237_s27 + $0x2e0] sm:$0xff] %v372_v28  ;;  %v378_v31 = vld [vmem:[%s5232_s26 + $0x5c8] sm:$0xff]  ;;  %375 = vst [vmem:[%s5237_s27 + $0x2e8] sm:$0xff] %v374_v29  ;;  %v380_v32 = vld [vmem:[%s5232_s26 + $0x600] sm:$0xff] }
  0x42   : > { %377 = vst [vmem:[%s5237_s27 + $0x2f0] sm:$0xff] %v376_v30  ;;  %379 = vst [vmem:[%s5237_s27 + $0x2f8] sm:$0xff] %v378_v31  ;;  %v382_v33 = vld [vmem:[%s5232_s26 + $0x608] sm:$0xff]  ;;  %v384_v34 = vld [vmem:[%s5232_s26 + $0x610] sm:$0xff] }
  0x43   : > { %381 = vst [vmem:[%s5237_s27 + $0x300] sm:$0xff] %v380_v32  ;;  %383 = vst [vmem:[%s5237_s27 + $0x308] sm:$0xff] %v382_v33  ;;  %v386_v35 = vld [vmem:[%s5232_s26 + $0x618] sm:$0xff]  ;;  %v388_v36 = vld [vmem:[%s5232_s26 + $0x620] sm:$0xff] }
  0x44   : > { %385 = vst [vmem:[%s5237_s27 + $0x310] sm:$0xff] %v384_v34  ;;  %v390_v37 = vld [vmem:[%s5232_s26 + $0x628] sm:$0xff]  ;;  %387 = vst [vmem:[%s5237_s27 + $0x318] sm:$0xff] %v386_v35  ;;  %v392_v38 = vld [vmem:[%s5232_s26 + $0x660] sm:$0xff] }
  0x45   : > { %389 = vst [vmem:[%s5237_s27 + $0x320] sm:$0xff] %v388_v36  ;;  %391 = vst [vmem:[%s5237_s27 + $0x328] sm:$0xff] %v390_v37  ;;  %v394_v39 = vld [vmem:[%s5232_s26 + $0x668] sm:$0xff]  ;;  %v396_v40 = vld [vmem:[%s5232_s26 + $0x670] sm:$0xff] }
  0x46   : > { %393 = vst [vmem:[%s5237_s27 + $0x330] sm:$0xff] %v392_v38  ;;  %395 = vst [vmem:[%s5237_s27 + $0x338] sm:$0xff] %v394_v39  ;;  %v398_v41 = vld [vmem:[%s5232_s26 + $0x678] sm:$0xff]  ;;  %v400_v42 = vld [vmem:[%s5232_s26 + $0x680] sm:$0xff] }
  0x47   : > { %397 = vst [vmem:[%s5237_s27 + $0x340] sm:$0xff] %v396_v40  ;;  %v402_v43 = vld [vmem:[%s5232_s26 + $0x688] sm:$0xff]  ;;  %399 = vst [vmem:[%s5237_s27 + $0x348] sm:$0xff] %v398_v41  ;;  %v404_v44 = vld [vmem:[%s5232_s26 + $0x6c0] sm:$0xff] }
  0x48   : > { %401 = vst [vmem:[%s5237_s27 + $0x350] sm:$0xff] %v400_v42  ;;  %403 = vst [vmem:[%s5237_s27 + $0x358] sm:$0xff] %v402_v43  ;;  %v406_v45 = vld [vmem:[%s5232_s26 + $0x6c8] sm:$0xff]  ;;  %v408_v46 = vld [vmem:[%s5232_s26 + $0x6d0] sm:$0xff] }
  0x49   : > { %405 = vst [vmem:[%s5237_s27 + $0x360] sm:$0xff] %v404_v44  ;;  %407 = vst [vmem:[%s5237_s27 + $0x368] sm:$0xff] %v406_v45  ;;  %v410_v47 = vld [vmem:[%s5232_s26 + $0x6d8] sm:$0xff]  ;;  %v412_v48 = vld [vmem:[%s5232_s26 + $0x6e0] sm:$0xff] }
  0x4a   : > { %409 = vst [vmem:[%s5237_s27 + $0x370] sm:$0xff] %v408_v46  ;;  %v414_v49 = vld [vmem:[%s5232_s26 + $0x6e8] sm:$0xff]  ;;  %411 = vst [vmem:[%s5237_s27 + $0x378] sm:$0xff] %v410_v47  ;;  %v416_v50 = vld [vmem:[%s5232_s26 + $0x720] sm:$0xff] }
  0x4b   : > { %413 = vst [vmem:[%s5237_s27 + $0x380] sm:$0xff] %v412_v48  ;;  %415 = vst [vmem:[%s5237_s27 + $0x388] sm:$0xff] %v414_v49  ;;  %v418_v51 = vld [vmem:[%s5232_s26 + $0x728] sm:$0xff]  ;;  %v420_v52 = vld [vmem:[%s5232_s26 + $0x730] sm:$0xff] }
  0x4c   : > { %417 = vst [vmem:[%s5237_s27 + $0x390] sm:$0xff] %v416_v50  ;;  %419 = vst [vmem:[%s5237_s27 + $0x398] sm:$0xff] %v418_v51  ;;  %v422_v53 = vld [vmem:[%s5232_s26 + $0x738] sm:$0xff]  ;;  %v424_v54 = vld [vmem:[%s5232_s26 + $0x740] sm:$0xff] }
  0x4d   : > { %421 = vst [vmem:[%s5237_s27 + $0x3a0] sm:$0xff] %v420_v52  ;;  %v426_v55 = vld [vmem:[%s5232_s26 + $0x748] sm:$0xff]  ;;  %423 = vst [vmem:[%s5237_s27 + $0x3a8] sm:$0xff] %v422_v53  ;;  %v428_v56 = vld [vmem:[%s5232_s26 + $0x780] sm:$0xff] }
  0x4e   : > { %425 = vst [vmem:[%s5237_s27 + $0x3b0] sm:$0xff] %v424_v54  ;;  %427 = vst [vmem:[%s5237_s27 + $0x3b8] sm:$0xff] %v426_v55  ;;  %v430_v57 = vld [vmem:[%s5232_s26 + $0x788] sm:$0xff]  ;;  %v432_v58 = vld [vmem:[%s5232_s26 + $0x790] sm:$0xff] }
  0x4f   : > { %429 = vst [vmem:[%s5237_s27 + $0x3c0] sm:$0xff] %v428_v56  ;;  %431 = vst [vmem:[%s5237_s27 + $0x3c8] sm:$0xff] %v430_v57  ;;  %v434_v59 = vld [vmem:[%s5232_s26 + $0x798] sm:$0xff]  ;;  %v436_v60 = vld [vmem:[%s5232_s26 + $0x7a0] sm:$0xff] }
  0x50   : > { %433 = vst [vmem:[%s5237_s27 + $0x3d0] sm:$0xff] %v432_v58  ;;  %v438_v61 = vld [vmem:[%s5232_s26 + $0x7a8] sm:$0xff]  ;;  %435 = vst [vmem:[%s5237_s27 + $0x3d8] sm:$0xff] %v434_v59  ;;  %v440_v62 = vld [vmem:[%s5232_s26 + $0x7e0] sm:$0xff] }
  0x51   : > { %437 = vst [vmem:[%s5237_s27 + $0x3e0] sm:$0xff] %v436_v60  ;;  %439 = vst [vmem:[%s5237_s27 + $0x3e8] sm:$0xff] %v438_v61  ;;  %v442_v63 = vld [vmem:[%s5232_s26 + $0x7e8] sm:$0xff]  ;;  %v444_v0 = vld [vmem:[%s5232_s26 + $0x7f0] sm:$0xff] }
  0x52   : > { %441 = vst [vmem:[%s5237_s27 + $0x3f0] sm:$0xff] %v440_v62  ;;  %443 = vst [vmem:[%s5237_s27 + $0x3f8] sm:$0xff] %v442_v63  ;;  %v446_v1 = vld [vmem:[%s5232_s26 + $0x7f8] sm:$0xff]  ;;  %v448_v2 = vld [vmem:[%s5232_s26 + $0x800] sm:$0xff] }
  0x53   : > { %445 = vst [vmem:[%s5237_s27 + $0x400] sm:$0xff] %v444_v0  ;;  %v450_v3 = vld [vmem:[%s5232_s26 + $0x808] sm:$0xff]  ;;  %447 = vst [vmem:[%s5237_s27 + $0x408] sm:$0xff] %v446_v1  ;;  %v452_v4 = vld [vmem:[%s5232_s26 + $0x840] sm:$0xff] }
  0x54   : > { %449 = vst [vmem:[%s5237_s27 + $0x410] sm:$0xff] %v448_v2  ;;  %451 = vst [vmem:[%s5237_s27 + $0x418] sm:$0xff] %v450_v3  ;;  %v454_v5 = vld [vmem:[%s5232_s26 + $0x848] sm:$0xff]  ;;  %v456_v6 = vld [vmem:[%s5232_s26 + $0x850] sm:$0xff] }
  0x55   : > { %453 = vst [vmem:[%s5237_s27 + $0x420] sm:$0xff] %v452_v4  ;;  %455 = vst [vmem:[%s5237_s27 + $0x428] sm:$0xff] %v454_v5  ;;  %v458_v7 = vld [vmem:[%s5232_s26 + $0x858] sm:$0xff]  ;;  %v460_v8 = vld [vmem:[%s5232_s26 + $0x860] sm:$0xff] }
  0x56   : > { %457 = vst [vmem:[%s5237_s27 + $0x430] sm:$0xff] %v456_v6  ;;  %v462_v9 = vld [vmem:[%s5232_s26 + $0x868] sm:$0xff]  ;;  %459 = vst [vmem:[%s5237_s27 + $0x438] sm:$0xff] %v458_v7  ;;  %v464_v10 = vld [vmem:[%s5232_s26 + $0x8a0] sm:$0xff] }
  0x57   : > { %461 = vst [vmem:[%s5237_s27 + $0x440] sm:$0xff] %v460_v8  ;;  %463 = vst [vmem:[%s5237_s27 + $0x448] sm:$0xff] %v462_v9  ;;  %v466_v11 = vld [vmem:[%s5232_s26 + $0x8a8] sm:$0xff]  ;;  %v468_v12 = vld [vmem:[%s5232_s26 + $0x8b0] sm:$0xff] }
  0x58   : > { %465 = vst [vmem:[%s5237_s27 + $0x450] sm:$0xff] %v464_v10  ;;  %467 = vst [vmem:[%s5237_s27 + $0x458] sm:$0xff] %v466_v11  ;;  %v470_v13 = vld [vmem:[%s5232_s26 + $0x8b8] sm:$0xff]  ;;  %v472_v14 = vld [vmem:[%s5232_s26 + $0x8c0] sm:$0xff] }
  0x59   : > { %469 = vst [vmem:[%s5237_s27 + $0x460] sm:$0xff] %v468_v12  ;;  %v474_v15 = vld [vmem:[%s5232_s26 + $0x8c8] sm:$0xff]  ;;  %471 = vst [vmem:[%s5237_s27 + $0x468] sm:$0xff] %v470_v13  ;;  %v476_v16 = vld [vmem:[%s5232_s26 + $0x900] sm:$0xff] }
  0x5a   : > { %473 = vst [vmem:[%s5237_s27 + $0x470] sm:$0xff] %v472_v14  ;;  %475 = vst [vmem:[%s5237_s27 + $0x478] sm:$0xff] %v474_v15  ;;  %v478_v17 = vld [vmem:[%s5232_s26 + $0x908] sm:$0xff]  ;;  %v480_v18 = vld [vmem:[%s5232_s26 + $0x910] sm:$0xff] }
  0x5b   : > { %477 = vst [vmem:[%s5237_s27 + $0x480] sm:$0xff] %v476_v16  ;;  %479 = vst [vmem:[%s5237_s27 + $0x488] sm:$0xff] %v478_v17  ;;  %v482_v19 = vld [vmem:[%s5232_s26 + $0x918] sm:$0xff]  ;;  %v484_v20 = vld [vmem:[%s5232_s26 + $0x920] sm:$0xff] }
  0x5c   : > { %481 = vst [vmem:[%s5237_s27 + $0x490] sm:$0xff] %v480_v18  ;;  %v486_v21 = vld [vmem:[%s5232_s26 + $0x928] sm:$0xff]  ;;  %483 = vst [vmem:[%s5237_s27 + $0x498] sm:$0xff] %v482_v19  ;;  %v488_v22 = vld [vmem:[%s5232_s26 + $0x960] sm:$0xff] }
  0x5d   : > { %485 = vst [vmem:[%s5237_s27 + $0x4a0] sm:$0xff] %v484_v20  ;;  %487 = vst [vmem:[%s5237_s27 + $0x4a8] sm:$0xff] %v486_v21  ;;  %v490_v23 = vld [vmem:[%s5232_s26 + $0x968] sm:$0xff]  ;;  %v492_v24 = vld [vmem:[%s5232_s26 + $0x970] sm:$0xff] }
  0x5e   : > { %489 = vst [vmem:[%s5237_s27 + $0x4b0] sm:$0xff] %v488_v22  ;;  %491 = vst [vmem:[%s5237_s27 + $0x4b8] sm:$0xff] %v490_v23  ;;  %v494_v25 = vld [vmem:[%s5232_s26 + $0x978] sm:$0xff]  ;;  %v496_v26 = vld [vmem:[%s5232_s26 + $0x980] sm:$0xff] }
  0x5f   : > { %493 = vst [vmem:[%s5237_s27 + $0x4c0] sm:$0xff] %v492_v24  ;;  %v498_v27 = vld [vmem:[%s5232_s26 + $0x988] sm:$0xff]  ;;  %495 = vst [vmem:[%s5237_s27 + $0x4c8] sm:$0xff] %v494_v25  ;;  %v500_v28 = vld [vmem:[%s5232_s26 + $0x9c0] sm:$0xff] }
  0x60   : > { %497 = vst [vmem:[%s5237_s27 + $0x4d0] sm:$0xff] %v496_v26  ;;  %499 = vst [vmem:[%s5237_s27 + $0x4d8] sm:$0xff] %v498_v27  ;;  %v502_v29 = vld [vmem:[%s5232_s26 + $0x9c8] sm:$0xff]  ;;  %v504_v30 = vld [vmem:[%s5232_s26 + $0x9d0] sm:$0xff] }
  0x61   : > { %501 = vst [vmem:[%s5237_s27 + $0x4e0] sm:$0xff] %v500_v28  ;;  %503 = vst [vmem:[%s5237_s27 + $0x4e8] sm:$0xff] %v502_v29  ;;  %v506_v31 = vld [vmem:[%s5232_s26 + $0x9d8] sm:$0xff]  ;;  %v508_v32 = vld [vmem:[%s5232_s26 + $0x9e0] sm:$0xff] }
  0x62   : > { %505 = vst [vmem:[%s5237_s27 + $0x4f0] sm:$0xff] %v504_v30  ;;  %v510_v33 = vld [vmem:[%s5232_s26 + $0x9e8] sm:$0xff]  ;;  %507 = vst [vmem:[%s5237_s27 + $0x4f8] sm:$0xff] %v506_v31  ;;  %v512_v34 = vld [vmem:[%s5232_s26 + $0xa20] sm:$0xff] }
  0x63   : > { %509 = vst [vmem:[%s5237_s27 + $0x500] sm:$0xff] %v508_v32  ;;  %511 = vst [vmem:[%s5237_s27 + $0x508] sm:$0xff] %v510_v33  ;;  %v514_v35 = vld [vmem:[%s5232_s26 + $0xa28] sm:$0xff]  ;;  %v516_v36 = vld [vmem:[%s5232_s26 + $0xa30] sm:$0xff] }
  0x64   : > { %513 = vst [vmem:[%s5237_s27 + $0x510] sm:$0xff] %v512_v34  ;;  %515 = vst [vmem:[%s5237_s27 + $0x518] sm:$0xff] %v514_v35  ;;  %v518_v37 = vld [vmem:[%s5232_s26 + $0xa38] sm:$0xff]  ;;  %v520_v38 = vld [vmem:[%s5232_s26 + $0xa40] sm:$0xff] }
  0x65   : > { %517 = vst [vmem:[%s5237_s27 + $0x520] sm:$0xff] %v516_v36  ;;  %v522_v39 = vld [vmem:[%s5232_s26 + $0xa48] sm:$0xff]  ;;  %519 = vst [vmem:[%s5237_s27 + $0x528] sm:$0xff] %v518_v37  ;;  %v524_v40 = vld [vmem:[%s5232_s26 + $0xa80] sm:$0xff] }
  0x66   : > { %521 = vst [vmem:[%s5237_s27 + $0x530] sm:$0xff] %v520_v38  ;;  %523 = vst [vmem:[%s5237_s27 + $0x538] sm:$0xff] %v522_v39  ;;  %v526_v41 = vld [vmem:[%s5232_s26 + $0xa88] sm:$0xff]  ;;  %v528_v42 = vld [vmem:[%s5232_s26 + $0xa90] sm:$0xff] }
  0x67   : > { %525 = vst [vmem:[%s5237_s27 + $0x540] sm:$0xff] %v524_v40  ;;  %527 = vst [vmem:[%s5237_s27 + $0x548] sm:$0xff] %v526_v41  ;;  %v530_v43 = vld [vmem:[%s5232_s26 + $0xa98] sm:$0xff]  ;;  %v532_v44 = vld [vmem:[%s5232_s26 + $0xaa0] sm:$0xff] }
  0x68   : > { %529 = vst [vmem:[%s5237_s27 + $0x550] sm:$0xff] %v528_v42  ;;  %v534_v45 = vld [vmem:[%s5232_s26 + $0xaa8] sm:$0xff]  ;;  %531 = vst [vmem:[%s5237_s27 + $0x558] sm:$0xff] %v530_v43  ;;  %v536_v46 = vld [vmem:[%s5232_s26 + $0xae0] sm:$0xff] }
  0x69   : > { %533 = vst [vmem:[%s5237_s27 + $0x560] sm:$0xff] %v532_v44  ;;  %535 = vst [vmem:[%s5237_s27 + $0x568] sm:$0xff] %v534_v45  ;;  %v538_v47 = vld [vmem:[%s5232_s26 + $0xae8] sm:$0xff]  ;;  %v540_v48 = vld [vmem:[%s5232_s26 + $0xaf0] sm:$0xff] }
  0x6a   : > { %537 = vst [vmem:[%s5237_s27 + $0x570] sm:$0xff] %v536_v46  ;;  %539 = vst [vmem:[%s5237_s27 + $0x578] sm:$0xff] %v538_v47  ;;  %v542_v49 = vld [vmem:[%s5232_s26 + $0xaf8] sm:$0xff]  ;;  %v544_v50 = vld [vmem:[%s5232_s26 + $0xb00] sm:$0xff] }
  0x6b   : > { %541 = vst [vmem:[%s5237_s27 + $0x580] sm:$0xff] %v540_v48  ;;  %v546_v51 = vld [vmem:[%s5232_s26 + $0xb08] sm:$0xff]  ;;  %543 = vst [vmem:[%s5237_s27 + $0x588] sm:$0xff] %v542_v49  ;;  %v548_v52 = vld [vmem:[%s5232_s26 + $0xb40] sm:$0xff] }
  0x6c   : > { %545 = vst [vmem:[%s5237_s27 + $0x590] sm:$0xff] %v544_v50  ;;  %547 = vst [vmem:[%s5237_s27 + $0x598] sm:$0xff] %v546_v51  ;;  %v550_v53 = vld [vmem:[%s5232_s26 + $0xb48] sm:$0xff]  ;;  %v552_v54 = vld [vmem:[%s5232_s26 + $0xb50] sm:$0xff] }
  0x6d   : > { %549 = vst [vmem:[%s5237_s27 + $0x5a0] sm:$0xff] %v548_v52  ;;  %551 = vst [vmem:[%s5237_s27 + $0x5a8] sm:$0xff] %v550_v53  ;;  %v554_v55 = vld [vmem:[%s5232_s26 + $0xb58] sm:$0xff]  ;;  %v556_v56 = vld [vmem:[%s5232_s26 + $0xb60] sm:$0xff] }
  0x6e   : > { %553 = vst [vmem:[%s5237_s27 + $0x5b0] sm:$0xff] %v552_v54  ;;  %v558_v57 = vld [vmem:[%s5232_s26 + $0xb68] sm:$0xff]  ;;  %555 = vst [vmem:[%s5237_s27 + $0x5b8] sm:$0xff] %v554_v55  ;;  %v560_v58 = vld [vmem:[%s5232_s26 + $0xba0] sm:$0xff] }
  0x6f   : > { %557 = vst [vmem:[%s5237_s27 + $0x5c0] sm:$0xff] %v556_v56  ;;  %559 = vst [vmem:[%s5237_s27 + $0x5c8] sm:$0xff] %v558_v57  ;;  %v562_v59 = vld [vmem:[%s5232_s26 + $0xba8] sm:$0xff]  ;;  %v564_v60 = vld [vmem:[%s5232_s26 + $0xbb0] sm:$0xff] }
  0x70   : > { %561 = vst [vmem:[%s5237_s27 + $0x5d0] sm:$0xff] %v560_v58  ;;  %563 = vst [vmem:[%s5237_s27 + $0x5d8] sm:$0xff] %v562_v59  ;;  %v566_v61 = vld [vmem:[%s5232_s26 + $0xbb8] sm:$0xff]  ;;  %v568_v62 = vld [vmem:[%s5232_s26 + $0xbc0] sm:$0xff] }
  0x71   : > { %565 = vst [vmem:[%s5237_s27 + $0x5e0] sm:$0xff] %v564_v60  ;;  %v570_v63 = vld [vmem:[%s5232_s26 + $0xbc8] sm:$0xff]  ;;  %567 = vst [vmem:[%s5237_s27 + $0x5e8] sm:$0xff] %v566_v61  ;;  %v572_v0 = vld [vmem:[%s5232_s26 + $0xc00] sm:$0xff] }
  0x72   : > { %569 = vst [vmem:[%s5237_s27 + $0x5f0] sm:$0xff] %v568_v62  ;;  %571 = vst [vmem:[%s5237_s27 + $0x5f8] sm:$0xff] %v570_v63  ;;  %v574_v1 = vld [vmem:[%s5232_s26 + $0xc08] sm:$0xff]  ;;  %v576_v2 = vld [vmem:[%s5232_s26 + $0xc10] sm:$0xff] }
  0x73   : > { %573 = vst [vmem:[%s5237_s27 + $0x600] sm:$0xff] %v572_v0  ;;  %575 = vst [vmem:[%s5237_s27 + $0x608] sm:$0xff] %v574_v1  ;;  %v578_v3 = vld [vmem:[%s5232_s26 + $0xc18] sm:$0xff]  ;;  %v580_v4 = vld [vmem:[%s5232_s26 + $0xc20] sm:$0xff] }
  0x74   : > { %577 = vst [vmem:[%s5237_s27 + $0x610] sm:$0xff] %v576_v2  ;;  %v582_v5 = vld [vmem:[%s5232_s26 + $0xc28] sm:$0xff]  ;;  %579 = vst [vmem:[%s5237_s27 + $0x618] sm:$0xff] %v578_v3  ;;  %v584_v6 = vld [vmem:[%s5232_s26 + $0xc60] sm:$0xff] }
  0x75   : > { %581 = vst [vmem:[%s5237_s27 + $0x620] sm:$0xff] %v580_v4  ;;  %583 = vst [vmem:[%s5237_s27 + $0x628] sm:$0xff] %v582_v5  ;;  %v586_v7 = vld [vmem:[%s5232_s26 + $0xc68] sm:$0xff]  ;;  %v588_v8 = vld [vmem:[%s5232_s26 + $0xc70] sm:$0xff] }
  0x76   : > { %585 = vst [vmem:[%s5237_s27 + $0x630] sm:$0xff] %v584_v6  ;;  %587 = vst [vmem:[%s5237_s27 + $0x638] sm:$0xff] %v586_v7  ;;  %v590_v9 = vld [vmem:[%s5232_s26 + $0xc78] sm:$0xff]  ;;  %v592_v10 = vld [vmem:[%s5232_s26 + $0xc80] sm:$0xff] }
  0x77   : > { %589 = vst [vmem:[%s5237_s27 + $0x640] sm:$0xff] %v588_v8  ;;  %v594_v11 = vld [vmem:[%s5232_s26 + $0xc88] sm:$0xff]  ;;  %591 = vst [vmem:[%s5237_s27 + $0x648] sm:$0xff] %v590_v9  ;;  %v596_v12 = vld [vmem:[%s5232_s26 + $0xcc0] sm:$0xff] }
  0x78   : > { %593 = vst [vmem:[%s5237_s27 + $0x650] sm:$0xff] %v592_v10  ;;  %595 = vst [vmem:[%s5237_s27 + $0x658] sm:$0xff] %v594_v11  ;;  %v598_v13 = vld [vmem:[%s5232_s26 + $0xcc8] sm:$0xff]  ;;  %v600_v14 = vld [vmem:[%s5232_s26 + $0xcd0] sm:$0xff] }
  0x79   : > { %597 = vst [vmem:[%s5237_s27 + $0x660] sm:$0xff] %v596_v12  ;;  %599 = vst [vmem:[%s5237_s27 + $0x668] sm:$0xff] %v598_v13  ;;  %v602_v15 = vld [vmem:[%s5232_s26 + $0xcd8] sm:$0xff]  ;;  %v604_v16 = vld [vmem:[%s5232_s26 + $0xce0] sm:$0xff] }
  0x7a   : > { %601 = vst [vmem:[%s5237_s27 + $0x670] sm:$0xff] %v600_v14  ;;  %v606_v17 = vld [vmem:[%s5232_s26 + $0xce8] sm:$0xff]  ;;  %603 = vst [vmem:[%s5237_s27 + $0x678] sm:$0xff] %v602_v15  ;;  %v608_v18 = vld [vmem:[%s5232_s26 + $0xd20] sm:$0xff] }
  0x7b   : > { %605 = vst [vmem:[%s5237_s27 + $0x680] sm:$0xff] %v604_v16  ;;  %607 = vst [vmem:[%s5237_s27 + $0x688] sm:$0xff] %v606_v17  ;;  %v610_v19 = vld [vmem:[%s5232_s26 + $0xd28] sm:$0xff]  ;;  %v612_v20 = vld [vmem:[%s5232_s26 + $0xd30] sm:$0xff] }
  0x7c   : > { %609 = vst [vmem:[%s5237_s27 + $0x690] sm:$0xff] %v608_v18  ;;  %611 = vst [vmem:[%s5237_s27 + $0x698] sm:$0xff] %v610_v19  ;;  %v614_v21 = vld [vmem:[%s5232_s26 + $0xd38] sm:$0xff]  ;;  %v616_v22 = vld [vmem:[%s5232_s26 + $0xd40] sm:$0xff] }
  0x7d   : > { %613 = vst [vmem:[%s5237_s27 + $0x6a0] sm:$0xff] %v612_v20  ;;  %v618_v23 = vld [vmem:[%s5232_s26 + $0xd48] sm:$0xff]  ;;  %615 = vst [vmem:[%s5237_s27 + $0x6a8] sm:$0xff] %v614_v21  ;;  %v620_v24 = vld [vmem:[%s5232_s26 + $0xd80] sm:$0xff] }
  0x7e   : > { %617 = vst [vmem:[%s5237_s27 + $0x6b0] sm:$0xff] %v616_v22  ;;  %619 = vst [vmem:[%s5237_s27 + $0x6b8] sm:$0xff] %v618_v23  ;;  %v622_v25 = vld [vmem:[%s5232_s26 + $0xd88] sm:$0xff]  ;;  %v624_v26 = vld [vmem:[%s5232_s26 + $0xd90] sm:$0xff] }
  0x7f   : > { %621 = vst [vmem:[%s5237_s27 + $0x6c0] sm:$0xff] %v620_v24  ;;  %623 = vst [vmem:[%s5237_s27 + $0x6c8] sm:$0xff] %v622_v25  ;;  %v626_v27 = vld [vmem:[%s5232_s26 + $0xd98] sm:$0xff]  ;;  %v628_v28 = vld [vmem:[%s5232_s26 + $0xda0] sm:$0xff] }
  0x80   : > { %625 = vst [vmem:[%s5237_s27 + $0x6d0] sm:$0xff] %v624_v26  ;;  %v630_v29 = vld [vmem:[%s5232_s26 + $0xda8] sm:$0xff]  ;;  %627 = vst [vmem:[%s5237_s27 + $0x6d8] sm:$0xff] %v626_v27  ;;  %v632_v30 = vld [vmem:[%s5232_s26 + $0xde0] sm:$0xff] }
  0x81   : > { %629 = vst [vmem:[%s5237_s27 + $0x6e0] sm:$0xff] %v628_v28  ;;  %631 = vst [vmem:[%s5237_s27 + $0x6e8] sm:$0xff] %v630_v29  ;;  %v634_v31 = vld [vmem:[%s5232_s26 + $0xde8] sm:$0xff]  ;;  %v636_v32 = vld [vmem:[%s5232_s26 + $0xdf0] sm:$0xff] }
  0x82   : > { %633 = vst [vmem:[%s5237_s27 + $0x6f0] sm:$0xff] %v632_v30  ;;  %635 = vst [vmem:[%s5237_s27 + $0x6f8] sm:$0xff] %v634_v31  ;;  %v638_v33 = vld [vmem:[%s5232_s26 + $0xdf8] sm:$0xff]  ;;  %v640_v34 = vld [vmem:[%s5232_s26 + $0xe00] sm:$0xff] }
  0x83   : > { %637 = vst [vmem:[%s5237_s27 + $0x700] sm:$0xff] %v636_v32  ;;  %v642_v35 = vld [vmem:[%s5232_s26 + $0xe08] sm:$0xff]  ;;  %639 = vst [vmem:[%s5237_s27 + $0x708] sm:$0xff] %v638_v33  ;;  %v644_v36 = vld [vmem:[%s5232_s26 + $0xe40] sm:$0xff] }
  0x84   : > { %641 = vst [vmem:[%s5237_s27 + $0x710] sm:$0xff] %v640_v34  ;;  %643 = vst [vmem:[%s5237_s27 + $0x718] sm:$0xff] %v642_v35  ;;  %v646_v37 = vld [vmem:[%s5232_s26 + $0xe48] sm:$0xff]  ;;  %v648_v38 = vld [vmem:[%s5232_s26 + $0xe50] sm:$0xff] }
  0x85   : > { %645 = vst [vmem:[%s5237_s27 + $0x720] sm:$0xff] %v644_v36  ;;  %647 = vst [vmem:[%s5237_s27 + $0x728] sm:$0xff] %v646_v37  ;;  %v650_v39 = vld [vmem:[%s5232_s26 + $0xe58] sm:$0xff]  ;;  %v652_v40 = vld [vmem:[%s5232_s26 + $0xe60] sm:$0xff] }
  0x86   : > { %649 = vst [vmem:[%s5237_s27 + $0x730] sm:$0xff] %v648_v38  ;;  %v654_v41 = vld [vmem:[%s5232_s26 + $0xe68] sm:$0xff]  ;;  %651 = vst [vmem:[%s5237_s27 + $0x738] sm:$0xff] %v650_v39  ;;  %v656_v42 = vld [vmem:[%s5232_s26 + $0xea0] sm:$0xff] }
  0x87   : > { %653 = vst [vmem:[%s5237_s27 + $0x740] sm:$0xff] %v652_v40  ;;  %655 = vst [vmem:[%s5237_s27 + $0x748] sm:$0xff] %v654_v41  ;;  %v658_v43 = vld [vmem:[%s5232_s26 + $0xea8] sm:$0xff]  ;;  %v660_v44 = vld [vmem:[%s5232_s26 + $0xeb0] sm:$0xff] }
  0x88   : > { %657 = vst [vmem:[%s5237_s27 + $0x750] sm:$0xff] %v656_v42  ;;  %659 = vst [vmem:[%s5237_s27 + $0x758] sm:$0xff] %v658_v43  ;;  %v662_v45 = vld [vmem:[%s5232_s26 + $0xeb8] sm:$0xff]  ;;  %v664_v46 = vld [vmem:[%s5232_s26 + $0xec0] sm:$0xff] }
  0x89   : > { %661 = vst [vmem:[%s5237_s27 + $0x760] sm:$0xff] %v660_v44  ;;  %v666_v47 = vld [vmem:[%s5232_s26 + $0xec8] sm:$0xff]  ;;  %663 = vst [vmem:[%s5237_s27 + $0x768] sm:$0xff] %v662_v45  ;;  %v668_v48 = vld [vmem:[%s5232_s26 + $0xf00] sm:$0xff] }
  0x8a   : > { %665 = vst [vmem:[%s5237_s27 + $0x770] sm:$0xff] %v664_v46  ;;  %667 = vst [vmem:[%s5237_s27 + $0x778] sm:$0xff] %v666_v47  ;;  %v670_v49 = vld [vmem:[%s5232_s26 + $0xf08] sm:$0xff]  ;;  %v672_v50 = vld [vmem:[%s5232_s26 + $0xf10] sm:$0xff] }
  0x8b   : > { %669 = vst [vmem:[%s5237_s27 + $0x780] sm:$0xff] %v668_v48  ;;  %671 = vst [vmem:[%s5237_s27 + $0x788] sm:$0xff] %v670_v49  ;;  %v674_v51 = vld [vmem:[%s5232_s26 + $0xf18] sm:$0xff]  ;;  %v676_v52 = vld [vmem:[%s5232_s26 + $0xf20] sm:$0xff] }
  0x8c   : > { %673 = vst [vmem:[%s5237_s27 + $0x790] sm:$0xff] %v672_v50  ;;  %v678_v53 = vld [vmem:[%s5232_s26 + $0xf28] sm:$0xff]  ;;  %675 = vst [vmem:[%s5237_s27 + $0x798] sm:$0xff] %v674_v51  ;;  %v680_v54 = vld [vmem:[%s5232_s26 + $0xf60] sm:$0xff] }
  0x8d   : > { %677 = vst [vmem:[%s5237_s27 + $0x7a0] sm:$0xff] %v676_v52  ;;  %679 = vst [vmem:[%s5237_s27 + $0x7a8] sm:$0xff] %v678_v53  ;;  %v682_v55 = vld [vmem:[%s5232_s26 + $0xf68] sm:$0xff]  ;;  %v684_v56 = vld [vmem:[%s5232_s26 + $0xf70] sm:$0xff] }
  0x8e   : > { %681 = vst [vmem:[%s5237_s27 + $0x7b0] sm:$0xff] %v680_v54  ;;  %683 = vst [vmem:[%s5237_s27 + $0x7b8] sm:$0xff] %v682_v55  ;;  %v686_v57 = vld [vmem:[%s5232_s26 + $0xf78] sm:$0xff]  ;;  %v688_v58 = vld [vmem:[%s5232_s26 + $0xf80] sm:$0xff] }
  0x8f   : > { %685 = vst [vmem:[%s5237_s27 + $0x7c0] sm:$0xff] %v684_v56  ;;  %v690_v59 = vld [vmem:[%s5232_s26 + $0xf88] sm:$0xff]  ;;  %687 = vst [vmem:[%s5237_s27 + $0x7c8] sm:$0xff] %v686_v57  ;;  %v692_v60 = vld [vmem:[%s5232_s26 + $0xfc0] sm:$0xff] }
  0x90   : > { %689 = vst [vmem:[%s5237_s27 + $0x7d0] sm:$0xff] %v688_v58  ;;  %691 = vst [vmem:[%s5237_s27 + $0x7d8] sm:$0xff] %v690_v59  ;;  %v694_v61 = vld [vmem:[%s5232_s26 + $0xfc8] sm:$0xff]  ;;  %v696_v62 = vld [vmem:[%s5232_s26 + $0xfd0] sm:$0xff] }
  0x91   : > { %693 = vst [vmem:[%s5237_s27 + $0x7e0] sm:$0xff] %v692_v60  ;;  %695 = vst [vmem:[%s5237_s27 + $0x7e8] sm:$0xff] %v694_v61  ;;  %v698_v63 = vld [vmem:[%s5232_s26 + $0xfd8] sm:$0xff]  ;;  %v700_v0 = vld [vmem:[%s5232_s26 + $0xfe0] sm:$0xff] }
  0x92   : > { %697 = vst [vmem:[%s5237_s27 + $0x7f0] sm:$0xff] %v696_v62  ;;  %v702_v1 = vld [vmem:[%s5232_s26 + $0xfe8] sm:$0xff]  ;;  %699 = vst [vmem:[%s5237_s27 + $0x7f8] sm:$0xff] %v698_v63  ;;  %v704_v2 = vld [vmem:[%s5232_s26 + $0x1020] sm:$0xff] }
  0x93   : > { %701 = vst [vmem:[%s5237_s27 + $0x800] sm:$0xff] %v700_v0  ;;  %703 = vst [vmem:[%s5237_s27 + $0x808] sm:$0xff] %v702_v1  ;;  %v706_v3 = vld [vmem:[%s5232_s26 + $0x1028] sm:$0xff]  ;;  %v708_v4 = vld [vmem:[%s5232_s26 + $0x1030] sm:$0xff] }
  0x94   : > { %705 = vst [vmem:[%s5237_s27 + $0x810] sm:$0xff] %v704_v2  ;;  %707 = vst [vmem:[%s5237_s27 + $0x818] sm:$0xff] %v706_v3  ;;  %v710_v5 = vld [vmem:[%s5232_s26 + $0x1038] sm:$0xff]  ;;  %v712_v6 = vld [vmem:[%s5232_s26 + $0x1040] sm:$0xff] }
  0x95   : > { %709 = vst [vmem:[%s5237_s27 + $0x820] sm:$0xff] %v708_v4  ;;  %v714_v7 = vld [vmem:[%s5232_s26 + $0x1048] sm:$0xff]  ;;  %711 = vst [vmem:[%s5237_s27 + $0x828] sm:$0xff] %v710_v5  ;;  %v716_v8 = vld [vmem:[%s5232_s26 + $0x1080] sm:$0xff] }
  0x96   : > { %713 = vst [vmem:[%s5237_s27 + $0x830] sm:$0xff] %v712_v6  ;;  %715 = vst [vmem:[%s5237_s27 + $0x838] sm:$0xff] %v714_v7  ;;  %v718_v9 = vld [vmem:[%s5232_s26 + $0x1088] sm:$0xff]  ;;  %v720_v10 = vld [vmem:[%s5232_s26 + $0x1090] sm:$0xff] }
  0x97   : > { %717 = vst [vmem:[%s5237_s27 + $0x840] sm:$0xff] %v716_v8  ;;  %719 = vst [vmem:[%s5237_s27 + $0x848] sm:$0xff] %v718_v9  ;;  %v722_v11 = vld [vmem:[%s5232_s26 + $0x1098] sm:$0xff]  ;;  %v724_v12 = vld [vmem:[%s5232_s26 + $0x10a0] sm:$0xff] }
  0x98   : > { %721 = vst [vmem:[%s5237_s27 + $0x850] sm:$0xff] %v720_v10  ;;  %v726_v13 = vld [vmem:[%s5232_s26 + $0x10a8] sm:$0xff]  ;;  %723 = vst [vmem:[%s5237_s27 + $0x858] sm:$0xff] %v722_v11  ;;  %v728_v14 = vld [vmem:[%s5232_s26 + $0x10e0] sm:$0xff] }
  0x99   : > { %725 = vst [vmem:[%s5237_s27 + $0x860] sm:$0xff] %v724_v12  ;;  %727 = vst [vmem:[%s5237_s27 + $0x868] sm:$0xff] %v726_v13  ;;  %v730_v15 = vld [vmem:[%s5232_s26 + $0x10e8] sm:$0xff]  ;;  %v732_v16 = vld [vmem:[%s5232_s26 + $0x10f0] sm:$0xff] }
  0x9a   : > { %729 = vst [vmem:[%s5237_s27 + $0x870] sm:$0xff] %v728_v14  ;;  %731 = vst [vmem:[%s5237_s27 + $0x878] sm:$0xff] %v730_v15  ;;  %v734_v17 = vld [vmem:[%s5232_s26 + $0x10f8] sm:$0xff]  ;;  %v736_v18 = vld [vmem:[%s5232_s26 + $0x1100] sm:$0xff] }
  0x9b   : > { %733 = vst [vmem:[%s5237_s27 + $0x880] sm:$0xff] %v732_v16  ;;  %v738_v19 = vld [vmem:[%s5232_s26 + $0x1108] sm:$0xff]  ;;  %735 = vst [vmem:[%s5237_s27 + $0x888] sm:$0xff] %v734_v17  ;;  %v740_v20 = vld [vmem:[%s5232_s26 + $0x1140] sm:$0xff] }
  0x9c   : > { %737 = vst [vmem:[%s5237_s27 + $0x890] sm:$0xff] %v736_v18  ;;  %739 = vst [vmem:[%s5237_s27 + $0x898] sm:$0xff] %v738_v19  ;;  %v742_v21 = vld [vmem:[%s5232_s26 + $0x1148] sm:$0xff]  ;;  %v744_v22 = vld [vmem:[%s5232_s26 + $0x1150] sm:$0xff] }
  0x9d   : > { %741 = vst [vmem:[%s5237_s27 + $0x8a0] sm:$0xff] %v740_v20  ;;  %743 = vst [vmem:[%s5237_s27 + $0x8a8] sm:$0xff] %v742_v21  ;;  %v746_v23 = vld [vmem:[%s5232_s26 + $0x1158] sm:$0xff]  ;;  %v748_v24 = vld [vmem:[%s5232_s26 + $0x1160] sm:$0xff] }
  0x9e   : > { %745 = vst [vmem:[%s5237_s27 + $0x8b0] sm:$0xff] %v744_v22  ;;  %v750_v25 = vld [vmem:[%s5232_s26 + $0x1168] sm:$0xff]  ;;  %747 = vst [vmem:[%s5237_s27 + $0x8b8] sm:$0xff] %v746_v23  ;;  %v752_v26 = vld [vmem:[%s5232_s26 + $0x11a0] sm:$0xff] }
  0x9f   : > { %749 = vst [vmem:[%s5237_s27 + $0x8c0] sm:$0xff] %v748_v24  ;;  %751 = vst [vmem:[%s5237_s27 + $0x8c8] sm:$0xff] %v750_v25  ;;  %v754_v27 = vld [vmem:[%s5232_s26 + $0x11a8] sm:$0xff]  ;;  %v756_v28 = vld [vmem:[%s5232_s26 + $0x11b0] sm:$0xff] }
  0xa0   : > { %753 = vst [vmem:[%s5237_s27 + $0x8d0] sm:$0xff] %v752_v26  ;;  %755 = vst [vmem:[%s5237_s27 + $0x8d8] sm:$0xff] %v754_v27  ;;  %v758_v29 = vld [vmem:[%s5232_s26 + $0x11b8] sm:$0xff]  ;;  %v760_v30 = vld [vmem:[%s5232_s26 + $0x11c0] sm:$0xff] }
  0xa1   : > { %757 = vst [vmem:[%s5237_s27 + $0x8e0] sm:$0xff] %v756_v28  ;;  %v762_v31 = vld [vmem:[%s5232_s26 + $0x11c8] sm:$0xff]  ;;  %759 = vst [vmem:[%s5237_s27 + $0x8e8] sm:$0xff] %v758_v29  ;;  %v764_v32 = vld [vmem:[%s5232_s26 + $0x1200] sm:$0xff] }
  0xa2   : > { %761 = vst [vmem:[%s5237_s27 + $0x8f0] sm:$0xff] %v760_v30  ;;  %763 = vst [vmem:[%s5237_s27 + $0x8f8] sm:$0xff] %v762_v31  ;;  %v766_v33 = vld [vmem:[%s5232_s26 + $0x1208] sm:$0xff]  ;;  %v768_v34 = vld [vmem:[%s5232_s26 + $0x1210] sm:$0xff] }
  0xa3   : > { %765 = vst [vmem:[%s5237_s27 + $0x900] sm:$0xff] %v764_v32  ;;  %767 = vst [vmem:[%s5237_s27 + $0x908] sm:$0xff] %v766_v33  ;;  %v770_v35 = vld [vmem:[%s5232_s26 + $0x1218] sm:$0xff]  ;;  %v772_v36 = vld [vmem:[%s5232_s26 + $0x1220] sm:$0xff] }
  0xa4   : > { %769 = vst [vmem:[%s5237_s27 + $0x910] sm:$0xff] %v768_v34  ;;  %v774_v37 = vld [vmem:[%s5232_s26 + $0x1228] sm:$0xff]  ;;  %771 = vst [vmem:[%s5237_s27 + $0x918] sm:$0xff] %v770_v35  ;;  %v776_v38 = vld [vmem:[%s5232_s26 + $0x1260] sm:$0xff] }
  0xa5   : > { %773 = vst [vmem:[%s5237_s27 + $0x920] sm:$0xff] %v772_v36  ;;  %775 = vst [vmem:[%s5237_s27 + $0x928] sm:$0xff] %v774_v37  ;;  %v778_v39 = vld [vmem:[%s5232_s26 + $0x1268] sm:$0xff]  ;;  %v780_v40 = vld [vmem:[%s5232_s26 + $0x1270] sm:$0xff] }
  0xa6   : > { %777 = vst [vmem:[%s5237_s27 + $0x930] sm:$0xff] %v776_v38  ;;  %779 = vst [vmem:[%s5237_s27 + $0x938] sm:$0xff] %v778_v39  ;;  %v782_v41 = vld [vmem:[%s5232_s26 + $0x1278] sm:$0xff]  ;;  %v784_v42 = vld [vmem:[%s5232_s26 + $0x1280] sm:$0xff] }
  0xa7   : > { %781 = vst [vmem:[%s5237_s27 + $0x940] sm:$0xff] %v780_v40  ;;  %v786_v43 = vld [vmem:[%s5232_s26 + $0x1288] sm:$0xff]  ;;  %783 = vst [vmem:[%s5237_s27 + $0x948] sm:$0xff] %v782_v41  ;;  %v788_v44 = vld [vmem:[%s5232_s26 + $0x12c0] sm:$0xff] }
  0xa8   : > { %785 = vst [vmem:[%s5237_s27 + $0x950] sm:$0xff] %v784_v42  ;;  %787 = vst [vmem:[%s5237_s27 + $0x958] sm:$0xff] %v786_v43  ;;  %v790_v45 = vld [vmem:[%s5232_s26 + $0x12c8] sm:$0xff]  ;;  %v792_v46 = vld [vmem:[%s5232_s26 + $0x12d0] sm:$0xff] }
  0xa9   : > { %789 = vst [vmem:[%s5237_s27 + $0x960] sm:$0xff] %v788_v44  ;;  %791 = vst [vmem:[%s5237_s27 + $0x968] sm:$0xff] %v790_v45  ;;  %v794_v47 = vld [vmem:[%s5232_s26 + $0x12d8] sm:$0xff]  ;;  %v796_v48 = vld [vmem:[%s5232_s26 + $0x12e0] sm:$0xff] }
  0xaa   : > { %793 = vst [vmem:[%s5237_s27 + $0x970] sm:$0xff] %v792_v46  ;;  %v798_v49 = vld [vmem:[%s5232_s26 + $0x12e8] sm:$0xff]  ;;  %795 = vst [vmem:[%s5237_s27 + $0x978] sm:$0xff] %v794_v47  ;;  %v800_v50 = vld [vmem:[%s5232_s26 + $0x1320] sm:$0xff] }
  0xab   : > { %797 = vst [vmem:[%s5237_s27 + $0x980] sm:$0xff] %v796_v48  ;;  %799 = vst [vmem:[%s5237_s27 + $0x988] sm:$0xff] %v798_v49  ;;  %v802_v51 = vld [vmem:[%s5232_s26 + $0x1328] sm:$0xff]  ;;  %v804_v52 = vld [vmem:[%s5232_s26 + $0x1330] sm:$0xff] }
  0xac   : > { %801 = vst [vmem:[%s5237_s27 + $0x990] sm:$0xff] %v800_v50  ;;  %803 = vst [vmem:[%s5237_s27 + $0x998] sm:$0xff] %v802_v51  ;;  %v806_v53 = vld [vmem:[%s5232_s26 + $0x1338] sm:$0xff]  ;;  %v808_v54 = vld [vmem:[%s5232_s26 + $0x1340] sm:$0xff] }
  0xad   : > { %805 = vst [vmem:[%s5237_s27 + $0x9a0] sm:$0xff] %v804_v52  ;;  %v810_v55 = vld [vmem:[%s5232_s26 + $0x1348] sm:$0xff]  ;;  %807 = vst [vmem:[%s5237_s27 + $0x9a8] sm:$0xff] %v806_v53  ;;  %v812_v56 = vld [vmem:[%s5232_s26 + $0x1380] sm:$0xff] }
  0xae   : > { %809 = vst [vmem:[%s5237_s27 + $0x9b0] sm:$0xff] %v808_v54  ;;  %811 = vst [vmem:[%s5237_s27 + $0x9b8] sm:$0xff] %v810_v55  ;;  %v814_v57 = vld [vmem:[%s5232_s26 + $0x1388] sm:$0xff]  ;;  %v816_v58 = vld [vmem:[%s5232_s26 + $0x1390] sm:$0xff] }
  0xaf   : > { %813 = vst [vmem:[%s5237_s27 + $0x9c0] sm:$0xff] %v812_v56  ;;  %815 = vst [vmem:[%s5237_s27 + $0x9c8] sm:$0xff] %v814_v57  ;;  %v818_v59 = vld [vmem:[%s5232_s26 + $0x1398] sm:$0xff]  ;;  %v820_v60 = vld [vmem:[%s5232_s26 + $0x13a0] sm:$0xff] }
  0xb0   : > { %817 = vst [vmem:[%s5237_s27 + $0x9d0] sm:$0xff] %v816_v58  ;;  %v822_v61 = vld [vmem:[%s5232_s26 + $0x13a8] sm:$0xff]  ;;  %819 = vst [vmem:[%s5237_s27 + $0x9d8] sm:$0xff] %v818_v59  ;;  %v824_v62 = vld [vmem:[%s5232_s26 + $0x13e0] sm:$0xff] }
  0xb1   : > { %821 = vst [vmem:[%s5237_s27 + $0x9e0] sm:$0xff] %v820_v60  ;;  %823 = vst [vmem:[%s5237_s27 + $0x9e8] sm:$0xff] %v822_v61  ;;  %v826_v63 = vld [vmem:[%s5232_s26 + $0x13e8] sm:$0xff]  ;;  %v828_v0 = vld [vmem:[%s5232_s26 + $0x13f0] sm:$0xff] }
  0xb2   : > { %825 = vst [vmem:[%s5237_s27 + $0x9f0] sm:$0xff] %v824_v62  ;;  %827 = vst [vmem:[%s5237_s27 + $0x9f8] sm:$0xff] %v826_v63  ;;  %v830_v1 = vld [vmem:[%s5232_s26 + $0x13f8] sm:$0xff]  ;;  %v832_v2 = vld [vmem:[%s5232_s26 + $0x1400] sm:$0xff] }
  0xb3   : > { %829 = vst [vmem:[%s5237_s27 + $0xa00] sm:$0xff] %v828_v0  ;;  %v834_v3 = vld [vmem:[%s5232_s26 + $0x1408] sm:$0xff]  ;;  %831 = vst [vmem:[%s5237_s27 + $0xa08] sm:$0xff] %v830_v1  ;;  %v836_v4 = vld [vmem:[%s5232_s26 + $0x1440] sm:$0xff] }
  0xb4   : > { %833 = vst [vmem:[%s5237_s27 + $0xa10] sm:$0xff] %v832_v2  ;;  %835 = vst [vmem:[%s5237_s27 + $0xa18] sm:$0xff] %v834_v3  ;;  %v838_v5 = vld [vmem:[%s5232_s26 + $0x1448] sm:$0xff]  ;;  %v840_v6 = vld [vmem:[%s5232_s26 + $0x1450] sm:$0xff] }
  0xb5   : > { %837 = vst [vmem:[%s5237_s27 + $0xa20] sm:$0xff] %v836_v4  ;;  %839 = vst [vmem:[%s5237_s27 + $0xa28] sm:$0xff] %v838_v5  ;;  %v842_v7 = vld [vmem:[%s5232_s26 + $0x1458] sm:$0xff]  ;;  %v844_v8 = vld [vmem:[%s5232_s26 + $0x1460] sm:$0xff] }
  0xb6   : > { %841 = vst [vmem:[%s5237_s27 + $0xa30] sm:$0xff] %v840_v6  ;;  %v846_v9 = vld [vmem:[%s5232_s26 + $0x1468] sm:$0xff]  ;;  %843 = vst [vmem:[%s5237_s27 + $0xa38] sm:$0xff] %v842_v7  ;;  %v848_v10 = vld [vmem:[%s5232_s26 + $0x14a0] sm:$0xff] }
  0xb7   : > { %845 = vst [vmem:[%s5237_s27 + $0xa40] sm:$0xff] %v844_v8  ;;  %847 = vst [vmem:[%s5237_s27 + $0xa48] sm:$0xff] %v846_v9  ;;  %v850_v11 = vld [vmem:[%s5232_s26 + $0x14a8] sm:$0xff]  ;;  %v852_v12 = vld [vmem:[%s5232_s26 + $0x14b0] sm:$0xff] }
  0xb8   : > { %849 = vst [vmem:[%s5237_s27 + $0xa50] sm:$0xff] %v848_v10  ;;  %851 = vst [vmem:[%s5237_s27 + $0xa58] sm:$0xff] %v850_v11  ;;  %v854_v13 = vld [vmem:[%s5232_s26 + $0x14b8] sm:$0xff]  ;;  %v856_v14 = vld [vmem:[%s5232_s26 + $0x14c0] sm:$0xff] }
  0xb9   : > { %853 = vst [vmem:[%s5237_s27 + $0xa60] sm:$0xff] %v852_v12  ;;  %v858_v15 = vld [vmem:[%s5232_s26 + $0x14c8] sm:$0xff]  ;;  %855 = vst [vmem:[%s5237_s27 + $0xa68] sm:$0xff] %v854_v13  ;;  %v860_v16 = vld [vmem:[%s5232_s26 + $0x1500] sm:$0xff] }
  0xba   : > { %857 = vst [vmem:[%s5237_s27 + $0xa70] sm:$0xff] %v856_v14  ;;  %859 = vst [vmem:[%s5237_s27 + $0xa78] sm:$0xff] %v858_v15  ;;  %v862_v17 = vld [vmem:[%s5232_s26 + $0x1508] sm:$0xff]  ;;  %v864_v18 = vld [vmem:[%s5232_s26 + $0x1510] sm:$0xff] }
  0xbb   : > { %861 = vst [vmem:[%s5237_s27 + $0xa80] sm:$0xff] %v860_v16  ;;  %863 = vst [vmem:[%s5237_s27 + $0xa88] sm:$0xff] %v862_v17  ;;  %v866_v19 = vld [vmem:[%s5232_s26 + $0x1518] sm:$0xff]  ;;  %v868_v20 = vld [vmem:[%s5232_s26 + $0x1520] sm:$0xff] }
  0xbc   : > { %865 = vst [vmem:[%s5237_s27 + $0xa90] sm:$0xff] %v864_v18  ;;  %v870_v21 = vld [vmem:[%s5232_s26 + $0x1528] sm:$0xff]  ;;  %867 = vst [vmem:[%s5237_s27 + $0xa98] sm:$0xff] %v866_v19  ;;  %v872_v22 = vld [vmem:[%s5232_s26 + $0x1560] sm:$0xff] }
  0xbd   : > { %869 = vst [vmem:[%s5237_s27 + $0xaa0] sm:$0xff] %v868_v20  ;;  %871 = vst [vmem:[%s5237_s27 + $0xaa8] sm:$0xff] %v870_v21  ;;  %v874_v23 = vld [vmem:[%s5232_s26 + $0x1568] sm:$0xff]  ;;  %v876_v24 = vld [vmem:[%s5232_s26 + $0x1570] sm:$0xff] }
  0xbe   : > { %873 = vst [vmem:[%s5237_s27 + $0xab0] sm:$0xff] %v872_v22  ;;  %875 = vst [vmem:[%s5237_s27 + $0xab8] sm:$0xff] %v874_v23  ;;  %v878_v25 = vld [vmem:[%s5232_s26 + $0x1578] sm:$0xff]  ;;  %v880_v26 = vld [vmem:[%s5232_s26 + $0x1580] sm:$0xff] }
  0xbf   : > { %877 = vst [vmem:[%s5237_s27 + $0xac0] sm:$0xff] %v876_v24  ;;  %v882_v27 = vld [vmem:[%s5232_s26 + $0x1588] sm:$0xff]  ;;  %879 = vst [vmem:[%s5237_s27 + $0xac8] sm:$0xff] %v878_v25  ;;  %v884_v28 = vld [vmem:[%s5232_s26 + $0x15c0] sm:$0xff] }
  0xc0   : > { %881 = vst [vmem:[%s5237_s27 + $0xad0] sm:$0xff] %v880_v26  ;;  %883 = vst [vmem:[%s5237_s27 + $0xad8] sm:$0xff] %v882_v27  ;;  %v886_v29 = vld [vmem:[%s5232_s26 + $0x15c8] sm:$0xff]  ;;  %v888_v30 = vld [vmem:[%s5232_s26 + $0x15d0] sm:$0xff] }
  0xc1   : > { %885 = vst [vmem:[%s5237_s27 + $0xae0] sm:$0xff] %v884_v28  ;;  %887 = vst [vmem:[%s5237_s27 + $0xae8] sm:$0xff] %v886_v29  ;;  %v890_v31 = vld [vmem:[%s5232_s26 + $0x15d8] sm:$0xff]  ;;  %v892_v32 = vld [vmem:[%s5232_s26 + $0x15e0] sm:$0xff] }
  0xc2   : > { %889 = vst [vmem:[%s5237_s27 + $0xaf0] sm:$0xff] %v888_v30  ;;  %v894_v33 = vld [vmem:[%s5232_s26 + $0x15e8] sm:$0xff]  ;;  %891 = vst [vmem:[%s5237_s27 + $0xaf8] sm:$0xff] %v890_v31  ;;  %v896_v34 = vld [vmem:[%s5232_s26 + $0x1620] sm:$0xff] }
  0xc3   : > { %893 = vst [vmem:[%s5237_s27 + $0xb00] sm:$0xff] %v892_v32  ;;  %895 = vst [vmem:[%s5237_s27 + $0xb08] sm:$0xff] %v894_v33  ;;  %v898_v35 = vld [vmem:[%s5232_s26 + $0x1628] sm:$0xff]  ;;  %v900_v36 = vld [vmem:[%s5232_s26 + $0x1630] sm:$0xff] }
  0xc4   : > { %897 = vst [vmem:[%s5237_s27 + $0xb10] sm:$0xff] %v896_v34  ;;  %899 = vst [vmem:[%s5237_s27 + $0xb18] sm:$0xff] %v898_v35  ;;  %v902_v37 = vld [vmem:[%s5232_s26 + $0x1638] sm:$0xff]  ;;  %v904_v38 = vld [vmem:[%s5232_s26 + $0x1640] sm:$0xff] }
  0xc5   : > { %901 = vst [vmem:[%s5237_s27 + $0xb20] sm:$0xff] %v900_v36  ;;  %v906_v39 = vld [vmem:[%s5232_s26 + $0x1648] sm:$0xff]  ;;  %903 = vst [vmem:[%s5237_s27 + $0xb28] sm:$0xff] %v902_v37  ;;  %v908_v40 = vld [vmem:[%s5232_s26 + $0x1680] sm:$0xff] }
  0xc6   : > { %905 = vst [vmem:[%s5237_s27 + $0xb30] sm:$0xff] %v904_v38  ;;  %907 = vst [vmem:[%s5237_s27 + $0xb38] sm:$0xff] %v906_v39  ;;  %v910_v41 = vld [vmem:[%s5232_s26 + $0x1688] sm:$0xff]  ;;  %v912_v42 = vld [vmem:[%s5232_s26 + $0x1690] sm:$0xff] }
  0xc7   : > { %909 = vst [vmem:[%s5237_s27 + $0xb40] sm:$0xff] %v908_v40  ;;  %911 = vst [vmem:[%s5237_s27 + $0xb48] sm:$0xff] %v910_v41  ;;  %v914_v43 = vld [vmem:[%s5232_s26 + $0x1698] sm:$0xff]  ;;  %v916_v44 = vld [vmem:[%s5232_s26 + $0x16a0] sm:$0xff] }
  0xc8   : > { %913 = vst [vmem:[%s5237_s27 + $0xb50] sm:$0xff] %v912_v42  ;;  %v918_v45 = vld [vmem:[%s5232_s26 + $0x16a8] sm:$0xff]  ;;  %915 = vst [vmem:[%s5237_s27 + $0xb58] sm:$0xff] %v914_v43  ;;  %v920_v46 = vld [vmem:[%s5232_s26 + $0x16e0] sm:$0xff] }
  0xc9   : > { %917 = vst [vmem:[%s5237_s27 + $0xb60] sm:$0xff] %v916_v44  ;;  %919 = vst [vmem:[%s5237_s27 + $0xb68] sm:$0xff] %v918_v45  ;;  %v922_v47 = vld [vmem:[%s5232_s26 + $0x16e8] sm:$0xff]  ;;  %v924_v48 = vld [vmem:[%s5232_s26 + $0x16f0] sm:$0xff] }
  0xca   : > { %921 = vst [vmem:[%s5237_s27 + $0xb70] sm:$0xff] %v920_v46  ;;  %923 = vst [vmem:[%s5237_s27 + $0xb78] sm:$0xff] %v922_v47  ;;  %v926_v49 = vld [vmem:[%s5232_s26 + $0x16f8] sm:$0xff]  ;;  %v928_v50 = vld [vmem:[%s5232_s26 + $0x1700] sm:$0xff] }
  0xcb   : > { %925 = vst [vmem:[%s5237_s27 + $0xb80] sm:$0xff] %v924_v48  ;;  %v930_v51 = vld [vmem:[%s5232_s26 + $0x1708] sm:$0xff]  ;;  %927 = vst [vmem:[%s5237_s27 + $0xb88] sm:$0xff] %v926_v49  ;;  %v932_v52 = vld [vmem:[%s5232_s26 + $0x1740] sm:$0xff] }
  0xcc   : > { %929 = vst [vmem:[%s5237_s27 + $0xb90] sm:$0xff] %v928_v50  ;;  %931 = vst [vmem:[%s5237_s27 + $0xb98] sm:$0xff] %v930_v51  ;;  %v934_v53 = vld [vmem:[%s5232_s26 + $0x1748] sm:$0xff]  ;;  %v936_v54 = vld [vmem:[%s5232_s26 + $0x1750] sm:$0xff] }
  0xcd   : > { %933 = vst [vmem:[%s5237_s27 + $0xba0] sm:$0xff] %v932_v52  ;;  %935 = vst [vmem:[%s5237_s27 + $0xba8] sm:$0xff] %v934_v53  ;;  %v938_v55 = vld [vmem:[%s5232_s26 + $0x1758] sm:$0xff]  ;;  %v940_v56 = vld [vmem:[%s5232_s26 + $0x1760] sm:$0xff] }
  0xce   : > { %937 = vst [vmem:[%s5237_s27 + $0xbb0] sm:$0xff] %v936_v54  ;;  %v942_v57 = vld [vmem:[%s5232_s26 + $0x1768] sm:$0xff]  ;;  %939 = vst [vmem:[%s5237_s27 + $0xbb8] sm:$0xff] %v938_v55  ;;  %v944_v58 = vld [vmem:[%s5232_s26 + $0x17a0] sm:$0xff] }
  0xcf   : > { %941 = vst [vmem:[%s5237_s27 + $0xbc0] sm:$0xff] %v940_v56  ;;  %943 = vst [vmem:[%s5237_s27 + $0xbc8] sm:$0xff] %v942_v57  ;;  %v946_v59 = vld [vmem:[%s5232_s26 + $0x17a8] sm:$0xff]  ;;  %v948_v60 = vld [vmem:[%s5232_s26 + $0x17b0] sm:$0xff] }
  0xd0   : > { %945 = vst [vmem:[%s5237_s27 + $0xbd0] sm:$0xff] %v944_v58  ;;  %947 = vst [vmem:[%s5237_s27 + $0xbd8] sm:$0xff] %v946_v59  ;;  %v950_v61 = vld [vmem:[%s5232_s26 + $0x17b8] sm:$0xff]  ;;  %v952_v62 = vld [vmem:[%s5232_s26 + $0x17c0] sm:$0xff] }
  0xd1   : > { %949 = vst [vmem:[%s5237_s27 + $0xbe0] sm:$0xff] %v948_v60  ;;  %v954_v63 = vld [vmem:[%s5232_s26 + $0x17c8] sm:$0xff]  ;;  %951 = vst [vmem:[%s5237_s27 + $0xbe8] sm:$0xff] %v950_v61 }
  0xd2   : > { %953 = vst [vmem:[%s5237_s27 + $0xbf0] sm:$0xff] %v952_v62  ;;  %955 = vst [vmem:[%s5237_s27 + $0xbf8] sm:$0xff] %v954_v63 }
  0xd3 PF: > { %p4122_p6 = scmp.ge.s32.totalorder %s5167_s16, 1  ;;  %p968_p7 = scmp.lt.s32.totalorder %s5167_s16, 3 }
  0xd5   : > { %p969_p8 = pnand %p4122_p6, %p968_p7 }
  0xd6   : > { %s975_s28 = sand.u32 (!%p969_p8), 1, %s5151_s12   ;;  %v1055_v0 = vld [vmem:[%s6517_s0 + $0x8] sm:$0xff] (!%p969_p8)  ;;  %v1057_v1 = vld [vmem:[%s6517_s0 + $0x18] sm:$0xff] (!%p969_p8)  ;;  %s1018_s12 = smul.u32 (!%p969_p8), 12, %s5159_s14 }
  0xd7   : > { %972 = sbr.rel (%p969_p8) target bundleno = 823 (0x337), region = 51  ;;  %v6013_v2 = vpack.c.bf16 (!%p969_p8), %v1055_v0, %v1055_v0  ;;  %v6015_v3 = vpack.c.bf16 (!%p969_p8), %v1057_v1, %v1057_v1 }
  0xd8   : > { %s4512_s6 = smul.u32 (!%p969_p8), 3072, %s975_s28  ;;  %p1019_p9 = scmp.lt.s32.totalorder (!%p969_p8), %s1018_s12, 23 }
  0xd9   : > { %3410 = vmatprep.mubr.bf16.mxu0 (!%p969_p8), %v6013_v2  ;;  %3451 = vmatprep.mubr.bf16.mxu1 (!%p969_p8), %v6015_v3 }
  0xda   : > { %s6019_s7 = scalar_lea.vmem (!%p969_p8), [#allocation3], %s4512_s6 }
  0xdb   : > { %v4553_v4 = vld [vmem:[%s6019_s7 + $0x4] ss:$48 sps:$4 sm:$0xff] (!%p969_p8)   ;;  %v4557_v6 = vld [vmem:[%s6019_s7] ss:$48 sps:$4 sm:$0xff] (!%p969_p8)  }
  0xdc   : > { %v4555_v5 = vld [vmem:[%s6019_s7 + $0x604] ss:$48 sps:$4 sm:$0xff] (!%p969_p8)   ;;  %3378 = vmatprep.subr.bf16.mxu0 (!%p969_p8), %v4553_v4  ;;  %v4558_v7 = vld [vmem:[%s6019_s7 + $0x600] ss:$48 sps:$4 sm:$0xff] (!%p969_p8)  }
  0xdd   : > { %3419 = vmatprep.subr.bf16.mxu1 (!%p969_p8), %v4555_v5  ;;  %v4559_v8 = vld [vmem:[%s6019_s7 + $0x64] ss:$48 sps:$4 sm:$0xff] (!%p969_p8)   ;;  %3379 = vmatpush1.bf16.msra.mxu0 (!%p969_p8), %v4557_v6  ;;  %v4563_v10 = vld [vmem:[%s6019_s7 + $0x60] ss:$48 sps:$4 sm:$0xff] (!%p969_p8)  }
  0xde   : > { %3420 = vmatpush1.bf16.msra.mxu1 %v4558_v7  ;;  %v4561_v9 = vld [vmem:[%s6019_s7 + $0x664] ss:$48 sps:$4 sm:$0xff]   ;;  %3380 = vmatprep.subr.bf16.mxu0 %v4559_v8  ;;  %v4564_v11 = vld [vmem:[%s6019_s7 + $0x660] ss:$48 sps:$4 sm:$0xff]   ;;  %v4651_v8 = vld [vmem:[%s6019_s7 + $0xc] ss:$48 sps:$4 sm:$0xff]  }
  0xdf   : > { %3421 = vmatprep.subr.bf16.mxu1 %v4561_v9  ;;  %v4565_v12 = vld [vmem:[%s6019_s7 + $0xc4] ss:$48 sps:$4 sm:$0xff]   ;;  %v4569_v14 = vld [vmem:[%s6019_s7 + $0xc0] ss:$48 sps:$4 sm:$0xff]   ;;  %v4654_v9 = vld [vmem:[%s6019_s7 + $0x60c] ss:$48 sps:$4 sm:$0xff]  }
  0xe0   : > { %v4567_v13 = vld [vmem:[%s6019_s7 + $0x6c4] ss:$48 sps:$4 sm:$0xff]   ;;  %v4570_v15 = vld [vmem:[%s6019_s7 + $0x6c0] ss:$48 sps:$4 sm:$0xff]   ;;  %s6528_s12 = smov (!%p1019_p9, %s1018_s12), 23 }
  0xe1   : > { %3381 = vmatpush1.bf16.msra.mxu0 %v4563_v10  ;;  %v4571_v16 = vld [vmem:[%s6019_s7 + $0x124] ss:$48 sps:$4 sm:$0xff]   ;;  %v4575_v18 = vld [vmem:[%s6019_s7 + $0x120] ss:$48 sps:$4 sm:$0xff]   ;;  %s6330_s19 = scalar_lea.vmem %s6519_s2, %s6528_s12  ;;  %s4123_s21 = sshll.u32 %s6528_s12, 3 }
  0xe2   : > { %3422 = vmatpush1.bf16.msra.mxu1 %v4564_v11  ;;  %3382 = vmatprep.subr.bf16.mxu0 %v4565_v12  ;;  %v4573_v17 = vld [vmem:[%s6019_s7 + $0x724] ss:$48 sps:$4 sm:$0xff]   ;;  %v4576_v19 = vld [vmem:[%s6019_s7 + $0x720] ss:$48 sps:$4 sm:$0xff]   ;;  %v4649_v12 = vld [vmem:[%s6019_s7 + $0x8] ss:$48 sps:$4 sm:$0xff]   ;;  %s6355_s24 = scalar_lea.vmem %s6520_s3, %s4123_s21 }
  0xe3   : > { %3423 = vmatprep.subr.bf16.mxu1 %v4567_v13  ;;  %v4577_v20 = vld [vmem:[%s6019_s7 + $0x184] ss:$48 sps:$4 sm:$0xff]   ;;  %v4581_v22 = vld [vmem:[%s6019_s7 + $0x180] ss:$48 sps:$4 sm:$0xff]   ;;  %v4652_v13 = vld [vmem:[%s6019_s7 + $0x608] ss:$48 sps:$4 sm:$0xff]  }
  0xe4   : > { %v4579_v21 = vld [vmem:[%s6019_s7 + $0x784] ss:$48 sps:$4 sm:$0xff]   ;;  %v4582_v23 = vld [vmem:[%s6019_s7 + $0x780] ss:$48 sps:$4 sm:$0xff]  }
  0xe5   : > { %3383 = vmatpush1.bf16.msra.mxu0 %v4569_v14  ;;  %v4583_v24 = vld [vmem:[%s6019_s7 + $0x1e4] ss:$48 sps:$4 sm:$0xff]   ;;  %v4587_v26 = vld [vmem:[%s6019_s7 + $0x1e0] ss:$48 sps:$4 sm:$0xff]   ;;  %v4657_v14 = vld [vmem:[%s6019_s7 + $0x6c] ss:$48 sps:$4 sm:$0xff]  }
  0xe6   : > { %3424 = vmatpush1.bf16.msra.mxu1 %v4570_v15  ;;  %3384 = vmatprep.subr.bf16.mxu0 %v4571_v16  ;;  %v4585_v25 = vld [vmem:[%s6019_s7 + $0x7e4] ss:$48 sps:$4 sm:$0xff]   ;;  %v4588_v27 = vld [vmem:[%s6019_s7 + $0x7e0] ss:$48 sps:$4 sm:$0xff]   ;;  %v4660_v15 = vld [vmem:[%s6019_s7 + $0x66c] ss:$48 sps:$4 sm:$0xff]  }
  0xe7   : > { %3425 = vmatprep.subr.bf16.mxu1 %v4573_v17  ;;  %v4589_v28 = vld [vmem:[%s6019_s7 + $0x244] ss:$48 sps:$4 sm:$0xff]   ;;  %v4593_v30 = vld [vmem:[%s6019_s7 + $0x240] ss:$48 sps:$4 sm:$0xff]   ;;  %v4655_v16 = vld [vmem:[%s6019_s7 + $0x68] ss:$48 sps:$4 sm:$0xff]  }
  0xe8   : > { %v4591_v29 = vld [vmem:[%s6019_s7 + $0x844] ss:$48 sps:$4 sm:$0xff]   ;;  %v4594_v31 = vld [vmem:[%s6019_s7 + $0x840] ss:$48 sps:$4 sm:$0xff]   ;;  %v4658_v17 = vld [vmem:[%s6019_s7 + $0x668] ss:$48 sps:$4 sm:$0xff]  }
  0xe9   : > { %3385 = vmatpush1.bf16.msra.mxu0 %v4575_v18  ;;  %v4595_v32 = vld [vmem:[%s6019_s7 + $0x2a4] ss:$48 sps:$4 sm:$0xff]   ;;  %v4599_v34 = vld [vmem:[%s6019_s7 + $0x2a0] ss:$48 sps:$4 sm:$0xff]   ;;  %v4663_v18 = vld [vmem:[%s6019_s7 + $0xcc] ss:$48 sps:$4 sm:$0xff]  }
  0xea   : > { %3426 = vmatpush1.bf16.msra.mxu1 %v4576_v19  ;;  %3386 = vmatprep.subr.bf16.mxu0 %v4577_v20  ;;  %v4597_v33 = vld [vmem:[%s6019_s7 + $0x8a4] ss:$48 sps:$4 sm:$0xff]   ;;  %v4600_v35 = vld [vmem:[%s6019_s7 + $0x8a0] ss:$48 sps:$4 sm:$0xff]   ;;  %v4666_v19 = vld [vmem:[%s6019_s7 + $0x6cc] ss:$48 sps:$4 sm:$0xff]  }
  0xeb   : > { %3427 = vmatprep.subr.bf16.mxu1 %v4579_v21  ;;  %v4601_v36 = vld [vmem:[%s6019_s7 + $0x304] ss:$48 sps:$4 sm:$0xff]   ;;  %v4605_v38 = vld [vmem:[%s6019_s7 + $0x300] ss:$48 sps:$4 sm:$0xff]   ;;  %v4661_v20 = vld [vmem:[%s6019_s7 + $0xc8] ss:$48 sps:$4 sm:$0xff]  }
  0xec   : > { %v4603_v37 = vld [vmem:[%s6019_s7 + $0x904] ss:$48 sps:$4 sm:$0xff]   ;;  %v4606_v39 = vld [vmem:[%s6019_s7 + $0x900] ss:$48 sps:$4 sm:$0xff]   ;;  %v4664_v21 = vld [vmem:[%s6019_s7 + $0x6c8] ss:$48 sps:$4 sm:$0xff]  }
  0xed   : > { %3387 = vmatpush1.bf16.msra.mxu0 %v4581_v22  ;;  %v4607_v40 = vld [vmem:[%s6019_s7 + $0x364] ss:$48 sps:$4 sm:$0xff]   ;;  %v4611_v42 = vld [vmem:[%s6019_s7 + $0x360] ss:$48 sps:$4 sm:$0xff]   ;;  %v4669_v22 = vld [vmem:[%s6019_s7 + $0x12c] ss:$48 sps:$4 sm:$0xff]  }
  0xee   : > { %3428 = vmatpush1.bf16.msra.mxu1 %v4582_v23  ;;  %3388 = vmatprep.subr.bf16.mxu0 %v4583_v24  ;;  %v4609_v41 = vld [vmem:[%s6019_s7 + $0x964] ss:$48 sps:$4 sm:$0xff]   ;;  %v4612_v43 = vld [vmem:[%s6019_s7 + $0x960] ss:$48 sps:$4 sm:$0xff]   ;;  %v4672_v23 = vld [vmem:[%s6019_s7 + $0x72c] ss:$48 sps:$4 sm:$0xff]  }
  0xef   : > { %3429 = vmatprep.subr.bf16.mxu1 %v4585_v25  ;;  %v4613_v44 = vld [vmem:[%s6019_s7 + $0x3c4] ss:$48 sps:$4 sm:$0xff]   ;;  %v4617_v46 = vld [vmem:[%s6019_s7 + $0x3c0] ss:$48 sps:$4 sm:$0xff]   ;;  %v4667_v24 = vld [vmem:[%s6019_s7 + $0x128] ss:$48 sps:$4 sm:$0xff]  }
  0xf0   : > { %v4615_v45 = vld [vmem:[%s6019_s7 + $0x9c4] ss:$48 sps:$4 sm:$0xff]   ;;  %v4618_v47 = vld [vmem:[%s6019_s7 + $0x9c0] ss:$48 sps:$4 sm:$0xff]   ;;  %v4670_v25 = vld [vmem:[%s6019_s7 + $0x728] ss:$48 sps:$4 sm:$0xff]  }
  0xf1   : > { %3389 = vmatpush1.bf16.msra.mxu0 %v4587_v26  ;;  %v4619_v48 = vld [vmem:[%s6019_s7 + $0x424] ss:$48 sps:$4 sm:$0xff]   ;;  %v4623_v50 = vld [vmem:[%s6019_s7 + $0x420] ss:$48 sps:$4 sm:$0xff]   ;;  %v4675_v26 = vld [vmem:[%s6019_s7 + $0x18c] ss:$48 sps:$4 sm:$0xff]  }
  0xf2   : > { %3430 = vmatpush1.bf16.msra.mxu1 %v4588_v27  ;;  %3390 = vmatprep.subr.bf16.mxu0 %v4589_v28  ;;  %v4621_v49 = vld [vmem:[%s6019_s7 + $0xa24] ss:$48 sps:$4 sm:$0xff]   ;;  %v4624_v51 = vld [vmem:[%s6019_s7 + $0xa20] ss:$48 sps:$4 sm:$0xff]   ;;  %v4678_v27 = vld [vmem:[%s6019_s7 + $0x78c] ss:$48 sps:$4 sm:$0xff]  }
  0xf3   : > { %3431 = vmatprep.subr.bf16.mxu1 %v4591_v29  ;;  %v4625_v52 = vld [vmem:[%s6019_s7 + $0x484] ss:$48 sps:$4 sm:$0xff]   ;;  %v4629_v54 = vld [vmem:[%s6019_s7 + $0x480] ss:$48 sps:$4 sm:$0xff]   ;;  %v4673_v28 = vld [vmem:[%s6019_s7 + $0x188] ss:$48 sps:$4 sm:$0xff]  }
  0xf4   : > { %v4627_v53 = vld [vmem:[%s6019_s7 + $0xa84] ss:$48 sps:$4 sm:$0xff]   ;;  %v4630_v55 = vld [vmem:[%s6019_s7 + $0xa80] ss:$48 sps:$4 sm:$0xff]   ;;  %v4676_v29 = vld [vmem:[%s6019_s7 + $0x788] ss:$48 sps:$4 sm:$0xff]  }
  0xf5   : > { %3391 = vmatpush1.bf16.msra.mxu0 %v4593_v30  ;;  %v4631_v56 = vld [vmem:[%s6019_s7 + $0x4e4] ss:$48 sps:$4 sm:$0xff]   ;;  %v4635_v58 = vld [vmem:[%s6019_s7 + $0x4e0] ss:$48 sps:$4 sm:$0xff]   ;;  %v4681_v30 = vld [vmem:[%s6019_s7 + $0x1ec] ss:$48 sps:$4 sm:$0xff]  }
  0xf6   : > { %3432 = vmatpush1.bf16.msra.mxu1 %v4594_v31  ;;  %3392 = vmatprep.subr.bf16.mxu0 %v4595_v32  ;;  %v4633_v57 = vld [vmem:[%s6019_s7 + $0xae4] ss:$48 sps:$4 sm:$0xff]   ;;  %v4636_v59 = vld [vmem:[%s6019_s7 + $0xae0] ss:$48 sps:$4 sm:$0xff]   ;;  %v4684_v31 = vld [vmem:[%s6019_s7 + $0x7ec] ss:$48 sps:$4 sm:$0xff]  }
  0xf7   : > { %3433 = vmatprep.subr.bf16.mxu1 %v4597_v33  ;;  %v4637_v60 = vld [vmem:[%s6019_s7 + $0x544] ss:$48 sps:$4 sm:$0xff]   ;;  %v4641_v62 = vld [vmem:[%s6019_s7 + $0x540] ss:$48 sps:$4 sm:$0xff]   ;;  %v4679_v32 = vld [vmem:[%s6019_s7 + $0x1e8] ss:$48 sps:$4 sm:$0xff]  }
  0xf8   : > { %v4639_v61 = vld [vmem:[%s6019_s7 + $0xb44] ss:$48 sps:$4 sm:$0xff]   ;;  %v4642_v63 = vld [vmem:[%s6019_s7 + $0xb40] ss:$48 sps:$4 sm:$0xff]   ;;  %v4682_v33 = vld [vmem:[%s6019_s7 + $0x7e8] ss:$48 sps:$4 sm:$0xff]  }
  0xf9   : > { %3393 = vmatpush1.bf16.msra.mxu0 %v4599_v34  ;;  %v4643_v0 = vld [vmem:[%s6019_s7 + $0x5a4] ss:$48 sps:$4 sm:$0xff]   ;;  %v4647_v6 = vld [vmem:[%s6019_s7 + $0x5a0] ss:$48 sps:$4 sm:$0xff]   ;;  %v4687_v34 = vld [vmem:[%s6019_s7 + $0x24c] ss:$48 sps:$4 sm:$0xff]  }
  0xfa   : > { %3434 = vmatpush1.bf16.msra.mxu1 %v4600_v35  ;;  %3394 = vmatprep.subr.bf16.mxu0 %v4601_v36  ;;  %v4645_v1 = vld [vmem:[%s6019_s7 + $0xba4] ss:$48 sps:$4 sm:$0xff]   ;;  %v4648_v7 = vld [vmem:[%s6019_s7 + $0xba0] ss:$48 sps:$4 sm:$0xff]   ;;  %v4690_v35 = vld [vmem:[%s6019_s7 + $0x84c] ss:$48 sps:$4 sm:$0xff]  }
  0xfb   : > { %3435 = vmatprep.subr.bf16.mxu1 %v4603_v37  ;;  %v1054_v4 = vld [vmem:[%s6517_s0] sm:$0xff]  ;;  %v1056_v5 = vld [vmem:[%s6517_s0 + $0x10] sm:$0xff]  ;;  %v4685_v36 = vld [vmem:[%s6019_s7 + $0x248] ss:$48 sps:$4 sm:$0xff]  }
  0xfc   : > { %v6093_v10 = vpack.c.bf16 %v1054_v4, %v1054_v4  ;;  %v6095_v11 = vpack.c.bf16 %v1056_v5, %v1056_v5  ;;  %v4688_v37 = vld [vmem:[%s6019_s7 + $0x848] ss:$48 sps:$4 sm:$0xff]   ;;  %v4735_v4 = vld [vmem:[%s6019_s7 + $0x54c] ss:$48 sps:$4 sm:$0xff]  }
  0xfd   : > { %3395 = vmatpush1.bf16.msra.mxu0 %v4605_v38  ;;  %v4693_v38 = vld [vmem:[%s6019_s7 + $0x2ac] ss:$48 sps:$4 sm:$0xff]  }
  0xfe   : > { %3436 = vmatpush1.bf16.msra.mxu1 %v4606_v39  ;;  %3396 = vmatprep.subr.bf16.mxu0 %v4607_v40  ;;  %v4696_v39 = vld [vmem:[%s6019_s7 + $0x8ac] ss:$48 sps:$4 sm:$0xff]   ;;  %v4691_v40 = vld [vmem:[%s6019_s7 + $0x2a8] ss:$48 sps:$4 sm:$0xff]  }
  0xff   : > { %3437 = vmatprep.subr.bf16.mxu1 %v4609_v41  ;;  %v4694_v41 = vld [vmem:[%s6019_s7 + $0x8a8] ss:$48 sps:$4 sm:$0xff]   ;;  %v4738_v5 = vld [vmem:[%s6019_s7 + $0xb4c] ss:$48 sps:$4 sm:$0xff]  }
 0x101   : > { %3397 = vmatpush1.bf16.msra.mxu0 %v4611_v42  ;;  %v4699_v42 = vld [vmem:[%s6019_s7 + $0x30c] ss:$48 sps:$4 sm:$0xff]  }
 0x102   : > { %3438 = vmatpush1.bf16.msra.mxu1 %v4612_v43  ;;  %3398 = vmatprep.subr.bf16.mxu0 %v4613_v44  ;;  %v4702_v43 = vld [vmem:[%s6019_s7 + $0x90c] ss:$48 sps:$4 sm:$0xff]   ;;  %v4697_v44 = vld [vmem:[%s6019_s7 + $0x308] ss:$48 sps:$4 sm:$0xff]  }
 0x103   : > { %3439 = vmatprep.subr.bf16.mxu1 %v4615_v45  ;;  %v4700_v45 = vld [vmem:[%s6019_s7 + $0x908] ss:$48 sps:$4 sm:$0xff]  }
 0x105   : > { %3399 = vmatpush1.bf16.msra.mxu0 %v4617_v46  ;;  %v4705_v46 = vld [vmem:[%s6019_s7 + $0x36c] ss:$48 sps:$4 sm:$0xff]  }
 0x106   : > { %3440 = vmatpush1.bf16.msra.mxu1 %v4618_v47  ;;  %3400 = vmatprep.subr.bf16.mxu0 %v4619_v48  ;;  %v4708_v47 = vld [vmem:[%s6019_s7 + $0x96c] ss:$48 sps:$4 sm:$0xff]   ;;  %v4703_v48 = vld [vmem:[%s6019_s7 + $0x368] ss:$48 sps:$4 sm:$0xff]  }
 0x107   : > { %3441 = vmatprep.subr.bf16.mxu1 %v4621_v49  ;;  %v4706_v49 = vld [vmem:[%s6019_s7 + $0x968] ss:$48 sps:$4 sm:$0xff]  }
 0x109   : > { %3401 = vmatpush1.bf16.msra.mxu0 %v4623_v50  ;;  %v4711_v50 = vld [vmem:[%s6019_s7 + $0x3cc] ss:$48 sps:$4 sm:$0xff]  }
 0x10a   : > { %3442 = vmatpush1.bf16.msra.mxu1 %v4624_v51  ;;  %3402 = vmatprep.subr.bf16.mxu0 %v4625_v52  ;;  %v4714_v51 = vld [vmem:[%s6019_s7 + $0x9cc] ss:$48 sps:$4 sm:$0xff]   ;;  %v4709_v52 = vld [vmem:[%s6019_s7 + $0x3c8] ss:$48 sps:$4 sm:$0xff]  }
 0x10b   : > { %3443 = vmatprep.subr.bf16.mxu1 %v4627_v53  ;;  %v4712_v53 = vld [vmem:[%s6019_s7 + $0x9c8] ss:$48 sps:$4 sm:$0xff]  }
 0x10d   : > { %3403 = vmatpush1.bf16.msra.mxu0 %v4629_v54  ;;  %v4717_v54 = vld [vmem:[%s6019_s7 + $0x42c] ss:$48 sps:$4 sm:$0xff]  }
 0x10e   : > { %3444 = vmatpush1.bf16.msra.mxu1 %v4630_v55  ;;  %3404 = vmatprep.subr.bf16.mxu0 %v4631_v56  ;;  %v4720_v55 = vld [vmem:[%s6019_s7 + $0xa2c] ss:$48 sps:$4 sm:$0xff]   ;;  %v4715_v56 = vld [vmem:[%s6019_s7 + $0x428] ss:$48 sps:$4 sm:$0xff]  }
 0x10f   : > { %3445 = vmatprep.subr.bf16.mxu1 %v4633_v57  ;;  %v4718_v57 = vld [vmem:[%s6019_s7 + $0xa28] ss:$48 sps:$4 sm:$0xff]  }
 0x111   : > { %3405 = vmatpush1.bf16.msra.mxu0 %v4635_v58  ;;  %v4723_v58 = vld [vmem:[%s6019_s7 + $0x48c] ss:$48 sps:$4 sm:$0xff]  }
 0x112   : > { %3446 = vmatpush1.bf16.msra.mxu1 %v4636_v59  ;;  %3406 = vmatprep.subr.bf16.mxu0 %v4637_v60  ;;  %v4726_v59 = vld [vmem:[%s6019_s7 + $0xa8c] ss:$48 sps:$4 sm:$0xff]   ;;  %v4721_v60 = vld [vmem:[%s6019_s7 + $0x488] ss:$48 sps:$4 sm:$0xff]  }
 0x113   : > { %3447 = vmatprep.subr.bf16.mxu1 %v4639_v61  ;;  %v4724_v61 = vld [vmem:[%s6019_s7 + $0xa88] ss:$48 sps:$4 sm:$0xff]  }
 0x115   : > { %3407 = vmatpush1.bf16.msra.mxu0 %v4641_v62  ;;  %v4729_v62 = vld [vmem:[%s6019_s7 + $0x4ec] ss:$48 sps:$4 sm:$0xff]  }
 0x116   : > { %3448 = vmatpush1.bf16.msra.mxu1 %v4642_v63  ;;  %3408 = vmatprep.subr.bf16.mxu0 %v4643_v0  ;;  %v4732_v63 = vld [vmem:[%s6019_s7 + $0xaec] ss:$48 sps:$4 sm:$0xff]   ;;  %v4727_v0 = vld [vmem:[%s6019_s7 + $0x4e8] ss:$48 sps:$4 sm:$0xff]  }
 0x117   : > { %3449 = vmatprep.subr.bf16.mxu1 %v4645_v1  ;;  %v4730_v1 = vld [vmem:[%s6019_s7 + $0xae8] ss:$48 sps:$4 sm:$0xff]  }
 0x119   : > { %3409 = vmatpush1.bf16.msra.mxu0 %v4647_v6  ;;  %v4733_v6 = vld [vmem:[%s6019_s7 + $0x548] ss:$48 sps:$4 sm:$0xff]  }
 0x11a   : > { %3450 = vmatpush1.bf16.msra.mxu1 %v4648_v7  ;;  %3460 = vmatprep.subr.bf16.mxu0 %v4651_v8  ;;  %v4736_v7 = vld [vmem:[%s6019_s7 + $0xb48] ss:$48 sps:$4 sm:$0xff]   ;;  %v4741_v8 = vld [vmem:[%s6019_s7 + $0x5ac] ss:$48 sps:$4 sm:$0xff]  }
 0x11b   : > { %3501 = vmatprep.subr.bf16.mxu1 %v4654_v9  ;;  %v4744_v9 = vld [vmem:[%s6019_s7 + $0xbac] ss:$48 sps:$4 sm:$0xff]  }
 0x11c   : > { %3411 = vmatmul.mubr.bf16.vlgmr.msra.gmra.mrb[0].mxu0 %v6093_v10 }
 0x11d   : > { %3452 = vmatmul.mubr.bf16.vlgmr.msra.gmra.mrb[0].mxu1 %v6095_v11  ;;  %3461 = vmatpush1.bf16.msra.mxu0 %v4649_v12  ;;  %v4739_v12 = vld [vmem:[%s6019_s7 + $0x5a8] ss:$48 sps:$4 sm:$0xff]  }
 0x11e   : > { %3502 = vmatpush1.bf16.msra.mxu1 %v4652_v13  ;;  %3462 = vmatprep.subr.bf16.mxu0 %v4657_v14  ;;  %v4742_v13 = vld [vmem:[%s6019_s7 + $0xba8] ss:$48 sps:$4 sm:$0xff]   ;;  %v4747_v14 = vld [vmem:[%s6019_s7 + $0x14] ss:$48 sps:$4 sm:$0xff]  }
 0x11f   : > { %3503 = vmatprep.subr.bf16.mxu1 %v4660_v15  ;;  %3492 = vmatprep.mubr.bf16.mxu0 %v6013_v2  ;;  %v4750_v15 = vld [vmem:[%s6019_s7 + $0x614] ss:$48 sps:$4 sm:$0xff]  }
 0x120   : > { %3533 = vmatprep.mubr.bf16.mxu1 %v6015_v3 }
 0x121   : > { %3463 = vmatpush1.bf16.msra.mxu0 %v4655_v16  ;;  %v4745_v16 = vld [vmem:[%s6019_s7 + $0x10] ss:$48 sps:$4 sm:$0xff]  }
 0x122   : > { %3504 = vmatpush1.bf16.msra.mxu1 %v4658_v17  ;;  %3464 = vmatprep.subr.bf16.mxu0 %v4663_v18  ;;  %v4748_v17 = vld [vmem:[%s6019_s7 + $0x610] ss:$48 sps:$4 sm:$0xff]   ;;  %v4753_v18 = vld [vmem:[%s6019_s7 + $0x74] ss:$48 sps:$4 sm:$0xff]  }
 0x123   : > { %3505 = vmatprep.subr.bf16.mxu1 %v4666_v19  ;;  %v4756_v19 = vld [vmem:[%s6019_s7 + $0x674] ss:$48 sps:$4 sm:$0xff]  }
 0x125   : > { %3465 = vmatpush1.bf16.msra.mxu0 %v4661_v20  ;;  %v4751_v20 = vld [vmem:[%s6019_s7 + $0x70] ss:$48 sps:$4 sm:$0xff]  }
 0x126   : > { %3506 = vmatpush1.bf16.msra.mxu1 %v4664_v21  ;;  %3466 = vmatprep.subr.bf16.mxu0 %v4669_v22  ;;  %v4754_v21 = vld [vmem:[%s6019_s7 + $0x670] ss:$48 sps:$4 sm:$0xff]   ;;  %v4759_v22 = vld [vmem:[%s6019_s7 + $0xd4] ss:$48 sps:$4 sm:$0xff]  }
 0x127   : > { %3507 = vmatprep.subr.bf16.mxu1 %v4672_v23  ;;  %v4762_v23 = vld [vmem:[%s6019_s7 + $0x6d4] ss:$48 sps:$4 sm:$0xff]  }
 0x129   : > { %3467 = vmatpush1.bf16.msra.mxu0 %v4667_v24  ;;  %v4757_v24 = vld [vmem:[%s6019_s7 + $0xd0] ss:$48 sps:$4 sm:$0xff]  }
 0x12a   : > { %3508 = vmatpush1.bf16.msra.mxu1 %v4670_v25  ;;  %3468 = vmatprep.subr.bf16.mxu0 %v4675_v26  ;;  %v4760_v25 = vld [vmem:[%s6019_s7 + $0x6d0] ss:$48 sps:$4 sm:$0xff]   ;;  %v4765_v26 = vld [vmem:[%s6019_s7 + $0x134] ss:$48 sps:$4 sm:$0xff]  }
 0x12b   : > { %3509 = vmatprep.subr.bf16.mxu1 %v4678_v27  ;;  %v4768_v27 = vld [vmem:[%s6019_s7 + $0x734] ss:$48 sps:$4 sm:$0xff]  }
 0x12d   : > { %3469 = vmatpush1.bf16.msra.mxu0 %v4673_v28  ;;  %v4763_v28 = vld [vmem:[%s6019_s7 + $0x130] ss:$48 sps:$4 sm:$0xff]  }
 0x12e   : > { %3510 = vmatpush1.bf16.msra.mxu1 %v4676_v29  ;;  %3470 = vmatprep.subr.bf16.mxu0 %v4681_v30  ;;  %v4766_v29 = vld [vmem:[%s6019_s7 + $0x730] ss:$48 sps:$4 sm:$0xff]   ;;  %v4771_v30 = vld [vmem:[%s6019_s7 + $0x194] ss:$48 sps:$4 sm:$0xff]  }
 0x12f   : > { %3511 = vmatprep.subr.bf16.mxu1 %v4684_v31  ;;  %v4774_v31 = vld [vmem:[%s6019_s7 + $0x794] ss:$48 sps:$4 sm:$0xff]  }
 0x131   : > { %3471 = vmatpush1.bf16.msra.mxu0 %v4679_v32  ;;  %v4769_v32 = vld [vmem:[%s6019_s7 + $0x190] ss:$48 sps:$4 sm:$0xff]  }
 0x132   : > { %3512 = vmatpush1.bf16.msra.mxu1 %v4682_v33  ;;  %3472 = vmatprep.subr.bf16.mxu0 %v4687_v34  ;;  %v4772_v33 = vld [vmem:[%s6019_s7 + $0x790] ss:$48 sps:$4 sm:$0xff]   ;;  %v4777_v34 = vld [vmem:[%s6019_s7 + $0x1f4] ss:$48 sps:$4 sm:$0xff]  }
 0x133   : > { %3513 = vmatprep.subr.bf16.mxu1 %v4690_v35  ;;  %v4780_v35 = vld [vmem:[%s6019_s7 + $0x7f4] ss:$48 sps:$4 sm:$0xff]  }
 0x135   : > { %3473 = vmatpush1.bf16.msra.mxu0 %v4685_v36  ;;  %v4775_v36 = vld [vmem:[%s6019_s7 + $0x1f0] ss:$48 sps:$4 sm:$0xff]  }
 0x136   : > { %3514 = vmatpush1.bf16.msra.mxu1 %v4688_v37  ;;  %3474 = vmatprep.subr.bf16.mxu0 %v4693_v38  ;;  %v4778_v37 = vld [vmem:[%s6019_s7 + $0x7f0] ss:$48 sps:$4 sm:$0xff]   ;;  %v4783_v38 = vld [vmem:[%s6019_s7 + $0x254] ss:$48 sps:$4 sm:$0xff]  }
 0x137   : > { %3515 = vmatprep.subr.bf16.mxu1 %v4696_v39  ;;  %v4786_v39 = vld [vmem:[%s6019_s7 + $0x854] ss:$48 sps:$4 sm:$0xff]  }
 0x139   : > { %3475 = vmatpush1.bf16.msra.mxu0 %v4691_v40  ;;  %v4781_v40 = vld [vmem:[%s6019_s7 + $0x250] ss:$48 sps:$4 sm:$0xff]  }
 0x13a   : > { %3516 = vmatpush1.bf16.msra.mxu1 %v4694_v41  ;;  %3476 = vmatprep.subr.bf16.mxu0 %v4699_v42  ;;  %v4784_v41 = vld [vmem:[%s6019_s7 + $0x850] ss:$48 sps:$4 sm:$0xff]   ;;  %v4789_v42 = vld [vmem:[%s6019_s7 + $0x2b4] ss:$48 sps:$4 sm:$0xff]  }
 0x13b   : > { %3517 = vmatprep.subr.bf16.mxu1 %v4702_v43  ;;  %v4792_v43 = vld [vmem:[%s6019_s7 + $0x8b4] ss:$48 sps:$4 sm:$0xff]  }
 0x13d   : > { %3477 = vmatpush1.bf16.msra.mxu0 %v4697_v44  ;;  %v4787_v44 = vld [vmem:[%s6019_s7 + $0x2b0] ss:$48 sps:$4 sm:$0xff]  }
 0x13e   : > { %3518 = vmatpush1.bf16.msra.mxu1 %v4700_v45  ;;  %3478 = vmatprep.subr.bf16.mxu0 %v4705_v46  ;;  %v4790_v45 = vld [vmem:[%s6019_s7 + $0x8b0] ss:$48 sps:$4 sm:$0xff]   ;;  %v4795_v46 = vld [vmem:[%s6019_s7 + $0x314] ss:$48 sps:$4 sm:$0xff]  }
 0x13f   : > { %3519 = vmatprep.subr.bf16.mxu1 %v4708_v47  ;;  %v4798_v47 = vld [vmem:[%s6019_s7 + $0x914] ss:$48 sps:$4 sm:$0xff]  }
 0x141   : > { %3479 = vmatpush1.bf16.msra.mxu0 %v4703_v48  ;;  %v4793_v48 = vld [vmem:[%s6019_s7 + $0x310] ss:$48 sps:$4 sm:$0xff]  }
 0x142   : > { %3520 = vmatpush1.bf16.msra.mxu1 %v4706_v49  ;;  %3480 = vmatprep.subr.bf16.mxu0 %v4711_v50  ;;  %v4796_v49 = vld [vmem:[%s6019_s7 + $0x910] ss:$48 sps:$4 sm:$0xff]   ;;  %v4801_v50 = vld [vmem:[%s6019_s7 + $0x374] ss:$48 sps:$4 sm:$0xff]  }
 0x143   : > { %3521 = vmatprep.subr.bf16.mxu1 %v4714_v51  ;;  %v4804_v51 = vld [vmem:[%s6019_s7 + $0x974] ss:$48 sps:$4 sm:$0xff]  }
 0x145   : > { %3481 = vmatpush1.bf16.msra.mxu0 %v4709_v52  ;;  %v4799_v52 = vld [vmem:[%s6019_s7 + $0x370] ss:$48 sps:$4 sm:$0xff]  }
 0x146   : > { %3522 = vmatpush1.bf16.msra.mxu1 %v4712_v53  ;;  %3482 = vmatprep.subr.bf16.mxu0 %v4717_v54  ;;  %v4802_v53 = vld [vmem:[%s6019_s7 + $0x970] ss:$48 sps:$4 sm:$0xff]   ;;  %v4807_v54 = vld [vmem:[%s6019_s7 + $0x3d4] ss:$48 sps:$4 sm:$0xff]  }
 0x147   : > { %3523 = vmatprep.subr.bf16.mxu1 %v4720_v55  ;;  %v4810_v55 = vld [vmem:[%s6019_s7 + $0x9d4] ss:$48 sps:$4 sm:$0xff]  }
 0x149   : > { %3483 = vmatpush1.bf16.msra.mxu0 %v4715_v56  ;;  %v4805_v56 = vld [vmem:[%s6019_s7 + $0x3d0] ss:$48 sps:$4 sm:$0xff]  }
 0x14a   : > { %3524 = vmatpush1.bf16.msra.mxu1 %v4718_v57  ;;  %3484 = vmatprep.subr.bf16.mxu0 %v4723_v58  ;;  %v4808_v57 = vld [vmem:[%s6019_s7 + $0x9d0] ss:$48 sps:$4 sm:$0xff]   ;;  %v4813_v58 = vld [vmem:[%s6019_s7 + $0x434] ss:$48 sps:$4 sm:$0xff]  }
 0x14b   : > { %3525 = vmatprep.subr.bf16.mxu1 %v4726_v59  ;;  %v4816_v59 = vld [vmem:[%s6019_s7 + $0xa34] ss:$48 sps:$4 sm:$0xff]  }
 0x14d   : > { %3485 = vmatpush1.bf16.msra.mxu0 %v4721_v60  ;;  %v4811_v60 = vld [vmem:[%s6019_s7 + $0x430] ss:$48 sps:$4 sm:$0xff]  }
 0x14e   : > { %3526 = vmatpush1.bf16.msra.mxu1 %v4724_v61  ;;  %3486 = vmatprep.subr.bf16.mxu0 %v4729_v62  ;;  %v4814_v61 = vld [vmem:[%s6019_s7 + $0xa30] ss:$48 sps:$4 sm:$0xff]   ;;  %v4819_v62 = vld [vmem:[%s6019_s7 + $0x494] ss:$48 sps:$4 sm:$0xff]  }
 0x14f   : > { %3527 = vmatprep.subr.bf16.mxu1 %v4732_v63  ;;  %v4822_v63 = vld [vmem:[%s6019_s7 + $0xa94] ss:$48 sps:$4 sm:$0xff]  }
 0x151   : > { %3487 = vmatpush1.bf16.msra.mxu0 %v4727_v0  ;;  %v4817_v0 = vld [vmem:[%s6019_s7 + $0x490] ss:$48 sps:$4 sm:$0xff]  }
 0x152   : > { %3528 = vmatpush1.bf16.msra.mxu1 %v4730_v1  ;;  %3488 = vmatprep.subr.bf16.mxu0 %v4735_v4  ;;  %v4820_v1 = vld [vmem:[%s6019_s7 + $0xa90] ss:$48 sps:$4 sm:$0xff]   ;;  %v4825_v4 = vld [vmem:[%s6019_s7 + $0x4f4] ss:$48 sps:$4 sm:$0xff]  }
 0x153   : > { %3529 = vmatprep.subr.bf16.mxu1 %v4738_v5  ;;  %v4828_v5 = vld [vmem:[%s6019_s7 + $0xaf4] ss:$48 sps:$4 sm:$0xff]  }
 0x155   : > { %3489 = vmatpush1.bf16.msra.mxu0 %v4733_v6  ;;  %v4823_v6 = vld [vmem:[%s6019_s7 + $0x4f0] ss:$48 sps:$4 sm:$0xff]  }
 0x156   : > { %3530 = vmatpush1.bf16.msra.mxu1 %v4736_v7  ;;  %3490 = vmatprep.subr.bf16.mxu0 %v4741_v8  ;;  %v4826_v7 = vld [vmem:[%s6019_s7 + $0xaf0] ss:$48 sps:$4 sm:$0xff]   ;;  %v4831_v8 = vld [vmem:[%s6019_s7 + $0x554] ss:$48 sps:$4 sm:$0xff]  }
 0x157   : > { %3531 = vmatprep.subr.bf16.mxu1 %v4744_v9  ;;  %v4834_v9 = vld [vmem:[%s6019_s7 + $0xb54] ss:$48 sps:$4 sm:$0xff]  }
 0x159   : > { %3491 = vmatpush1.bf16.msra.mxu0 %v4739_v12  ;;  %v4829_v12 = vld [vmem:[%s6019_s7 + $0x550] ss:$48 sps:$4 sm:$0xff]  }
 0x15a   : > { %3532 = vmatpush1.bf16.msra.mxu1 %v4742_v13  ;;  %3542 = vmatprep.subr.bf16.mxu0 %v4747_v14  ;;  %v4832_v13 = vld [vmem:[%s6019_s7 + $0xb50] ss:$48 sps:$4 sm:$0xff]   ;;  %v4837_v14 = vld [vmem:[%s6019_s7 + $0x5b4] ss:$48 sps:$4 sm:$0xff]  }
 0x15b   : > { %3583 = vmatprep.subr.bf16.mxu1 %v4750_v15  ;;  %v4840_v15 = vld [vmem:[%s6019_s7 + $0xbb4] ss:$48 sps:$4 sm:$0xff]  }
 0x15c   : > { %3493 = vmatmul.mubr.bf16.vlgmr.msra.gmra.mrb[4].mxu0 %v6093_v10 }
 0x15d   : > { %3534 = vmatmul.mubr.bf16.vlgmr.msra.gmra.mrb[4].mxu1 %v6095_v11  ;;  %3543 = vmatpush1.bf16.msra.mxu0 %v4745_v16  ;;  %v4835_v16 = vld [vmem:[%s6019_s7 + $0x5b0] ss:$48 sps:$4 sm:$0xff]  }
 0x15e   : > { %3584 = vmatpush1.bf16.msra.mxu1 %v4748_v17  ;;  %3544 = vmatprep.subr.bf16.mxu0 %v4753_v18  ;;  %v4838_v17 = vld [vmem:[%s6019_s7 + $0xbb0] ss:$48 sps:$4 sm:$0xff]   ;;  %v4843_v18 = vld [vmem:[%s6019_s7 + $0x1c] ss:$48 sps:$4 sm:$0xff]  }
 0x15f   : > { %3585 = vmatprep.subr.bf16.mxu1 %v4756_v19  ;;  %3574 = vmatprep.mubr.bf16.mxu0 %v6013_v2  ;;  %v4846_v19 = vld [vmem:[%s6019_s7 + $0x61c] ss:$48 sps:$4 sm:$0xff]  }
 0x160   : > { %3615 = vmatprep.mubr.bf16.mxu1 %v6015_v3 }
 0x161   : > { %3545 = vmatpush1.bf16.msra.mxu0 %v4751_v20  ;;  %v4841_v20 = vld [vmem:[%s6019_s7 + $0x18] ss:$48 sps:$4 sm:$0xff]  }
 0x162   : > { %3586 = vmatpush1.bf16.msra.mxu1 %v4754_v21  ;;  %3546 = vmatprep.subr.bf16.mxu0 %v4759_v22  ;;  %v4844_v21 = vld [vmem:[%s6019_s7 + $0x618] ss:$48 sps:$4 sm:$0xff]   ;;  %v4849_v22 = vld [vmem:[%s6019_s7 + $0x7c] ss:$48 sps:$4 sm:$0xff]  }
 0x163   : > { %3587 = vmatprep.subr.bf16.mxu1 %v4762_v23  ;;  %v4852_v23 = vld [vmem:[%s6019_s7 + $0x67c] ss:$48 sps:$4 sm:$0xff]  }
 0x165   : > { %3547 = vmatpush1.bf16.msra.mxu0 %v4757_v24  ;;  %v4847_v24 = vld [vmem:[%s6019_s7 + $0x78] ss:$48 sps:$4 sm:$0xff]  }
 0x166   : > { %3588 = vmatpush1.bf16.msra.mxu1 %v4760_v25  ;;  %3548 = vmatprep.subr.bf16.mxu0 %v4765_v26  ;;  %v4850_v25 = vld [vmem:[%s6019_s7 + $0x678] ss:$48 sps:$4 sm:$0xff]   ;;  %v4855_v26 = vld [vmem:[%s6019_s7 + $0xdc] ss:$48 sps:$4 sm:$0xff]  }
 0x167   : > { %3589 = vmatprep.subr.bf16.mxu1 %v4768_v27  ;;  %v4858_v27 = vld [vmem:[%s6019_s7 + $0x6dc] ss:$48 sps:$4 sm:$0xff]  }
 0x169   : > { %3549 = vmatpush1.bf16.msra.mxu0 %v4763_v28  ;;  %v4853_v28 = vld [vmem:[%s6019_s7 + $0xd8] ss:$48 sps:$4 sm:$0xff]  }
 0x16a   : > { %3590 = vmatpush1.bf16.msra.mxu1 %v4766_v29  ;;  %3550 = vmatprep.subr.bf16.mxu0 %v4771_v30  ;;  %v4856_v29 = vld [vmem:[%s6019_s7 + $0x6d8] ss:$48 sps:$4 sm:$0xff]   ;;  %v4861_v30 = vld [vmem:[%s6019_s7 + $0x13c] ss:$48 sps:$4 sm:$0xff]  }
 0x16b   : > { %3591 = vmatprep.subr.bf16.mxu1 %v4774_v31  ;;  %v4864_v31 = vld [vmem:[%s6019_s7 + $0x73c] ss:$48 sps:$4 sm:$0xff]  }
 0x16d   : > { %3551 = vmatpush1.bf16.msra.mxu0 %v4769_v32  ;;  %v4859_v32 = vld [vmem:[%s6019_s7 + $0x138] ss:$48 sps:$4 sm:$0xff]  }
 0x16e   : > { %3592 = vmatpush1.bf16.msra.mxu1 %v4772_v33  ;;  %3552 = vmatprep.subr.bf16.mxu0 %v4777_v34  ;;  %v4862_v33 = vld [vmem:[%s6019_s7 + $0x738] ss:$48 sps:$4 sm:$0xff]   ;;  %v4867_v34 = vld [vmem:[%s6019_s7 + $0x19c] ss:$48 sps:$4 sm:$0xff]  }
 0x16f   : > { %3593 = vmatprep.subr.bf16.mxu1 %v4780_v35  ;;  %v4870_v35 = vld [vmem:[%s6019_s7 + $0x79c] ss:$48 sps:$4 sm:$0xff]  }
 0x171   : > { %3553 = vmatpush1.bf16.msra.mxu0 %v4775_v36  ;;  %v4865_v36 = vld [vmem:[%s6019_s7 + $0x198] ss:$48 sps:$4 sm:$0xff]  }
 0x172   : > { %3594 = vmatpush1.bf16.msra.mxu1 %v4778_v37  ;;  %3554 = vmatprep.subr.bf16.mxu0 %v4783_v38  ;;  %v4868_v37 = vld [vmem:[%s6019_s7 + $0x798] ss:$48 sps:$4 sm:$0xff]   ;;  %v4873_v38 = vld [vmem:[%s6019_s7 + $0x1fc] ss:$48 sps:$4 sm:$0xff]  }
 0x173   : > { %3595 = vmatprep.subr.bf16.mxu1 %v4786_v39  ;;  %v4876_v39 = vld [vmem:[%s6019_s7 + $0x7fc] ss:$48 sps:$4 sm:$0xff]  }
 0x175   : > { %3555 = vmatpush1.bf16.msra.mxu0 %v4781_v40  ;;  %v4871_v40 = vld [vmem:[%s6019_s7 + $0x1f8] ss:$48 sps:$4 sm:$0xff]  }
 0x176   : > { %3596 = vmatpush1.bf16.msra.mxu1 %v4784_v41  ;;  %3556 = vmatprep.subr.bf16.mxu0 %v4789_v42  ;;  %v4874_v41 = vld [vmem:[%s6019_s7 + $0x7f8] ss:$48 sps:$4 sm:$0xff]   ;;  %v4879_v42 = vld [vmem:[%s6019_s7 + $0x25c] ss:$48 sps:$4 sm:$0xff]  }
 0x177   : > { %3597 = vmatprep.subr.bf16.mxu1 %v4792_v43  ;;  %v4882_v43 = vld [vmem:[%s6019_s7 + $0x85c] ss:$48 sps:$4 sm:$0xff]  }
 0x179   : > { %3557 = vmatpush1.bf16.msra.mxu0 %v4787_v44  ;;  %v4877_v44 = vld [vmem:[%s6019_s7 + $0x258] ss:$48 sps:$4 sm:$0xff]  }
 0x17a   : > { %3598 = vmatpush1.bf16.msra.mxu1 %v4790_v45  ;;  %3558 = vmatprep.subr.bf16.mxu0 %v4795_v46  ;;  %v4880_v45 = vld [vmem:[%s6019_s7 + $0x858] ss:$48 sps:$4 sm:$0xff]   ;;  %v4885_v46 = vld [vmem:[%s6019_s7 + $0x2bc] ss:$48 sps:$4 sm:$0xff]  }
 0x17b   : > { %3599 = vmatprep.subr.bf16.mxu1 %v4798_v47  ;;  %v4888_v47 = vld [vmem:[%s6019_s7 + $0x8bc] ss:$48 sps:$4 sm:$0xff]  }
 0x17d   : > { %3559 = vmatpush1.bf16.msra.mxu0 %v4793_v48  ;;  %v4883_v48 = vld [vmem:[%s6019_s7 + $0x2b8] ss:$48 sps:$4 sm:$0xff]  }
 0x17e   : > { %3600 = vmatpush1.bf16.msra.mxu1 %v4796_v49  ;;  %3560 = vmatprep.subr.bf16.mxu0 %v4801_v50  ;;  %v4886_v49 = vld [vmem:[%s6019_s7 + $0x8b8] ss:$48 sps:$4 sm:$0xff]   ;;  %v4891_v50 = vld [vmem:[%s6019_s7 + $0x31c] ss:$48 sps:$4 sm:$0xff]  }
 0x17f   : > { %3601 = vmatprep.subr.bf16.mxu1 %v4804_v51  ;;  %v4894_v51 = vld [vmem:[%s6019_s7 + $0x91c] ss:$48 sps:$4 sm:$0xff]  }
 0x181   : > { %3561 = vmatpush1.bf16.msra.mxu0 %v4799_v52  ;;  %v4889_v52 = vld [vmem:[%s6019_s7 + $0x318] ss:$48 sps:$4 sm:$0xff]  }
 0x182   : > { %3602 = vmatpush1.bf16.msra.mxu1 %v4802_v53  ;;  %3562 = vmatprep.subr.bf16.mxu0 %v4807_v54  ;;  %v4892_v53 = vld [vmem:[%s6019_s7 + $0x918] ss:$48 sps:$4 sm:$0xff]   ;;  %v4897_v54 = vld [vmem:[%s6019_s7 + $0x37c] ss:$48 sps:$4 sm:$0xff]  }
 0x183   : > { %3603 = vmatprep.subr.bf16.mxu1 %v4810_v55  ;;  %v4900_v55 = vld [vmem:[%s6019_s7 + $0x97c] ss:$48 sps:$4 sm:$0xff]  }
 0x185   : > { %3563 = vmatpush1.bf16.msra.mxu0 %v4805_v56  ;;  %v4895_v56 = vld [vmem:[%s6019_s7 + $0x378] ss:$48 sps:$4 sm:$0xff]  }
 0x186   : > { %3604 = vmatpush1.bf16.msra.mxu1 %v4808_v57  ;;  %3564 = vmatprep.subr.bf16.mxu0 %v4813_v58  ;;  %v4898_v57 = vld [vmem:[%s6019_s7 + $0x978] ss:$48 sps:$4 sm:$0xff]   ;;  %v4903_v58 = vld [vmem:[%s6019_s7 + $0x3dc] ss:$48 sps:$4 sm:$0xff]  }
 0x187   : > { %3605 = vmatprep.subr.bf16.mxu1 %v4816_v59  ;;  %v4906_v59 = vld [vmem:[%s6019_s7 + $0x9dc] ss:$48 sps:$4 sm:$0xff]  }
 0x189   : > { %3565 = vmatpush1.bf16.msra.mxu0 %v4811_v60  ;;  %v4901_v60 = vld [vmem:[%s6019_s7 + $0x3d8] ss:$48 sps:$4 sm:$0xff]  }
 0x18a   : > { %3606 = vmatpush1.bf16.msra.mxu1 %v4814_v61  ;;  %3566 = vmatprep.subr.bf16.mxu0 %v4819_v62  ;;  %v4904_v61 = vld [vmem:[%s6019_s7 + $0x9d8] ss:$48 sps:$4 sm:$0xff]   ;;  %v4909_v62 = vld [vmem:[%s6019_s7 + $0x43c] ss:$48 sps:$4 sm:$0xff]  }
 0x18b   : > { %3607 = vmatprep.subr.bf16.mxu1 %v4822_v63  ;;  %v4912_v63 = vld [vmem:[%s6019_s7 + $0xa3c] ss:$48 sps:$4 sm:$0xff]  }
 0x18d   : > { %3567 = vmatpush1.bf16.msra.mxu0 %v4817_v0  ;;  %v4907_v0 = vld [vmem:[%s6019_s7 + $0x438] ss:$48 sps:$4 sm:$0xff]  }
 0x18e   : > { %3608 = vmatpush1.bf16.msra.mxu1 %v4820_v1  ;;  %3568 = vmatprep.subr.bf16.mxu0 %v4825_v4  ;;  %v4910_v1 = vld [vmem:[%s6019_s7 + $0xa38] ss:$48 sps:$4 sm:$0xff]   ;;  %v4915_v4 = vld [vmem:[%s6019_s7 + $0x49c] ss:$48 sps:$4 sm:$0xff]  }
 0x18f   : > { %3609 = vmatprep.subr.bf16.mxu1 %v4828_v5  ;;  %v4918_v5 = vld [vmem:[%s6019_s7 + $0xa9c] ss:$48 sps:$4 sm:$0xff]  }
 0x191   : > { %3569 = vmatpush1.bf16.msra.mxu0 %v4823_v6  ;;  %v4913_v6 = vld [vmem:[%s6019_s7 + $0x498] ss:$48 sps:$4 sm:$0xff]  }
 0x192   : > { %3610 = vmatpush1.bf16.msra.mxu1 %v4826_v7  ;;  %3570 = vmatprep.subr.bf16.mxu0 %v4831_v8  ;;  %v4916_v7 = vld [vmem:[%s6019_s7 + $0xa98] ss:$48 sps:$4 sm:$0xff]   ;;  %v4921_v8 = vld [vmem:[%s6019_s7 + $0x4fc] ss:$48 sps:$4 sm:$0xff]  }
 0x193   : > { %3611 = vmatprep.subr.bf16.mxu1 %v4834_v9  ;;  %v4924_v9 = vld [vmem:[%s6019_s7 + $0xafc] ss:$48 sps:$4 sm:$0xff]  }
 0x195   : > { %3571 = vmatpush1.bf16.msra.mxu0 %v4829_v12  ;;  %v4919_v12 = vld [vmem:[%s6019_s7 + $0x4f8] ss:$48 sps:$4 sm:$0xff]  }
 0x196   : > { %3612 = vmatpush1.bf16.msra.mxu1 %v4832_v13  ;;  %3572 = vmatprep.subr.bf16.mxu0 %v4837_v14  ;;  %v4922_v13 = vld [vmem:[%s6019_s7 + $0xaf8] ss:$48 sps:$4 sm:$0xff]   ;;  %v4927_v14 = vld [vmem:[%s6019_s7 + $0x55c] ss:$48 sps:$4 sm:$0xff]  }
 0x197   : > { %3613 = vmatprep.subr.bf16.mxu1 %v4840_v15  ;;  %v4930_v15 = vld [vmem:[%s6019_s7 + $0xb5c] ss:$48 sps:$4 sm:$0xff]  }
 0x199   : > { %3573 = vmatpush1.bf16.msra.mxu0 %v4835_v16  ;;  %v4925_v16 = vld [vmem:[%s6019_s7 + $0x558] ss:$48 sps:$4 sm:$0xff]  }
 0x19a   : > { %3614 = vmatpush1.bf16.msra.mxu1 %v4838_v17  ;;  %3624 = vmatprep.subr.bf16.mxu0 %v4843_v18  ;;  %v4928_v17 = vld [vmem:[%s6019_s7 + $0xb58] ss:$48 sps:$4 sm:$0xff]   ;;  %v4933_v18 = vld [vmem:[%s6019_s7 + $0x5bc] ss:$48 sps:$4 sm:$0xff]  }
 0x19b   : > { %3665 = vmatprep.subr.bf16.mxu1 %v4846_v19  ;;  %v4936_v19 = vld [vmem:[%s6019_s7 + $0xbbc] ss:$48 sps:$4 sm:$0xff]  }
 0x19c   : > { %3575 = vmatmul.mubr.bf16.vlgmr.msra.gmra.mrb[8].mxu0 %v6093_v10 }
 0x19d   : > { %3616 = vmatmul.mubr.bf16.vlgmr.msra.gmra.mrb[8].mxu1 %v6095_v11  ;;  %3625 = vmatpush1.bf16.msra.mxu0 %v4841_v20  ;;  %v4931_v20 = vld [vmem:[%s6019_s7 + $0x5b8] ss:$48 sps:$4 sm:$0xff]  }
 0x19e   : > { %3666 = vmatpush1.bf16.msra.mxu1 %v4844_v21  ;;  %3626 = vmatprep.subr.bf16.mxu0 %v4849_v22  ;;  %v4934_v21 = vld [vmem:[%s6019_s7 + $0xbb8] ss:$48 sps:$4 sm:$0xff]   ;;  %v4939_v22 = vld [vmem:[%s6019_s7 + $0x24] ss:$48 sps:$4 sm:$0xff]  }
 0x19f   : > { %3667 = vmatprep.subr.bf16.mxu1 %v4852_v23  ;;  %3656 = vmatprep.mubr.bf16.mxu0 %v6013_v2  ;;  %v4942_v23 = vld [vmem:[%s6019_s7 + $0x624] ss:$48 sps:$4 sm:$0xff]  }
 0x1a0   : > { %3697 = vmatprep.mubr.bf16.mxu1 %v6015_v3 }
 0x1a1   : > { %3627 = vmatpush1.bf16.msra.mxu0 %v4847_v24  ;;  %v4937_v24 = vld [vmem:[%s6019_s7 + $0x20] ss:$48 sps:$4 sm:$0xff]  }
 0x1a2   : > { %3668 = vmatpush1.bf16.msra.mxu1 %v4850_v25  ;;  %3628 = vmatprep.subr.bf16.mxu0 %v4855_v26  ;;  %v4940_v25 = vld [vmem:[%s6019_s7 + $0x620] ss:$48 sps:$4 sm:$0xff]   ;;  %v4945_v26 = vld [vmem:[%s6019_s7 + $0x84] ss:$48 sps:$4 sm:$0xff]  }
 0x1a3   : > { %3669 = vmatprep.subr.bf16.mxu1 %v4858_v27  ;;  %v4948_v27 = vld [vmem:[%s6019_s7 + $0x684] ss:$48 sps:$4 sm:$0xff]  }
 0x1a5   : > { %3629 = vmatpush1.bf16.msra.mxu0 %v4853_v28  ;;  %v4943_v28 = vld [vmem:[%s6019_s7 + $0x80] ss:$48 sps:$4 sm:$0xff]  }
 0x1a6   : > { %3670 = vmatpush1.bf16.msra.mxu1 %v4856_v29  ;;  %3630 = vmatprep.subr.bf16.mxu0 %v4861_v30  ;;  %v4946_v29 = vld [vmem:[%s6019_s7 + $0x680] ss:$48 sps:$4 sm:$0xff]   ;;  %v4951_v30 = vld [vmem:[%s6019_s7 + $0xe4] ss:$48 sps:$4 sm:$0xff]  }
 0x1a7   : > { %3671 = vmatprep.subr.bf16.mxu1 %v4864_v31  ;;  %v4954_v31 = vld [vmem:[%s6019_s7 + $0x6e4] ss:$48 sps:$4 sm:$0xff]  }
 0x1a9   : > { %3631 = vmatpush1.bf16.msra.mxu0 %v4859_v32  ;;  %v4949_v32 = vld [vmem:[%s6019_s7 + $0xe0] ss:$48 sps:$4 sm:$0xff]  }
 0x1aa   : > { %3672 = vmatpush1.bf16.msra.mxu1 %v4862_v33  ;;  %3632 = vmatprep.subr.bf16.mxu0 %v4867_v34  ;;  %v4952_v33 = vld [vmem:[%s6019_s7 + $0x6e0] ss:$48 sps:$4 sm:$0xff]   ;;  %v4957_v34 = vld [vmem:[%s6019_s7 + $0x144] ss:$48 sps:$4 sm:$0xff]  }
 0x1ab   : > { %3673 = vmatprep.subr.bf16.mxu1 %v4870_v35  ;;  %v4960_v35 = vld [vmem:[%s6019_s7 + $0x744] ss:$48 sps:$4 sm:$0xff]  }
 0x1ad   : > { %3633 = vmatpush1.bf16.msra.mxu0 %v4865_v36  ;;  %v3913_v36 = vlaneseq }
 0x1ae   : > { %3674 = vmatpush1.bf16.msra.mxu1 %v4868_v37  ;;  %3634 = vmatprep.subr.bf16.mxu0 %v4873_v38  ;;  %v4955_v37 = vld [vmem:[%s6019_s7 + $0x140] ss:$48 sps:$4 sm:$0xff]  }
 0x1af   : > { %3675 = vmatprep.subr.bf16.mxu1 %v4876_v39  ;;  %v4958_v38 = vld [vmem:[%s6019_s7 + $0x740] ss:$48 sps:$4 sm:$0xff]   ;;  %v4963_v39 = vld [vmem:[%s6019_s7 + $0x1a4] ss:$48 sps:$4 sm:$0xff]  }
 0x1b1   : > { %3635 = vmatpush1.bf16.msra.mxu0 %v4871_v40  ;;  %v4966_v40 = vld [vmem:[%s6019_s7 + $0x7a4] ss:$48 sps:$4 sm:$0xff]  }
 0x1b2   : > { %3676 = vmatpush1.bf16.msra.mxu1 %v4874_v41  ;;  %3636 = vmatprep.subr.bf16.mxu0 %v4879_v42  ;;  %v6324_v41 = vshrl.u32 %v3913_v36, 7  ;;  %v4961_v42 = vld [vmem:[%s6019_s7 + $0x1a0] ss:$48 sps:$4 sm:$0xff]  }
 0x1b3   : > { %3677 = vmatprep.subr.bf16.mxu1 %v4882_v43  ;;  %v4964_v43 = vld [vmem:[%s6019_s7 + $0x7a0] ss:$48 sps:$4 sm:$0xff]  }
 0x1b4   : > { %v5018_v36 = vld [vmem:[%s6019_s7 + $0xb00] ss:$48 sps:$4 sm:$0xff]  }
 0x1b5   : > { %3637 = vmatpush1.bf16.msra.mxu0 %v4877_v44  ;;  %v3915_v44 = vsub.s32 0, %v6324_v41 }
 0x1b6   : > { %3678 = vmatpush1.bf16.msra.mxu1 %v4880_v45  ;;  %3638 = vmatprep.subr.bf16.mxu0 %v4885_v46  ;;  %v4969_v45 = vld [vmem:[%s6019_s7 + $0x204] ss:$48 sps:$4 sm:$0xff]  }
 0x1b7   : > { %3679 = vmatprep.subr.bf16.mxu1 %v4888_v47  ;;  %v4972_v46 = vld [vmem:[%s6019_s7 + $0x804] ss:$48 sps:$4 sm:$0xff]  }
 0x1b8   : > { %v6338_v47 = vld [vmem:[%s6330_s19] sm:$0xff] }
 0x1b9   : > { %3639 = vmatpush1.bf16.msra.mxu0 %v4883_v48  ;;  %v3919_v48 = vsub.s32 1, %v6324_v41 }
 0x1ba   : > { %3680 = vmatpush1.bf16.msra.mxu1 %v4886_v49  ;;  %3640 = vmatprep.subr.bf16.mxu0 %v4891_v50  ;;  %v4967_v49 = vld [vmem:[%s6019_s7 + $0x200] ss:$48 sps:$4 sm:$0xff]  }
 0x1bb   : > { %3681 = vmatprep.subr.bf16.mxu1 %v4894_v51  ;;  %v4970_v50 = vld [vmem:[%s6019_s7 + $0x800] ss:$48 sps:$4 sm:$0xff]   ;;  %v3916_v51 = vrot.slane %v6338_v47, %v3915_v44 }
 0x1bd   : > { %3641 = vmatpush1.bf16.msra.mxu0 %v4889_v52  ;;  %v4975_v52 = vld [vmem:[%s6019_s7 + $0x264] ss:$48 sps:$4 sm:$0xff]  }
 0x1be   : > { %3682 = vmatpush1.bf16.msra.mxu1 %v4892_v53  ;;  %3642 = vmatprep.subr.bf16.mxu0 %v4897_v54  ;;  %v4978_v53 = vld [vmem:[%s6019_s7 + $0x864] ss:$48 sps:$4 sm:$0xff]  }
 0x1bf   : > { %3683 = vmatprep.subr.bf16.mxu1 %v4900_v55 }
 0x1c1   : > { %3643 = vmatpush1.bf16.msra.mxu0 %v4895_v56  ;;  %v3920_v56 = vrot.slane %v6338_v47, %v3919_v48 }
 0x1c2   : > { %3684 = vmatpush1.bf16.msra.mxu1 %v4898_v57  ;;  %3644 = vmatprep.subr.bf16.mxu0 %v4903_v58 }
 0x1c3   : > { %3685 = vmatprep.subr.bf16.mxu1 %v4906_v59 }
 0x1c5   : > { %3645 = vmatpush1.bf16.msra.mxu0 %v4901_v60 }
 0x1c6   : > { %3686 = vmatpush1.bf16.msra.mxu1 %v4904_v61  ;;  %3646 = vmatprep.subr.bf16.mxu0 %v4909_v62 }
 0x1c7   : > { %3687 = vmatprep.subr.bf16.mxu1 %v4912_v63  ;;  %v4973_v63 = vld [vmem:[%s6019_s7 + $0x260] ss:$48 sps:$4 sm:$0xff]  }
 0x1c9   : > { %3647 = vmatpush1.bf16.msra.mxu0 %v4907_v0  ;;  %v4976_v0 = vld [vmem:[%s6019_s7 + $0x860] ss:$48 sps:$4 sm:$0xff]  }
 0x1ca   : > { %3688 = vmatpush1.bf16.msra.mxu1 %v4910_v1  ;;  %3648 = vmatprep.subr.bf16.mxu0 %v4915_v4 }
 0x1cb   : > { %3689 = vmatprep.subr.bf16.mxu1 %v4918_v5 }
 0x1cd   : > { %3649 = vmatpush1.bf16.msra.mxu0 %v4913_v6  ;;  %v4981_v6 = vld [vmem:[%s6019_s7 + $0x2c4] ss:$48 sps:$4 sm:$0xff]  }
 0x1ce   : > { %3690 = vmatpush1.bf16.msra.mxu1 %v4916_v7  ;;  %3650 = vmatprep.subr.bf16.mxu0 %v4921_v8  ;;  %v4984_v7 = vld [vmem:[%s6019_s7 + $0x8c4] ss:$48 sps:$4 sm:$0xff]  }
 0x1cf   : > { %3691 = vmatprep.subr.bf16.mxu1 %v4924_v9  ;;  %v4979_v9 = vld [vmem:[%s6019_s7 + $0x2c0] ss:$48 sps:$4 sm:$0xff]  }
 0x1d1   : > { %3651 = vmatpush1.bf16.msra.mxu0 %v4919_v12  ;;  %v4982_v12 = vld [vmem:[%s6019_s7 + $0x8c0] ss:$48 sps:$4 sm:$0xff]  }
 0x1d2   : > { %3692 = vmatpush1.bf16.msra.mxu1 %v4922_v13  ;;  %3652 = vmatprep.subr.bf16.mxu0 %v4927_v14  ;;  %v4987_v13 = vld [vmem:[%s6019_s7 + $0x324] ss:$48 sps:$4 sm:$0xff]  }
 0x1d3   : > { %3693 = vmatprep.subr.bf16.mxu1 %v4930_v15  ;;  %v4990_v14 = vld [vmem:[%s6019_s7 + $0x924] ss:$48 sps:$4 sm:$0xff]   ;;  %v4985_v15 = vld [vmem:[%s6019_s7 + $0x320] ss:$48 sps:$4 sm:$0xff]  }
 0x1d5   : > { %3653 = vmatpush1.bf16.msra.mxu0 %v4925_v16  ;;  %v4988_v16 = vld [vmem:[%s6019_s7 + $0x920] ss:$48 sps:$4 sm:$0xff]  }
 0x1d6   : > { %3694 = vmatpush1.bf16.msra.mxu1 %v4928_v17  ;;  %3654 = vmatprep.subr.bf16.mxu0 %v4933_v18  ;;  %v4993_v17 = vld [vmem:[%s6019_s7 + $0x384] ss:$48 sps:$4 sm:$0xff]  }
 0x1d7   : > { %3695 = vmatprep.subr.bf16.mxu1 %v4936_v19  ;;  %v4996_v18 = vld [vmem:[%s6019_s7 + $0x984] ss:$48 sps:$4 sm:$0xff]   ;;  %v4991_v19 = vld [vmem:[%s6019_s7 + $0x380] ss:$48 sps:$4 sm:$0xff]  }
 0x1d9   : > { %3655 = vmatpush1.bf16.msra.mxu0 %v4931_v20  ;;  %v4994_v20 = vld [vmem:[%s6019_s7 + $0x980] ss:$48 sps:$4 sm:$0xff]  }
 0x1da   : > { %3696 = vmatpush1.bf16.msra.mxu1 %v4934_v21  ;;  %3706 = vmatprep.subr.bf16.mxu0 %v4939_v22  ;;  %v4999_v21 = vld [vmem:[%s6019_s7 + $0x3e4] ss:$48 sps:$4 sm:$0xff]  }
 0x1db   : > { %3747 = vmatprep.subr.bf16.mxu1 %v4942_v23  ;;  %v5002_v22 = vld [vmem:[%s6019_s7 + $0x9e4] ss:$48 sps:$4 sm:$0xff]   ;;  %v4997_v23 = vld [vmem:[%s6019_s7 + $0x3e0] ss:$48 sps:$4 sm:$0xff]  }
 0x1dc   : > { %3657 = vmatmul.mubr.bf16.vlgmr.msra.gmra.mrb[12].mxu0 %v6093_v10 }
 0x1dd   : > { %3698 = vmatmul.mubr.bf16.vlgmr.msra.gmra.mrb[12].mxu1 %v6095_v11  ;;  %3707 = vmatpush1.bf16.msra.mxu0 %v4937_v24  ;;  %v5000_v24 = vld [vmem:[%s6019_s7 + $0x9e0] ss:$48 sps:$4 sm:$0xff]  }
 0x1de   : > { %3748 = vmatpush1.bf16.msra.mxu1 %v4940_v25  ;;  %3708 = vmatprep.subr.bf16.mxu0 %v4945_v26  ;;  %v5005_v25 = vld [vmem:[%s6019_s7 + $0x444] ss:$48 sps:$4 sm:$0xff]  }
 0x1df   : > { %3749 = vmatprep.subr.bf16.mxu1 %v4948_v27  ;;  %3738 = vmatprep.mubr.bf16.mxu0 %v6013_v2  ;;  %v5008_v26 = vld [vmem:[%s6019_s7 + $0xa44] ss:$48 sps:$4 sm:$0xff]   ;;  %v5003_v27 = vld [vmem:[%s6019_s7 + $0x440] ss:$48 sps:$4 sm:$0xff]  }
 0x1e0   : > { %3779 = vmatprep.mubr.bf16.mxu1 %v6015_v3 }
 0x1e1   : > { %3709 = vmatpush1.bf16.msra.mxu0 %v4943_v28  ;;  %v5006_v28 = vld [vmem:[%s6019_s7 + $0xa40] ss:$48 sps:$4 sm:$0xff]  }
 0x1e2   : > { %3750 = vmatpush1.bf16.msra.mxu1 %v4946_v29  ;;  %3710 = vmatprep.subr.bf16.mxu0 %v4951_v30  ;;  %v5011_v29 = vld [vmem:[%s6019_s7 + $0x4a4] ss:$48 sps:$4 sm:$0xff]  }
 0x1e3   : > { %3751 = vmatprep.subr.bf16.mxu1 %v4954_v31  ;;  %v5014_v30 = vld [vmem:[%s6019_s7 + $0xaa4] ss:$48 sps:$4 sm:$0xff]   ;;  %v5009_v31 = vld [vmem:[%s6019_s7 + $0x4a0] ss:$48 sps:$4 sm:$0xff]  }
 0x1e5   : > { %3711 = vmatpush1.bf16.msra.mxu0 %v4949_v32  ;;  %v5012_v32 = vld [vmem:[%s6019_s7 + $0xaa0] ss:$48 sps:$4 sm:$0xff]  }
 0x1e6   : > { %3752 = vmatpush1.bf16.msra.mxu1 %v4952_v33  ;;  %3712 = vmatprep.subr.bf16.mxu0 %v4957_v34  ;;  %v5017_v33 = vld [vmem:[%s6019_s7 + $0x504] ss:$48 sps:$4 sm:$0xff]  }
 0x1e7   : > { %3753 = vmatprep.subr.bf16.mxu1 %v4960_v35  ;;  %v5020_v34 = vld [vmem:[%s6019_s7 + $0xb04] ss:$48 sps:$4 sm:$0xff]   ;;  %v5015_v35 = vld [vmem:[%s6019_s7 + $0x500] ss:$48 sps:$4 sm:$0xff]  }
 0x1e9   : > { %3713 = vmatpush1.bf16.msra.mxu0 %v4955_v37  ;;  %v5023_v37 = vld [vmem:[%s6019_s7 + $0x564] ss:$48 sps:$4 sm:$0xff]  }
 0x1ea   : > { %3754 = vmatpush1.bf16.msra.mxu1 %v4958_v38  ;;  %3714 = vmatprep.subr.bf16.mxu0 %v4963_v39  ;;  %v5026_v38 = vld [vmem:[%s6019_s7 + $0xb64] ss:$48 sps:$4 sm:$0xff]   ;;  %v5021_v39 = vld [vmem:[%s6019_s7 + $0x560] ss:$48 sps:$4 sm:$0xff]  }
 0x1eb   : > { %3755 = vmatprep.subr.bf16.mxu1 %v4966_v40  ;;  %v5024_v40 = vld [vmem:[%s6019_s7 + $0xb60] ss:$48 sps:$4 sm:$0xff]  }
 0x1ed   : > { %3715 = vmatpush1.bf16.msra.mxu0 %v4961_v42  ;;  %v5029_v42 = vld [vmem:[%s6019_s7 + $0x5c4] ss:$48 sps:$4 sm:$0xff]  }
 0x1ee   : > { %3756 = vmatpush1.bf16.msra.mxu1 %v4964_v43  ;;  %3716 = vmatprep.subr.bf16.mxu0 %v4969_v45  ;;  %v5032_v43 = vld [vmem:[%s6019_s7 + $0xbc4] ss:$48 sps:$4 sm:$0xff]   ;;  %v5027_v45 = vld [vmem:[%s6019_s7 + $0x5c0] ss:$48 sps:$4 sm:$0xff]  }
 0x1ef   : > { %3757 = vmatprep.subr.bf16.mxu1 %v4972_v46  ;;  %v3412_v54 = vpop.f32.mrb[0].mxu0  ;;  %v5030_v46 = vld [vmem:[%s6019_s7 + $0xbc0] ss:$48 sps:$4 sm:$0xff]  }
 0x1f0   : > { %v3453_v55 = vpop.f32.mrb[0].mxu1  ;;  %v3414_v58 = vpop.f32.mrb[1].mxu0 }
 0x1f1   : > { %v3454_v57 = vadd.f32 %v3453_v55, %v3412_v54  ;;  %v3455_v59 = vpop.f32.mrb[1].mxu1  ;;  %v3416_v61 = vpop.f32.mrb[2].mxu0  ;;  %3717 = vmatpush1.bf16.msra.mxu0 %v4967_v49  ;;  %v5035_v49 = vld [vmem:[%s6019_s7 + $0x2c] ss:$48 sps:$4 sm:$0xff]   ;;  %v5039_v55 = vld [vmem:[%s6019_s7 + $0x88] ss:$48 sps:$4 sm:$0xff]  }
 0x1f2   : > { %v3456_v60 = vadd.f32 %v3455_v59, %v3414_v58  ;;  %v3457_v62 = vpop.f32.mrb[2].mxu1  ;;  %3758 = vmatpush1.bf16.msra.mxu1 %v4970_v50  ;;  %v3417_v4 = vpop.f32.mrb[3].mxu0  ;;  %3718 = vmatprep.subr.bf16.mxu0 %v4975_v52  ;;  %v5038_v50 = vld [vmem:[%s6019_s7 + $0x62c] ss:$48 sps:$4 sm:$0xff]   ;;  %v5036_v52 = vld [vmem:[%s6019_s7 + $0x628] ss:$48 sps:$4 sm:$0xff]  }
 0x1f3   : > { %v3973_v1 = vadd.f32 %v3916_v51, %v3454_v57  ;;  %v3458_v5 = vpop.f32.mrb[3].mxu1  ;;  %3759 = vmatprep.subr.bf16.mxu1 %v4978_v53  ;;  %v5033_v51 = vld [vmem:[%s6019_s7 + $0x28] ss:$48 sps:$4 sm:$0xff]   ;;  %v5041_v53 = vld [vmem:[%s6019_s7 + $0x8c] ss:$48 sps:$4 sm:$0xff]  }
 0x1f4   : > { %v3974_v8 = vadd.f32 %v3920_v56, %v3456_v60  ;;  %v5044_v54 = vld [vmem:[%s6019_s7 + $0x68c] ss:$48 sps:$4 sm:$0xff]   ;;  %v5042_v56 = vld [vmem:[%s6019_s7 + $0x688] ss:$48 sps:$4 sm:$0xff]   ;;  %v3923_v5 = vsub.s32 2, %v6324_v41 }
 0x1f5   : > { %3985 = vst [vmem:[%s6355_s24] sm:$0xff] %v3973_v1  ;;  %3719 = vmatpush1.bf16.msra.mxu0 %v4973_v63  ;;  %v5047_v57 = vld [vmem:[%s6019_s7 + $0xec] ss:$48 sps:$4 sm:$0xff]   ;;  %v5045_v59 = vld [vmem:[%s6019_s7 + $0xe8] ss:$48 sps:$4 sm:$0xff]  }
 0x1f6   : > { %3986 = vst [vmem:[%s6355_s24 + $0x8] sm:$0xff] %v3974_v8  ;;  %3760 = vmatpush1.bf16.msra.mxu1 %v4976_v0  ;;  %3720 = vmatprep.subr.bf16.mxu0 %v4981_v6  ;;  %v5050_v58 = vld [vmem:[%s6019_s7 + $0x6ec] ss:$48 sps:$4 sm:$0xff]   ;;  %v5048_v60 = vld [vmem:[%s6019_s7 + $0x6e8] ss:$48 sps:$4 sm:$0xff]   ;;  %v3927_v8 = vsub.s32 3, %v6324_v41 }
 0x1f7   : > { %3761 = vmatprep.subr.bf16.mxu1 %v4984_v7  ;;  %v5053_v61 = vld [vmem:[%s6019_s7 + $0x14c] ss:$48 sps:$4 sm:$0xff]   ;;  %v5051_v63 = vld [vmem:[%s6019_s7 + $0x148] ss:$48 sps:$4 sm:$0xff]  }
 0x1f8   : > { %v5056_v62 = vld [vmem:[%s6019_s7 + $0x74c] ss:$48 sps:$4 sm:$0xff]   ;;  %v5057_v1 = vld [vmem:[%s6019_s7 + $0x1a8] ss:$48 sps:$4 sm:$0xff]  }
 0x1f9   : > { %3721 = vmatpush1.bf16.msra.mxu0 %v4979_v9  ;;  %v5062_v0 = vld [vmem:[%s6019_s7 + $0x7ac] ss:$48 sps:$4 sm:$0xff]   ;;  %v5060_v4 = vld [vmem:[%s6019_s7 + $0x7a8] ss:$48 sps:$4 sm:$0xff]  }
 0x1fa   : > { %3762 = vmatpush1.bf16.msra.mxu1 %v4982_v12  ;;  %3722 = vmatprep.subr.bf16.mxu0 %v4987_v13  ;;  %v5065_v6 = vld [vmem:[%s6019_s7 + $0x20c] ss:$48 sps:$4 sm:$0xff]   ;;  %v5063_v9 = vld [vmem:[%s6019_s7 + $0x208] ss:$48 sps:$4 sm:$0xff]   ;;  %v3924_v13 = vrot.slane %v6338_v47, %v3923_v5 }
 0x1fb   : > { %3763 = vmatprep.subr.bf16.mxu1 %v4990_v14  ;;  %v5068_v7 = vld [vmem:[%s6019_s7 + $0x80c] ss:$48 sps:$4 sm:$0xff]   ;;  %v5066_v12 = vld [vmem:[%s6019_s7 + $0x808] ss:$48 sps:$4 sm:$0xff]  }
 0x1fc   : > { %v5071_v14 = vld [vmem:[%s6019_s7 + $0x26c] ss:$48 sps:$4 sm:$0xff]  }
 0x1fd   : > { %3723 = vmatpush1.bf16.msra.mxu0 %v4985_v15  ;;  %v5074_v15 = vld [vmem:[%s6019_s7 + $0x86c] ss:$48 sps:$4 sm:$0xff]  }
 0x1fe   : > { %3764 = vmatpush1.bf16.msra.mxu1 %v4988_v16  ;;  %3724 = vmatprep.subr.bf16.mxu0 %v4993_v17 }
 0x1ff   : > { %3765 = vmatprep.subr.bf16.mxu1 %v4996_v18  ;;  %v3928_v18 = vrot.slane %v6338_v47, %v3927_v8 }
 0x201   : > { %3725 = vmatpush1.bf16.msra.mxu0 %v4991_v19 }
 0x202   : > { %3766 = vmatpush1.bf16.msra.mxu1 %v4994_v20  ;;  %3726 = vmatprep.subr.bf16.mxu0 %v4999_v21 }
 0x203   : > { %3767 = vmatprep.subr.bf16.mxu1 %v5002_v22 }
 0x205   : > { %3727 = vmatpush1.bf16.msra.mxu0 %v4997_v23 }
 0x206   : > { %3768 = vmatpush1.bf16.msra.mxu1 %v5000_v24  ;;  %3728 = vmatprep.subr.bf16.mxu0 %v5005_v25  ;;  %v5069_v25 = vld [vmem:[%s6019_s7 + $0x268] ss:$48 sps:$4 sm:$0xff]  }
 0x207   : > { %3769 = vmatprep.subr.bf16.mxu1 %v5008_v26  ;;  %v5072_v26 = vld [vmem:[%s6019_s7 + $0x868] ss:$48 sps:$4 sm:$0xff]  }
 0x209   : > { %3729 = vmatpush1.bf16.msra.mxu0 %v5003_v27 }
 0x20a   : > { %3770 = vmatpush1.bf16.msra.mxu1 %v5006_v28  ;;  %3730 = vmatprep.subr.bf16.mxu0 %v5011_v29 }
 0x20b   : > { %3771 = vmatprep.subr.bf16.mxu1 %v5014_v30  ;;  %v5077_v30 = vld [vmem:[%s6019_s7 + $0x2cc] ss:$48 sps:$4 sm:$0xff]  }
 0x20d   : > { %3731 = vmatpush1.bf16.msra.mxu0 %v5009_v31  ;;  %v5080_v31 = vld [vmem:[%s6019_s7 + $0x8cc] ss:$48 sps:$4 sm:$0xff]  }
 0x20e   : > { %3772 = vmatpush1.bf16.msra.mxu1 %v5012_v32  ;;  %3732 = vmatprep.subr.bf16.mxu0 %v5017_v33  ;;  %v5075_v33 = vld [vmem:[%s6019_s7 + $0x2c8] ss:$48 sps:$4 sm:$0xff]  }
 0x20f   : > { %3773 = vmatprep.subr.bf16.mxu1 %v5020_v34  ;;  %v5078_v34 = vld [vmem:[%s6019_s7 + $0x8c8] ss:$48 sps:$4 sm:$0xff]  }
 0x211   : > { %3733 = vmatpush1.bf16.msra.mxu0 %v5015_v35  ;;  %v5083_v35 = vld [vmem:[%s6019_s7 + $0x32c] ss:$48 sps:$4 sm:$0xff]  }
 0x212   : > { %3774 = vmatpush1.bf16.msra.mxu1 %v5018_v36  ;;  %3734 = vmatprep.subr.bf16.mxu0 %v5023_v37  ;;  %v5086_v36 = vld [vmem:[%s6019_s7 + $0x92c] ss:$48 sps:$4 sm:$0xff]   ;;  %v5081_v37 = vld [vmem:[%s6019_s7 + $0x328] ss:$48 sps:$4 sm:$0xff]  }
 0x213   : > { %3775 = vmatprep.subr.bf16.mxu1 %v5026_v38  ;;  %v5084_v38 = vld [vmem:[%s6019_s7 + $0x928] ss:$48 sps:$4 sm:$0xff]  }
 0x215   : > { %3735 = vmatpush1.bf16.msra.mxu0 %v5021_v39  ;;  %v5089_v39 = vld [vmem:[%s6019_s7 + $0x38c] ss:$48 sps:$4 sm:$0xff]  }
 0x216   : > { %3776 = vmatpush1.bf16.msra.mxu1 %v5024_v40  ;;  %3736 = vmatprep.subr.bf16.mxu0 %v5029_v42  ;;  %v5092_v40 = vld [vmem:[%s6019_s7 + $0x98c] ss:$48 sps:$4 sm:$0xff]   ;;  %v5087_v42 = vld [vmem:[%s6019_s7 + $0x388] ss:$48 sps:$4 sm:$0xff]  }
 0x217   : > { %3777 = vmatprep.subr.bf16.mxu1 %v5032_v43  ;;  %v5090_v43 = vld [vmem:[%s6019_s7 + $0x988] ss:$48 sps:$4 sm:$0xff]  }
 0x219   : > { %3737 = vmatpush1.bf16.msra.mxu0 %v5027_v45  ;;  %v5095_v45 = vld [vmem:[%s6019_s7 + $0x3ec] ss:$48 sps:$4 sm:$0xff]  }
 0x21a   : > { %3778 = vmatpush1.bf16.msra.mxu1 %v5030_v46  ;;  %3788 = vmatprep.subr.bf16.mxu0 %v5035_v49  ;;  %v5098_v46 = vld [vmem:[%s6019_s7 + $0x9ec] ss:$48 sps:$4 sm:$0xff]   ;;  %v5093_v49 = vld [vmem:[%s6019_s7 + $0x3e8] ss:$48 sps:$4 sm:$0xff]  }
 0x21b   : > { %3829 = vmatprep.subr.bf16.mxu1 %v5038_v50  ;;  %v5096_v50 = vld [vmem:[%s6019_s7 + $0x9e8] ss:$48 sps:$4 sm:$0xff]  }
 0x21c   : > { %3739 = vmatmul.mubr.bf16.vlgmr.msra.gmra.mrb[16].mxu0 %v6093_v10 }
 0x21d   : > { %3780 = vmatmul.mubr.bf16.vlgmr.msra.gmra.mrb[16].mxu1 %v6095_v11  ;;  %3789 = vmatpush1.bf16.msra.mxu0 %v5033_v51  ;;  %v5101_v51 = vld [vmem:[%s6019_s7 + $0x44c] ss:$48 sps:$4 sm:$0xff]  }
 0x21e   : > { %3830 = vmatpush1.bf16.msra.mxu1 %v5036_v52  ;;  %3790 = vmatprep.subr.bf16.mxu0 %v5041_v53  ;;  %v5104_v52 = vld [vmem:[%s6019_s7 + $0xa4c] ss:$48 sps:$4 sm:$0xff]   ;;  %v5099_v53 = vld [vmem:[%s6019_s7 + $0x448] ss:$48 sps:$4 sm:$0xff]  }
 0x21f   : > { %3831 = vmatprep.subr.bf16.mxu1 %v5044_v54  ;;  %3820 = vmatprep.mubr.bf16.mxu0 %v6013_v2  ;;  %v5054_v2 = vld [vmem:[%s6019_s7 + $0x748] ss:$48 sps:$4 sm:$0xff]  }
 0x220   : > { %3861 = vmatprep.mubr.bf16.mxu1 %v6015_v3  ;;  %v5059_v3 = vld [vmem:[%s6019_s7 + $0x1ac] ss:$48 sps:$4 sm:$0xff]   ;;  %v5102_v54 = vld [vmem:[%s6019_s7 + $0xa48] ss:$48 sps:$4 sm:$0xff]  }
 0x221   : > { %3791 = vmatpush1.bf16.msra.mxu0 %v5039_v55  ;;  %v5107_v55 = vld [vmem:[%s6019_s7 + $0x4ac] ss:$48 sps:$4 sm:$0xff]  }
 0x222   : > { %3832 = vmatpush1.bf16.msra.mxu1 %v5042_v56  ;;  %3792 = vmatprep.subr.bf16.mxu0 %v5047_v57  ;;  %v5110_v56 = vld [vmem:[%s6019_s7 + $0xaac] ss:$48 sps:$4 sm:$0xff]   ;;  %v5105_v57 = vld [vmem:[%s6019_s7 + $0x4a8] ss:$48 sps:$4 sm:$0xff]  }
 0x223   : > { %3833 = vmatprep.subr.bf16.mxu1 %v5050_v58  ;;  %v5108_v58 = vld [vmem:[%s6019_s7 + $0xaa8] ss:$48 sps:$4 sm:$0xff]  }
 0x225   : > { %3793 = vmatpush1.bf16.msra.mxu0 %v5045_v59  ;;  %v5113_v59 = vld [vmem:[%s6019_s7 + $0x50c] ss:$48 sps:$4 sm:$0xff]  }
 0x226   : > { %3834 = vmatpush1.bf16.msra.mxu1 %v5048_v60  ;;  %3794 = vmatprep.subr.bf16.mxu0 %v5053_v61  ;;  %v5116_v60 = vld [vmem:[%s6019_s7 + $0xb0c] ss:$48 sps:$4 sm:$0xff]   ;;  %v5111_v61 = vld [vmem:[%s6019_s7 + $0x508] ss:$48 sps:$4 sm:$0xff]  }
 0x227   : > { %3835 = vmatprep.subr.bf16.mxu1 %v5056_v62  ;;  %v5114_v62 = vld [vmem:[%s6019_s7 + $0xb08] ss:$48 sps:$4 sm:$0xff]  }
 0x229   : > { %3795 = vmatpush1.bf16.msra.mxu0 %v5051_v63  ;;  %v5119_v63 = vld [vmem:[%s6019_s7 + $0x56c] ss:$48 sps:$4 sm:$0xff]  }
 0x22a   : > { %3836 = vmatpush1.bf16.msra.mxu1 %v5054_v2  ;;  %3796 = vmatprep.subr.bf16.mxu0 %v5059_v3  ;;  %v5122_v2 = vld [vmem:[%s6019_s7 + $0xb6c] ss:$48 sps:$4 sm:$0xff]   ;;  %v5117_v3 = vld [vmem:[%s6019_s7 + $0x568] ss:$48 sps:$4 sm:$0xff]  }
 0x22b   : > { %3837 = vmatprep.subr.bf16.mxu1 %v5062_v0  ;;  %v5120_v0 = vld [vmem:[%s6019_s7 + $0xb68] ss:$48 sps:$4 sm:$0xff]  }
 0x22d   : > { %3797 = vmatpush1.bf16.msra.mxu0 %v5057_v1  ;;  %v5125_v1 = vld [vmem:[%s6019_s7 + $0x5cc] ss:$48 sps:$4 sm:$0xff]  }
 0x22e   : > { %3838 = vmatpush1.bf16.msra.mxu1 %v5060_v4  ;;  %3798 = vmatprep.subr.bf16.mxu0 %v5065_v6  ;;  %v5128_v4 = vld [vmem:[%s6019_s7 + $0xbcc] ss:$48 sps:$4 sm:$0xff]   ;;  %v5123_v6 = vld [vmem:[%s6019_s7 + $0x5c8] ss:$48 sps:$4 sm:$0xff]  }
 0x22f   : > { %3839 = vmatprep.subr.bf16.mxu1 %v5068_v7  ;;  %v3494_v16 = vpop.f32.mrb[4].mxu0  ;;  %v5126_v7 = vld [vmem:[%s6019_s7 + $0xbc8] ss:$48 sps:$4 sm:$0xff]  }
 0x230   : > { %v3535_v17 = vpop.f32.mrb[4].mxu1  ;;  %v3496_v20 = vpop.f32.mrb[5].mxu0 }
 0x231   : > { %v3536_v19 = vadd.f32 %v3535_v17, %v3494_v16  ;;  %v3537_v21 = vpop.f32.mrb[5].mxu1  ;;  %v3498_v23 = vpop.f32.mrb[6].mxu0  ;;  %3799 = vmatpush1.bf16.msra.mxu0 %v5063_v9  ;;  %v3931_v9 = vsub.s32 4, %v6324_v41 }
 0x232   : > { %v3538_v22 = vadd.f32 %v3537_v21, %v3496_v20  ;;  %v3539_v24 = vpop.f32.mrb[6].mxu1  ;;  %3840 = vmatpush1.bf16.msra.mxu1 %v5066_v12  ;;  %v3499_v28 = vpop.f32.mrb[7].mxu0  ;;  %3800 = vmatprep.subr.bf16.mxu0 %v5071_v14  ;;  %v3935_v12 = vsub.s32 5, %v6324_v41 }
 0x233   : > { %v3975_v27 = vadd.f32 %v3924_v13, %v3536_v19  ;;  %v3540_v29 = vpop.f32.mrb[7].mxu1  ;;  %3841 = vmatprep.subr.bf16.mxu1 %v5074_v15  ;;  %v3932_v13 = vrot.slane %v6338_v47, %v3931_v9 }
 0x234   : > { %v3976_v32 = vadd.f32 %v3928_v18, %v3538_v22  ;;  %v3936_v16 = vrot.slane %v6338_v47, %v3935_v12 }
 0x235   : > { %3987 = vst [vmem:[%s6355_s24 + $0x10] sm:$0xff] %v3975_v27  ;;  %3801 = vmatpush1.bf16.msra.mxu0 %v5069_v25  ;;  %v3939_v25 = vsub.s32 6, %v6324_v41 }
 0x236   : > { %3988 = vst [vmem:[%s6355_s24 + $0x18] sm:$0xff] %v3976_v32  ;;  %3842 = vmatpush1.bf16.msra.mxu1 %v5072_v26  ;;  %3802 = vmatprep.subr.bf16.mxu0 %v5077_v30  ;;  %v3943_v26 = vsub.s32 7, %v6324_v41 }
 0x237   : > { %3843 = vmatprep.subr.bf16.mxu1 %v5080_v31  ;;  %v3940_v27 = vrot.slane %v6338_v47, %v3939_v25 }
 0x238   : > { %v3944_v30 = vrot.slane %v6338_v47, %v3943_v26 }
 0x239   : > { %3803 = vmatpush1.bf16.msra.mxu0 %v5075_v33 }
 0x23a   : > { %3844 = vmatpush1.bf16.msra.mxu1 %v5078_v34  ;;  %3804 = vmatprep.subr.bf16.mxu0 %v5083_v35 }
 0x23b   : > { %3845 = vmatprep.subr.bf16.mxu1 %v5086_v36 }
 0x23d   : > { %3805 = vmatpush1.bf16.msra.mxu0 %v5081_v37 }
 0x23e   : > { %3846 = vmatpush1.bf16.msra.mxu1 %v5084_v38  ;;  %3806 = vmatprep.subr.bf16.mxu0 %v5089_v39 }
 0x23f   : > { %3847 = vmatprep.subr.bf16.mxu1 %v5092_v40 }
 0x241   : > { %3807 = vmatpush1.bf16.msra.mxu0 %v5087_v42  ;;  %v3910_v42 = vld [vmem:[%s6330_s19 + $0x8] sm:$0xf] }
 0x242   : > { %3848 = vmatpush1.bf16.msra.mxu1 %v5090_v43  ;;  %3808 = vmatprep.subr.bf16.mxu0 %v5095_v45  ;;  %v3948_v43 = vrot.slane %v3910_v42, %v3915_v44  ;;  %v3956_v44 = vrot.slane %v3910_v42, %v3923_v5 }
 0x243   : > { %3849 = vmatprep.subr.bf16.mxu1 %v5098_v46  ;;  %v3952_v46 = vrot.slane %v3910_v42, %v3919_v48  ;;  %v3960_v48 = vrot.slane %v3910_v42, %v3927_v8 }
 0x245   : > { %3809 = vmatpush1.bf16.msra.mxu0 %v5093_v49 }
 0x246   : > { %3850 = vmatpush1.bf16.msra.mxu1 %v5096_v50  ;;  %3810 = vmatprep.subr.bf16.mxu0 %v5101_v51 }
 0x247   : > { %3851 = vmatprep.subr.bf16.mxu1 %v5104_v52 }
 0x249   : > { %3811 = vmatpush1.bf16.msra.mxu0 %v5099_v53 }
 0x24a   : > { %3852 = vmatpush1.bf16.msra.mxu1 %v5102_v54  ;;  %3812 = vmatprep.subr.bf16.mxu0 %v5107_v55 }
 0x24b   : > { %3853 = vmatprep.subr.bf16.mxu1 %v5110_v56 }
 0x24d   : > { %3813 = vmatpush1.bf16.msra.mxu0 %v5105_v57 }
 0x24e   : > { %3854 = vmatpush1.bf16.msra.mxu1 %v5108_v58  ;;  %3814 = vmatprep.subr.bf16.mxu0 %v5113_v59 }
 0x24f   : > { %3855 = vmatprep.subr.bf16.mxu1 %v5116_v60 }
 0x251   : > { %3815 = vmatpush1.bf16.msra.mxu0 %v5111_v61 }
 0x252   : > { %3856 = vmatpush1.bf16.msra.mxu1 %v5114_v62  ;;  %3816 = vmatprep.subr.bf16.mxu0 %v5119_v63 }
 0x253   : > { %3857 = vmatprep.subr.bf16.mxu1 %v5122_v2 }
 0x255   : > { %3817 = vmatpush1.bf16.msra.mxu0 %v5117_v3 }
 0x256   : > { %3858 = vmatpush1.bf16.msra.mxu1 %v5120_v0  ;;  %3818 = vmatprep.subr.bf16.mxu0 %v5125_v1 }
 0x257   : > { %3859 = vmatprep.subr.bf16.mxu1 %v5128_v4 }
 0x259   : > { %3819 = vmatpush1.bf16.msra.mxu0 %v5123_v6 }
 0x25a   : > { %3860 = vmatpush1.bf16.msra.mxu1 %v5126_v7 }
 0x25c   : > { %3821 = vmatmul.mubr.bf16.vlgmr.msra.gmra.mrb[20].mxu0 %v6093_v10 }
 0x25d   : > { %3862 = vmatmul.mubr.bf16.vlgmr.msra.gmra.mrb[20].mxu1 %v6095_v11 }
 0x26f   : > { %v3576_v14 = vpop.f32.mrb[8].mxu0 }
 0x270   : > { %v3617_v15 = vpop.f32.mrb[8].mxu1  ;;  %v3578_v18 = vpop.f32.mrb[9].mxu0 }
 0x271   : > { %v3618_v17 = vadd.f32 %v3617_v15, %v3576_v14  ;;  %v3619_v19 = vpop.f32.mrb[9].mxu1  ;;  %v3580_v21 = vpop.f32.mrb[10].mxu0 }
 0x272   : > { %v3620_v20 = vadd.f32 %v3619_v19, %v3578_v18  ;;  %v3621_v10 = vpop.f32.mrb[10].mxu1  ;;  %v3581_v11 = vpop.f32.mrb[11].mxu0 }
 0x273   : > { %v3977_v22 = vadd.f32 %v3932_v13, %v3618_v17  ;;  %v3622_v23 = vpop.f32.mrb[11].mxu1 }
 0x274   : > { %v3978_v24 = vadd.f32 %v3936_v16, %v3620_v20 }
 0x275   : > { %3989 = vst [vmem:[%s6355_s24 + $0x20] sm:$0xff] %v3977_v22 }
 0x276   : > { %3990 = vst [vmem:[%s6355_s24 + $0x28] sm:$0xff] %v3978_v24 }
 0x2af   : > { %v3658_v28 = vpop.f32.mrb[12].mxu0 }
 0x2b0   : > { %v3699_v29 = vpop.f32.mrb[12].mxu1  ;;  %v3660_v32 = vpop.f32.mrb[13].mxu0 }
 0x2b1   : > { %v3700_v31 = vadd.f32 %v3699_v29, %v3658_v28  ;;  %v3701_v33 = vpop.f32.mrb[13].mxu1  ;;  %v3662_v35 = vpop.f32.mrb[14].mxu0 }
 0x2b2   : > { %v3702_v34 = vadd.f32 %v3701_v33, %v3660_v32  ;;  %v3703_v36 = vpop.f32.mrb[14].mxu1  ;;  %v3663_v38 = vpop.f32.mrb[15].mxu0 }
 0x2b3   : > { %v3979_v37 = vadd.f32 %v3940_v27, %v3700_v31  ;;  %v3704_v39 = vpop.f32.mrb[15].mxu1 }
 0x2b4   : > { %v3980_v40 = vadd.f32 %v3944_v30, %v3702_v34 }
 0x2b5   : > { %3991 = vst [vmem:[%s6355_s24 + $0x30] sm:$0xff] %v3979_v37 }
 0x2b6   : > { %3992 = vst [vmem:[%s6355_s24 + $0x38] sm:$0xff] %v3980_v40 }
 0x2ef   : > { %v3740_v45 = vpop.f32.mrb[16].mxu0 }
 0x2f0   : > { %v3781_v47 = vpop.f32.mrb[16].mxu1  ;;  %v3742_v50 = vpop.f32.mrb[17].mxu0 }
 0x2f1   : > { %v3782_v49 = vadd.f32 %v3781_v47, %v3740_v45  ;;  %v3783_v51 = vpop.f32.mrb[17].mxu1  ;;  %v3744_v53 = vpop.f32.mrb[18].mxu0 }
 0x2f2   : > { %v3784_v52 = vadd.f32 %v3783_v51, %v3742_v50  ;;  %v3785_v54 = vpop.f32.mrb[18].mxu1  ;;  %v3745_v56 = vpop.f32.mrb[19].mxu0 }
 0x2f3   : > { %v3981_v55 = vadd.f32 %v3948_v43, %v3782_v49  ;;  %v3786_v57 = vpop.f32.mrb[19].mxu1 }
 0x2f4   : > { %v3982_v58 = vadd.f32 %v3952_v46, %v3784_v52 }
 0x2f5   : > { %3993 = vst [vmem:[%s6355_s24 + $0x40] sm:$0xff] %v3981_v55 }
 0x2f6   : > { %3994 = vst [vmem:[%s6355_s24 + $0x48] sm:$0xff] %v3982_v58 }
 0x32f   : > { %v3822_v59 = vpop.f32.mrb[20].mxu0 }
 0x330   : > { %v3863_v60 = vpop.f32.mrb[20].mxu1  ;;  %v3824_v62 = vpop.f32.mrb[21].mxu0 }
 0x331   : > { %v3864_v61 = vadd.f32 %v3863_v60, %v3822_v59  ;;  %v3865_v63 = vpop.f32.mrb[21].mxu1  ;;  %v3826_v3 = vpop.f32.mrb[22].mxu0 }
 0x332   : > { %v3866_v2 = vadd.f32 %v3865_v63, %v3824_v62  ;;  %v3867_v0 = vpop.f32.mrb[22].mxu1  ;;  %v3827_v4 = vpop.f32.mrb[23].mxu0 }
 0x333   : > { %v3983_v1 = vadd.f32 %v3956_v44, %v3864_v61  ;;  %v3868_v6 = vpop.f32.mrb[23].mxu1 }
 0x334   : > { %v3984_v7 = vadd.f32 %v3960_v48, %v3866_v2 }
 0x335   : > { %3995 = vst [vmem:[%s6355_s24 + $0x50] sm:$0xff] %v3983_v1 }
 0x336   : > { %3996 = vst [vmem:[%s6355_s24 + $0x58] sm:$0xff] %v3984_v7 }
 0x337 PF: > { %s13_s16 = sadd.s32 1, %s5167_s16   ;;  %s6521_s12 = smov %s5155_s13 }
 0x338   : > { %p10_p10 = scmp.ge.s32.totalorder %s13_s16, 4   ;;  %s6522_s13 = smov %s5224_s20 }
 0x339   : > { %s6523_s14 = smov %s5163_s15  ;;  %s6524_s15 = smov %s6526_s17 }
 0x33a   :  { %12 = sbr.rel (!%p10_p10) target bundleno = 3 (0x3), region = 105 }

</bundles_post_ra>
